<compile_context>
chip_gen: v7x
topology: tpu7x:2x2x1
jax: 0.10.0
libtpu: 0.0.40
codegen_flags: <defaults>
</compile_context>

<pallas_src>
import functools

import jax
import jax.numpy as jnp
from jax.experimental import pallas as pl
from jax.experimental.pallas import tpu as pltpu


# ----------------------------------------------------------------------------
# helpers
# ----------------------------------------------------------------------------
def _round_up(x, m):
    return (x + m - 1) // m * m


def _pick_time_block(T, max_tt=32):
    """Time-block size: divides T, multiple of 8 (layout rule) when blocking."""
    if T <= max_tt:
        return T
    for tt in range(max_tt, 7, -8):          # 32, 24, 16, 8
        if T % tt == 0:
            return tt
    return T                                  # fallback: single big time block


def _pick_batch_block(Bp):
    """Split padded batch into 2 blocks when large enough (v7x megacore)."""
    if Bp >= 16 and Bp % 16 == 0:
        return Bp // 2
    return Bp


def _pad_gate_weight(w, H, Hp, in_dim, in_pad):
    """(4H, in_dim) torch-layout gate weight -> zero-padded (4Hp, in_pad)."""
    w = jnp.asarray(w, jnp.float32).reshape(4, H, in_dim)
    wp = jnp.zeros((4, Hp, in_pad), jnp.float32).at[:, :H, :in_dim].set(w)
    return wp.reshape(4 * Hp, in_pad)


def _pad_gate_bias(b, H, Hp):
    b = jnp.asarray(b, jnp.float32).reshape(4, H)
    bp = jnp.zeros((4, Hp), jnp.float32).at[:, :H].set(b)
    return bp.reshape(4 * Hp)


# ----------------------------------------------------------------------------
# Fused 2-layer LSTM recurrence kernel.
#   grid = (batch_blocks [parallel], time_blocks [arbitrary/sequential])
#   gx0      : precomputed layer-0 input gates (x @ W_ih0^T + b0), (Bp, T, 4Hp)
#   h0/c0    : initial hidden/cell state, (2, Bp, Hp)
#   weights  : W_hh0^T, W_ih1^T, W_hh1^T (Hp, 4Hp); b1 (1, 4Hp)
#   out      : layer-1 hidden per step (Bp, T, Hp); hn/cn (2, Bp, Hp)
#   scratch  : h/c carry for both layers, (2, BB, Hp) f32
# Gate order follows PyTorch: i, f, g, o.
# ----------------------------------------------------------------------------
def _decoder_lstm_kernel(gx0_ref, h0_ref, c0_ref,
                         whh0_ref, wih1_ref, whh1_ref, b1_ref,
                         out_ref, hn_ref, cn_ref,
                         h_scr, c_scr, *, hp, tt):
    tb = pl.program_id(1)

    @pl.when(tb == 0)
    def _():
        h_scr[...] = h0_ref[...].astype(jnp.float32)
        c_scr[...] = c0_ref[...].astype(jnp.float32)

    # Carries held in registers across the unrolled time block.
    h0 = h_scr[0]
    c0 = c_scr[0]
    h1 = h_scr[1]
    c1 = c_scr[1]

    # Hoist resident weight loads out of the unrolled loop.
    whh0 = whh0_ref[...]
    wih1 = wih1_ref[...]
    whh1 = whh1_ref[...]
    b1 = b1_ref[...]

    def gate_act(g):
        i_g = jax.nn.sigmoid(g[:, 0 * hp:1 * hp])
        f_g = jax.nn.sigmoid(g[:, 1 * hp:2 * hp])
        g_g = jnp.tanh(g[:, 2 * hp:3 * hp])
        o_g = jax.nn.sigmoid(g[:, 3 * hp:4 * hp])
        return i_g, f_g, g_g, o_g

    for i in range(tt):  # tt is a compile-time constant -> fully unrolled
        # ---- layer 0: input projection already hoisted; only h @ W_hh ----
        g0 = gx0_ref[:, i, :] + jnp.dot(h0, whh0,
                                        preferred_element_type=jnp.float32)
        i0, f0, gg0, o0 = gate_act(g0)
        c0 = f0 * c0 + i0 * gg0
        h0 = o0 * jnp.tanh(c0)

        # ---- layer 1: fused, consumes layer-0's fresh h ----
        g1 = (jnp.dot(h0, wih1, preferred_element_type=jnp.float32)
              + jnp.dot(h1, whh1, preferred_element_type=jnp.float32)
              + b1)
        i1, f1, gg1, o1 = gate_act(g1)
        c1 = f1 * c1 + i1 * gg1
        h1 = o1 * jnp.tanh(c1)

        out_ref[:, i, :] = h1.astype(out_ref.dtype)

    # Persist carries for the next time block.
    h_scr[0] = h0
    c_scr[0] = c0
    h_scr[1] = h1
    c_scr[1] = c1

    @pl.when(tb == pl.num_programs(1) - 1)
    def _():
        hn_ref[0] = h0.astype(hn_ref.dtype)
        hn_ref[1] = h1.astype(hn_ref.dtype)
        cn_ref[0] = c0.astype(cn_ref.dtype)
        cn_ref[1] = c1.astype(cn_ref.dtype)


def _decoder_lstm(gx0, h0p, c0p, whh0_t, wih1_t, whh1_t, b1,
                  *, Bp, T, Hp, BB, Tt):
    nb = Bp // BB
    nt = T // Tt
    kernel = functools.partial(_decoder_lstm_kernel, hp=Hp, tt=Tt)

    out, hn, cn = pl.pallas_call(
        kernel,
        out_shape=(
            jax.ShapeDtypeStruct((Bp, T, Hp), jnp.float32),
            jax.ShapeDtypeStruct((2, Bp, Hp), jnp.float32),
            jax.ShapeDtypeStruct((2, Bp, Hp), jnp.float32),
        ),
        grid_spec=pltpu.PrefetchScalarGridSpec(
            num_scalar_prefetch=0,
            grid=(nb, nt),
            in_specs=[
                pl.BlockSpec((BB, Tt, 4 * Hp), lambda bb, tb: (bb, tb, 0)),  # gx0
                pl.BlockSpec((2, BB, Hp), lambda bb, tb: (0, bb, 0)),        # h0
                pl.BlockSpec((2, BB, Hp), lambda bb, tb: (0, bb, 0)),        # c0
                pl.BlockSpec((Hp, 4 * Hp), lambda bb, tb: (0, 0)),           # W_hh0^T
                pl.BlockSpec((Hp, 4 * Hp), lambda bb, tb: (0, 0)),           # W_ih1^T
                pl.BlockSpec((Hp, 4 * Hp), lambda bb, tb: (0, 0)),           # W_hh1^T
                pl.BlockSpec((1, 4 * Hp), lambda bb, tb: (0, 0)),            # b1
            ],
            out_specs=[
                pl.BlockSpec((BB, Tt, Hp), lambda bb, tb: (bb, tb, 0)),      # output
                pl.BlockSpec((2, BB, Hp), lambda bb, tb: (0, bb, 0)),        # h_n
                pl.BlockSpec((2, BB, Hp), lambda bb, tb: (0, bb, 0)),        # c_n
            ],
            scratch_shapes=[
                pltpu.VMEM((2, BB, Hp), jnp.float32),   # h carry (both layers)
                pltpu.VMEM((2, BB, Hp), jnp.float32),   # c carry (both layers)
            ],
        ),
        compiler_params=pltpu.CompilerParams(
            # batch blocks are independent (megacore); time is the recurrence
            # and must stay sequential.
            dimension_semantics=("parallel", "arbitrary"),
            vmem_limit_bytes=32 * 1024 * 1024,
        ),
    )(gx0, h0p, c0p, whh0_t, wih1_t, whh1_t, b1)
    return out, hn, cn


# ----------------------------------------------------------------------------
# Public forward: matches torch's Decoder.forward(x, hidden).
# ----------------------------------------------------------------------------
def decoder_forward(x, hidden, params):
    """x: (B, T, E) batch_first.  hidden = (h_0, c_0), each (2, B, H).
    Returns (output (B, T, H), (h_n (2, B, H), c_n (2, B, H)))."""
    h0, c0 = hidden
    B, T, E = x.shape
    H = params["w_hh_l0"].shape[1]

    Hp = _round_up(H, 128)    # lane-aligned gate blocks / dense stores
    Bp = _round_up(B, 8)      # full sublanes
    Tt = _pick_time_block(T)
    BB = _pick_batch_block(Bp)

    # ---- weight prep: scatter each gate block into an Hp-wide padded slot ----
    wih0_t = _pad_gate_weight(params["w_ih_l0"], H, Hp, E, E).T      # (E,  4Hp)
    whh0_t = _pad_gate_weight(params["w_hh_l0"], H, Hp, H, Hp).T     # (Hp, 4Hp)
    wih1_t = _pad_gate_weight(params["w_ih_l1"], H, Hp, H, Hp).T     # (Hp, 4Hp)
    whh1_t = _pad_gate_weight(params["w_hh_l1"], H, Hp, H, Hp).T     # (Hp, 4Hp)
    b0 = _pad_gate_bias(params["b_ih_l0"] + params["b_hh_l0"], H, Hp)          # (4Hp,)
    b1 = _pad_gate_bias(params["b_ih_l1"] + params["b_hh_l1"], H, Hp)[None, :]  # (1,4Hp)

    # ---- hoisted layer-0 input projection: one big (B*T, E) x (E, 4Hp) matmul ----
    x2d = jnp.asarray(x, jnp.float32).reshape(B * T, E)
    gx0 = (x2d @ wih0_t + b0[None, :]).reshape(B, T, 4 * Hp)
    gx0 = jnp.pad(gx0, ((0, Bp - B), (0, 0), (0, 0)))

    # ---- padded initial state (padded lanes zero -> stay zero in the carry) ----
    h0p = jnp.pad(jnp.asarray(h0, jnp.float32), ((0, 0), (0, Bp - B), (0, Hp - H)))
    c0p = jnp.pad(jnp.asarray(c0, jnp.float32), ((0, 0), (0, Bp - B), (0, Hp - H)))

    out_p, hn_p, cn_p = _decoder_lstm(gx0, h0p, c0p, whh0_t, wih1_t, whh1_t, b1,
                                      Bp=Bp, T=T, Hp=Hp, BB=BB, Tt=Tt)

    output = out_p[:B, :, :H]
    h_n = hn_p[:, :B, :H]
    c_n = cn_p[:, :B, :H]
    return output, (h_n, c_n)


# ----------------------------------------------------------------------------
# Pure-JAX reference (lax.scan) for correctness checking.
# ----------------------------------------------------------------------------
def _ref_layer(x_tm, h0, c0, w_ih, w_hh, b_ih, b_hh):
    H = w_hh.shape[1]

    def step(carry, x_t):
        h, c = carry
        gates = x_t @ w_ih.T + h @ w_hh.T + b_ih + b_hh
        i = jax.nn.sigmoid(gates[:, 0 * H:1 * H])
        f = jax.nn.sigmoid(gates[:, 1 * H:2 * H])
        g = jnp.tanh(gates[:, 2 * H:3 * H])
        o = jax.nn.sigmoid(gates[:, 3 * H:4 * H])
        c_new = f * c + i * g
        h_new = o * jnp.tanh(c_new)
        return (h_new, c_new), h_new

    (h_n, c_n), out = jax.lax.scan(step, (h0, c0), x_tm)
    return out, h_n, c_n


def decoder_forward_ref(x, hidden, params):
    h0, c0 = hidden
    x_tm = jnp.transpose(x, (1, 0, 2))
    out0, hn0, cn0 = _ref_layer(x_tm, h0[0], c0[0],
                                params["w_ih_l0"], params["w_hh_l0"],
                                params["b_ih_l0"], params["b_hh_l0"])
    out1, hn1, cn1 = _ref_layer(out0, h0[1], c0[1],
                                params["w_ih_l1"], params["w_hh_l1"],
                                params["b_ih_l1"], params["b_hh_l1"])
    return (jnp.transpose(out1, (1, 0, 2)),
            (jnp.stack([hn0, hn1]), jnp.stack([cn0, cn1])))


# ----------------------------------------------------------------------------
# Deterministic parameter init (torch.nn.LSTM default: U(-k, k), k=1/sqrt(H)).
# Shapes per torch: w_ih_l0 (4H,E), w_hh_l0 (4H,H), w_ih_l1 (4H,H),
# w_hh_l1 (4H,H), biases (4H,).
# ----------------------------------------------------------------------------
def init_params(key, embedding_dim, hidden_dim):
    k = 1.0 / jnp.sqrt(jnp.float32(hidden_dim))
    keys = jax.random.split(key, 8)

    def u(kk, shape):
        return jax.random.uniform(kk, shape, jnp.float32, minval=-k, maxval=k)

    H, E = hidden_dim, embedding_dim
    return {
        "w_ih_l0": u(keys[0], (4 * H, E)),
        "w_hh_l0": u(keys[1], (4 * H, H)),
        "b_ih_l0": u(keys[2], (4 * H,)),
        "b_hh_l0": u(keys[3], (4 * H,)),
        "w_ih_l1": u(keys[4], (4 * H, H)),
        "w_hh_l1": u(keys[5], (4 * H, H)),
        "b_ih_l1": u(keys[6], (4 * H,)),
        "b_hh_l1": u(keys[7], (4 * H,)),
    }


if __name__ == "__main__":
    B, T, E, H = 2, 8, 16, 32

    key = jax.random.PRNGKey(0)
    k_x, k_h, k_c, k_p = jax.random.split(key, 4)
    x = jax.random.normal(k_x, (B, T, E), jnp.float32)
    h0 = 0.1 * jax.random.normal(k_h, (2, B, H), jnp.float32)
    c0 = 0.1 * jax.random.normal(k_c, (2, B, H), jnp.float32)
    params = init_params(k_p, E, H)

    output, (h_n, c_n) = decoder_forward(x, (h0, c0), params)
    jax.block_until_ready((output, h_n, c_n))

    # Correctness check against pure-JAX reference.
    out_ref, (h_ref, c_ref) = decoder_forward_ref(x, (h0, c0), params)
    assert output.shape == (B, T, H)
    assert h_n.shape == (2, B, H) and c_n.shape == (2, B, H)
    assert jnp.allclose(output, out_ref, atol=1e-4, rtol=1e-4)
    assert jnp.allclose(h_n, h_ref, atol=1e-4, rtol=1e-4)
    assert jnp.allclose(c_n, c_ref, atol=1e-4, rtol=1e-4)

    print("KERNEL_OK")
</pallas_src>

<mosaic_0001>
module attributes {stable_mosaic.version = 11 : i64} {
  func.func @_decoder_lstm_kernel(%arg0: i32, %arg1: i32, %arg2: memref<8x8x512xf32, #tpu.memory_space<vmem>>, %arg3: memref<2x8x128xf32, #tpu.memory_space<vmem>>, %arg4: memref<2x8x128xf32, #tpu.memory_space<vmem>>, %arg5: memref<128x512xf32, #tpu.memory_space<vmem>>, %arg6: memref<128x512xf32, #tpu.memory_space<vmem>>, %arg7: memref<128x512xf32, #tpu.memory_space<vmem>>, %arg8: memref<1x512xf32, #tpu.memory_space<vmem>>, %arg9: memref<8x8x128xf32, #tpu.memory_space<vmem>>, %arg10: memref<2x8x128xf32, #tpu.memory_space<vmem>>, %arg11: memref<2x8x128xf32, #tpu.memory_space<vmem>>, %arg12: memref<2x8x128xf32, #tpu.memory_space<vmem>>, %arg13: memref<2x8x128xf32, #tpu.memory_space<vmem>>) attributes {dimension_semantics = [#tpu.dimension_semantics<parallel>, #tpu.dimension_semantics<arbitrary>], iteration_bounds = array<i64: 1, 1>, scalar_prefetch = 0 : i64, scratch_operands = 2 : i64, tpu.core_type = #tpu.core_type<tc>, window_params = [{transform_indices = @transform_0, window_bounds = array<i64: 8, 8, 512>}, {transform_indices = @transform_1, window_bounds = array<i64: 2, 8, 128>}, {transform_indices = @transform_2, window_bounds = array<i64: 2, 8, 128>}, {pipeline_mode = #tpu.pipeline_mode<synchronous>, transform_indices = @transform_3, window_bounds = array<i64: 128, 512>}, {pipeline_mode = #tpu.pipeline_mode<synchronous>, transform_indices = @transform_4, window_bounds = array<i64: 128, 512>}, {pipeline_mode = #tpu.pipeline_mode<synchronous>, transform_indices = @transform_5, window_bounds = array<i64: 128, 512>}, {pipeline_mode = #tpu.pipeline_mode<synchronous>, transform_indices = @transform_6, window_bounds = array<i64: 1, 512>}, {transform_indices = @transform_7, window_bounds = array<i64: 8, 8, 128>}, {transform_indices = @transform_8, window_bounds = array<i64: 2, 8, 128>}, {transform_indices = @transform_9, window_bounds = array<i64: 2, 8, 128>}]} {
    %c0_i32 = arith.constant 0 : i32
    %0 = arith.cmpi eq, %arg1, %c0_i32 : i32
    %1 = arith.extui %0 : i1 to i32
    %c0_i32_0 = arith.constant 0 : i32
    %2 = arith.cmpi ne, %1, %c0_i32_0 : i32
    scf.if %2 {
      %c0_146 = arith.constant 0 : index
      %c0_147 = arith.constant 0 : index
      %c0_148 = arith.constant 0 : index
      %526 = vector.load %arg3[%c0_146, %c0_147, %c0_148] : memref<2x8x128xf32, #tpu.memory_space<vmem>>, vector<2x8x128xf32>
      %c0_149 = arith.constant 0 : index
      %c0_150 = arith.constant 0 : index
      %c0_151 = arith.constant 0 : index
      %527 = vector.load %arg12[%c0_149, %c0_150, %c0_151] : memref<2x8x128xf32, #tpu.memory_space<vmem>>, vector<2x8x128xf32>
      tpu.vector_store %arg12[%c0_149, %c0_150, %c0_151], %526 {strides = array<i32>} : memref<2x8x128xf32, #tpu.memory_space<vmem>>, vector<2x8x128xf32>,
      %c0_152 = arith.constant 0 : index
      %c0_153 = arith.constant 0 : index
      %c0_154 = arith.constant 0 : index
      %528 = vector.load %arg4[%c0_152, %c0_153, %c0_154] : memref<2x8x128xf32, #tpu.memory_space<vmem>>, vector<2x8x128xf32>
      %c0_155 = arith.constant 0 : index
      %c0_156 = arith.constant 0 : index
      %c0_157 = arith.constant 0 : index
      %529 = vector.load %arg13[%c0_155, %c0_156, %c0_157] : memref<2x8x128xf32, #tpu.memory_space<vmem>>, vector<2x8x128xf32>
      tpu.vector_store %arg13[%c0_155, %c0_156, %c0_157], %528 {strides = array<i32>} : memref<2x8x128xf32, #tpu.memory_space<vmem>>, vector<2x8x128xf32>,
    } else {
    }
    %c0 = arith.constant 0 : index
    %c0_1 = arith.constant 0 : index
    %c0_2 = arith.constant 0 : index
    %3 = vector.load %arg12[%c0, %c0_1, %c0_2] : memref<2x8x128xf32, #tpu.memory_space<vmem>>, vector<1x8x128xf32>
    %4 = vector.shape_cast %3 : vector<1x8x128xf32> to vector<8x128xf32>
    %c0_3 = arith.constant 0 : index
    %c0_4 = arith.constant 0 : index
    %c0_5 = arith.constant 0 : index
    %5 = vector.load %arg13[%c0_3, %c0_4, %c0_5] : memref<2x8x128xf32, #tpu.memory_space<vmem>>, vector<1x8x128xf32>
    %6 = vector.shape_cast %5 : vector<1x8x128xf32> to vector<8x128xf32>
    %c1 = arith.constant 1 : index
    %c0_6 = arith.constant 0 : index
    %c0_7 = arith.constant 0 : index
    %7 = vector.load %arg12[%c1, %c0_6, %c0_7] : memref<2x8x128xf32, #tpu.memory_space<vmem>>, vector<1x8x128xf32>
    %8 = vector.shape_cast %7 : vector<1x8x128xf32> to vector<8x128xf32>
    %c1_8 = arith.constant 1 : index
    %c0_9 = arith.constant 0 : index
    %c0_10 = arith.constant 0 : index
    %9 = vector.load %arg13[%c1_8, %c0_9, %c0_10] : memref<2x8x128xf32, #tpu.memory_space<vmem>>, vector<1x8x128xf32>
    %10 = vector.shape_cast %9 : vector<1x8x128xf32> to vector<8x128xf32>
    %c0_11 = arith.constant 0 : index
    %c0_12 = arith.constant 0 : index
    %11 = vector.load %arg5[%c0_11, %c0_12] : memref<128x512xf32, #tpu.memory_space<vmem>>, vector<128x512xf32>
    %c0_13 = arith.constant 0 : index
    %c0_14 = arith.constant 0 : index
    %12 = vector.load %arg6[%c0_13, %c0_14] : memref<128x512xf32, #tpu.memory_space<vmem>>, vector<128x512xf32>
    %c0_15 = arith.constant 0 : index
    %c0_16 = arith.constant 0 : index
    %13 = vector.load %arg7[%c0_15, %c0_16] : memref<128x512xf32, #tpu.memory_space<vmem>>, vector<128x512xf32>
    %c0_17 = arith.constant 0 : index
    %c0_18 = arith.constant 0 : index
    %14 = vector.load %arg8[%c0_17, %c0_18] : memref<1x512xf32, #tpu.memory_space<vmem>>, vector<1x512xf32>
    %c0_19 = arith.constant 0 : index
    %c0_20 = arith.constant 0 : index
    %c0_21 = arith.constant 0 : index
    %15 = vector.load %arg2[%c0_19, %c0_20, %c0_21] : memref<8x8x512xf32, #tpu.memory_space<vmem>>, vector<8x1x512xf32>
    %16 = vector.shape_cast %15 : vector<8x1x512xf32> to vector<8x512xf32>
    %cst = arith.constant dense<0.000000e+00> : vector<8x512xf32>
    %17 = tpu.matmul %4, %11, %cst {dimension_numbers = #tpu.dot_dimension_numbers<[1], [0], [0], [1], [0, 0, 1, 1], [], []>} : vector<8x128xf32>, vector<128x512xf32>, vector<8x512xf32> -> vector<8x512xf32>
    %18 = arith.addf %16, %17 : vector<8x512xf32>
    %19 = vector.extract_strided_slice %18 {offsets = [0, 0], sizes = [8, 128], strides = [1, 1]} : vector<8x512xf32> to vector<8x128xf32>
    %20 = arith.negf %19 : vector<8x128xf32>
    %21 = math.exp %20 : vector<8x128xf32>
    %cst_22 = arith.constant 1.000000e+00 : f32
    %22 = vector.broadcast %cst_22 : f32 to vector<8x128xf32>
    %23 = arith.addf %22, %21 : vector<8x128xf32>
    %24 = arith.divf %22, %23 : vector<8x128xf32>
    %25 = vector.extract_strided_slice %18 {offsets = [0, 128], sizes = [8, 128], strides = [1, 1]} : vector<8x512xf32> to vector<8x128xf32>
    %26 = arith.negf %25 : vector<8x128xf32>
    %27 = math.exp %26 : vector<8x128xf32>
    %cst_23 = arith.constant 1.000000e+00 : f32
    %28 = vector.broadcast %cst_23 : f32 to vector<8x128xf32>
    %29 = arith.addf %28, %27 : vector<8x128xf32>
    %30 = arith.divf %28, %29 : vector<8x128xf32>
    %31 = vector.extract_strided_slice %18 {offsets = [0, 256], sizes = [8, 128], strides = [1, 1]} : vector<8x512xf32> to vector<8x128xf32>
    %32 = math.tanh %31 : vector<8x128xf32>
    %33 = vector.extract_strided_slice %18 {offsets = [0, 384], sizes = [8, 128], strides = [1, 1]} : vector<8x512xf32> to vector<8x128xf32>
    %34 = arith.negf %33 : vector<8x128xf32>
    %35 = math.exp %34 : vector<8x128xf32>
    %cst_24 = arith.constant 1.000000e+00 : f32
    %36 = vector.broadcast %cst_24 : f32 to vector<8x128xf32>
    %37 = arith.addf %36, %35 : vector<8x128xf32>
    %38 = arith.divf %36, %37 : vector<8x128xf32>
    %39 = arith.mulf %30, %6 : vector<8x128xf32>
    %40 = arith.mulf %24, %32 : vector<8x128xf32>
    %41 = arith.addf %39, %40 : vector<8x128xf32>
    %42 = math.tanh %41 : vector<8x128xf32>
    %43 = arith.mulf %38, %42 : vector<8x128xf32>
    %cst_25 = arith.constant dense<0.000000e+00> : vector<8x512xf32>
    %44 = tpu.matmul %43, %12, %cst_25 {dimension_numbers = #tpu.dot_dimension_numbers<[1], [0], [0], [1], [0, 0, 1, 1], [], []>} : vector<8x128xf32>, vector<128x512xf32>, vector<8x512xf32> -> vector<8x512xf32>
    %cst_26 = arith.constant dense<0.000000e+00> : vector<8x512xf32>
    %45 = tpu.matmul %8, %13, %cst_26 {dimension_numbers = #tpu.dot_dimension_numbers<[1], [0], [0], [1], [0, 0, 1, 1], [], []>} : vector<8x128xf32>, vector<128x512xf32>, vector<8x512xf32> -> vector<8x512xf32>
    %46 = arith.addf %44, %45 : vector<8x512xf32>
    %47 = vector.broadcast %14 : vector<1x512xf32> to vector<8x512xf32>
    %48 = arith.addf %46, %47 : vector<8x512xf32>
    %49 = vector.extract_strided_slice %48 {offsets = [0, 0], sizes = [8, 128], strides = [1, 1]} : vector<8x512xf32> to vector<8x128xf32>
    %50 = arith.negf %49 : vector<8x128xf32>
    %51 = math.exp %50 : vector<8x128xf32>
    %cst_27 = arith.constant 1.000000e+00 : f32
    %52 = vector.broadcast %cst_27 : f32 to vector<8x128xf32>
    %53 = arith.addf %52, %51 : vector<8x128xf32>
    %54 = arith.divf %52, %53 : vector<8x128xf32>
    %55 = vector.extract_strided_slice %48 {offsets = [0, 128], sizes = [8, 128], strides = [1, 1]} : vector<8x512xf32> to vector<8x128xf32>
    %56 = arith.negf %55 : vector<8x128xf32>
    %57 = math.exp %56 : vector<8x128xf32>
    %cst_28 = arith.constant 1.000000e+00 : f32
    %58 = vector.broadcast %cst_28 : f32 to vector<8x128xf32>
    %59 = arith.addf %58, %57 : vector<8x128xf32>
    %60 = arith.divf %58, %59 : vector<8x128xf32>
    %61 = vector.extract_strided_slice %48 {offsets = [0, 256], sizes = [8, 128], strides = [1, 1]} : vector<8x512xf32> to vector<8x128xf32>
    %62 = math.tanh %61 : vector<8x128xf32>
    %63 = vector.extract_strided_slice %48 {offsets = [0, 384], sizes = [8, 128], strides = [1, 1]} : vector<8x512xf32> to vector<8x128xf32>
    %64 = arith.negf %63 : vector<8x128xf32>
    %65 = math.exp %64 : vector<8x128xf32>
    %cst_29 = arith.constant 1.000000e+00 : f32
    %66 = vector.broadcast %cst_29 : f32 to vector<8x128xf32>
    %67 = arith.addf %66, %65 : vector<8x128xf32>
    %68 = arith.divf %66, %67 : vector<8x128xf32>
    %69 = arith.mulf %60, %10 : vector<8x128xf32>
    %70 = arith.mulf %54, %62 : vector<8x128xf32>
    %71 = arith.addf %69, %70 : vector<8x128xf32>
    %72 = math.tanh %71 : vector<8x128xf32>
    %73 = arith.mulf %68, %72 : vector<8x128xf32>
    %c0_30 = arith.constant 0 : index
    %c0_31 = arith.constant 0 : index
    %c0_32 = arith.constant 0 : index
    %74 = vector.load %arg9[%c0_30, %c0_31, %c0_32] : memref<8x8x128xf32, #tpu.memory_space<vmem>>, vector<8x1x128xf32>
    %75 = vector.shape_cast %74 : vector<8x1x128xf32> to vector<8x128xf32>
    %76 = vector.shape_cast %73 : vector<8x128xf32> to vector<8x1x128xf32>
    tpu.vector_store %arg9[%c0_30, %c0_31, %c0_32], %76 {strides = array<i32>} : memref<8x8x128xf32, #tpu.memory_space<vmem>>, vector<8x1x128xf32>,
    %c0_33 = arith.constant 0 : index
    %c1_34 = arith.constant 1 : index
    %c0_35 = arith.constant 0 : index
    %77 = vector.load %arg2[%c0_33, %c1_34, %c0_35] : memref<8x8x512xf32, #tpu.memory_space<vmem>>, vector<8x1x512xf32>
    %78 = vector.shape_cast %77 : vector<8x1x512xf32> to vector<8x512xf32>
    %cst_36 = arith.constant dense<0.000000e+00> : vector<8x512xf32>
    %79 = tpu.matmul %43, %11, %cst_36 {dimension_numbers = #tpu.dot_dimension_numbers<[1], [0], [0], [1], [0, 0, 1, 1], [], []>} : vector<8x128xf32>, vector<128x512xf32>, vector<8x512xf32> -> vector<8x512xf32>
    %80 = arith.addf %78, %79 : vector<8x512xf32>
    %81 = vector.extract_strided_slice %80 {offsets = [0, 0], sizes = [8, 128], strides = [1, 1]} : vector<8x512xf32> to vector<8x128xf32>
    %82 = arith.negf %81 : vector<8x128xf32>
    %83 = math.exp %82 : vector<8x128xf32>
    %cst_37 = arith.constant 1.000000e+00 : f32
    %84 = vector.broadcast %cst_37 : f32 to vector<8x128xf32>
    %85 = arith.addf %84, %83 : vector<8x128xf32>
    %86 = arith.divf %84, %85 : vector<8x128xf32>
    %87 = vector.extract_strided_slice %80 {offsets = [0, 128], sizes = [8, 128], strides = [1, 1]} : vector<8x512xf32> to vector<8x128xf32>
    %88 = arith.negf %87 : vector<8x128xf32>
    %89 = math.exp %88 : vector<8x128xf32>
    %cst_38 = arith.constant 1.000000e+00 : f32
    %90 = vector.broadcast %cst_38 : f32 to vector<8x128xf32>
    %91 = arith.addf %90, %89 : vector<8x128xf32>
    %92 = arith.divf %90, %91 : vector<8x128xf32>
    %93 = vector.extract_strided_slice %80 {offsets = [0, 256], sizes = [8, 128], strides = [1, 1]} : vector<8x512xf32> to vector<8x128xf32>
    %94 = math.tanh %93 : vector<8x128xf32>
    %95 = vector.extract_strided_slice %80 {offsets = [0, 384], sizes = [8, 128], strides = [1, 1]} : vector<8x512xf32> to vector<8x128xf32>
    %96 = arith.negf %95 : vector<8x128xf32>
    %97 = math.exp %96 : vector<8x128xf32>
    %cst_39 = arith.constant 1.000000e+00 : f32
    %98 = vector.broadcast %cst_39 : f32 to vector<8x128xf32>
    %99 = arith.addf %98, %97 : vector<8x128xf32>
    %100 = arith.divf %98, %99 : vector<8x128xf32>
    %101 = arith.mulf %92, %41 : vector<8x128xf32>
    %102 = arith.mulf %86, %94 : vector<8x128xf32>
    %103 = arith.addf %101, %102 : vector<8x128xf32>
    %104 = math.tanh %103 : vector<8x128xf32>
    %105 = arith.mulf %100, %104 : vector<8x128xf32>
    %cst_40 = arith.constant dense<0.000000e+00> : vector<8x512xf32>
    %106 = tpu.matmul %105, %12, %cst_40 {dimension_numbers = #tpu.dot_dimension_numbers<[1], [0], [0], [1], [0, 0, 1, 1], [], []>} : vector<8x128xf32>, vector<128x512xf32>, vector<8x512xf32> -> vector<8x512xf32>
    %cst_41 = arith.constant dense<0.000000e+00> : vector<8x512xf32>
    %107 = tpu.matmul %73, %13, %cst_41 {dimension_numbers = #tpu.dot_dimension_numbers<[1], [0], [0], [1], [0, 0, 1, 1], [], []>} : vector<8x128xf32>, vector<128x512xf32>, vector<8x512xf32> -> vector<8x512xf32>
    %108 = arith.addf %106, %107 : vector<8x512xf32>
    %109 = vector.broadcast %14 : vector<1x512xf32> to vector<8x512xf32>
    %110 = arith.addf %108, %109 : vector<8x512xf32>
    %111 = vector.extract_strided_slice %110 {offsets = [0, 0], sizes = [8, 128], strides = [1, 1]} : vector<8x512xf32> to vector<8x128xf32>
    %112 = arith.negf %111 : vector<8x128xf32>
    %113 = math.exp %112 : vector<8x128xf32>
    %cst_42 = arith.constant 1.000000e+00 : f32
    %114 = vector.broadcast %cst_42 : f32 to vector<8x128xf32>
    %115 = arith.addf %114, %113 : vector<8x128xf32>
    %116 = arith.divf %114, %115 : vector<8x128xf32>
    %117 = vector.extract_strided_slice %110 {offsets = [0, 128], sizes = [8, 128], strides = [1, 1]} : vector<8x512xf32> to vector<8x128xf32>
    %118 = arith.negf %117 : vector<8x128xf32>
    %119 = math.exp %118 : vector<8x128xf32>
    %cst_43 = arith.constant 1.000000e+00 : f32
    %120 = vector.broadcast %cst_43 : f32 to vector<8x128xf32>
    %121 = arith.addf %120, %119 : vector<8x128xf32>
    %122 = arith.divf %120, %121 : vector<8x128xf32>
    %123 = vector.extract_strided_slice %110 {offsets = [0, 256], sizes = [8, 128], strides = [1, 1]} : vector<8x512xf32> to vector<8x128xf32>
    %124 = math.tanh %123 : vector<8x128xf32>
    %125 = vector.extract_strided_slice %110 {offsets = [0, 384], sizes = [8, 128], strides = [1, 1]} : vector<8x512xf32> to vector<8x128xf32>
    %126 = arith.negf %125 : vector<8x128xf32>
    %127 = math.exp %126 : vector<8x128xf32>
    %cst_44 = arith.constant 1.000000e+00 : f32
    %128 = vector.broadcast %cst_44 : f32 to vector<8x128xf32>
    %129 = arith.addf %128, %127 : vector<8x128xf32>
    %130 = arith.divf %128, %129 : vector<8x128xf32>
    %131 = arith.mulf %122, %71 : vector<8x128xf32>
    %132 = arith.mulf %116, %124 : vector<8x128xf32>
    %133 = arith.addf %131, %132 : vector<8x128xf32>
    %134 = math.tanh %133 : vector<8x128xf32>
    %135 = arith.mulf %130, %134 : vector<8x128xf32>
    %c0_45 = arith.constant 0 : index
    %c1_46 = arith.constant 1 : index
    %c0_47 = arith.constant 0 : index
    %136 = vector.load %arg9[%c0_45, %c1_46, %c0_47] : memref<8x8x128xf32, #tpu.memory_space<vmem>>, vector<8x1x128xf32>
    %137 = vector.shape_cast %136 : vector<8x1x128xf32> to vector<8x128xf32>
    %138 = vector.shape_cast %135 : vector<8x128xf32> to vector<8x1x128xf32>
    tpu.vector_store %arg9[%c0_45, %c1_46, %c0_47], %138 {strides = array<i32>} : memref<8x8x128xf32, #tpu.memory_space<vmem>>, vector<8x1x128xf32>,
    %c0_48 = arith.constant 0 : index
    %c2 = arith.constant 2 : index
    %c0_49 = arith.constant 0 : index
    %139 = vector.load %arg2[%c0_48, %c2, %c0_49] : memref<8x8x512xf32, #tpu.memory_space<vmem>>, vector<8x1x512xf32>
    %140 = vector.shape_cast %139 : vector<8x1x512xf32> to vector<8x512xf32>
    %cst_50 = arith.constant dense<0.000000e+00> : vector<8x512xf32>
    %141 = tpu.matmul %105, %11, %cst_50 {dimension_numbers = #tpu.dot_dimension_numbers<[1], [0], [0], [1], [0, 0, 1, 1], [], []>} : vector<8x128xf32>, vector<128x512xf32>, vector<8x512xf32> -> vector<8x512xf32>
    %142 = arith.addf %140, %141 : vector<8x512xf32>
    %143 = vector.extract_strided_slice %142 {offsets = [0, 0], sizes = [8, 128], strides = [1, 1]} : vector<8x512xf32> to vector<8x128xf32>
    %144 = arith.negf %143 : vector<8x128xf32>
    %145 = math.exp %144 : vector<8x128xf32>
    %cst_51 = arith.constant 1.000000e+00 : f32
    %146 = vector.broadcast %cst_51 : f32 to vector<8x128xf32>
    %147 = arith.addf %146, %145 : vector<8x128xf32>
    %148 = arith.divf %146, %147 : vector<8x128xf32>
    %149 = vector.extract_strided_slice %142 {offsets = [0, 128], sizes = [8, 128], strides = [1, 1]} : vector<8x512xf32> to vector<8x128xf32>
    %150 = arith.negf %149 : vector<8x128xf32>
    %151 = math.exp %150 : vector<8x128xf32>
    %cst_52 = arith.constant 1.000000e+00 : f32
    %152 = vector.broadcast %cst_52 : f32 to vector<8x128xf32>
    %153 = arith.addf %152, %151 : vector<8x128xf32>
    %154 = arith.divf %152, %153 : vector<8x128xf32>
    %155 = vector.extract_strided_slice %142 {offsets = [0, 256], sizes = [8, 128], strides = [1, 1]} : vector<8x512xf32> to vector<8x128xf32>
    %156 = math.tanh %155 : vector<8x128xf32>
    %157 = vector.extract_strided_slice %142 {offsets = [0, 384], sizes = [8, 128], strides = [1, 1]} : vector<8x512xf32> to vector<8x128xf32>
    %158 = arith.negf %157 : vector<8x128xf32>
    %159 = math.exp %158 : vector<8x128xf32>
    %cst_53 = arith.constant 1.000000e+00 : f32
    %160 = vector.broadcast %cst_53 : f32 to vector<8x128xf32>
    %161 = arith.addf %160, %159 : vector<8x128xf32>
    %162 = arith.divf %160, %161 : vector<8x128xf32>
    %163 = arith.mulf %154, %103 : vector<8x128xf32>
    %164 = arith.mulf %148, %156 : vector<8x128xf32>
    %165 = arith.addf %163, %164 : vector<8x128xf32>
    %166 = math.tanh %165 : vector<8x128xf32>
    %167 = arith.mulf %162, %166 : vector<8x128xf32>
    %cst_54 = arith.constant dense<0.000000e+00> : vector<8x512xf32>
    %168 = tpu.matmul %167, %12, %cst_54 {dimension_numbers = #tpu.dot_dimension_numbers<[1], [0], [0], [1], [0, 0, 1, 1], [], []>} : vector<8x128xf32>, vector<128x512xf32>, vector<8x512xf32> -> vector<8x512xf32>
    %cst_55 = arith.constant dense<0.000000e+00> : vector<8x512xf32>
    %169 = tpu.matmul %135, %13, %cst_55 {dimension_numbers = #tpu.dot_dimension_numbers<[1], [0], [0], [1], [0, 0, 1, 1], [], []>} : vector<8x128xf32>, vector<128x512xf32>, vector<8x512xf32> -> vector<8x512xf32>
    %170 = arith.addf %168, %169 : vector<8x512xf32>
    %171 = vector.broadcast %14 : vector<1x512xf32> to vector<8x512xf32>
    %172 = arith.addf %170, %171 : vector<8x512xf32>
    %173 = vector.extract_strided_slice %172 {offsets = [0, 0], sizes = [8, 128], strides = [1, 1]} : vector<8x512xf32> to vector<8x128xf32>
    %174 = arith.negf %173 : vector<8x128xf32>
    %175 = math.exp %174 : vector<8x128xf32>
    %cst_56 = arith.constant 1.000000e+00 : f32
    %176 = vector.broadcast %cst_56 : f32 to vector<8x128xf32>
    %177 = arith.addf %176, %175 : vector<8x128xf32>
    %178 = arith.divf %176, %177 : vector<8x128xf32>
    %179 = vector.extract_strided_slice %172 {offsets = [0, 128], sizes = [8, 128], strides = [1, 1]} : vector<8x512xf32> to vector<8x128xf32>
    %180 = arith.negf %179 : vector<8x128xf32>
    %181 = math.exp %180 : vector<8x128xf32>
    %cst_57 = arith.constant 1.000000e+00 : f32
    %182 = vector.broadcast %cst_57 : f32 to vector<8x128xf32>
    %183 = arith.addf %182, %181 : vector<8x128xf32>
    %184 = arith.divf %182, %183 : vector<8x128xf32>
    %185 = vector.extract_strided_slice %172 {offsets = [0, 256], sizes = [8, 128], strides = [1, 1]} : vector<8x512xf32> to vector<8x128xf32>
    %186 = math.tanh %185 : vector<8x128xf32>
    %187 = vector.extract_strided_slice %172 {offsets = [0, 384], sizes = [8, 128], strides = [1, 1]} : vector<8x512xf32> to vector<8x128xf32>
    %188 = arith.negf %187 : vector<8x128xf32>
    %189 = math.exp %188 : vector<8x128xf32>
    %cst_58 = arith.constant 1.000000e+00 : f32
    %190 = vector.broadcast %cst_58 : f32 to vector<8x128xf32>
    %191 = arith.addf %190, %189 : vector<8x128xf32>
    %192 = arith.divf %190, %191 : vector<8x128xf32>
    %193 = arith.mulf %184, %133 : vector<8x128xf32>
    %194 = arith.mulf %178, %186 : vector<8x128xf32>
    %195 = arith.addf %193, %194 : vector<8x128xf32>
    %196 = math.tanh %195 : vector<8x128xf32>
    %197 = arith.mulf %192, %196 : vector<8x128xf32>
    %c0_59 = arith.constant 0 : index
    %c2_60 = arith.constant 2 : index
    %c0_61 = arith.constant 0 : index
    %198 = vector.load %arg9[%c0_59, %c2_60, %c0_61] : memref<8x8x128xf32, #tpu.memory_space<vmem>>, vector<8x1x128xf32>
    %199 = vector.shape_cast %198 : vector<8x1x128xf32> to vector<8x128xf32>
    %200 = vector.shape_cast %197 : vector<8x128xf32> to vector<8x1x128xf32>
    tpu.vector_store %arg9[%c0_59, %c2_60, %c0_61], %200 {strides = array<i32>} : memref<8x8x128xf32, #tpu.memory_space<vmem>>, vector<8x1x128xf32>,
    %c0_62 = arith.constant 0 : index
    %c3 = arith.constant 3 : index
    %c0_63 = arith.constant 0 : index
    %201 = vector.load %arg2[%c0_62, %c3, %c0_63] : memref<8x8x512xf32, #tpu.memory_space<vmem>>, vector<8x1x512xf32>
    %202 = vector.shape_cast %201 : vector<8x1x512xf32> to vector<8x512xf32>
    %cst_64 = arith.constant dense<0.000000e+00> : vector<8x512xf32>
    %203 = tpu.matmul %167, %11, %cst_64 {dimension_numbers = #tpu.dot_dimension_numbers<[1], [0], [0], [1], [0, 0, 1, 1], [], []>} : vector<8x128xf32>, vector<128x512xf32>, vector<8x512xf32> -> vector<8x512xf32>
    %204 = arith.addf %202, %203 : vector<8x512xf32>
    %205 = vector.extract_strided_slice %204 {offsets = [0, 0], sizes = [8, 128], strides = [1, 1]} : vector<8x512xf32> to vector<8x128xf32>
    %206 = arith.negf %205 : vector<8x128xf32>
    %207 = math.exp %206 : vector<8x128xf32>
    %cst_65 = arith.constant 1.000000e+00 : f32
    %208 = vector.broadcast %cst_65 : f32 to vector<8x128xf32>
    %209 = arith.addf %208, %207 : vector<8x128xf32>
    %210 = arith.divf %208, %209 : vector<8x128xf32>
    %211 = vector.extract_strided_slice %204 {offsets = [0, 128], sizes = [8, 128], strides = [1, 1]} : vector<8x512xf32> to vector<8x128xf32>
    %212 = arith.negf %211 : vector<8x128xf32>
    %213 = math.exp %212 : vector<8x128xf32>
    %cst_66 = arith.constant 1.000000e+00 : f32
    %214 = vector.broadcast %cst_66 : f32 to vector<8x128xf32>
    %215 = arith.addf %214, %213 : vector<8x128xf32>
    %216 = arith.divf %214, %215 : vector<8x128xf32>
    %217 = vector.extract_strided_slice %204 {offsets = [0, 256], sizes = [8, 128], strides = [1, 1]} : vector<8x512xf32> to vector<8x128xf32>
    %218 = math.tanh %217 : vector<8x128xf32>
    %219 = vector.extract_strided_slice %204 {offsets = [0, 384], sizes = [8, 128], strides = [1, 1]} : vector<8x512xf32> to vector<8x128xf32>
    %220 = arith.negf %219 : vector<8x128xf32>
    %221 = math.exp %220 : vector<8x128xf32>
    %cst_67 = arith.constant 1.000000e+00 : f32
    %222 = vector.broadcast %cst_67 : f32 to vector<8x128xf32>
    %223 = arith.addf %222, %221 : vector<8x128xf32>
    %224 = arith.divf %222, %223 : vector<8x128xf32>
    %225 = arith.mulf %216, %165 : vector<8x128xf32>
    %226 = arith.mulf %210, %218 : vector<8x128xf32>
    %227 = arith.addf %225, %226 : vector<8x128xf32>
    %228 = math.tanh %227 : vector<8x128xf32>
    %229 = arith.mulf %224, %228 : vector<8x128xf32>
    %cst_68 = arith.constant dense<0.000000e+00> : vector<8x512xf32>
    %230 = tpu.matmul %229, %12, %cst_68 {dimension_numbers = #tpu.dot_dimension_numbers<[1], [0], [0], [1], [0, 0, 1, 1], [], []>} : vector<8x128xf32>, vector<128x512xf32>, vector<8x512xf32> -> vector<8x512xf32>
    %cst_69 = arith.constant dense<0.000000e+00> : vector<8x512xf32>
    %231 = tpu.matmul %197, %13, %cst_69 {dimension_numbers = #tpu.dot_dimension_numbers<[1], [0], [0], [1], [0, 0, 1, 1], [], []>} : vector<8x128xf32>, vector<128x512xf32>, vector<8x512xf32> -> vector<8x512xf32>
    %232 = arith.addf %230, %231 : vector<8x512xf32>
    %233 = vector.broadcast %14 : vector<1x512xf32> to vector<8x512xf32>
    %234 = arith.addf %232, %233 : vector<8x512xf32>
    %235 = vector.extract_strided_slice %234 {offsets = [0, 0], sizes = [8, 128], strides = [1, 1]} : vector<8x512xf32> to vector<8x128xf32>
    %236 = arith.negf %235 : vector<8x128xf32>
    %237 = math.exp %236 : vector<8x128xf32>
    %cst_70 = arith.constant 1.000000e+00 : f32
    %238 = vector.broadcast %cst_70 : f32 to vector<8x128xf32>
    %239 = arith.addf %238, %237 : vector<8x128xf32>
    %240 = arith.divf %238, %239 : vector<8x128xf32>
    %241 = vector.extract_strided_slice %234 {offsets = [0, 128], sizes = [8, 128], strides = [1, 1]} : vector<8x512xf32> to vector<8x128xf32>
    %242 = arith.negf %241 : vector<8x128xf32>
    %243 = math.exp %242 : vector<8x128xf32>
    %cst_71 = arith.constant 1.000000e+00 : f32
    %244 = vector.broadcast %cst_71 : f32 to vector<8x128xf32>
    %245 = arith.addf %244, %243 : vector<8x128xf32>
    %246 = arith.divf %244, %245 : vector<8x128xf32>
    %247 = vector.extract_strided_slice %234 {offsets = [0, 256], sizes = [8, 128], strides = [1, 1]} : vector<8x512xf32> to vector<8x128xf32>
    %248 = math.tanh %247 : vector<8x128xf32>
    %249 = vector.extract_strided_slice %234 {offsets = [0, 384], sizes = [8, 128], strides = [1, 1]} : vector<8x512xf32> to vector<8x128xf32>
    %250 = arith.negf %249 : vector<8x128xf32>
    %251 = math.exp %250 : vector<8x128xf32>
    %cst_72 = arith.constant 1.000000e+00 : f32
    %252 = vector.broadcast %cst_72 : f32 to vector<8x128xf32>
    %253 = arith.addf %252, %251 : vector<8x128xf32>
    %254 = arith.divf %252, %253 : vector<8x128xf32>
    %255 = arith.mulf %246, %195 : vector<8x128xf32>
    %256 = arith.mulf %240, %248 : vector<8x128xf32>
    %257 = arith.addf %255, %256 : vector<8x128xf32>
    %258 = math.tanh %257 : vector<8x128xf32>
    %259 = arith.mulf %254, %258 : vector<8x128xf32>
    %c0_73 = arith.constant 0 : index
    %c3_74 = arith.constant 3 : index
    %c0_75 = arith.constant 0 : index
    %260 = vector.load %arg9[%c0_73, %c3_74, %c0_75] : memref<8x8x128xf32, #tpu.memory_space<vmem>>, vector<8x1x128xf32>
    %261 = vector.shape_cast %260 : vector<8x1x128xf32> to vector<8x128xf32>
    %262 = vector.shape_cast %259 : vector<8x128xf32> to vector<8x1x128xf32>
    tpu.vector_store %arg9[%c0_73, %c3_74, %c0_75], %262 {strides = array<i32>} : memref<8x8x128xf32, #tpu.memory_space<vmem>>, vector<8x1x128xf32>,
    %c0_76 = arith.constant 0 : index
    %c4 = arith.constant 4 : index
    %c0_77 = arith.constant 0 : index
    %263 = vector.load %arg2[%c0_76, %c4, %c0_77] : memref<8x8x512xf32, #tpu.memory_space<vmem>>, vector<8x1x512xf32>
    %264 = vector.shape_cast %263 : vector<8x1x512xf32> to vector<8x512xf32>
    %cst_78 = arith.constant dense<0.000000e+00> : vector<8x512xf32>
    %265 = tpu.matmul %229, %11, %cst_78 {dimension_numbers = #tpu.dot_dimension_numbers<[1], [0], [0], [1], [0, 0, 1, 1], [], []>} : vector<8x128xf32>, vector<128x512xf32>, vector<8x512xf32> -> vector<8x512xf32>
    %266 = arith.addf %264, %265 : vector<8x512xf32>
    %267 = vector.extract_strided_slice %266 {offsets = [0, 0], sizes = [8, 128], strides = [1, 1]} : vector<8x512xf32> to vector<8x128xf32>
    %268 = arith.negf %267 : vector<8x128xf32>
    %269 = math.exp %268 : vector<8x128xf32>
    %cst_79 = arith.constant 1.000000e+00 : f32
    %270 = vector.broadcast %cst_79 : f32 to vector<8x128xf32>
    %271 = arith.addf %270, %269 : vector<8x128xf32>
    %272 = arith.divf %270, %271 : vector<8x128xf32>
    %273 = vector.extract_strided_slice %266 {offsets = [0, 128], sizes = [8, 128], strides = [1, 1]} : vector<8x512xf32> to vector<8x128xf32>
    %274 = arith.negf %273 : vector<8x128xf32>
    %275 = math.exp %274 : vector<8x128xf32>
    %cst_80 = arith.constant 1.000000e+00 : f32
    %276 = vector.broadcast %cst_80 : f32 to vector<8x128xf32>
    %277 = arith.addf %276, %275 : vector<8x128xf32>
    %278 = arith.divf %276, %277 : vector<8x128xf32>
    %279 = vector.extract_strided_slice %266 {offsets = [0, 256], sizes = [8, 128], strides = [1, 1]} : vector<8x512xf32> to vector<8x128xf32>
    %280 = math.tanh %279 : vector<8x128xf32>
    %281 = vector.extract_strided_slice %266 {offsets = [0, 384], sizes = [8, 128], strides = [1, 1]} : vector<8x512xf32> to vector<8x128xf32>
    %282 = arith.negf %281 : vector<8x128xf32>
    %283 = math.exp %282 : vector<8x128xf32>
    %cst_81 = arith.constant 1.000000e+00 : f32
    %284 = vector.broadcast %cst_81 : f32 to vector<8x128xf32>
    %285 = arith.addf %284, %283 : vector<8x128xf32>
    %286 = arith.divf %284, %285 : vector<8x128xf32>
    %287 = arith.mulf %278, %227 : vector<8x128xf32>
    %288 = arith.mulf %272, %280 : vector<8x128xf32>
    %289 = arith.addf %287, %288 : vector<8x128xf32>
    %290 = math.tanh %289 : vector<8x128xf32>
    %291 = arith.mulf %286, %290 : vector<8x128xf32>
    %cst_82 = arith.constant dense<0.000000e+00> : vector<8x512xf32>
    %292 = tpu.matmul %291, %12, %cst_82 {dimension_numbers = #tpu.dot_dimension_numbers<[1], [0], [0], [1], [0, 0, 1, 1], [], []>} : vector<8x128xf32>, vector<128x512xf32>, vector<8x512xf32> -> vector<8x512xf32>
    %cst_83 = arith.constant dense<0.000000e+00> : vector<8x512xf32>
    %293 = tpu.matmul %259, %13, %cst_83 {dimension_numbers = #tpu.dot_dimension_numbers<[1], [0], [0], [1], [0, 0, 1, 1], [], []>} : vector<8x128xf32>, vector<128x512xf32>, vector<8x512xf32> -> vector<8x512xf32>
    %294 = arith.addf %292, %293 : vector<8x512xf32>
    %295 = vector.broadcast %14 : vector<1x512xf32> to vector<8x512xf32>
    %296 = arith.addf %294, %295 : vector<8x512xf32>
    %297 = vector.extract_strided_slice %296 {offsets = [0, 0], sizes = [8, 128], strides = [1, 1]} : vector<8x512xf32> to vector<8x128xf32>
    %298 = arith.negf %297 : vector<8x128xf32>
    %299 = math.exp %298 : vector<8x128xf32>
    %cst_84 = arith.constant 1.000000e+00 : f32
    %300 = vector.broadcast %cst_84 : f32 to vector<8x128xf32>
    %301 = arith.addf %300, %299 : vector<8x128xf32>
    %302 = arith.divf %300, %301 : vector<8x128xf32>
    %303 = vector.extract_strided_slice %296 {offsets = [0, 128], sizes = [8, 128], strides = [1, 1]} : vector<8x512xf32> to vector<8x128xf32>
    %304 = arith.negf %303 : vector<8x128xf32>
    %305 = math.exp %304 : vector<8x128xf32>
    %cst_85 = arith.constant 1.000000e+00 : f32
    %306 = vector.broadcast %cst_85 : f32 to vector<8x128xf32>
    %307 = arith.addf %306, %305 : vector<8x128xf32>
    %308 = arith.divf %306, %307 : vector<8x128xf32>
    %309 = vector.extract_strided_slice %296 {offsets = [0, 256], sizes = [8, 128], strides = [1, 1]} : vector<8x512xf32> to vector<8x128xf32>
    %310 = math.tanh %309 : vector<8x128xf32>
    %311 = vector.extract_strided_slice %296 {offsets = [0, 384], sizes = [8, 128], strides = [1, 1]} : vector<8x512xf32> to vector<8x128xf32>
    %312 = arith.negf %311 : vector<8x128xf32>
    %313 = math.exp %312 : vector<8x128xf32>
    %cst_86 = arith.constant 1.000000e+00 : f32
    %314 = vector.broadcast %cst_86 : f32 to vector<8x128xf32>
    %315 = arith.addf %314, %313 : vector<8x128xf32>
    %316 = arith.divf %314, %315 : vector<8x128xf32>
    %317 = arith.mulf %308, %257 : vector<8x128xf32>
    %318 = arith.mulf %302, %310 : vector<8x128xf32>
    %319 = arith.addf %317, %318 : vector<8x128xf32>
    %320 = math.tanh %319 : vector<8x128xf32>
    %321 = arith.mulf %316, %320 : vector<8x128xf32>
    %c0_87 = arith.constant 0 : index
    %c4_88 = arith.constant 4 : index
    %c0_89 = arith.constant 0 : index
    %322 = vector.load %arg9[%c0_87, %c4_88, %c0_89] : memref<8x8x128xf32, #tpu.memory_space<vmem>>, vector<8x1x128xf32>
    %323 = vector.shape_cast %322 : vector<8x1x128xf32> to vector<8x128xf32>
    %324 = vector.shape_cast %321 : vector<8x128xf32> to vector<8x1x128xf32>
    tpu.vector_store %arg9[%c0_87, %c4_88, %c0_89], %324 {strides = array<i32>} : memref<8x8x128xf32, #tpu.memory_space<vmem>>, vector<8x1x128xf32>,
    %c0_90 = arith.constant 0 : index
    %c5 = arith.constant 5 : index
    %c0_91 = arith.constant 0 : index
    %325 = vector.load %arg2[%c0_90, %c5, %c0_91] : memref<8x8x512xf32, #tpu.memory_space<vmem>>, vector<8x1x512xf32>
    %326 = vector.shape_cast %325 : vector<8x1x512xf32> to vector<8x512xf32>
    %cst_92 = arith.constant dense<0.000000e+00> : vector<8x512xf32>
    %327 = tpu.matmul %291, %11, %cst_92 {dimension_numbers = #tpu.dot_dimension_numbers<[1], [0], [0], [1], [0, 0, 1, 1], [], []>} : vector<8x128xf32>, vector<128x512xf32>, vector<8x512xf32> -> vector<8x512xf32>
    %328 = arith.addf %326, %327 : vector<8x512xf32>
    %329 = vector.extract_strided_slice %328 {offsets = [0, 0], sizes = [8, 128], strides = [1, 1]} : vector<8x512xf32> to vector<8x128xf32>
    %330 = arith.negf %329 : vector<8x128xf32>
    %331 = math.exp %330 : vector<8x128xf32>
    %cst_93 = arith.constant 1.000000e+00 : f32
    %332 = vector.broadcast %cst_93 : f32 to vector<8x128xf32>
    %333 = arith.addf %332, %331 : vector<8x128xf32>
    %334 = arith.divf %332, %333 : vector<8x128xf32>
    %335 = vector.extract_strided_slice %328 {offsets = [0, 128], sizes = [8, 128], strides = [1, 1]} : vector<8x512xf32> to vector<8x128xf32>
    %336 = arith.negf %335 : vector<8x128xf32>
    %337 = math.exp %336 : vector<8x128xf32>
    %cst_94 = arith.constant 1.000000e+00 : f32
    %338 = vector.broadcast %cst_94 : f32 to vector<8x128xf32>
    %339 = arith.addf %338, %337 : vector<8x128xf32>
    %340 = arith.divf %338, %339 : vector<8x128xf32>
    %341 = vector.extract_strided_slice %328 {offsets = [0, 256], sizes = [8, 128], strides = [1, 1]} : vector<8x512xf32> to vector<8x128xf32>
    %342 = math.tanh %341 : vector<8x128xf32>
    %343 = vector.extract_strided_slice %328 {offsets = [0, 384], sizes = [8, 128], strides = [1, 1]} : vector<8x512xf32> to vector<8x128xf32>
    %344 = arith.negf %343 : vector<8x128xf32>
    %345 = math.exp %344 : vector<8x128xf32>
    %cst_95 = arith.constant 1.000000e+00 : f32
    %346 = vector.broadcast %cst_95 : f32 to vector<8x128xf32>
    %347 = arith.addf %346, %345 : vector<8x128xf32>
    %348 = arith.divf %346, %347 : vector<8x128xf32>
    %349 = arith.mulf %340, %289 : vector<8x128xf32>
    %350 = arith.mulf %334, %342 : vector<8x128xf32>
    %351 = arith.addf %349, %350 : vector<8x128xf32>
    %352 = math.tanh %351 : vector<8x128xf32>
    %353 = arith.mulf %348, %352 : vector<8x128xf32>
    %cst_96 = arith.constant dense<0.000000e+00> : vector<8x512xf32>
    %354 = tpu.matmul %353, %12, %cst_96 {dimension_numbers = #tpu.dot_dimension_numbers<[1], [0], [0], [1], [0, 0, 1, 1], [], []>} : vector<8x128xf32>, vector<128x512xf32>, vector<8x512xf32> -> vector<8x512xf32>
    %cst_97 = arith.constant dense<0.000000e+00> : vector<8x512xf32>
    %355 = tpu.matmul %321, %13, %cst_97 {dimension_numbers = #tpu.dot_dimension_numbers<[1], [0], [0], [1], [0, 0, 1, 1], [], []>} : vector<8x128xf32>, vector<128x512xf32>, vector<8x512xf32> -> vector<8x512xf32>
    %356 = arith.addf %354, %355 : vector<8x512xf32>
    %357 = vector.broadcast %14 : vector<1x512xf32> to vector<8x512xf32>
    %358 = arith.addf %356, %357 : vector<8x512xf32>
    %359 = vector.extract_strided_slice %358 {offsets = [0, 0], sizes = [8, 128], strides = [1, 1]} : vector<8x512xf32> to vector<8x128xf32>
    %360 = arith.negf %359 : vector<8x128xf32>
    %361 = math.exp %360 : vector<8x128xf32>
    %cst_98 = arith.constant 1.000000e+00 : f32
    %362 = vector.broadcast %cst_98 : f32 to vector<8x128xf32>
    %363 = arith.addf %362, %361 : vector<8x128xf32>
    %364 = arith.divf %362, %363 : vector<8x128xf32>
    %365 = vector.extract_strided_slice %358 {offsets = [0, 128], sizes = [8, 128], strides = [1, 1]} : vector<8x512xf32> to vector<8x128xf32>
    %366 = arith.negf %365 : vector<8x128xf32>
    %367 = math.exp %366 : vector<8x128xf32>
    %cst_99 = arith.constant 1.000000e+00 : f32
    %368 = vector.broadcast %cst_99 : f32 to vector<8x128xf32>
    %369 = arith.addf %368, %367 : vector<8x128xf32>
    %370 = arith.divf %368, %369 : vector<8x128xf32>
    %371 = vector.extract_strided_slice %358 {offsets = [0, 256], sizes = [8, 128], strides = [1, 1]} : vector<8x512xf32> to vector<8x128xf32>
    %372 = math.tanh %371 : vector<8x128xf32>
    %373 = vector.extract_strided_slice %358 {offsets = [0, 384], sizes = [8, 128], strides = [1, 1]} : vector<8x512xf32> to vector<8x128xf32>
    %374 = arith.negf %373 : vector<8x128xf32>
    %375 = math.exp %374 : vector<8x128xf32>
    %cst_100 = arith.constant 1.000000e+00 : f32
    %376 = vector.broadcast %cst_100 : f32 to vector<8x128xf32>
    %377 = arith.addf %376, %375 : vector<8x128xf32>
    %378 = arith.divf %376, %377 : vector<8x128xf32>
    %379 = arith.mulf %370, %319 : vector<8x128xf32>
    %380 = arith.mulf %364, %372 : vector<8x128xf32>
    %381 = arith.addf %379, %380 : vector<8x128xf32>
    %382 = math.tanh %381 : vector<8x128xf32>
    %383 = arith.mulf %378, %382 : vector<8x128xf32>
    %c0_101 = arith.constant 0 : index
    %c5_102 = arith.constant 5 : index
    %c0_103 = arith.constant 0 : index
    %384 = vector.load %arg9[%c0_101, %c5_102, %c0_103] : memref<8x8x128xf32, #tpu.memory_space<vmem>>, vector<8x1x128xf32>
    %385 = vector.shape_cast %384 : vector<8x1x128xf32> to vector<8x128xf32>
    %386 = vector.shape_cast %383 : vector<8x128xf32> to vector<8x1x128xf32>
    tpu.vector_store %arg9[%c0_101, %c5_102, %c0_103], %386 {strides = array<i32>} : memref<8x8x128xf32, #tpu.memory_space<vmem>>, vector<8x1x128xf32>,
    %c0_104 = arith.constant 0 : index
    %c6 = arith.constant 6 : index
    %c0_105 = arith.constant 0 : index
    %387 = vector.load %arg2[%c0_104, %c6, %c0_105] : memref<8x8x512xf32, #tpu.memory_space<vmem>>, vector<8x1x512xf32>
    %388 = vector.shape_cast %387 : vector<8x1x512xf32> to vector<8x512xf32>
    %cst_106 = arith.constant dense<0.000000e+00> : vector<8x512xf32>
    %389 = tpu.matmul %353, %11, %cst_106 {dimension_numbers = #tpu.dot_dimension_numbers<[1], [0], [0], [1], [0, 0, 1, 1], [], []>} : vector<8x128xf32>, vector<128x512xf32>, vector<8x512xf32> -> vector<8x512xf32>
    %390 = arith.addf %388, %389 : vector<8x512xf32>
    %391 = vector.extract_strided_slice %390 {offsets = [0, 0], sizes = [8, 128], strides = [1, 1]} : vector<8x512xf32> to vector<8x128xf32>
    %392 = arith.negf %391 : vector<8x128xf32>
    %393 = math.exp %392 : vector<8x128xf32>
    %cst_107 = arith.constant 1.000000e+00 : f32
    %394 = vector.broadcast %cst_107 : f32 to vector<8x128xf32>
    %395 = arith.addf %394, %393 : vector<8x128xf32>
    %396 = arith.divf %394, %395 : vector<8x128xf32>
    %397 = vector.extract_strided_slice %390 {offsets = [0, 128], sizes = [8, 128], strides = [1, 1]} : vector<8x512xf32> to vector<8x128xf32>
    %398 = arith.negf %397 : vector<8x128xf32>
    %399 = math.exp %398 : vector<8x128xf32>
    %cst_108 = arith.constant 1.000000e+00 : f32
    %400 = vector.broadcast %cst_108 : f32 to vector<8x128xf32>
    %401 = arith.addf %400, %399 : vector<8x128xf32>
    %402 = arith.divf %400, %401 : vector<8x128xf32>
    %403 = vector.extract_strided_slice %390 {offsets = [0, 256], sizes = [8, 128], strides = [1, 1]} : vector<8x512xf32> to vector<8x128xf32>
    %404 = math.tanh %403 : vector<8x128xf32>
    %405 = vector.extract_strided_slice %390 {offsets = [0, 384], sizes = [8, 128], strides = [1, 1]} : vector<8x512xf32> to vector<8x128xf32>
    %406 = arith.negf %405 : vector<8x128xf32>
    %407 = math.exp %406 : vector<8x128xf32>
    %cst_109 = arith.constant 1.000000e+00 : f32
    %408 = vector.broadcast %cst_109 : f32 to vector<8x128xf32>
    %409 = arith.addf %408, %407 : vector<8x128xf32>
    %410 = arith.divf %408, %409 : vector<8x128xf32>
    %411 = arith.mulf %402, %351 : vector<8x128xf32>
    %412 = arith.mulf %396, %404 : vector<8x128xf32>
    %413 = arith.addf %411, %412 : vector<8x128xf32>
    %414 = math.tanh %413 : vector<8x128xf32>
    %415 = arith.mulf %410, %414 : vector<8x128xf32>
    %cst_110 = arith.constant dense<0.000000e+00> : vector<8x512xf32>
    %416 = tpu.matmul %415, %12, %cst_110 {dimension_numbers = #tpu.dot_dimension_numbers<[1], [0], [0], [1], [0, 0, 1, 1], [], []>} : vector<8x128xf32>, vector<128x512xf32>, vector<8x512xf32> -> vector<8x512xf32>
    %cst_111 = arith.constant dense<0.000000e+00> : vector<8x512xf32>
    %417 = tpu.matmul %383, %13, %cst_111 {dimension_numbers = #tpu.dot_dimension_numbers<[1], [0], [0], [1], [0, 0, 1, 1], [], []>} : vector<8x128xf32>, vector<128x512xf32>, vector<8x512xf32> -> vector<8x512xf32>
    %418 = arith.addf %416, %417 : vector<8x512xf32>
    %419 = vector.broadcast %14 : vector<1x512xf32> to vector<8x512xf32>
    %420 = arith.addf %418, %419 : vector<8x512xf32>
    %421 = vector.extract_strided_slice %420 {offsets = [0, 0], sizes = [8, 128], strides = [1, 1]} : vector<8x512xf32> to vector<8x128xf32>
    %422 = arith.negf %421 : vector<8x128xf32>
    %423 = math.exp %422 : vector<8x128xf32>
    %cst_112 = arith.constant 1.000000e+00 : f32
    %424 = vector.broadcast %cst_112 : f32 to vector<8x128xf32>
    %425 = arith.addf %424, %423 : vector<8x128xf32>
    %426 = arith.divf %424, %425 : vector<8x128xf32>
    %427 = vector.extract_strided_slice %420 {offsets = [0, 128], sizes = [8, 128], strides = [1, 1]} : vector<8x512xf32> to vector<8x128xf32>
    %428 = arith.negf %427 : vector<8x128xf32>
    %429 = math.exp %428 : vector<8x128xf32>
    %cst_113 = arith.constant 1.000000e+00 : f32
    %430 = vector.broadcast %cst_113 : f32 to vector<8x128xf32>
    %431 = arith.addf %430, %429 : vector<8x128xf32>
    %432 = arith.divf %430, %431 : vector<8x128xf32>
    %433 = vector.extract_strided_slice %420 {offsets = [0, 256], sizes = [8, 128], strides = [1, 1]} : vector<8x512xf32> to vector<8x128xf32>
    %434 = math.tanh %433 : vector<8x128xf32>
    %435 = vector.extract_strided_slice %420 {offsets = [0, 384], sizes = [8, 128], strides = [1, 1]} : vector<8x512xf32> to vector<8x128xf32>
    %436 = arith.negf %435 : vector<8x128xf32>
    %437 = math.exp %436 : vector<8x128xf32>
    %cst_114 = arith.constant 1.000000e+00 : f32
    %438 = vector.broadcast %cst_114 : f32 to vector<8x128xf32>
    %439 = arith.addf %438, %437 : vector<8x128xf32>
    %440 = arith.divf %438, %439 : vector<8x128xf32>
    %441 = arith.mulf %432, %381 : vector<8x128xf32>
    %442 = arith.mulf %426, %434 : vector<8x128xf32>
    %443 = arith.addf %441, %442 : vector<8x128xf32>
    %444 = math.tanh %443 : vector<8x128xf32>
    %445 = arith.mulf %440, %444 : vector<8x128xf32>
    %c0_115 = arith.constant 0 : index
    %c6_116 = arith.constant 6 : index
    %c0_117 = arith.constant 0 : index
    %446 = vector.load %arg9[%c0_115, %c6_116, %c0_117] : memref<8x8x128xf32, #tpu.memory_space<vmem>>, vector<8x1x128xf32>
    %447 = vector.shape_cast %446 : vector<8x1x128xf32> to vector<8x128xf32>
    %448 = vector.shape_cast %445 : vector<8x128xf32> to vector<8x1x128xf32>
    tpu.vector_store %arg9[%c0_115, %c6_116, %c0_117], %448 {strides = array<i32>} : memref<8x8x128xf32, #tpu.memory_space<vmem>>, vector<8x1x128xf32>,
    %c0_118 = arith.constant 0 : index
    %c7 = arith.constant 7 : index
    %c0_119 = arith.constant 0 : index
    %449 = vector.load %arg2[%c0_118, %c7, %c0_119] : memref<8x8x512xf32, #tpu.memory_space<vmem>>, vector<8x1x512xf32>
    %450 = vector.shape_cast %449 : vector<8x1x512xf32> to vector<8x512xf32>
    %cst_120 = arith.constant dense<0.000000e+00> : vector<8x512xf32>
    %451 = tpu.matmul %415, %11, %cst_120 {dimension_numbers = #tpu.dot_dimension_numbers<[1], [0], [0], [1], [0, 0, 1, 1], [], []>} : vector<8x128xf32>, vector<128x512xf32>, vector<8x512xf32> -> vector<8x512xf32>
    %452 = arith.addf %450, %451 : vector<8x512xf32>
    %453 = vector.extract_strided_slice %452 {offsets = [0, 0], sizes = [8, 128], strides = [1, 1]} : vector<8x512xf32> to vector<8x128xf32>
    %454 = arith.negf %453 : vector<8x128xf32>
    %455 = math.exp %454 : vector<8x128xf32>
    %cst_121 = arith.constant 1.000000e+00 : f32
    %456 = vector.broadcast %cst_121 : f32 to vector<8x128xf32>
    %457 = arith.addf %456, %455 : vector<8x128xf32>
    %458 = arith.divf %456, %457 : vector<8x128xf32>
    %459 = vector.extract_strided_slice %452 {offsets = [0, 128], sizes = [8, 128], strides = [1, 1]} : vector<8x512xf32> to vector<8x128xf32>
    %460 = arith.negf %459 : vector<8x128xf32>
    %461 = math.exp %460 : vector<8x128xf32>
    %cst_122 = arith.constant 1.000000e+00 : f32
    %462 = vector.broadcast %cst_122 : f32 to vector<8x128xf32>
    %463 = arith.addf %462, %461 : vector<8x128xf32>
    %464 = arith.divf %462, %463 : vector<8x128xf32>
    %465 = vector.extract_strided_slice %452 {offsets = [0, 256], sizes = [8, 128], strides = [1, 1]} : vector<8x512xf32> to vector<8x128xf32>
    %466 = math.tanh %465 : vector<8x128xf32>
    %467 = vector.extract_strided_slice %452 {offsets = [0, 384], sizes = [8, 128], strides = [1, 1]} : vector<8x512xf32> to vector<8x128xf32>
    %468 = arith.negf %467 : vector<8x128xf32>
    %469 = math.exp %468 : vector<8x128xf32>
    %cst_123 = arith.constant 1.000000e+00 : f32
    %470 = vector.broadcast %cst_123 : f32 to vector<8x128xf32>
    %471 = arith.addf %470, %469 : vector<8x128xf32>
    %472 = arith.divf %470, %471 : vector<8x128xf32>
    %473 = arith.mulf %464, %413 : vector<8x128xf32>
    %474 = arith.mulf %458, %466 : vector<8x128xf32>
    %475 = arith.addf %473, %474 : vector<8x128xf32>
    %476 = math.tanh %475 : vector<8x128xf32>
    %477 = arith.mulf %472, %476 : vector<8x128xf32>
    %cst_124 = arith.constant dense<0.000000e+00> : vector<8x512xf32>
    %478 = tpu.matmul %477, %12, %cst_124 {dimension_numbers = #tpu.dot_dimension_numbers<[1], [0], [0], [1], [0, 0, 1, 1], [], []>} : vector<8x128xf32>, vector<128x512xf32>, vector<8x512xf32> -> vector<8x512xf32>
    %cst_125 = arith.constant dense<0.000000e+00> : vector<8x512xf32>
    %479 = tpu.matmul %445, %13, %cst_125 {dimension_numbers = #tpu.dot_dimension_numbers<[1], [0], [0], [1], [0, 0, 1, 1], [], []>} : vector<8x128xf32>, vector<128x512xf32>, vector<8x512xf32> -> vector<8x512xf32>
    %480 = arith.addf %478, %479 : vector<8x512xf32>
    %481 = vector.broadcast %14 : vector<1x512xf32> to vector<8x512xf32>
    %482 = arith.addf %480, %481 : vector<8x512xf32>
    %483 = vector.extract_strided_slice %482 {offsets = [0, 0], sizes = [8, 128], strides = [1, 1]} : vector<8x512xf32> to vector<8x128xf32>
    %484 = arith.negf %483 : vector<8x128xf32>
    %485 = math.exp %484 : vector<8x128xf32>
    %cst_126 = arith.constant 1.000000e+00 : f32
    %486 = vector.broadcast %cst_126 : f32 to vector<8x128xf32>
    %487 = arith.addf %486, %485 : vector<8x128xf32>
    %488 = arith.divf %486, %487 : vector<8x128xf32>
    %489 = vector.extract_strided_slice %482 {offsets = [0, 128], sizes = [8, 128], strides = [1, 1]} : vector<8x512xf32> to vector<8x128xf32>
    %490 = arith.negf %489 : vector<8x128xf32>
    %491 = math.exp %490 : vector<8x128xf32>
    %cst_127 = arith.constant 1.000000e+00 : f32
    %492 = vector.broadcast %cst_127 : f32 to vector<8x128xf32>
    %493 = arith.addf %492, %491 : vector<8x128xf32>
    %494 = arith.divf %492, %493 : vector<8x128xf32>
    %495 = vector.extract_strided_slice %482 {offsets = [0, 256], sizes = [8, 128], strides = [1, 1]} : vector<8x512xf32> to vector<8x128xf32>
    %496 = math.tanh %495 : vector<8x128xf32>
    %497 = vector.extract_strided_slice %482 {offsets = [0, 384], sizes = [8, 128], strides = [1, 1]} : vector<8x512xf32> to vector<8x128xf32>
    %498 = arith.negf %497 : vector<8x128xf32>
    %499 = math.exp %498 : vector<8x128xf32>
    %cst_128 = arith.constant 1.000000e+00 : f32
    %500 = vector.broadcast %cst_128 : f32 to vector<8x128xf32>
    %501 = arith.addf %500, %499 : vector<8x128xf32>
    %502 = arith.divf %500, %501 : vector<8x128xf32>
    %503 = arith.mulf %494, %443 : vector<8x128xf32>
    %504 = arith.mulf %488, %496 : vector<8x128xf32>
    %505 = arith.addf %503, %504 : vector<8x128xf32>
    %506 = math.tanh %505 : vector<8x128xf32>
    %507 = arith.mulf %502, %506 : vector<8x128xf32>
    %c0_129 = arith.constant 0 : index
    %c7_130 = arith.constant 7 : index
    %c0_131 = arith.constant 0 : index
    %508 = vector.load %arg9[%c0_129, %c7_130, %c0_131] : memref<8x8x128xf32, #tpu.memory_space<vmem>>, vector<8x1x128xf32>
    %509 = vector.shape_cast %508 : vector<8x1x128xf32> to vector<8x128xf32>
    %510 = vector.shape_cast %507 : vector<8x128xf32> to vector<8x1x128xf32>
    tpu.vector_store %arg9[%c0_129, %c7_130, %c0_131], %510 {strides = array<i32>} : memref<8x8x128xf32, #tpu.memory_space<vmem>>, vector<8x1x128xf32>,
    %c0_132 = arith.constant 0 : index
    %c0_133 = arith.constant 0 : index
    %c0_134 = arith.constant 0 : index
    %511 = vector.load %arg12[%c0_132, %c0_133, %c0_134] : memref<2x8x128xf32, #tpu.memory_space<vmem>>, vector<1x8x128xf32>
    %512 = vector.shape_cast %511 : vector<1x8x128xf32> to vector<8x128xf32>
    %513 = vector.shape_cast %477 : vector<8x128xf32> to vector<1x8x128xf32>
    tpu.vector_store %arg12[%c0_132, %c0_133, %c0_134], %513 {strides = array<i32>} : memref<2x8x128xf32, #tpu.memory_space<vmem>>, vector<1x8x128xf32>,
    %c0_135 = arith.constant 0 : index
    %c0_136 = arith.constant 0 : index
    %c0_137 = arith.constant 0 : index
    %514 = vector.load %arg13[%c0_135, %c0_136, %c0_137] : memref<2x8x128xf32, #tpu.memory_space<vmem>>, vector<1x8x128xf32>
    %515 = vector.shape_cast %514 : vector<1x8x128xf32> to vector<8x128xf32>
    %516 = vector.shape_cast %475 : vector<8x128xf32> to vector<1x8x128xf32>
    tpu.vector_store %arg13[%c0_135, %c0_136, %c0_137], %516 {strides = array<i32>} : memref<2x8x128xf32, #tpu.memory_space<vmem>>, vector<1x8x128xf32>,
    %c1_138 = arith.constant 1 : index
    %c0_139 = arith.constant 0 : index
    %c0_140 = arith.constant 0 : index
    %517 = vector.load %arg12[%c1_138, %c0_139, %c0_140] : memref<2x8x128xf32, #tpu.memory_space<vmem>>, vector<1x8x128xf32>
    %518 = vector.shape_cast %517 : vector<1x8x128xf32> to vector<8x128xf32>
    %519 = vector.shape_cast %507 : vector<8x128xf32> to vector<1x8x128xf32>
    tpu.vector_store %arg12[%c1_138, %c0_139, %c0_140], %519 {strides = array<i32>} : memref<2x8x128xf32, #tpu.memory_space<vmem>>, vector<1x8x128xf32>,
    %c1_141 = arith.constant 1 : index
    %c0_142 = arith.constant 0 : index
    %c0_143 = arith.constant 0 : index
    %520 = vector.load %arg13[%c1_141, %c0_142, %c0_143] : memref<2x8x128xf32, #tpu.memory_space<vmem>>, vector<1x8x128xf32>
    %521 = vector.shape_cast %520 : vector<1x8x128xf32> to vector<8x128xf32>
    %522 = vector.shape_cast %505 : vector<8x128xf32> to vector<1x8x128xf32>
    tpu.vector_store %arg13[%c1_141, %c0_142, %c0_143], %522 {strides = array<i32>} : memref<2x8x128xf32, #tpu.memory_space<vmem>>, vector<1x8x128xf32>,
    %c0_i32_144 = arith.constant 0 : i32
    %523 = arith.cmpi eq, %arg1, %c0_i32_144 : i32
    %524 = arith.extui %523 : i1 to i32
    %c0_i32_145 = arith.constant 0 : i32
    %525 = arith.cmpi ne, %524, %c0_i32_145 : i32
    scf.if %525 {
      %c0_146 = arith.constant 0 : index
      %c0_147 = arith.constant 0 : index
      %c0_148 = arith.constant 0 : index
      %526 = vector.load %arg10[%c0_146, %c0_147, %c0_148] : memref<2x8x128xf32, #tpu.memory_space<vmem>>, vector<1x8x128xf32>
      %527 = vector.shape_cast %526 : vector<1x8x128xf32> to vector<8x128xf32>
      %528 = vector.shape_cast %477 : vector<8x128xf32> to vector<1x8x128xf32>
      tpu.vector_store %arg10[%c0_146, %c0_147, %c0_148], %528 {strides = array<i32>} : memref<2x8x128xf32, #tpu.memory_space<vmem>>, vector<1x8x128xf32>,
      %c1_149 = arith.constant 1 : index
      %c0_150 = arith.constant 0 : index
      %c0_151 = arith.constant 0 : index
      %529 = vector.load %arg10[%c1_149, %c0_150, %c0_151] : memref<2x8x128xf32, #tpu.memory_space<vmem>>, vector<1x8x128xf32>
      %530 = vector.shape_cast %529 : vector<1x8x128xf32> to vector<8x128xf32>
      %531 = vector.shape_cast %507 : vector<8x128xf32> to vector<1x8x128xf32>
      tpu.vector_store %arg10[%c1_149, %c0_150, %c0_151], %531 {strides = array<i32>} : memref<2x8x128xf32, #tpu.memory_space<vmem>>, vector<1x8x128xf32>,
      %c0_152 = arith.constant 0 : index
      %c0_153 = arith.constant 0 : index
      %c0_154 = arith.constant 0 : index
      %532 = vector.load %arg11[%c0_152, %c0_153, %c0_154] : memref<2x8x128xf32, #tpu.memory_space<vmem>>, vector<1x8x128xf32>
      %533 = vector.shape_cast %532 : vector<1x8x128xf32> to vector<8x128xf32>
      %534 = vector.shape_cast %475 : vector<8x128xf32> to vector<1x8x128xf32>
      tpu.vector_store %arg11[%c0_152, %c0_153, %c0_154], %534 {strides = array<i32>} : memref<2x8x128xf32, #tpu.memory_space<vmem>>, vector<1x8x128xf32>,
      %c1_155 = arith.constant 1 : index
      %c0_156 = arith.constant 0 : index
      %c0_157 = arith.constant 0 : index
      %535 = vector.load %arg11[%c1_155, %c0_156, %c0_157] : memref<2x8x128xf32, #tpu.memory_space<vmem>>, vector<1x8x128xf32>
      %536 = vector.shape_cast %535 : vector<1x8x128xf32> to vector<8x128xf32>
      %537 = vector.shape_cast %505 : vector<8x128xf32> to vector<1x8x128xf32>
      tpu.vector_store %arg11[%c1_155, %c0_156, %c0_157], %537 {strides = array<i32>} : memref<2x8x128xf32, #tpu.memory_space<vmem>>, vector<1x8x128xf32>,
    } else {
    }
    return
  }
  func.func @transform_0(%arg0: i32, %arg1: i32) -> (i32, i32, i32) {
    %c0_i32 = arith.constant 0 : i32
    %c0_i32_0 = arith.constant 0 : i32
    return %arg0, %arg1, %c0_i32 : i32, i32, i32
  }
  func.func @transform_1(%arg0: i32, %arg1: i32) -> (i32, i32, i32) {
    %c0_i32 = arith.constant 0 : i32
    %c0_i32_0 = arith.constant 0 : i32
    %c0_i32_1 = arith.constant 0 : i32
    return %c0_i32, %arg0, %c0_i32_0 : i32, i32, i32
  }
  func.func @transform_2(%arg0: i32, %arg1: i32) -> (i32, i32, i32) {
    %c0_i32 = arith.constant 0 : i32
    %c0_i32_0 = arith.constant 0 : i32
    %c0_i32_1 = arith.constant 0 : i32
    return %c0_i32, %arg0, %c0_i32_0 : i32, i32, i32
  }
  func.func @transform_3(%arg0: i32, %arg1: i32) -> (i32, i32) {
    %c0_i32 = arith.constant 0 : i32
    %c0_i32_0 = arith.constant 0 : i32
    %c0_i32_1 = arith.constant 0 : i32
    return %c0_i32, %c0_i32_0 : i32, i32
  }
  func.func @transform_4(%arg0: i32, %arg1: i32) -> (i32, i32) {
    %c0_i32 = arith.constant 0 : i32
    %c0_i32_0 = arith.constant 0 : i32
    %c0_i32_1 = arith.constant 0 : i32
    return %c0_i32, %c0_i32_0 : i32, i32
  }
  func.func @transform_5(%arg0: i32, %arg1: i32) -> (i32, i32) {
    %c0_i32 = arith.constant 0 : i32
    %c0_i32_0 = arith.constant 0 : i32
    %c0_i32_1 = arith.constant 0 : i32
    return %c0_i32, %c0_i32_0 : i32, i32
  }
  func.func @transform_6(%arg0: i32, %arg1: i32) -> (i32, i32) {
    %c0_i32 = arith.constant 0 : i32
    %c0_i32_0 = arith.constant 0 : i32
    %c0_i32_1 = arith.constant 0 : i32
    return %c0_i32, %c0_i32_0 : i32, i32
  }
  func.func @transform_7(%arg0: i32, %arg1: i32) -> (i32, i32, i32) {
    %c0_i32 = arith.constant 0 : i32
    %c0_i32_0 = arith.constant 0 : i32
    return %arg0, %arg1, %c0_i32 : i32, i32, i32
  }
  func.func @transform_8(%arg0: i32, %arg1: i32) -> (i32, i32, i32) {
    %c0_i32 = arith.constant 0 : i32
    %c0_i32_0 = arith.constant 0 : i32
    %c0_i32_1 = arith.constant 0 : i32
    return %c0_i32, %arg0, %c0_i32_0 : i32, i32, i32
  }
  func.func @transform_9(%arg0: i32, %arg1: i32) -> (i32, i32, i32) {
    %c0_i32 = arith.constant 0 : i32
    %c0_i32_0 = arith.constant 0 : i32
    %c0_i32_1 = arith.constant 0 : i32
    return %c0_i32, %arg0, %c0_i32_0 : i32, i32, i32
  }
}

</mosaic_0001>

<bundles_post_ra>
// kernel: tpu_custom_call.1
= control target key start
LH: loop header
LB: loop body
LE: loop exit
PB: predicated region body
PF: predicated region fallthrough
CT: control target
= control target key end

     0   :  { %15 = vsyncpa [#allocation5], 0  ;;  %s13474_s0 = inlined_call_operand.hbm [shape: f32[8,8,512], index: 0, kind: input, shape index: {}]   ;;  %s13475_s1 = inlined_call_operand.hbm [shape: f32[2,8,128], index: 1, kind: input, shape index: {}]   ;;  %s13476_s2 = inlined_call_operand.hbm [shape: f32[2,8,128], index: 2, kind: input, shape index: {}]   ;;  %s13477_s3 = inlined_call_operand.hbm [shape: f32[128,512], index: 3, kind: input, shape index: {}]   ;;  %s13478_s4 = inlined_call_operand.hbm [shape: f32[128,512], index: 4, kind: input, shape index: {}]   ;;  %s13479_s5 = inlined_call_operand.hbm [shape: f32[128,512], index: 5, kind: input, shape index: {}]   ;;  %s13480_s6 = inlined_call_operand.vmem [shape: f32[1,512], index: 6, kind: input, shape index: {}]   ;;  %s13481_s7 = inlined_call_operand.hbm [shape: f32[8,8,128], index: 7, kind: output, shape index: {0}]   ;;  %s13482_s8 = inlined_call_operand.hbm [shape: f32[2,8,128], index: 8, kind: output, shape index: {1}]   ;;  %s13483_s9 = inlined_call_operand.hbm [shape: f32[2,8,128], index: 9, kind: output, shape index: {2}]  }
   0x1   :  { %16 = vsyncpa [#allocation8], 0 }
   0x2   :  { %17 = vsyncpa [#allocation11], 0 }
   0x3   :  { %18 = vsyncpa [#allocation14], 0 }
   0x4   :  { %19 = vsyncpa [#allocation6], 0 }
   0x5   :  { %20 = vsyncpa [#allocation17], 0  ;;  %s11158_s30 = smov [#allocation7]   ;;  %s10948_s13 = scalar_lea.hbm %s13475_s1, 256 }
   0x6   :  { %s38_s10 = sshll.u32 %s11158_s30, 4  ;;  %p10949_p0 = scmp.ne.s32.totalorder %s13475_s1, %s10948_s13  ;;  %s39_s10 = int_to_ptr.vmem [resolvable:$true] %s38_s10 }
   0x7   :  { %p10952_p1 = scmp.lt.u32.totalorder %s10948_s13, %s13475_s1 }
   0x9   :  { %p10954_p2 = pnand %p10952_p1, %p10949_p0 }
   0xb   :  { %10957 = shalt.err (!%p10954_p2)
}
   0xc   :  { %s10958_s18 = scalar_lea.vmem %s39_s10, 256  ;;  %p10963_p4 = scmp.lt.s32.totalorder %s39_s10, %s39_s10 }
   0xd   :  { %p10959_p3 = scmp.ne.s32.totalorder %s39_s10, %s10958_s18  ;;  %p10964_p5 = scmp.lt.s32.totalorder %s10958_s18, %s10958_s18 }
   0xf   :  { %p10965_p6 = por %p10964_p5, %p10963_p4 }
  0x11   :  { %p10966_p7 = pnand %p10965_p6, %p10959_p3 }
  0x13   :  { %10969 = shalt.err (!%p10966_p7)
}
  0x14   :  { %s11159_s19 = smov 128   ;;  %s11160_s20 = smov 8  }
  0x15   :  { %44 = dma.hbm_to_vmem [thread:$0]  %s13475_s1, 256, %s39_s10, [#allocation8], %s11159_s19, %s11159_s19, %s11160_s20  }
  0x16   :  { %s11161_s23 = smov [#allocation10]   ;;  %s11162_s25 = smov [#allocation4]  }
  0x17   :  { %s62_s24 = sshll.u32 %s11161_s23, 4  ;;  %s26_s26 = sshll.u32 %s11162_s25, 4  ;;  %s63_s24 = int_to_ptr.vmem [resolvable:$true] %s62_s24  ;;  %s27_s26 = int_to_ptr.vmem [resolvable:$true] %s26_s26 }
  0x18   :  { %s10970_s29 = scalar_lea.hbm %s13477_s3, 8192 }
  0x19   :  { %p10971_p8 = scmp.ne.s32.totalorder %s13477_s3, %s10970_s29  ;;  %p10974_p9 = scmp.lt.u32.totalorder %s10970_s29, %s13477_s3 }
  0x1b   :  { %p10976_p10 = pnand %p10974_p9, %p10971_p8 }
  0x1d   :  { %10979 = shalt.err (!%p10976_p10)
}
  0x1e   :  { %s10980_s1 = scalar_lea.vmem %s63_s24, 8192  ;;  %p10985_p12 = scmp.lt.s32.totalorder %s63_s24, %s63_s24 }
  0x1f   :  { %p10981_p11 = scmp.ne.s32.totalorder %s63_s24, %s10980_s1  ;;  %p10986_p13 = scmp.lt.s32.totalorder %s10980_s1, %s10980_s1 }
  0x21   :  { %p10987_p0 = por %p10986_p13, %p10985_p12 }
  0x23   :  { %p10988_p1 = pnand %p10987_p0, %p10981_p11 }
  0x25   :  { %10991 = shalt.err (!%p10988_p1)
}
  0x26   :  { %s11163_s10 = smov 512   ;;  %s11164_s14 = smov 32  }
  0x27   :  { %68 = dma.hbm_to_vmem [thread:$0]  %s13477_s3, 8192, %s63_s24, [#allocation11], %s11163_s10, %s11163_s10, %s11164_s14  }
  0x28   :  { %s10992_s21 = scalar_lea.hbm %s13474_s0, 4096 }
  0x29   :  { %p10993_p2 = scmp.ne.s32.totalorder %s13474_s0, %s10992_s21  ;;  %p10996_p3 = scmp.lt.u32.totalorder %s10992_s21, %s13474_s0 }
  0x2b   :  { %p10998_p4 = pnand %p10996_p3, %p10993_p2 }
  0x2d   :  { %11001 = shalt.err (!%p10998_p4)
}
  0x2e   :  { %s11002_s28 = scalar_lea.vmem %s27_s26, 4096  ;;  %p11007_p6 = scmp.lt.s32.totalorder %s27_s26, %s27_s26 }
  0x2f   :  { %p11003_p5 = scmp.ne.s32.totalorder %s27_s26, %s11002_s28  ;;  %p11008_p7 = scmp.lt.s32.totalorder %s11002_s28, %s11002_s28 }
  0x31   :  { %p11009_p8 = por %p11008_p7, %p11007_p6 }
  0x33   :  { %p11010_p9 = pnand %p11009_p8, %p11003_p5 }
  0x35   :  { %11013 = shalt.err (!%p11010_p9)
}
  0x36   :  { %32 = dma.hbm_to_vmem [thread:$0]  %s13474_s0, 4096, %s27_s26, [#allocation5], %s11163_s10, %s11163_s10, %s11164_s14  }
  0x37   :  { %s11165_s29 = smov [#allocation9]   ;;  %s11166_s11 = smov [#allocation12]  }
  0x38   :  { %s50_s30 = sshll.u32 %s11165_s29, 4  ;;  %s74_s12 = sshll.u32 %s11166_s11, 4  ;;  %s51_s30 = int_to_ptr.vmem [resolvable:$true] %s50_s30  ;;  %s75_s12 = int_to_ptr.vmem [resolvable:$true] %s74_s12 }
  0x39   :  { %s11014_s15 = scalar_lea.hbm %s13476_s2, 256 }
  0x3a   :  { %p11015_p10 = scmp.ne.s32.totalorder %s13476_s2, %s11014_s15  ;;  %p11018_p11 = scmp.lt.u32.totalorder %s11014_s15, %s13476_s2 }
  0x3c   :  { %p11020_p12 = pnand %p11018_p11, %p11015_p10 }
  0x3e   :  { %11023 = shalt.err (!%p11020_p12)
}
  0x3f   :  { %s11024_s0 = scalar_lea.vmem %s51_s30, 256  ;;  %p11029_p0 = scmp.lt.s32.totalorder %s51_s30, %s51_s30 }
  0x40   :  { %p11025_p13 = scmp.ne.s32.totalorder %s51_s30, %s11024_s0  ;;  %p11030_p1 = scmp.lt.s32.totalorder %s11024_s0, %s11024_s0 }
  0x42   :  { %p11031_p2 = por %p11030_p1, %p11029_p0 }
  0x44   :  { %p11032_p3 = pnand %p11031_p2, %p11025_p13 }
  0x46   :  { %11035 = shalt.err (!%p11032_p3)
}
  0x47   :  { %56 = dma.hbm_to_vmem [thread:$0]  %s13476_s2, 256, %s51_s30, [#allocation8], %s11159_s19, %s11159_s19, %s11160_s20  }
  0x48   :  { %s11036_s27 = scalar_lea.hbm %s13478_s4, 8192 }
  0x49   :  { %p11037_p4 = scmp.ne.s32.totalorder %s13478_s4, %s11036_s27  ;;  %p11040_p5 = scmp.lt.u32.totalorder %s11036_s27, %s13478_s4 }
  0x4b   :  { %p11042_p6 = pnand %p11040_p5, %p11037_p4 }
  0x4d   :  { %11045 = shalt.err (!%p11042_p6)
}
  0x4e   :  { %s11046_s11 = scalar_lea.vmem %s75_s12, 8192  ;;  %p11051_p8 = scmp.lt.s32.totalorder %s75_s12, %s75_s12 }
  0x4f   :  { %p11047_p7 = scmp.ne.s32.totalorder %s75_s12, %s11046_s11  ;;  %p11052_p9 = scmp.lt.s32.totalorder %s11046_s11, %s11046_s11 }
  0x51   :  { %p11053_p10 = por %p11052_p9, %p11051_p8 }
  0x53   :  { %p11054_p11 = pnand %p11053_p10, %p11047_p7 }
  0x55   :  { %11057 = shalt.err (!%p11054_p11)
}
  0x56   :  { %80 = dma.hbm_to_vmem [thread:$0]  %s13478_s4, 8192, %s75_s12, [#allocation11], %s11163_s10, %s11163_s10, %s11164_s14  }
  0x57   :  { %s11167_s13 = smov [#allocation13]   ;;  %s11058_s17 = scalar_lea.hbm %s13479_s5, 8192 }
  0x58   :  { %s86_s1 = sshll.u32 %s11167_s13, 4  ;;  %p11059_p12 = scmp.ne.s32.totalorder %s13479_s5, %s11058_s17  ;;  %s87_s1 = int_to_ptr.vmem [resolvable:$true] %s86_s1 }
  0x59   :  { %p11062_p13 = scmp.lt.u32.totalorder %s11058_s17, %s13479_s5 }
  0x5b   :  { %p11064_p0 = pnand %p11062_p13, %p11059_p12 }
  0x5d   :  { %11067 = shalt.err (!%p11064_p0)
}
  0x5e   :  { %s11068_s22 = scalar_lea.vmem %s87_s1, 8192  ;;  %p11073_p2 = scmp.lt.s32.totalorder %s87_s1, %s87_s1 }
  0x5f   :  { %p11069_p1 = scmp.ne.s32.totalorder %s87_s1, %s11068_s22  ;;  %p11074_p3 = scmp.lt.s32.totalorder %s11068_s22, %s11068_s22 }
  0x61   :  { %p11075_p4 = por %p11074_p3, %p11073_p2 }
  0x63   :  { %p11076_p5 = pnand %p11075_p4, %p11069_p1 }
  0x65   :  { %11079 = shalt.err (!%p11076_p5)
}
  0x66   :  { %92 = dma.hbm_to_vmem [thread:$0]  %s13479_s5, 8192, %s87_s1, [#allocation14], %s11163_s10, %s11163_s10, %s11164_s14  }
  0x67   :  { %11146 = dma.done.wait [#allocation5], 4096  }
  0x68   :  { %11147 = vsyncadd [#allocation5], 4294963200 }
  0x69   :  { %11148 = dma.done.wait [#allocation8], 512  }
  0x6a   :  { %11149 = vsyncadd [#allocation8], 4294966784 }
  0x6b   :  { %11150 = dma.done.wait [#allocation11], 16384  }
  0x6c   :  { %11151 = vsyncadd [#allocation11], 4294950912 }
  0x6d   :  { %11152 = dma.done.wait [#allocation14], 8192  }
  0x6e   :  { %11153 = vsyncadd [#allocation14], 4294959104  ;;  %v13484_v0 = vmov 0.0   ;;  %v132_v1 = vld [vmem:[#allocation10 + $0x8] sm:$0xff]  ;;  %v134_v3 = vld [vmem:[#allocation10 + $0x18] sm:$0xff]  ;;  %s11171_s23 = smov [#allocation18]  }
  0x6f   :  { %403 = vmatprep.mubr.f32.mxu0 %v13484_v0  ;;  %474 = vmatprep.mubr.f32.mxu1 %v13484_v0  ;;  %v136_v2 = vld [vmem:[#allocation10 + $0x28] sm:$0xff]  ;;  %v138_v5 = vld [vmem:[#allocation10 + $0x38] sm:$0xff]  ;;  %v131_v6 = vld [vmem:[#allocation10] sm:$0xff]  ;;  %s7942_s25 = sshll.u32 %s11171_s23, 4  ;;  %s13416_s25 = int_to_ptr.vmem [resolvable:$true] %s7942_s25 }
  0x70   :  { %v11315_v4 = vpack.c.bf16 %v136_v2, %v132_v1  ;;  %v135_v7 = vld [vmem:[#allocation10 + $0x20] sm:$0xff]  ;;  %v11317_v8 = vpack.c.bf16 %v138_v5, %v134_v3  ;;  %v133_v10 = vld [vmem:[#allocation10 + $0x10] sm:$0xff]  ;;  %v140_v12 = vld [vmem:[#allocation10 + $0x48] sm:$0xff] }
  0x71   :  { %v11319_v9 = vpack.c.bf16 %v135_v7, %v131_v6  ;;  %v137_v11 = vld [vmem:[#allocation10 + $0x30] sm:$0xff]  ;;  %v144_v14 = vld [vmem:[#allocation10 + $0x68] sm:$0xff]  ;;  %v142_v15 = vld [vmem:[#allocation10 + $0x58] sm:$0xff] }
  0x72   :  { %13656 = vst [vmem:[#allocation25_spill] sm:$0xff] %v11315_v4  ;;  %13657 = vst [vmem:[#allocation26_spill] sm:$0xff] %v11317_v8  ;;  %8213 = vmatprep.subr.bf16.mxu0 %v11315_v4  ;;  %v11322_v13 = vpack.c.bf16 %v137_v11, %v133_v10  ;;  %v146_v16 = vld [vmem:[#allocation10 + $0x78] sm:$0xff]  ;;  %8245 = vmatprep.subr.bf16.mxu1 %v11317_v8  ;;  %v11326_v17 = vpack.c.bf16 %v144_v14, %v140_v12  ;;  %v139_v19 = vld [vmem:[#allocation10 + $0x40] sm:$0xff] }
  0x73   :  { %8215 = vmatpush1.bf16.msra.mxu0 %v11319_v9  ;;  %v11328_v18 = vpack.c.bf16 %v146_v16, %v142_v15  ;;  %v143_v20 = vld [vmem:[#allocation10 + $0x60] sm:$0xff]  ;;  %v141_v21 = vld [vmem:[#allocation10 + $0x50] sm:$0xff]  ;;  %v148_v24 = vld [vmem:[#allocation10 + $0x88] sm:$0xff] }
  0x74   :  { %8247 = vmatpush1.bf16.msra.mxu1 %v11322_v13  ;;  %v11331_v22 = vpack.c.bf16 %v143_v20, %v139_v19  ;;  %v145_v23 = vld [vmem:[#allocation10 + $0x70] sm:$0xff]  ;;  %v152_v25 = vld [vmem:[#allocation10 + $0xa8] sm:$0xff]  ;;  %8217 = vmatprep.subr.bf16.mxu0 %v11326_v17  ;;  %v150_v28 = vld [vmem:[#allocation10 + $0x98] sm:$0xff] }
  0x75   :  { %8249 = vmatprep.subr.bf16.mxu1 %v11328_v18  ;;  %v11335_v26 = vpack.c.bf16 %v145_v23, %v141_v21  ;;  %v11337_v27 = vpack.c.bf16 %v152_v25, %v148_v24  ;;  %v154_v29 = vld [vmem:[#allocation10 + $0xb8] sm:$0xff]  ;;  %v147_v30 = vld [vmem:[#allocation10 + $0x80] sm:$0xff]  ;;  %v149_v33 = vld [vmem:[#allocation10 + $0x90] sm:$0xff] }
  0x76   :  { %v11339_v31 = vpack.c.bf16 %v154_v29, %v150_v28  ;;  %v151_v32 = vld [vmem:[#allocation10 + $0xa0] sm:$0xff]  ;;  %v153_v34 = vld [vmem:[#allocation10 + $0xb0] sm:$0xff]  ;;  %v156_v36 = vld [vmem:[#allocation10 + $0xc8] sm:$0xff] }
  0x77   :  { %8219 = vmatpush1.bf16.msra.mxu0 %v11331_v22  ;;  %v11342_v35 = vpack.c.bf16 %v151_v32, %v147_v30  ;;  %v160_v37 = vld [vmem:[#allocation10 + $0xe8] sm:$0xff]  ;;  %v158_v38 = vld [vmem:[#allocation10 + $0xd8] sm:$0xff]  ;;  %v11346_v39 = vpack.c.bf16 %v153_v34, %v149_v33  ;;  %v155_v42 = vld [vmem:[#allocation10 + $0xc0] sm:$0xff] }
  0x78   :  { %8251 = vmatpush1.bf16.msra.mxu1 %v11335_v26  ;;  %8221 = vmatprep.subr.bf16.mxu0 %v11337_v27  ;;  %v11348_v40 = vpack.c.bf16 %v160_v37, %v156_v36  ;;  %v162_v41 = vld [vmem:[#allocation10 + $0xf8] sm:$0xff]  ;;  %v159_v43 = vld [vmem:[#allocation10 + $0xe0] sm:$0xff]  ;;  %v157_v45 = vld [vmem:[#allocation10 + $0xd0] sm:$0xff] }
  0x79   :  { %8253 = vmatprep.subr.bf16.mxu1 %v11339_v31  ;;  %v11351_v44 = vpack.c.bf16 %v162_v41, %v158_v38  ;;  %v161_v46 = vld [vmem:[#allocation10 + $0xf0] sm:$0xff]  ;;  %v164_v47 = vld [vmem:[#allocation10 + $0x108] sm:$0xff]  ;;  %v166_v49 = vld [vmem:[#allocation10 + $0x118] sm:$0xff]  ;;  %v11354_v51 = vpack.c.bf16 %v159_v43, %v155_v42 }
  0x7a   :  { %v168_v48 = vld [vmem:[#allocation10 + $0x128] sm:$0xff]  ;;  %v170_v50 = vld [vmem:[#allocation10 + $0x138] sm:$0xff]  ;;  %v11358_v52 = vpack.c.bf16 %v161_v46, %v157_v45  ;;  %v163_v54 = vld [vmem:[#allocation10 + $0x100] sm:$0xff] }
  0x7b   :  { %8223 = vmatpush1.bf16.msra.mxu0 %v11342_v35  ;;  %v11360_v53 = vpack.c.bf16 %v168_v48, %v164_v47  ;;  %v167_v55 = vld [vmem:[#allocation10 + $0x120] sm:$0xff]  ;;  %v165_v56 = vld [vmem:[#allocation10 + $0x110] sm:$0xff]  ;;  %v11363_v57 = vpack.c.bf16 %v170_v50, %v166_v49  ;;  %v172_v59 = vld [vmem:[#allocation10 + $0x148] sm:$0xff] }
  0x7c   :  { %8255 = vmatpush1.bf16.msra.mxu1 %v11346_v39  ;;  %8225 = vmatprep.subr.bf16.mxu0 %v11348_v40  ;;  %v169_v58 = vld [vmem:[#allocation10 + $0x130] sm:$0xff]  ;;  %v176_v60 = vld [vmem:[#allocation10 + $0x168] sm:$0xff]  ;;  %v174_v61 = vld [vmem:[#allocation10 + $0x158] sm:$0xff]  ;;  %v11366_v63 = vpack.c.bf16 %v167_v55, %v163_v54 }
  0x7d   :  { %8257 = vmatprep.subr.bf16.mxu1 %v11351_v44  ;;  %v178_v62 = vld [vmem:[#allocation10 + $0x178] sm:$0xff]  ;;  %v11370_v1 = vpack.c.bf16 %v169_v58, %v165_v56  ;;  %v11372_v2 = vpack.c.bf16 %v176_v60, %v172_v59  ;;  %v171_v3 = vld [vmem:[#allocation10 + $0x140] sm:$0xff]  ;;  %v173_v6 = vld [vmem:[#allocation10 + $0x150] sm:$0xff] }
  0x7e   :  { %v175_v5 = vld [vmem:[#allocation10 + $0x160] sm:$0xff]  ;;  %v11375_v7 = vpack.c.bf16 %v178_v62, %v174_v61  ;;  %v177_v10 = vld [vmem:[#allocation10 + $0x170] sm:$0xff]  ;;  %v180_v11 = vld [vmem:[#allocation10 + $0x188] sm:$0xff] }
  0x7f   :  { %8227 = vmatpush1.bf16.msra.mxu0 %v11354_v51  ;;  %v184_v12 = vld [vmem:[#allocation10 + $0x1a8] sm:$0xff]  ;;  %v182_v14 = vld [vmem:[#allocation10 + $0x198] sm:$0xff]  ;;  %v11378_v16 = vpack.c.bf16 %v175_v5, %v171_v3  ;;  %v11382_v19 = vpack.c.bf16 %v177_v10, %v173_v6  ;;  %v179_v21 = vld [vmem:[#allocation10 + $0x180] sm:$0xff] }
  0x80   :  { %8259 = vmatpush1.bf16.msra.mxu1 %v11358_v52  ;;  %8229 = vmatprep.subr.bf16.mxu0 %v11360_v53  ;;  %13658 = vst [vmem:[#allocation27_spill] sm:$0xff] %v11375_v7  ;;  %v186_v15 = vld [vmem:[#allocation10 + $0x1b8] sm:$0xff]  ;;  %v11384_v20 = vpack.c.bf16 %v184_v12, %v180_v11  ;;  %v183_v23 = vld [vmem:[#allocation10 + $0x1a0] sm:$0xff]  ;;  %v181_v24 = vld [vmem:[#allocation10 + $0x190] sm:$0xff] }
  0x81   :  { %8261 = vmatprep.subr.bf16.mxu1 %v11363_v57  ;;  %13659 = vst [vmem:[#allocation28_spill] sm:$0xff] %v11378_v16  ;;  %13660 = vst [vmem:[#allocation29_spill] sm:$0xff] %v11382_v19  ;;  %v11387_v25 = vpack.c.bf16 %v186_v15, %v182_v14  ;;  %v185_v28 = vld [vmem:[#allocation10 + $0x1b0] sm:$0xff]  ;;  %v188_v29 = vld [vmem:[#allocation10 + $0x1c8] sm:$0xff]  ;;  %v11390_v34 = vpack.c.bf16 %v183_v23, %v179_v21 }
  0x82   :  { %13661 = vst [vmem:[#allocation30_spill] sm:$0xff] %v11384_v20  ;;  %v192_v30 = vld [vmem:[#allocation10 + $0x1e8] sm:$0xff]  ;;  %v190_v32 = vld [vmem:[#allocation10 + $0x1d8] sm:$0xff]  ;;  %v11394_v36 = vpack.c.bf16 %v185_v28, %v181_v24  ;;  %v187_v38 = vld [vmem:[#allocation10 + $0x1c0] sm:$0xff] }
  0x83   :  { %8231 = vmatpush1.bf16.msra.mxu0 %v11366_v63  ;;  %13662 = vst [vmem:[#allocation31_spill] sm:$0xff] %v11387_v25  ;;  %v194_v33 = vld [vmem:[#allocation10 + $0x1f8] sm:$0xff]  ;;  %13663 = vst [vmem:[#allocation32_spill] sm:$0xff] %v11390_v34  ;;  %v11396_v37 = vpack.c.bf16 %v192_v30, %v188_v29  ;;  %v191_v41 = vld [vmem:[#allocation10 + $0x1e0] sm:$0xff] }
  0x84   :  { %8263 = vmatpush1.bf16.msra.mxu1 %v11370_v1  ;;  %8233 = vmatprep.subr.bf16.mxu0 %v11372_v2  ;;  %13664 = vst [vmem:[#allocation33_spill] sm:$0xff] %v11394_v36  ;;  %v11399_v42 = vpack.c.bf16 %v194_v33, %v190_v32  ;;  %v189_v43 = vld [vmem:[#allocation10 + $0x1d0] sm:$0xff]  ;;  %v11402_v46 = vpack.c.bf16 %v191_v41, %v187_v38  ;;  %v117_v48 = vld [vmem:[#allocation7] sm:$0xff]  ;;  %v260_v49 = vld [vmem:[#allocation13 + $0x8] sm:$0xff] }
  0x85   :  { %8265 = vmatprep.subr.bf16.mxu1 %v11375_v7  ;;  %13665 = vst [vmem:[#allocation34_spill] sm:$0xff] %v11396_v37  ;;  %v193_v45 = vld [vmem:[#allocation10 + $0x1f0] sm:$0xff]  ;;  %v264_v50 = vld [vmem:[#allocation13 + $0x28] sm:$0xff]  ;;  %v262_v54 = vld [vmem:[#allocation13 + $0x18] sm:$0xff] }
  0x86   :  { %13666 = vst [vmem:[#allocation35_spill] sm:$0xff] %v11399_v42  ;;  %13667 = vst [vmem:[#allocation36_spill] sm:$0xff] %v11402_v46  ;;  %v11406_v47 = vpack.c.bf16 %v193_v45, %v189_v43  ;;  %v11413_v55 = vpack.c.bf16 %v264_v50, %v260_v49  ;;  %v266_v56 = vld [vmem:[#allocation13 + $0x38] sm:$0xff]  ;;  %v259_v58 = vld [vmem:[#allocation13] sm:$0xff] }
  0x87   :  { %8235 = vmatpush1.bf16.msra.mxu0 %v11378_v16  ;;  %v263_v59 = vld [vmem:[#allocation13 + $0x20] sm:$0xff]  ;;  %v11415_v60 = vpack.c.bf16 %v266_v56, %v262_v54  ;;  %v261_v62 = vld [vmem:[#allocation13 + $0x10] sm:$0xff]  ;;  %v268_v6 = vld [vmem:[#allocation13 + $0x48] sm:$0xff] }
  0x88   :  { %8267 = vmatpush1.bf16.msra.mxu1 %v11382_v19  ;;  %8237 = vmatprep.subr.bf16.mxu0 %v11384_v20  ;;  %13668 = vst [vmem:[#allocation37_spill] sm:$0xff] %v11406_v47  ;;  %13669 = vst [vmem:[#allocation38_spill] sm:$0xff] %v11413_v55  ;;  %v11417_v61 = vpack.c.bf16 %v263_v59, %v259_v58  ;;  %v265_v3 = vld [vmem:[#allocation13 + $0x30] sm:$0xff]  ;;  %v272_v10 = vld [vmem:[#allocation13 + $0x68] sm:$0xff] }
  0x89   :  { %8269 = vmatprep.subr.bf16.mxu1 %v11387_v25  ;;  %13670 = vst [vmem:[#allocation39_spill] sm:$0xff] %v11415_v60  ;;  %v11420_v5 = vpack.c.bf16 %v265_v3, %v261_v62  ;;  %v270_v11 = vld [vmem:[#allocation13 + $0x58] sm:$0xff]  ;;  %v11425_v12 = vpack.c.bf16 %v272_v10, %v268_v6  ;;  %v267_v15 = vld [vmem:[#allocation13 + $0x40] sm:$0xff]  ;;  %v269_v28 = vld [vmem:[#allocation13 + $0x50] sm:$0xff] }
  0x8a   :  { %13671 = vst [vmem:[#allocation40_spill] sm:$0xff] %v11417_v61  ;;  %v274_v14 = vld [vmem:[#allocation13 + $0x78] sm:$0xff]  ;;  %v271_v21 = vld [vmem:[#allocation13 + $0x60] sm:$0xff]  ;;  %v273_v29 = vld [vmem:[#allocation13 + $0x70] sm:$0xff] }
  0x8b   :  { %8239 = vmatpush1.bf16.msra.mxu0 %v11390_v34  ;;  %13672 = vst [vmem:[#allocation41_spill] sm:$0xff] %v11420_v5  ;;  %13673 = vst [vmem:[#allocation42_spill] sm:$0xff] %v11425_v12  ;;  %v11427_v23 = vpack.c.bf16 %v274_v14, %v270_v11  ;;  %v11429_v24 = vpack.c.bf16 %v271_v21, %v267_v15  ;;  %v11432_v30 = vpack.c.bf16 %v273_v29, %v269_v28  ;;  %v276_v32 = vld [vmem:[#allocation13 + $0x88] sm:$0xff]  ;;  %v278_v38 = vld [vmem:[#allocation13 + $0x98] sm:$0xff] }
  0x8c   :  { %8271 = vmatpush1.bf16.msra.mxu1 %v11394_v36  ;;  %8241 = vmatprep.subr.bf16.mxu0 %v11396_v37  ;;  %v280_v33 = vld [vmem:[#allocation13 + $0xa8] sm:$0xff]  ;;  %v282_v43 = vld [vmem:[#allocation13 + $0xb8] sm:$0xff]  ;;  %v275_v45 = vld [vmem:[#allocation13 + $0x80] sm:$0xff] }
  0x8d   :  { %8273 = vmatprep.subr.bf16.mxu1 %v11399_v42  ;;  %13674 = vst [vmem:[#allocation43_spill] sm:$0xff] %v11427_v23  ;;  %13675 = vst [vmem:[#allocation44_spill] sm:$0xff] %v11429_v24  ;;  %v11437_v41 = vpack.c.bf16 %v280_v33, %v276_v32  ;;  %v11439_v49 = vpack.c.bf16 %v282_v43, %v278_v38  ;;  %v277_v54 = vld [vmem:[#allocation13 + $0x90] sm:$0xff]  ;;  %v284_v59 = vld [vmem:[#allocation13 + $0xc8] sm:$0xff] }
  0x8e   :  { %13676 = vst [vmem:[#allocation45_spill] sm:$0xff] %v11432_v30  ;;  %v281_v56 = vld [vmem:[#allocation13 + $0xb0] sm:$0xff]  ;;  %v288_v62 = vld [vmem:[#allocation13 + $0xe8] sm:$0xff]  ;;  %v286_v3 = vld [vmem:[#allocation13 + $0xd8] sm:$0xff] }
  0x8f   :  { %8243 = vmatpush1.bf16.msra.mxu0 %v11402_v46  ;;  %13677 = vst [vmem:[#allocation46_spill] sm:$0xff] %v11437_v41  ;;  %13678 = vst [vmem:[#allocation47_spill] sm:$0xff] %v11439_v49  ;;  %v11444_v58 = vpack.c.bf16 %v281_v56, %v277_v54  ;;  %v11449_v6 = vpack.c.bf16 %v288_v62, %v284_v59  ;;  %v290_v10 = vld [vmem:[#allocation13 + $0xf8] sm:$0xff]  ;;  %v283_v11 = vld [vmem:[#allocation13 + $0xc0] sm:$0xff] }
  0x90   :  { %8275 = vmatpush1.bf16.msra.mxu1 %v11406_v47  ;;  %8277 = vmatprep.subr.bf16.mxu0 %v11413_v55  ;;  %v287_v14 = vld [vmem:[#allocation13 + $0xe0] sm:$0xff]  ;;  %v11451_v15 = vpack.c.bf16 %v290_v10, %v286_v3  ;;  %v285_v28 = vld [vmem:[#allocation13 + $0xd0] sm:$0xff]  ;;  %v292_v33 = vld [vmem:[#allocation13 + $0x108] sm:$0xff] }
  0x91   :  { %8309 = vmatprep.subr.bf16.mxu1 %v11415_v60  ;;  %13680 = vst [vmem:[#allocation49_spill] sm:$0xff] %v11444_v58  ;;  %13681 = vst [vmem:[#allocation50_spill] sm:$0xff] %v11449_v6  ;;  %v11453_v21 = vpack.c.bf16 %v287_v14, %v283_v11  ;;  %v289_v29 = vld [vmem:[#allocation13 + $0xf0] sm:$0xff]  ;;  %v296_v38 = vld [vmem:[#allocation13 + $0x128] sm:$0xff] }
  0x92   :  { %404 = vmatmul.mubr.f32.vlgmr.msra.gmra.mrb[0].mxu0 %v117_v48  ;;  %13682 = vst [vmem:[#allocation51_spill] sm:$0xff] %v11451_v15  ;;  %v11456_v32 = vpack.c.bf16 %v289_v29, %v285_v28  ;;  %v294_v43 = vld [vmem:[#allocation13 + $0x118] sm:$0xff]  ;;  %v291_v54 = vld [vmem:[#allocation13 + $0x100] sm:$0xff]  ;;  %v293_v3 = vld [vmem:[#allocation13 + $0x110] sm:$0xff] }
  0x93   :  { %475 = vmatmul.mubr.f32.vlgmr.msra.gmra.mrb[0].mxu1 %v117_v48  ;;  %939 = vmatprep.mubr.f32.mxu0 %v13484_v0  ;;  %v279_v48 = vld [vmem:[#allocation13 + $0xa0] sm:$0xff]  ;;  %13683 = vst [vmem:[#allocation52_spill] sm:$0xff] %v11453_v21  ;;  %v297_v10 = vld [vmem:[#allocation13 + $0x130] sm:$0xff]  ;;  %v300_v14 = vld [vmem:[#allocation13 + $0x148] sm:$0xff] }
  0x94   :  { %1010 = vmatprep.mubr.f32.mxu1 %v13484_v0  ;;  %8279 = vmatpush1.bf16.msra.mxu0 %v11417_v61  ;;  %v11441_v50 = vpack.c.bf16 %v279_v48, %v275_v45  ;;  %13684 = vst [vmem:[#allocation53_spill] sm:$0xff] %v11456_v32  ;;  %v11461_v45 = vpack.c.bf16 %v296_v38, %v292_v33  ;;  %v298_v48 = vld [vmem:[#allocation13 + $0x138] sm:$0xff]  ;;  %v295_v56 = vld [vmem:[#allocation13 + $0x120] sm:$0xff]  ;;  %v304_v28 = vld [vmem:[#allocation13 + $0x168] sm:$0xff] }
  0x95   :  { %8311 = vmatpush1.bf16.msra.mxu1 %v11420_v5  ;;  %8281 = vmatprep.subr.bf16.mxu0 %v11425_v12  ;;  %v11463_v59 = vpack.c.bf16 %v298_v48, %v294_v43  ;;  %v11465_v62 = vpack.c.bf16 %v295_v56, %v291_v54  ;;  %v11468_v11 = vpack.c.bf16 %v297_v10, %v293_v3  ;;  %v302_v29 = vld [vmem:[#allocation13 + $0x158] sm:$0xff]  ;;  %v299_v43 = vld [vmem:[#allocation13 + $0x140] sm:$0xff]  ;;  %v301_v3 = vld [vmem:[#allocation13 + $0x150] sm:$0xff] }
  0x96   :  { %8313 = vmatprep.subr.bf16.mxu1 %v11427_v23  ;;  %13679 = vst [vmem:[#allocation48_spill] sm:$0xff] %v11441_v50  ;;  %13685 = vst [vmem:[#allocation54_spill] sm:$0xff] %v11461_v45  ;;  %v11473_v33 = vpack.c.bf16 %v304_v28, %v300_v14  ;;  %v306_v38 = vld [vmem:[#allocation13 + $0x178] sm:$0xff]  ;;  %v303_v48 = vld [vmem:[#allocation13 + $0x160] sm:$0xff] }
  0x97   :  { %13686 = vst [vmem:[#allocation55_spill] sm:$0xff] %v11463_v59  ;;  %13687 = vst [vmem:[#allocation56_spill] sm:$0xff] %v11465_v62  ;;  %v11475_v54 = vpack.c.bf16 %v306_v38, %v302_v29  ;;  %v11477_v56 = vpack.c.bf16 %v303_v48, %v299_v43  ;;  %v305_v10 = vld [vmem:[#allocation13 + $0x170] sm:$0xff]  ;;  %v312_v14 = vld [vmem:[#allocation13 + $0x1a8] sm:$0xff] }
  0x98   :  { %8283 = vmatpush1.bf16.msra.mxu0 %v11429_v24  ;;  %13688 = vst [vmem:[#allocation57_spill] sm:$0xff] %v11468_v11  ;;  %13689 = vst [vmem:[#allocation58_spill] sm:$0xff] %v11473_v33  ;;  %v11480_v0 = vpack.c.bf16 %v305_v10, %v301_v3  ;;  %v310_v28 = vld [vmem:[#allocation13 + $0x198] sm:$0xff]  ;;  %v307_v38 = vld [vmem:[#allocation13 + $0x180] sm:$0xff] }
  0x99   :  { %8315 = vmatpush1.bf16.msra.mxu1 %v11432_v30  ;;  %8285 = vmatprep.subr.bf16.mxu0 %v11437_v41  ;;  %13690 = vst [vmem:[#allocation59_spill] sm:$0xff] %v11475_v54  ;;  %13691 = vst [vmem:[#allocation60_spill] sm:$0xff] %v11477_v56  ;;  %v314_v29 = vld [vmem:[#allocation13 + $0x1b8] sm:$0xff]  ;;  %v311_v43 = vld [vmem:[#allocation13 + $0x1a0] sm:$0xff] }
  0x9a   :  { %8317 = vmatprep.subr.bf16.mxu1 %v11439_v49  ;;  %13692 = vst [vmem:[#allocation61_spill] sm:$0xff] %v11480_v0  ;;  %v11487_v48 = vpack.c.bf16 %v314_v29, %v310_v28  ;;  %v309_v3 = vld [vmem:[#allocation13 + $0x190] sm:$0xff]  ;;  %v322_v28 = vld [vmem:[#allocation13 + $0x1f8] sm:$0xff]  ;;  %v315_v29 = vld [vmem:[#allocation13 + $0x1c0] sm:$0xff] }
  0x9b   :  { %v313_v10 = vld [vmem:[#allocation13 + $0x1b0] sm:$0xff] }
  0x9c   :  { %8287 = vmatpush1.bf16.msra.mxu0 %v11441_v50  ;;  %13694 = vst [vmem:[#allocation63_spill] sm:$0xff] %v11487_v48  ;;  %v234_v50 = vld [vmem:[#allocation12 + $0x138] sm:$0xff] }
  0x9d   :  { %8319 = vmatpush1.bf16.msra.mxu1 %v11444_v58  ;;  %8289 = vmatprep.subr.bf16.mxu0 %v11449_v6  ;;  %v222_v6 = vld [vmem:[#allocation12 + $0xd8] sm:$0xff]  ;;  %v225_v58 = vld [vmem:[#allocation12 + $0xf0] sm:$0xff] }
  0x9e   :  { %8321 = vmatprep.subr.bf16.mxu1 %v11451_v15  ;;  %v220_v15 = vld [vmem:[#allocation12 + $0xc8] sm:$0xff] }
  0xa0   :  { %8291 = vmatpush1.bf16.msra.mxu0 %v11453_v21  ;;  %v13711_v21 = vmov 0.0  }
  0xa1   :  { %8323 = vmatpush1.bf16.msra.mxu1 %v11456_v32  ;;  %8293 = vmatprep.subr.bf16.mxu0 %v11461_v45  ;;  %v198_v45 = vld [vmem:[#allocation12 + $0x18] sm:$0xff] }
  0xa2   :  { %8325 = vmatprep.subr.bf16.mxu1 %v11463_v59  ;;  %v11489_v59 = vpack.c.bf16 %v311_v43, %v307_v38  ;;  %v319_v38 = vld [vmem:[#allocation13 + $0x1e0] sm:$0xff]  ;;  %v202_v32 = vld [vmem:[#allocation12 + $0x38] sm:$0xff] }
  0xa4   :  { %8295 = vmatpush1.bf16.msra.mxu0 %v11465_v62  ;;  %13695 = vst [vmem:[#allocation64_spill] sm:$0xff] %v11489_v59 }
  0xa5   :  { %8327 = vmatpush1.bf16.msra.mxu1 %v11468_v11  ;;  %8297 = vmatprep.subr.bf16.mxu0 %v11473_v33  ;;  %v308_v11 = vld [vmem:[#allocation13 + $0x188] sm:$0xff]  ;;  %v11501_v33 = vpack.c.bf16 %v319_v38, %v315_v29  ;;  %v199_v29 = vld [vmem:[#allocation12 + $0x20] sm:$0xff] }
  0xa6   :  { %8329 = vmatprep.subr.bf16.mxu1 %v11475_v54  ;;  %v11485_v62 = vpack.c.bf16 %v312_v14, %v308_v11  ;;  %v11492_v54 = vpack.c.bf16 %v313_v10, %v309_v3  ;;  %v320_v11 = vld [vmem:[#allocation13 + $0x1e8] sm:$0xff]  ;;  %v318_v14 = vld [vmem:[#allocation13 + $0x1d8] sm:$0xff]  ;;  %v317_v3 = vld [vmem:[#allocation13 + $0x1d0] sm:$0xff] }
  0xa7   :  { %v11499_v43 = vpack.c.bf16 %v322_v28, %v318_v14  ;;  %13699 = vst [vmem:[#allocation68_spill] sm:$0xff] %v11501_v33  ;;  %v321_v10 = vld [vmem:[#allocation13 + $0x1f0] sm:$0xff]  ;;  %v118_v14 = vld [vmem:[#allocation7 + $0x8] sm:$0xff]  ;;  %v195_v28 = vld [vmem:[#allocation12] sm:$0xff] }
  0xa8   :  { %8299 = vmatpush1.bf16.msra.mxu0 %v11477_v56  ;;  %13693 = vst [vmem:[#allocation62_spill] sm:$0xff] %v11485_v62  ;;  %13696 = vst [vmem:[#allocation65_spill] sm:$0xff] %v11492_v54  ;;  %v11513_v38 = vpack.c.bf16 %v199_v29, %v195_v28  ;;  %v207_v28 = vld [vmem:[#allocation12 + $0x60] sm:$0xff]  ;;  %v205_v29 = vld [vmem:[#allocation12 + $0x50] sm:$0xff] }
  0xa9   :  { %8331 = vmatpush1.bf16.msra.mxu1 %v11480_v0  ;;  %8301 = vmatprep.subr.bf16.mxu0 %v11485_v62  ;;  %v316_v0 = vld [vmem:[#allocation13 + $0x1c8] sm:$0xff]  ;;  %13698 = vst [vmem:[#allocation67_spill] sm:$0xff] %v11499_v43 }
  0xaa   :  { %8333 = vmatprep.subr.bf16.mxu1 %v11487_v48  ;;  %v11497_v56 = vpack.c.bf16 %v320_v11, %v316_v0  ;;  %v196_v62 = vld [vmem:[#allocation12 + $0x8] sm:$0xff]  ;;  %v11510_v11 = vpack.c.bf16 %v202_v32, %v198_v45  ;;  %13703 = vst [vmem:[#allocation72_spill] sm:$0xff] %v11513_v38  ;;  %v210_v32 = vld [vmem:[#allocation12 + $0x78] sm:$0xff] }
  0xab   :  { %v200_v48 = vld [vmem:[#allocation12 + $0x28] sm:$0xff] }
  0xac   :  { %8303 = vmatpush1.bf16.msra.mxu0 %v11489_v59  ;;  %13697 = vst [vmem:[#allocation66_spill] sm:$0xff] %v11497_v56  ;;  %v11504_v59 = vpack.c.bf16 %v321_v10, %v317_v3  ;;  %v11508_v0 = vpack.c.bf16 %v200_v48, %v196_v62  ;;  %13702 = vst [vmem:[#allocation71_spill] sm:$0xff] %v11510_v11  ;;  %v197_v3 = vld [vmem:[#allocation12 + $0x10] sm:$0xff]  ;;  %v208_v62 = vld [vmem:[#allocation12 + $0x68] sm:$0xff] }
  0xad   :  { %8335 = vmatpush1.bf16.msra.mxu1 %v11492_v54  ;;  %8305 = vmatprep.subr.bf16.mxu0 %v11497_v56  ;;  %v201_v10 = vld [vmem:[#allocation12 + $0x30] sm:$0xff]  ;;  %v204_v56 = vld [vmem:[#allocation12 + $0x48] sm:$0xff]  ;;  %v206_v48 = vld [vmem:[#allocation12 + $0x58] sm:$0xff] }
  0xae   :  { %13700 = vst [vmem:[#allocation69_spill] sm:$0xff] %v11504_v59  ;;  %8337 = vmatprep.subr.bf16.mxu1 %v11499_v43  ;;  %13701 = vst [vmem:[#allocation70_spill] sm:$0xff] %v11508_v0  ;;  %v11517_v43 = vpack.c.bf16 %v201_v10, %v197_v3  ;;  %v11519_v45 = vpack.c.bf16 %v208_v62, %v204_v56  ;;  %v216_v3 = vld [vmem:[#allocation12 + $0xa8] sm:$0xff]  ;;  %v214_v62 = vld [vmem:[#allocation12 + $0x98] sm:$0xff] }
  0xb0   :  { %8307 = vmatpush1.bf16.msra.mxu0 %v11501_v33  ;;  %13704 = vst [vmem:[#allocation73_spill] sm:$0xff] %v11517_v43  ;;  %13705 = vst [vmem:[#allocation74_spill] sm:$0xff] %v11519_v45  ;;  %v11521_v33 = vpack.c.bf16 %v210_v32, %v206_v48  ;;  %v218_v48 = vld [vmem:[#allocation12 + $0xb8] sm:$0xff]  ;;  %v211_v32 = vld [vmem:[#allocation12 + $0x80] sm:$0xff] }
  0xb1   :  { %8339 = vmatpush1.bf16.msra.mxu1 %v11504_v59  ;;  %8341 = vmatprep.subr.bf16.mxu0 %v11508_v0  ;;  %v203_v59 = vld [vmem:[#allocation12 + $0x40] sm:$0xff]  ;;  %v209_v0 = vld [vmem:[#allocation12 + $0x70] sm:$0xff] }
  0xb2   :  { %8373 = vmatprep.subr.bf16.mxu1 %v11510_v11  ;;  %13706 = vst [vmem:[#allocation75_spill] sm:$0xff] %v11521_v33  ;;  %v11524_v54 = vpack.c.bf16 %v207_v28, %v203_v59  ;;  %v212_v11 = vld [vmem:[#allocation12 + $0x88] sm:$0xff]  ;;  %v11528_v10 = vpack.c.bf16 %v209_v0, %v205_v29  ;;  %v215_v59 = vld [vmem:[#allocation12 + $0xa0] sm:$0xff]  ;;  %v213_v28 = vld [vmem:[#allocation12 + $0x90] sm:$0xff] }
  0xb3   :  { %940 = vmatmul.mubr.f32.vlgmr.msra.gmra.mrb[2].mxu0 %v118_v14  ;;  %v11530_v56 = vpack.c.bf16 %v216_v3, %v212_v11  ;;  %v11538_v0 = vpack.c.bf16 %v215_v59, %v211_v32  ;;  %v226_v11 = vld [vmem:[#allocation12 + $0xf8] sm:$0xff]  ;;  %v232_v32 = vld [vmem:[#allocation12 + $0x128] sm:$0xff] }
  0xb4   :  { %1011 = vmatmul.mubr.f32.vlgmr.msra.gmra.mrb[2].mxu1 %v118_v14  ;;  %8343 = vmatpush1.bf16.msra.mxu0 %v11513_v38  ;;  %13707 = vst [vmem:[#allocation76_spill] sm:$0xff] %v11524_v54  ;;  %13708 = vst [vmem:[#allocation77_spill] sm:$0xff] %v11528_v10  ;;  %v11533_v14 = vpack.c.bf16 %v218_v48, %v214_v62  ;;  %v217_v38 = vld [vmem:[#allocation12 + $0xb0] sm:$0xff]  ;;  %v219_v62 = vld [vmem:[#allocation12 + $0xc0] sm:$0xff] }
  0xb5   :  { %8375 = vmatpush1.bf16.msra.mxu1 %v11517_v43  ;;  %8345 = vmatprep.subr.bf16.mxu0 %v11519_v45  ;;  %13709 = vst [vmem:[#allocation78_spill] sm:$0xff] %v11530_v56  ;;  %v224_v43 = vld [vmem:[#allocation12 + $0xe8] sm:$0xff]  ;;  %13712 = vst [vmem:[#allocation80_spill] sm:$0xff] %v11538_v0  ;;  %v11542_v29 = vpack.c.bf16 %v217_v38, %v213_v28  ;;  %v223_v48 = vld [vmem:[#allocation12 + $0xe0] sm:$0xff]  ;;  %v11547_v45 = vpack.c.bf16 %v226_v11, %v222_v6 }
  0xb6   :  { %8377 = vmatprep.subr.bf16.mxu1 %v11521_v33  ;;  %13710 = vst [vmem:[#allocation79_spill] sm:$0xff] %v11533_v14  ;;  %1139 = vmatprep.mubr.f32.mxu0 %v13711_v21  ;;  %v11544_v3 = vpack.c.bf16 %v224_v43, %v220_v15  ;;  %v221_v33 = vld [vmem:[#allocation12 + $0xd0] sm:$0xff]  ;;  %v230_v59 = vld [vmem:[#allocation12 + $0x118] sm:$0xff]  ;;  %v227_v38 = vld [vmem:[#allocation12 + $0x100] sm:$0xff] }
  0xb7   :  { %1210 = vmatprep.mubr.f32.mxu1 %v13711_v21  ;;  %13713 = vst [vmem:[#allocation81_spill] sm:$0xff] %v11542_v29  ;;  %13715 = vst [vmem:[#allocation83_spill] sm:$0xff] %v11547_v45  ;;  %v11554_v15 = vpack.c.bf16 %v225_v58, %v221_v33  ;;  %v231_v6 = vld [vmem:[#allocation12 + $0x120] sm:$0xff]  ;;  %v229_v28 = vld [vmem:[#allocation12 + $0x110] sm:$0xff]  ;;  %v11559_v11 = vpack.c.bf16 %v234_v50, %v230_v59 }
  0xb8   :  { %8347 = vmatpush1.bf16.msra.mxu0 %v11524_v54  ;;  %13714 = vst [vmem:[#allocation82_spill] sm:$0xff] %v11544_v3  ;;  %v228_v54 = vld [vmem:[#allocation12 + $0x108] sm:$0xff]  ;;  %v239_v50 = vld [vmem:[#allocation12 + $0x160] sm:$0xff] }
  0xb9   :  { %8379 = vmatpush1.bf16.msra.mxu1 %v11528_v10  ;;  %8349 = vmatprep.subr.bf16.mxu0 %v11530_v56  ;;  %v11550_v10 = vpack.c.bf16 %v223_v48, %v219_v62  ;;  %13717 = vst [vmem:[#allocation85_spill] sm:$0xff] %v11554_v15  ;;  %v11556_v43 = vpack.c.bf16 %v232_v32, %v228_v54  ;;  %13719 = vst [vmem:[#allocation87_spill] sm:$0xff] %v11559_v11  ;;  %v236_v56 = vld [vmem:[#allocation12 + $0x148] sm:$0xff]  ;;  %v238_v62 = vld [vmem:[#allocation12 + $0x158] sm:$0xff] }
  0xba   :  { %8381 = vmatprep.subr.bf16.mxu1 %v11533_v14  ;;  %v233_v14 = vld [vmem:[#allocation12 + $0x130] sm:$0xff]  ;;  %v242_v48 = vld [vmem:[#allocation12 + $0x178] sm:$0xff]  ;;  %v235_v54 = vld [vmem:[#allocation12 + $0x140] sm:$0xff] }
  0xbb   :  { %13716 = vst [vmem:[#allocation84_spill] sm:$0xff] %v11550_v10  ;;  %13718 = vst [vmem:[#allocation86_spill] sm:$0xff] %v11556_v43  ;;  %v11566_v58 = vpack.c.bf16 %v233_v14, %v229_v28  ;;  %v237_v32 = vld [vmem:[#allocation12 + $0x150] sm:$0xff]  ;;  %v11571_v59 = vpack.c.bf16 %v242_v48, %v238_v62  ;;  %v247_v28 = vld [vmem:[#allocation12 + $0x1a0] sm:$0xff] }
  0xbc   :  { %8351 = vmatpush1.bf16.msra.mxu0 %v11538_v0  ;;  %v240_v0 = vld [vmem:[#allocation12 + $0x168] sm:$0xff]  ;;  %v245_v62 = vld [vmem:[#allocation12 + $0x190] sm:$0xff] }
  0xbd   :  { %8383 = vmatpush1.bf16.msra.mxu1 %v11542_v29  ;;  %8353 = vmatprep.subr.bf16.mxu0 %v11544_v3  ;;  %v11562_v29 = vpack.c.bf16 %v231_v6, %v227_v38  ;;  %13721 = vst [vmem:[#allocation89_spill] sm:$0xff] %v11566_v58  ;;  %v11568_v33 = vpack.c.bf16 %v240_v0, %v236_v56  ;;  %13723 = vst [vmem:[#allocation91_spill] sm:$0xff] %v11571_v59  ;;  %v244_v3 = vld [vmem:[#allocation12 + $0x188] sm:$0xff]  ;;  %v246_v38 = vld [vmem:[#allocation12 + $0x198] sm:$0xff] }
  0xbe   :  { %8385 = vmatprep.subr.bf16.mxu1 %v11547_v45  ;;  %v241_v45 = vld [vmem:[#allocation12 + $0x170] sm:$0xff]  ;;  %v250_v6 = vld [vmem:[#allocation12 + $0x1b8] sm:$0xff]  ;;  %v243_v0 = vld [vmem:[#allocation12 + $0x180] sm:$0xff] }
  0xbf   :  { %13720 = vst [vmem:[#allocation88_spill] sm:$0xff] %v11562_v29  ;;  %13722 = vst [vmem:[#allocation90_spill] sm:$0xff] %v11568_v33  ;;  %v11578_v56 = vpack.c.bf16 %v241_v45, %v237_v32  ;;  %v11583_v48 = vpack.c.bf16 %v250_v6, %v246_v38  ;;  %v255_v32 = vld [vmem:[#allocation12 + $0x1e0] sm:$0xff]  ;;  %v253_v6 = vld [vmem:[#allocation12 + $0x1d0] sm:$0xff] }
  0xc0   :  { %8355 = vmatpush1.bf16.msra.mxu0 %v11550_v10  ;;  %v248_v10 = vld [vmem:[#allocation12 + $0x1a8] sm:$0xff] }
  0xc1   :  { %8387 = vmatpush1.bf16.msra.mxu1 %v11554_v15  ;;  %8357 = vmatprep.subr.bf16.mxu0 %v11556_v43  ;;  %v11574_v15 = vpack.c.bf16 %v239_v50, %v235_v54  ;;  %13725 = vst [vmem:[#allocation93_spill] sm:$0xff] %v11578_v56  ;;  %v11580_v14 = vpack.c.bf16 %v248_v10, %v244_v3  ;;  %13727 = vst [vmem:[#allocation95_spill] sm:$0xff] %v11583_v48  ;;  %v252_v43 = vld [vmem:[#allocation12 + $0x1c8] sm:$0xff]  ;;  %v254_v54 = vld [vmem:[#allocation12 + $0x1d8] sm:$0xff] }
  0xc2   :  { %8389 = vmatprep.subr.bf16.mxu1 %v11559_v11  ;;  %v249_v11 = vld [vmem:[#allocation12 + $0x1b0] sm:$0xff]  ;;  %v258_v50 = vld [vmem:[#allocation12 + $0x1f8] sm:$0xff]  ;;  %v251_v3 = vld [vmem:[#allocation12 + $0x1c0] sm:$0xff] }
  0xc3   :  { %13724 = vst [vmem:[#allocation92_spill] sm:$0xff] %v11574_v15  ;;  %13726 = vst [vmem:[#allocation94_spill] sm:$0xff] %v11580_v14  ;;  %v11590_v45 = vpack.c.bf16 %v249_v11, %v245_v62  ;;  %v11595_v38 = vpack.c.bf16 %v258_v50, %v254_v54 }
  0xc4   :  { %8359 = vmatpush1.bf16.msra.mxu0 %v11562_v29  ;;  %v256_v29 = vld [vmem:[#allocation12 + $0x1e8] sm:$0xff] }
  0xc5   :  { %8391 = vmatpush1.bf16.msra.mxu1 %v11566_v58  ;;  %8361 = vmatprep.subr.bf16.mxu0 %v11568_v33  ;;  %v11586_v58 = vpack.c.bf16 %v247_v28, %v243_v0  ;;  %13729 = vst [vmem:[#allocation97_spill] sm:$0xff] %v11590_v45  ;;  %v11592_v10 = vpack.c.bf16 %v256_v29, %v252_v43  ;;  %13731 = vst [vmem:[#allocation99_spill] sm:$0xff] %v11595_v38  ;;  %v11169_v29 = vmov 1966171168   ;;  %v492_v28 = vlaneseq }
  0xc6   :  { %8393 = vmatprep.subr.bf16.mxu1 %v11571_v59  ;;  %v257_v59 = vld [vmem:[#allocation12 + $0x1f0] sm:$0xff]  ;;  %v11598_v0 = vpack.c.bf16 %v255_v32, %v251_v3  ;;  %v490_v43 = vunpack.c.l.s4 %v11169_v29 }
  0xc7   :  { %13728 = vst [vmem:[#allocation96_spill] sm:$0xff] %v11586_v58  ;;  %13730 = vst [vmem:[#allocation98_spill] sm:$0xff] %v11592_v10  ;;  %v11602_v11 = vpack.c.bf16 %v257_v59, %v253_v6  ;;  %v11609_v54 = vshrl.u32 %v492_v28, 7 }
  0xc8   :  { %8363 = vmatpush1.bf16.msra.mxu0 %v11574_v15  ;;  %13732 = vst [vmem:[#allocation100_spill] sm:$0xff] %v11598_v0  ;;  %v491_v62 = vunpack.c.0.s8 %v490_v43  ;;  %v332_v15 = vld [vmem:[#allocation4 + $0x80] ss:$8 sm:$0xf] }
  0xc9   :  { %8395 = vmatpush1.bf16.msra.mxu1 %v11578_v56  ;;  %8365 = vmatprep.subr.bf16.mxu0 %v11580_v14  ;;  %13733 = vst [vmem:[#allocation101_spill] sm:$0xff] %v11602_v11  ;;  %13734 = vst [vmem:[#allocation102_spill] sm:$0xff] %v11609_v54  ;;  %v326_v14 = vld [vmem:[#allocation4 + $0x20] ss:$8 sm:$0xf] }
  0xca   :  { %8397 = vmatprep.subr.bf16.mxu1 %v11583_v48  ;;  %v11612_v59 = vsub.s32 %v491_v62, %v11609_v54  ;;  %v324_v48 = vld [vmem:[#allocation4] ss:$8 sm:$0xf] }
  0xcb   :  { %v328_v56 = vld [vmem:[#allocation4 + $0x40] ss:$8 sm:$0xf] }
  0xcc   :  { %8367 = vmatpush1.bf16.msra.mxu0 %v11586_v58 }
  0xcd   :  { %8399 = vmatpush1.bf16.msra.mxu1 %v11590_v45  ;;  %8369 = vmatprep.subr.bf16.mxu0 %v11592_v10 }
  0xce   :  { %8401 = vmatprep.subr.bf16.mxu1 %v11595_v38 }
  0xd0   :  { %8371 = vmatpush1.bf16.msra.mxu0 %v11598_v0 }
  0xd1   :  { %8403 = vmatpush1.bf16.msra.mxu1 %v11602_v11  ;;  %8405 = vmatprep.subr.bf16.mxu0 %v11315_v4 }
  0xd2   :  { %8437 = vmatprep.subr.bf16.mxu1 %v11317_v8 }
 0x165   :  { %v405_v50 = vpop.f32.mrb[0].mxu0 }
 0x166   :  { %v476_v3 = vpop.f32.mrb[0].mxu1  ;;  %v407_v32 = vpop.f32.mrb[1].mxu0 }
 0x167   :  { %v485_v6 = vcombine.low %v405_v50, %v407_v32  ;;  %v486_v0 = vcombine.high %v405_v50, %v407_v32  ;;  %v478_v38 = vpop.f32.mrb[1].mxu1  ;;  %v330_v32 = vld [vmem:[#allocation4 + $0x60] ss:$8 sm:$0xf] }
 0x168   :  { %v487_v11 = vcombine.low %v476_v3, %v478_v38  ;;  %v488_v10 = vcombine.high %v476_v3, %v478_v38 }
 0x169   :  { %v495_v4 = vrot.slane %v485_v6, %v11612_v59  ;;  %v502_v8 = vrot.slane %v486_v0, %v11612_v59  ;;  %v336_v6 = vld [vmem:[#allocation4 + $0xc0] ss:$8 sm:$0xf] }
 0x16a   :  { %v509_v29 = vrot.slane %v487_v11, %v11612_v59  ;;  %v516_v43 = vrot.slane %v488_v10, %v11612_v59  ;;  %v334_v11 = vld [vmem:[#allocation4 + $0xa0] ss:$8 sm:$0xf] }
 0x16c   :  { %v517_v28 = vcombine.low %v495_v4, %v509_v29  ;;  %v518_v45 = vcombine.high %v495_v4, %v509_v29  ;;  %v519_v58 = vcombine.low %v502_v8, %v516_v43  ;;  %v520_v62 = vcombine.high %v502_v8, %v516_v43  ;;  %v338_v8 = vld [vmem:[#allocation4 + $0xe0] ss:$8 sm:$0xf] }
 0x16e   :  { %v527_v50 = vrot.slane %v517_v28, %v11612_v59  ;;  %v534_v38 = vrot.slane %v519_v58, %v11612_v59  ;;  %v541_v3 = vrot.slane %v518_v45, %v11612_v59  ;;  %v548_v0 = vrot.slane %v520_v62, %v11612_v59 }
 0x170   :  { %v549_v10 = vcombine.high %v527_v50, %v527_v50  ;;  %v550_v33 = vcombine.high %v534_v38, %v534_v38  ;;  %v551_v4 = vcombine.high %v541_v3, %v541_v3  ;;  %v552_v29 = vcombine.high %v548_v0, %v548_v0 }
 0x171   :  { %v11622_v43 = vadd.f32 %v527_v50, %v324_v48  ;;  %v11624_v54 = vadd.f32 %v541_v3, %v326_v14  ;;  %v11626_v49 = vadd.f32 %v534_v38, %v332_v15  ;;  %v11632_v45 = vadd.f32 %v548_v0, %v334_v11 }
 0x172   :  { %v11628_v28 = vadd.f32 %v549_v10, %v328_v56  ;;  %v11630_v58 = vadd.f32 %v551_v4, %v330_v32  ;;  %v11634_v62 = vadd.f32 %v550_v33, %v336_v6  ;;  %v11638_v24 = vadd.f32 %v552_v29, %v338_v8 }
 0x173   :  { %v7964_v41 = vmul.f32 -1.442695, %v11622_v43  ;;  %v7965_v30 = vmul.f32 -1.442695, %v11624_v54  ;;  %v7968_v15 = vmul.f32 -1.442695, %v11626_v49 }
 0x174   :  { %v7966_v48 = vmul.f32 -1.442695, %v11628_v28  ;;  %v7967_v14 = vmul.f32 -1.442695, %v11630_v58  ;;  %v625_v56 = vrot.slane %v11622_v43, 1  ;;  %v626_v33 = vrot.slane %v11624_v54, 1 }
 0x175   :  { %9796 = vpow2.f32 %v7964_v41  ;;  %v7969_v50 = vmul.f32 -1.442695, %v11632_v45  ;;  %v7970_v38 = vmul.f32 -1.442695, %v11634_v62  ;;  %v627_v3 = vrot.slane %v11628_v28, 1 }
 0x176   :  { %9798 = vpow2.f32 %v7965_v30  ;;  %v7971_v0 = vmul.f32 -1.442695, %v11638_v24  ;;  %v628_v32 = vrot.slane %v11630_v58, 1  ;;  %v629_v41 = vrot.slane %v11626_v49, 1 }
 0x177   :  { %9800 = vpow2.f32 %v7966_v48  ;;  %v7972_v11 = vmul.f32 -1.442695, %v625_v56  ;;  %v7973_v30 = vmul.f32 -1.442695, %v626_v33  ;;  %v7974_v6 = vmul.f32 -1.442695, %v627_v3 }
 0x178   :  { %9802 = vpow2.f32 %v7967_v14  ;;  %v7975_v10 = vmul.f32 -1.442695, %v628_v32  ;;  %v7976_v4 = vmul.f32 -1.442695, %v629_v41  ;;  %v630_v56 = vrot.slane %v11632_v45, 1 }
 0x179   :  { %9804 = vpow2.f32 %v7968_v15  ;;  %v632_v32 = vrot.slane %v11638_v24, 1  ;;  %v713_v61 = vrot.slane %v11622_v43, 3  ;;  %v694_v47 = vrot.slane %v11632_v45, 2 }
 0x17a   :  { %9806 = vpow2.f32 %v7969_v50 }
 0x17b   :  { %9808 = vpow2.f32 %v7970_v38  ;;  %v631_v38 = vrot.slane %v11634_v62, 1 }
 0x17c   :  { %9810 = vpow2.f32 %v7971_v0 }
 0x17d   :  { %9812 = vpow2.f32 %v7972_v11 }
 0x17e   :  { %9814 = vpow2.f32 %v7973_v30 }
 0x17f   :  { %v9797_v29 = vpop.eup %9796  ;;  %9816 = vpow2.f32 %v7974_v6 }
 0x180   :  { %v9799_v8 = vpop.eup %9798  ;;  %v593_v48 = vadd.f32 1.0, %v9797_v29  ;;  %9818 = vpow2.f32 %v7975_v10  ;;  %v7977_v10 = vmul.f32 -1.442695, %v630_v56 }
 0x181   :  { %v9801_v14 = vpop.eup %9800  ;;  %v594_v23 = vadd.f32 1.0, %v9799_v8  ;;  %9820 = vpow2.f32 %v7976_v4  ;;  %v7978_v8 = vmul.f32 -1.442695, %v631_v38 }
 0x182   :  { %v9803_v15 = vpop.eup %9802  ;;  %v595_v12 = vadd.f32 1.0, %v9801_v14  ;;  %9822 = vrcp.f32 %v593_v48 }
 0x183   :  { %v9805_v50 = vpop.eup %9804  ;;  %v596_v33 = vadd.f32 1.0, %v9803_v15  ;;  %9824 = vrcp.f32 %v594_v23  ;;  %v7979_v23 = vmul.f32 -1.442695, %v632_v32  ;;  %v689_v32 = vrot.slane %v11622_v43, 2 }
 0x184   :  { %v9807_v3 = vpop.eup %9806  ;;  %v597_v0 = vadd.f32 1.0, %v9805_v50  ;;  %9826 = vrcp.f32 %v595_v12  ;;  %v696_v43 = vrot.slane %v11638_v24, 2 }
 0x185   :  { %v9809_v41 = vpop.eup %9808  ;;  %v598_v11 = vadd.f32 1.0, %v9807_v3  ;;  %9828 = vrcp.f32 %v596_v33 }
 0x186   :  { %v9811_v30 = vpop.eup %9810  ;;  %v599_v6 = vadd.f32 1.0, %v9809_v41  ;;  %9830 = vrcp.f32 %v597_v0 }
 0x187   :  { %v9813_v4 = vpop.eup %9812  ;;  %v600_v29 = vadd.f32 1.0, %v9811_v30  ;;  %9832 = vrcp.f32 %v598_v11  ;;  %v690_v30 = vrot.slane %v11624_v54, 2 }
 0x188   :  { %v9815_v48 = vpop.eup %9814  ;;  %9834 = vrcp.f32 %v599_v6  ;;  %v665_v15 = vadd.f32 1.0, %v9813_v4  ;;  %v121_v6 = vld [vmem:[#allocation9] sm:$0xff]  ;;  %v691_v4 = vrot.slane %v11628_v28, 2 }
 0x189   :  { %v9817_v14 = vpop.eup %9816  ;;  %9836 = vrcp.f32 %v600_v29  ;;  %v666_v50 = vadd.f32 1.0, %v9815_v48  ;;  %v785_v29 = vrot.slane %v121_v6, %v11612_v59 }
 0x18a   :  { %v9819_v12 = vpop.eup %9818  ;;  %9838 = vpow2.f32 %v7977_v10  ;;  %v667_v33 = vadd.f32 1.0, %v9817_v14 }
 0x18b   :  { %v9821_v5 = vpop.eup %9820  ;;  %9840 = vpow2.f32 %v7978_v8  ;;  %v668_v56 = vadd.f32 1.0, %v9819_v12  ;;  %v692_v8 = vrot.slane %v11630_v58, 2  ;;  %v778_v12 = vcombine.high %v121_v6, %v121_v6 }
 0x18c   :  { %v11654_v3 = vpop.eup %9822  ;;  %9842 = vpow2.f32 %v7979_v23  ;;  %v669_v41 = vadd.f32 1.0, %v9821_v5  ;;  %v693_v23 = vrot.slane %v11626_v49, 2  ;;  %v695_v6 = vrot.slane %v11634_v62, 2 }
 0x18d   :  { %v11656_v0 = vpop.eup %9824  ;;  %9844 = vrcp.f32 %v665_v15 }
 0x18e   :  { %v11658_v38 = vpop.eup %9826  ;;  %9846 = vrcp.f32 %v666_v50  ;;  %v793_v50 = vcombine.high %v785_v29, %v785_v29 }
 0x18f   :  { %v11661_v11 = vpop.eup %9828  ;;  %9848 = vrcp.f32 %v667_v33 }
 0x190   :  { %v11664_v10 = vpop.eup %9830  ;;  %9850 = vrcp.f32 %v668_v56 }
 0x191   :  { %v11668_v5 = vpop.eup %9832  ;;  %9852 = vrcp.f32 %v669_v41  ;;  %v801_v41 = vrot.slane %v785_v29, %v11612_v59  ;;  %v716_v29 = vrot.slane %v11630_v58, 3 }
 0x192   :  { %v11671_v48 = vpop.eup %9834  ;;  %9854 = vtanh.f32 %v689_v32  ;;  %v714_v32 = vrot.slane %v11624_v54, 3  ;;  %v7980_v54 = vmul.f32 -1.442695, %v713_v61 }
 0x193   :  { %v11674_v14 = vpop.eup %9836  ;;  %9856 = vtanh.f32 %v690_v30  ;;  %v823_v58 = vcombine.high %v801_v41, %v801_v41 }
 0x194   :  { %v9839_v15 = vpop.eup %9838  ;;  %9858 = vtanh.f32 %v691_v4  ;;  %v715_v4 = vrot.slane %v11628_v28, 3  ;;  %v792_v28 = vrot.slane %v778_v12, %v11612_v59 }
 0x195   :  { %v9841_v33 = vpop.eup %9840  ;;  %v670_v56 = vadd.f32 1.0, %v9839_v15  ;;  %9860 = vtanh.f32 %v692_v8  ;;  %v815_v8 = vrot.slane %v793_v50, %v11612_v59  ;;  %v720_v50 = vrot.slane %v11638_v24, 3 }
 0x196   :  { %v9843_v60 = vpop.eup %9842  ;;  %v671_v55 = vadd.f32 1.0, %v9841_v33  ;;  %9862 = vtanh.f32 %v693_v23  ;;  %v717_v23 = vrot.slane %v11626_v49, 3  ;;  %v7982_v36 = vmul.f32 -1.442695, %v715_v4 }
 0x197   :  { %v9845_v46 = vpop.eup %9844  ;;  %v672_v30 = vadd.f32 1.0, %v9843_v60  ;;  %9864 = vrcp.f32 %v670_v56  ;;  %v718_v60 = vrot.slane %v11632_v45, 3  ;;  %v7981_v56 = vmul.f32 -1.442695, %v714_v32 }
 0x198   :  { %v9847_v15 = vpop.eup %9846  ;;  %9866 = vrcp.f32 %v671_v55  ;;  %v719_v55 = vrot.slane %v11634_v62, 3  ;;  %v825_v49 = vcombine.high %v815_v8, %v815_v8  ;;  %v808_v45 = vrot.slane %v792_v28, %v11612_v59 }
 0x199   :  { %v9849_v33 = vpop.eup %9848  ;;  %9868 = vrcp.f32 %v672_v30  ;;  %v7983_v30 = vmul.f32 -1.442695, %v716_v29  ;;  %v835_v32 = vmul.f32 %v9845_v46, %v801_v41  ;;  %v7985_v12 = vmul.f32 -1.442695, %v718_v60 }
 0x19a   :  { %v9851_v42 = vpop.eup %9850  ;;  %9870 = vtanh.f32 %v694_v47  ;;  %v7984_v47 = vmul.f32 -1.442695, %v717_v23  ;;  %v836_v20 = vmul.f32 %v9847_v15, %v815_v8  ;;  %v7986_v4 = vmul.f32 -1.442695, %v719_v55 }
 0x19b   :  { %v9853_v37 = vpop.eup %9852  ;;  %9872 = vtanh.f32 %v695_v6  ;;  %v794_v6 = vcombine.high %v792_v28, %v792_v28  ;;  %v837_v19 = vmul.f32 %v9849_v33, %v823_v58  ;;  %v7987_v29 = vmul.f32 -1.442695, %v720_v50 }
 0x19c   :  { %v9855_v34 = vpop.eup %9854  ;;  %9874 = vtanh.f32 %v696_v43  ;;  %v838_v23 = vmul.f32 %v9851_v42, %v825_v49  ;;  %v839_v41 = vmul.f32 %v9853_v37, %v808_v45 }
 0x19d   :  { %v9857_v61 = vpop.eup %9856  ;;  %9876 = vpow2.f32 %v7980_v54  ;;  %v843_v43 = vmul.f32 %v9855_v34, %v11654_v3 }
 0x19e   :  { %v9859_v25 = vpop.eup %9858  ;;  %9878 = vpow2.f32 %v7981_v56  ;;  %v844_v54 = vmul.f32 %v9857_v61, %v11656_v0  ;;  %v822_v0 = vrot.slane %v794_v6, %v11612_v59  ;;  %v824_v56 = vcombine.high %v808_v45, %v808_v45 }
 0x19f   :  { %v9861_v62 = vpop.eup %9860  ;;  %9880 = vpow2.f32 %v7982_v36  ;;  %v845_v46 = vmul.f32 %v9859_v25, %v11658_v38  ;;  %v11694_v60 = vadd.f32 %v843_v43, %v835_v32 }
 0x1a0   :  { %v9863_v24 = vpop.eup %9862  ;;  %9882 = vpow2.f32 %v7983_v30  ;;  %v846_v36 = vmul.f32 %v9861_v62, %v11661_v11  ;;  %v11697_v8 = vadd.f32 %v844_v54, %v836_v20  ;;  %v826_v28 = vcombine.high %v822_v0, %v822_v0 }
 0x1a1   :  { %v9865_v16 = vpop.eup %9864  ;;  %9884 = vpow2.f32 %v7984_v47  ;;  %v847_v3 = vmul.f32 %v9863_v24, %v11664_v10  ;;  %v11700_v33 = vadd.f32 %v845_v46, %v837_v19 }
 0x1a2   :  { %v9867_v15 = vpop.eup %9866  ;;  %9886 = vpow2.f32 %v7985_v12  ;;  %v11703_v25 = vadd.f32 %v846_v36, %v838_v23  ;;  %v840_v49 = vmul.f32 %v9865_v16, %v822_v0 }
 0x1a3   :  { %v9869_v34 = vpop.eup %9868  ;;  %9888 = vpow2.f32 %v7986_v4  ;;  %v11705_v38 = vadd.f32 %v847_v3, %v839_v41  ;;  %v841_v32 = vmul.f32 %v9867_v15, %v824_v56 }
 0x1a4   :  { %v9871_v42 = vpop.eup %9870  ;;  %9890 = vpow2.f32 %v7987_v29  ;;  %v842_v62 = vmul.f32 %v9869_v34, %v826_v28 }
 0x1a5   :  { %v9873_v37 = vpop.eup %9872  ;;  %9892 = vtanh.f32 %v11694_v60  ;;  %v848_v6 = vmul.f32 %v9871_v42, %v11668_v5 }
 0x1a6   :  { %v9875_v11 = vpop.eup %9874  ;;  %9894 = vtanh.f32 %v11697_v8  ;;  %v849_v24 = vmul.f32 %v9873_v37, %v11671_v48 }
 0x1a7   :  { %v9877_v20 = vpop.eup %9876  ;;  %9896 = vtanh.f32 %v11700_v33  ;;  %v850_v16 = vmul.f32 %v9875_v11, %v11674_v14  ;;  %v11715_v23 = vadd.f32 %v848_v6, %v840_v49 }
 0x1a8   :  { %v9879_v19 = vpop.eup %9878  ;;  %v753_v10 = vadd.f32 1.0, %v9877_v20  ;;  %9898 = vtanh.f32 %v11703_v25  ;;  %v11717_v15 = vadd.f32 %v849_v24, %v841_v32 }
 0x1a9   :  { %v9881_v55 = vpop.eup %9880  ;;  %v754_v58 = vadd.f32 1.0, %v9879_v19  ;;  %9900 = vtanh.f32 %v11705_v38  ;;  %v11719_v5 = vadd.f32 %v850_v16, %v842_v62 }
 0x1aa   :  { %v9883_v50 = vpop.eup %9882  ;;  %v755_v30 = vadd.f32 1.0, %v9881_v55  ;;  %9902 = vrcp.f32 %v753_v10 }
 0x1ab   :  { %v9885_v61 = vpop.eup %9884  ;;  %v756_v47 = vadd.f32 1.0, %v9883_v50  ;;  %9904 = vrcp.f32 %v754_v58 }
 0x1ac   :  { %v9887_v45 = vpop.eup %9886  ;;  %v757_v12 = vadd.f32 1.0, %v9885_v61  ;;  %9906 = vrcp.f32 %v755_v30 }
 0x1ad   :  { %v9889_v4 = vpop.eup %9888  ;;  %v758_v43 = vadd.f32 1.0, %v9887_v45  ;;  %9908 = vrcp.f32 %v756_v47 }
 0x1ae   :  { %v9891_v29 = vpop.eup %9890  ;;  %v759_v54 = vadd.f32 1.0, %v9889_v4  ;;  %9910 = vrcp.f32 %v757_v12 }
 0x1af   :  { %v9893_v46 = vpop.eup %9892  ;;  %v760_v41 = vadd.f32 1.0, %v9891_v29  ;;  %9912 = vrcp.f32 %v758_v43 }
 0x1b0   :  { %v9895_v36 = vpop.eup %9894  ;;  %9914 = vrcp.f32 %v759_v54 }
 0x1b1   :  { %v9897_v34 = vpop.eup %9896  ;;  %9916 = vrcp.f32 %v760_v41 }
 0x1b2   :  { %v9899_v3 = vpop.eup %9898  ;;  %9918 = vtanh.f32 %v11715_v23 }
 0x1b3   :  { %v9901_v48 = vpop.eup %9900  ;;  %9920 = vtanh.f32 %v11717_v15 }
 0x1b4   :  { %v9903_v14 = vpop.eup %9902  ;;  %9922 = vtanh.f32 %v11719_v5 }
 0x1b5   :  { %v9905_v42 = vpop.eup %9904  ;;  %v867_v0 = vmul.f32 %v9903_v14, %v9893_v46  ;;  %v13737_v14 = vld [vmem:[#allocation30_spill] sm:$0xff] }
 0x1b6   :  { %v9907_v37 = vpop.eup %9906  ;;  %v868_v11 = vmul.f32 %v9905_v42, %v9895_v36  ;;  %v13738_v42 = vld [vmem:[#allocation31_spill] sm:$0xff] }
 0x1b7   :  { %v9909_v20 = vpop.eup %9908  ;;  %v869_v56 = vmul.f32 %v9907_v37, %v9897_v34  ;;  %v13740_v37 = vld [vmem:[#allocation33_spill] sm:$0xff] }
 0x1b8   :  { %v9911_v19 = vpop.eup %9910  ;;  %v870_v10 = vmul.f32 %v9909_v20, %v9899_v3  ;;  %v1025_v28 = vcombine.low %v867_v0, %v868_v11  ;;  %v13735_v3 = vld [vmem:[#allocation28_spill] sm:$0xff]  ;;  %v13741_v11 = vld [vmem:[#allocation34_spill] sm:$0xff]  ;;  %v13742_v20 = vld [vmem:[#allocation35_spill] sm:$0xff] }
 0x1b9   :  { %v9913_v55 = vpop.eup %9912  ;;  %v871_v49 = vmul.f32 %v9911_v19, %v9901_v48  ;;  %v13736_v48 = vld [vmem:[#allocation29_spill] sm:$0xff]  ;;  %v13739_v0 = vld [vmem:[#allocation32_spill] sm:$0xff] }
 0x1ba   :  { %v9915_v58 = vpop.eup %9914  ;;  %v1026_v50 = vcombine.low %v869_v56, %v870_v10  ;;  %v1035_v47 = vrot.slane %v1025_v28, %v11612_v59  ;;  %v13743_v56 = vld [vmem:[#allocation36_spill] sm:$0xff]  ;;  %v13744_v19 = vld [vmem:[#allocation37_spill] sm:$0xff]  ;;  %v13745_v10 = vld [vmem:[#allocation38_spill] sm:$0xff] }
 0x1bb   :  { %v9917_v30 = vpop.eup %9916  ;;  %v13746_v28 = vld [vmem:[#allocation39_spill] sm:$0xff] }
 0x1bc   :  { %v9919_v61 = vpop.eup %9918  ;;  %v1042_v32 = vrot.slane %v1026_v50, %v11612_v59  ;;  %v13749_v50 = vld [vmem:[#allocation42_spill] sm:$0xff] }
 0x1bd   :  { %v9921_v45 = vpop.eup %9920  ;;  %v872_v12 = vmul.f32 %v9919_v61, %v9913_v55  ;;  %v13747_v55 = vld [vmem:[#allocation40_spill] sm:$0xff]  ;;  %v13752_v61 = vld [vmem:[#allocation45_spill] sm:$0xff] }
 0x1be   :  { %v9923_v6 = vpop.eup %9922  ;;  %v873_v62 = vmul.f32 %v9921_v45, %v9915_v58  ;;  %v1057_v4 = vcombine.low %v1035_v47, %v1042_v32  ;;  %v13748_v58 = vld [vmem:[#allocation41_spill] sm:$0xff]  ;;  %v13753_v47 = vld [vmem:[#allocation46_spill] sm:$0xff]  ;;  %v13754_v32 = vld [vmem:[#allocation47_spill] sm:$0xff] }
 0x1bf   :  { %v874_v43 = vmul.f32 %v9923_v6, %v9917_v30  ;;  %v1027_v24 = vcombine.low %v871_v49, %v872_v12  ;;  %v13750_v30 = vld [vmem:[#allocation43_spill] sm:$0xff]  ;;  %v13751_v49 = vld [vmem:[#allocation44_spill] sm:$0xff]  ;;  %v13756_v12 = vld [vmem:[#allocation49_spill] sm:$0xff] }
 0x1c0   :  { %v1065_v41 = vrot.slane %v1057_v4, %v11612_v59  ;;  %v13755_v45 = vld [vmem:[#allocation48_spill] sm:$0xff]  ;;  %v13757_v6 = vld [vmem:[#allocation50_spill] sm:$0xff] }
 0x1c1   :  { %v1028_v29 = vcombine.low %v873_v62, %v874_v43  ;;  %v1049_v54 = vrot.slane %v1027_v24, %v11612_v59  ;;  %v13758_v62 = vld [vmem:[#allocation51_spill] sm:$0xff]  ;;  %v13759_v4 = vld [vmem:[#allocation52_spill] sm:$0xff]  ;;  %v13760_v43 = vld [vmem:[#allocation53_spill] sm:$0xff] }
 0x1c2   :  { %v13761_v24 = vld [vmem:[#allocation54_spill] sm:$0xff] }
 0x1c3   :  { %v1056_v16 = vrot.slane %v1028_v29, %v11612_v59  ;;  %v13762_v29 = vld [vmem:[#allocation55_spill] sm:$0xff] }
 0x1c5   :  { %v1058_v46 = vcombine.low %v1049_v54, %v1056_v16  ;;  %v13763_v54 = vld [vmem:[#allocation56_spill] sm:$0xff]  ;;  %v13764_v16 = vld [vmem:[#allocation57_spill] sm:$0xff] }
 0x1c7   :  { %v1072_v36 = vrot.slane %v1058_v46, %v11612_v59  ;;  %v13765_v46 = vld [vmem:[#allocation58_spill] sm:$0xff] }
 0x1c9   :  { %v1073_v34 = vcombine.low %v1065_v41, %v1072_v36  ;;  %v13766_v41 = vld [vmem:[#allocation59_spill] sm:$0xff]  ;;  %v13767_v36 = vld [vmem:[#allocation60_spill] sm:$0xff] }
 0x1cb   :  { %1140 = vmatmul.mubr.f32.vlgmr.msra.gmra.mrb[2].mxu0 %v1073_v34  ;;  %1211 = vmatmul.mubr.f32.vlgmr.msra.gmra.mrb[2].mxu1 %v1073_v34 }
 0x1cc   :  { %8407 = vmatpush1.bf16.msra.mxu0 %v11319_v9  ;;  %8439 = vmatpush1.bf16.msra.mxu1 %v11322_v13 }
 0x1cd   :  { %8409 = vmatprep.subr.bf16.mxu0 %v11326_v17  ;;  %8441 = vmatprep.subr.bf16.mxu1 %v11328_v18 }
 0x1ce   :  { %1412 = vmatprep.mubr.f32.mxu0 %v13711_v21  ;;  %1483 = vmatprep.mubr.f32.mxu1 %v13711_v21 }
 0x1d0   :  { %8411 = vmatpush1.bf16.msra.mxu0 %v11331_v22  ;;  %8443 = vmatpush1.bf16.msra.mxu1 %v11335_v26 }
 0x1d1   :  { %8413 = vmatprep.subr.bf16.mxu0 %v11337_v27  ;;  %8445 = vmatprep.subr.bf16.mxu1 %v11339_v31 }
 0x1d4   :  { %8415 = vmatpush1.bf16.msra.mxu0 %v11342_v35  ;;  %8447 = vmatpush1.bf16.msra.mxu1 %v11346_v39 }
 0x1d5   :  { %8417 = vmatprep.subr.bf16.mxu0 %v11348_v40  ;;  %8449 = vmatprep.subr.bf16.mxu1 %v11351_v44 }
 0x1d8   :  { %8419 = vmatpush1.bf16.msra.mxu0 %v11354_v51  ;;  %8451 = vmatpush1.bf16.msra.mxu1 %v11358_v52 }
 0x1d9   :  { %8421 = vmatprep.subr.bf16.mxu0 %v11360_v53  ;;  %8453 = vmatprep.subr.bf16.mxu1 %v11363_v57 }
 0x1dc   :  { %8423 = vmatpush1.bf16.msra.mxu0 %v11366_v63  ;;  %8455 = vmatpush1.bf16.msra.mxu1 %v11370_v1 }
 0x1dd   :  { %8425 = vmatprep.subr.bf16.mxu0 %v11372_v2  ;;  %8457 = vmatprep.subr.bf16.mxu1 %v11375_v7 }
 0x1e0   :  { %8427 = vmatpush1.bf16.msra.mxu0 %v13735_v3  ;;  %8459 = vmatpush1.bf16.msra.mxu1 %v13736_v48 }
 0x1e1   :  { %8429 = vmatprep.subr.bf16.mxu0 %v13737_v14  ;;  %8461 = vmatprep.subr.bf16.mxu1 %v13738_v42 }
 0x1e4   :  { %8431 = vmatpush1.bf16.msra.mxu0 %v13739_v0  ;;  %8463 = vmatpush1.bf16.msra.mxu1 %v13740_v37 }
 0x1e5   :  { %8433 = vmatprep.subr.bf16.mxu0 %v13741_v11  ;;  %8465 = vmatprep.subr.bf16.mxu1 %v13742_v20 }
 0x1e8   :  { %8435 = vmatpush1.bf16.msra.mxu0 %v13743_v56  ;;  %8467 = vmatpush1.bf16.msra.mxu1 %v13744_v19 }
 0x1e9   :  { %8469 = vmatprep.subr.bf16.mxu0 %v13745_v10  ;;  %8501 = vmatprep.subr.bf16.mxu1 %v13746_v28 }
 0x1eb   :  { %1413 = vmatmul.mubr.f32.vlgmr.msra.gmra.mrb[4].mxu0 %v1073_v34  ;;  %1484 = vmatmul.mubr.f32.vlgmr.msra.gmra.mrb[4].mxu1 %v1073_v34  ;;  %v13768_v34 = vld [vmem:[#allocation61_spill] sm:$0xff] }
 0x1ec   :  { %8471 = vmatpush1.bf16.msra.mxu0 %v13747_v55  ;;  %8503 = vmatpush1.bf16.msra.mxu1 %v13748_v58 }
 0x1ed   :  { %8473 = vmatprep.subr.bf16.mxu0 %v13749_v50  ;;  %8505 = vmatprep.subr.bf16.mxu1 %v13750_v30 }
 0x1ee   :  { %1890 = vmatprep.mubr.f32.mxu0 %v13711_v21  ;;  %1961 = vmatprep.mubr.f32.mxu1 %v13711_v21 }
 0x1f0   :  { %8475 = vmatpush1.bf16.msra.mxu0 %v13751_v49  ;;  %8507 = vmatpush1.bf16.msra.mxu1 %v13752_v61 }
 0x1f1   :  { %8477 = vmatprep.subr.bf16.mxu0 %v13753_v47  ;;  %8509 = vmatprep.subr.bf16.mxu1 %v13754_v32 }
 0x1f4   :  { %8479 = vmatpush1.bf16.msra.mxu0 %v13755_v45  ;;  %8511 = vmatpush1.bf16.msra.mxu1 %v13756_v12 }
 0x1f5   :  { %8481 = vmatprep.subr.bf16.mxu0 %v13757_v6  ;;  %8513 = vmatprep.subr.bf16.mxu1 %v13758_v62  ;;  %v13769_v62 = vld [vmem:[#allocation62_spill] sm:$0xff] }
 0x1f8   :  { %8483 = vmatpush1.bf16.msra.mxu0 %v13759_v4  ;;  %8515 = vmatpush1.bf16.msra.mxu1 %v13760_v43  ;;  %v13770_v4 = vld [vmem:[#allocation63_spill] sm:$0xff]  ;;  %v13771_v43 = vld [vmem:[#allocation64_spill] sm:$0xff] }
 0x1f9   :  { %8485 = vmatprep.subr.bf16.mxu0 %v13761_v24  ;;  %8517 = vmatprep.subr.bf16.mxu1 %v13762_v29  ;;  %v13772_v24 = vld [vmem:[#allocation65_spill] sm:$0xff]  ;;  %v13773_v29 = vld [vmem:[#allocation66_spill] sm:$0xff] }
 0x1fc   :  { %8487 = vmatpush1.bf16.msra.mxu0 %v13763_v54  ;;  %8519 = vmatpush1.bf16.msra.mxu1 %v13764_v16  ;;  %v13774_v54 = vld [vmem:[#allocation67_spill] sm:$0xff]  ;;  %v13775_v16 = vld [vmem:[#allocation68_spill] sm:$0xff] }
 0x1fd   :  { %8489 = vmatprep.subr.bf16.mxu0 %v13765_v46  ;;  %8521 = vmatprep.subr.bf16.mxu1 %v13766_v41  ;;  %v13776_v46 = vld [vmem:[#allocation69_spill] sm:$0xff]  ;;  %v13777_v41 = vld [vmem:[#allocation70_spill] sm:$0xff] }
 0x200   :  { %8491 = vmatpush1.bf16.msra.mxu0 %v13767_v36  ;;  %8523 = vmatpush1.bf16.msra.mxu1 %v13768_v34  ;;  %v13778_v36 = vld [vmem:[#allocation71_spill] sm:$0xff]  ;;  %v13779_v34 = vld [vmem:[#allocation102_spill] sm:$0xff] }
 0x201   :  { %8493 = vmatprep.subr.bf16.mxu0 %v13769_v62  ;;  %8525 = vmatprep.subr.bf16.mxu1 %v13770_v4  ;;  %v1220_v62 = vsub.s32 0, %v13779_v34 }
 0x204   :  { %8495 = vmatpush1.bf16.msra.mxu0 %v13771_v43  ;;  %8527 = vmatpush1.bf16.msra.mxu1 %v13772_v24  ;;  %v323_v43 = vld [vmem:[%s13480_s6] sm:$0xf]  ;;  %v1224_v24 = vsub.s32 1, %v13779_v34  ;;  %s11170_s6 = smov [#allocation16]  }
 0x205   :  { %8497 = vmatprep.subr.bf16.mxu0 %v13773_v29  ;;  %8529 = vmatprep.subr.bf16.mxu1 %v13774_v54  ;;  %v11803_v4 = vrot.slane %v323_v43, %v1220_v62  ;;  %v1228_v62 = vsub.s32 2, %v13779_v34  ;;  %s7930_s14 = sshll.u32 %s11170_s6, 4  ;;  %s7931_s14 = int_to_ptr.vmem [resolvable:$true] %s7930_s14 }
 0x206   :  { %v11805_v29 = vrot.slane %v323_v43, %v1224_v24  ;;  %s11080_s27 = scalar_lea.vmem %s7931_s14, 256  ;;  %p11085_p7 = scmp.lt.s32.totalorder %s7931_s14, %s7931_s14 }
 0x207   :  { %13780 = vst [vmem:[#allocation102_spill] sm:$0xff] %v11803_v4  ;;  %v11814_v61 = vrot.slane %v323_v43, %v1228_v62  ;;  %p11081_p6 = scmp.ne.s32.totalorder %s7931_s14, %s11080_s27  ;;  %p11086_p8 = scmp.lt.s32.totalorder %s11080_s27, %s11080_s27 }
 0x208   :  { %8499 = vmatpush1.bf16.msra.mxu0 %v13775_v16  ;;  %8531 = vmatpush1.bf16.msra.mxu1 %v13776_v46  ;;  %13781 = vst [vmem:[#allocation103_spill] sm:$0xff] %v11805_v29  ;;  %v1232_v46 = vsub.s32 3, %v13779_v34 }
 0x209   :  { %8533 = vmatprep.subr.bf16.mxu0 %v13777_v41  ;;  %8565 = vmatprep.subr.bf16.mxu1 %v13778_v36  ;;  %13783 = vst [vmem:[#allocation105_spill] sm:$0xff] %v11814_v61  ;;  %p11087_p9 = por %p11086_p8, %p11085_p7 }
 0x20a   :  { %v11810_v47 = vrot.slane %v323_v43, %v1232_v46  ;;  %v122_v46 = vld [vmem:[#allocation9 + $0x8] sm:$0xff] }
 0x20b   :  { %p11088_p10 = pnand %p11087_p9, %p11081_p6 }
 0x20c   :  { %13782 = vst [vmem:[#allocation104_spill] sm:$0xff] %v11810_v47 }
 0x29e   :  { %v1141_v54 = vpop.f32.mrb[2].mxu0  ;;  %v1212_v16 = vpop.f32.mrb[2].mxu1 }
 0x29f   :  { %v1238_v41 = vadd.f32 %v11803_v4, %v1141_v54  ;;  %v1143_v6 = vpop.f32.mrb[3].mxu0  ;;  %v1214_v36 = vpop.f32.mrb[3].mxu1  ;;  %v1240_v30 = vadd.f32 %v11814_v61, %v1212_v16 }
 0x2a0   :  { %v1239_v12 = vadd.f32 %v11805_v29, %v1143_v6  ;;  %v1241_v24 = vadd.f32 %v11810_v47, %v1214_v36  ;;  %v1337_v29 = vld [vmem:[#allocation4 + $0x41] ss:$8 sm:$0xf] }
 0x2a1   :  { %v7988_v45 = vmul.f32 -1.442695, %v1238_v41 }
 0x2a2   :  { %v7989_v32 = vmul.f32 -1.442695, %v1239_v12  ;;  %v7990_v49 = vmul.f32 -1.442695, %v1241_v24 }
 0x2a3   :  { %9924 = vpow2.f32 %v7988_v45 }
 0x2a4   :  { %9926 = vpow2.f32 %v7989_v32 }
 0x2a5   :  { %9928 = vpow2.f32 %v7990_v49 }
 0x2a6   :  { %9930 = vtanh.f32 %v1240_v30 }
 0x2ad   :  { %v9925_v54 = vpop.eup %9924 }
 0x2ae   :  { %v9927_v4 = vpop.eup %9926  ;;  %v1245_v50 = vadd.f32 1.0, %v9925_v54 }
 0x2af   :  { %v1251_v6 = vadd.f32 1.0, %v9927_v4  ;;  %v9929_v12 = vpop.eup %9928 }
 0x2b0   :  { %9932 = vrcp.f32 %v1245_v50  ;;  %v9931_v45 = vpop.eup %9930  ;;  %v1258_v36 = vadd.f32 1.0, %v9929_v12 }
 0x2b1   :  { %9934 = vrcp.f32 %v1251_v6 }
 0x2b2   :  { %9936 = vrcp.f32 %v1258_v36  ;;  %v1333_v36 = vld [vmem:[#allocation4 + $0x1] ss:$8 sm:$0xf] }
 0x2ba   :  { %v9933_v41 = vpop.eup %9932 }
 0x2bb   :  { %v9935_v32 = vpop.eup %9934  ;;  %v1262_v34 = vmul.f32 %v9933_v41, %v9931_v45 }
 0x2bc   :  { %v1261_v43 = vmul.f32 %v9935_v32, %v122_v46 }
 0x2be   :  { %v11817_v62 = vadd.f32 %v1262_v34, %v1261_v43  ;;  %v1414_v24 = vpop.f32.mrb[4].mxu0  ;;  %v1485_v16 = vpop.f32.mrb[4].mxu1  ;;  %v1335_v43 = vld [vmem:[#allocation4 + $0x21] ss:$8 sm:$0xf] }
 0x2bf   :  { %v1416_v61 = vpop.f32.mrb[5].mxu0  ;;  %v1487_v54 = vpop.f32.mrb[5].mxu1 }
 0x2c0   :  { %13784 = vst [vmem:[#allocation106_spill] sm:$0xff] %v11817_v62  ;;  %v1494_v49 = vcombine.low %v1414_v24, %v1416_v61  ;;  %v1495_v30 = vcombine.high %v1414_v24, %v1416_v61  ;;  %v1496_v4 = vcombine.low %v1485_v16, %v1487_v54  ;;  %v1497_v50 = vcombine.high %v1485_v16, %v1487_v54  ;;  %v1341_v61 = vld [vmem:[#allocation4 + $0x81] ss:$8 sm:$0xf] }
 0x2c1   :  { %9938 = vtanh.f32 %v11817_v62  ;;  %v1345_v62 = vld [vmem:[#allocation4 + $0xc1] ss:$8 sm:$0xf] }
 0x2c2   :  { %v1504_v6 = vrot.slane %v1494_v49, %v11612_v59  ;;  %v1511_v47 = vrot.slane %v1495_v30, %v11612_v59  ;;  %v1518_v12 = vrot.slane %v1496_v4, %v11612_v59  ;;  %v1525_v45 = vrot.slane %v1497_v50, %v11612_v59  ;;  %v1339_v30 = vld [vmem:[#allocation4 + $0x61] ss:$8 sm:$0xf] }
 0x2c3   :  { %v1343_v4 = vld [vmem:[#allocation4 + $0xa1] ss:$8 sm:$0xf] }
 0x2c4   :  { %v1526_v46 = vcombine.low %v1504_v6, %v1518_v12  ;;  %v1527_v41 = vcombine.high %v1504_v6, %v1518_v12  ;;  %v1528_v32 = vcombine.low %v1511_v47, %v1525_v45  ;;  %v1529_v34 = vcombine.high %v1511_v47, %v1525_v45  ;;  %v9937_v47 = vpop.eup %9936  ;;  %v1347_v45 = vld [vmem:[#allocation4 + $0xe1] ss:$8 sm:$0xf] }
 0x2c6   :  { %v1536_v24 = vrot.slane %v1526_v46, %v11612_v59  ;;  %v1543_v16 = vrot.slane %v1528_v32, %v11612_v59  ;;  %v1550_v54 = vrot.slane %v1527_v41, %v11612_v59  ;;  %v1557_v49 = vrot.slane %v1529_v34, %v11612_v59 }
 0x2c8   :  { %v1558_v50 = vcombine.high %v1536_v24, %v1536_v24  ;;  %v1559_v58 = vcombine.high %v1543_v16, %v1543_v16  ;;  %v1560_v6 = vcombine.high %v1550_v54, %v1550_v54  ;;  %v1561_v12 = vcombine.high %v1557_v49, %v1557_v49 }
 0x2c9   :  { %v11828_v55 = vadd.f32 %v1536_v24, %v1333_v36  ;;  %v11830_v28 = vadd.f32 %v1550_v54, %v1335_v43  ;;  %v11832_v46 = vadd.f32 %v1543_v16, %v1341_v61  ;;  %v11838_v34 = vadd.f32 %v1557_v49, %v1343_v4  ;;  %v13785_v54 = vld [vmem:[#allocation72_spill] sm:$0xff]  ;;  %v13788_v4 = vld [vmem:[#allocation75_spill] sm:$0xff] }
 0x2ca   :  { %v11834_v32 = vadd.f32 %v1558_v50, %v1337_v29  ;;  %v11836_v41 = vadd.f32 %v1560_v6, %v1339_v30  ;;  %v11840_v19 = vadd.f32 %v1559_v58, %v1345_v62  ;;  %v11844_v11 = vadd.f32 %v1561_v12, %v1347_v45  ;;  %v13787_v30 = vld [vmem:[#allocation74_spill] sm:$0xff]  ;;  %v13789_v45 = vld [vmem:[#allocation76_spill] sm:$0xff] }
 0x2cb   :  { %v9939_v10 = vpop.eup %9938  ;;  %v7995_v56 = vmul.f32 -1.442695, %v11828_v55  ;;  %v7996_v20 = vmul.f32 -1.442695, %v11830_v28  ;;  %v7999_v29 = vmul.f32 -1.442695, %v11832_v46 }
 0x2cc   :  { %v7997_v36 = vmul.f32 -1.442695, %v11834_v32  ;;  %v7998_v43 = vmul.f32 -1.442695, %v11836_v41  ;;  %v11848_v61 = vmul.f32 %v9939_v10, %v9937_v47  ;;  %v1634_v24 = vrot.slane %v11828_v55, 1 }
 0x2cd   :  { %9940 = vpow2.f32 %v7995_v56  ;;  %v8000_v58 = vmul.f32 -1.442695, %v11838_v34  ;;  %v1635_v62 = vrot.slane %v11830_v28, 1  ;;  %v8001_v16 = vmul.f32 -1.442695, %v11840_v19  ;;  %v13786_v56 = vld [vmem:[#allocation73_spill] sm:$0xff] }
 0x2ce   :  { %9942 = vpow2.f32 %v7996_v20  ;;  %1891 = vmatmul.mubr.f32.vlgmr.msra.gmra.mrb[6].mxu0 %v11848_v61  ;;  %1962 = vmatmul.mubr.f32.vlgmr.msra.gmra.mrb[6].mxu1 %v11848_v61  ;;  %v1636_v10 = vrot.slane %v11834_v32, 1  ;;  %v8002_v20 = vmul.f32 -1.442695, %v11844_v11  ;;  %v1637_v49 = vrot.slane %v11836_v41, 1 }
 0x2cf   :  { %9944 = vpow2.f32 %v7997_v36  ;;  %8535 = vmatpush1.bf16.msra.mxu0 %v13785_v54  ;;  %8567 = vmatpush1.bf16.msra.mxu1 %v13786_v56  ;;  %v1638_v50 = vrot.slane %v11832_v46, 1  ;;  %v8003_v6 = vmul.f32 -1.442695, %v1634_v24  ;;  %v8004_v12 = vmul.f32 -1.442695, %v1635_v62  ;;  %v13790_v36 = vld [vmem:[#allocation77_spill] sm:$0xff] }
 0x2d0   :  { %9946 = vpow2.f32 %v7998_v43  ;;  %8537 = vmatprep.subr.bf16.mxu0 %v13787_v30  ;;  %8569 = vmatprep.subr.bf16.mxu1 %v13788_v4  ;;  %v8005_v47 = vmul.f32 -1.442695, %v1636_v10  ;;  %v8006_v43 = vmul.f32 -1.442695, %v1637_v49  ;;  %v13791_v30 = vld [vmem:[#allocation78_spill] sm:$0xff]  ;;  %v13793_v56 = vld [vmem:[#allocation80_spill] sm:$0xff] }
 0x2d1   :  { %9948 = vpow2.f32 %v7999_v29  ;;  %2090 = vmatprep.mubr.f32.mxu0 %v13711_v21  ;;  %2161 = vmatprep.mubr.f32.mxu1 %v13711_v21  ;;  %v13792_v29 = vld [vmem:[#allocation79_spill] sm:$0xff]  ;;  %v8007_v24 = vmul.f32 -1.442695, %v1638_v50  ;;  %v13795_v10 = vld [vmem:[#allocation82_spill] sm:$0xff]  ;;  %v1703_v42 = vrot.slane %v11838_v34, 2  ;;  %v1729_v3 = vrot.slane %v11844_v11, 3 }
 0x2d2   :  { %9950 = vpow2.f32 %v8000_v58  ;;  %v13794_v58 = vld [vmem:[#allocation81_spill] sm:$0xff] }
 0x2d3   :  { %9952 = vpow2.f32 %v8001_v16  ;;  %8539 = vmatpush1.bf16.msra.mxu0 %v13789_v45  ;;  %8571 = vmatpush1.bf16.msra.mxu1 %v13790_v36 }
 0x2d4   :  { %9954 = vpow2.f32 %v8002_v20  ;;  %8541 = vmatprep.subr.bf16.mxu0 %v13791_v30  ;;  %8573 = vmatprep.subr.bf16.mxu1 %v13792_v29  ;;  %v13796_v20 = vld [vmem:[#allocation83_spill] sm:$0xff]  ;;  %v1639_v29 = vrot.slane %v11838_v34, 1 }
 0x2d5   :  { %9956 = vpow2.f32 %v8003_v6 }
 0x2d6   :  { %9958 = vpow2.f32 %v8004_v12  ;;  %v1640_v12 = vrot.slane %v11840_v19, 1 }
 0x2d7   :  { %v9941_v4 = vpop.eup %9940  ;;  %9960 = vpow2.f32 %v8005_v47  ;;  %8543 = vmatpush1.bf16.msra.mxu0 %v13793_v56  ;;  %8575 = vmatpush1.bf16.msra.mxu1 %v13794_v58  ;;  %v13797_v58 = vld [vmem:[#allocation84_spill] sm:$0xff] }
 0x2d8   :  { %v9943_v62 = vpop.eup %9942  ;;  %v1602_v16 = vadd.f32 1.0, %v9941_v4  ;;  %9962 = vpow2.f32 %v8006_v43  ;;  %8545 = vmatprep.subr.bf16.mxu0 %v13795_v10  ;;  %8577 = vmatprep.subr.bf16.mxu1 %v13796_v20  ;;  %v13798_v4 = vld [vmem:[#allocation85_spill] sm:$0xff]  ;;  %v13799_v20 = vld [vmem:[#allocation86_spill] sm:$0xff] }
 0x2d9   :  { %v9945_v49 = vpop.eup %9944  ;;  %v1603_v30 = vadd.f32 1.0, %v9943_v62  ;;  %9964 = vpow2.f32 %v8007_v24  ;;  %v1641_v62 = vrot.slane %v11844_v11, 1  ;;  %v1267_v24 = vcombine.high %v11848_v61, %v11848_v61 }
 0x2da   :  { %v9947_v50 = vpop.eup %9946  ;;  %v1604_v6 = vadd.f32 1.0, %v9945_v49  ;;  %9966 = vrcp.f32 %v1602_v16  ;;  %v13800_v16 = vld [vmem:[#allocation87_spill] sm:$0xff] }
 0x2db   :  { %v9949_v47 = vpop.eup %9948  ;;  %v1605_v56 = vadd.f32 1.0, %v9947_v50  ;;  %9968 = vrcp.f32 %v1603_v30  ;;  %8547 = vmatpush1.bf16.msra.mxu0 %v13797_v58  ;;  %8579 = vmatpush1.bf16.msra.mxu1 %v13798_v4  ;;  %v8008_v30 = vmul.f32 -1.442695, %v1639_v29  ;;  %v1274_v50 = vrot.slane %v11848_v61, %v11612_v59 }
 0x2dc   :  { %v9951_v43 = vpop.eup %9950  ;;  %v1606_v10 = vadd.f32 1.0, %v9949_v47  ;;  %9970 = vrcp.f32 %v1604_v6  ;;  %8549 = vmatprep.subr.bf16.mxu0 %v13799_v20  ;;  %8581 = vmatprep.subr.bf16.mxu1 %v13800_v16  ;;  %v8009_v6 = vmul.f32 -1.442695, %v1640_v12  ;;  %v1281_v47 = vrot.slane %v1267_v24, %v11612_v59  ;;  %v13801_v16 = vld [vmem:[#allocation88_spill] sm:$0xff]  ;;  %v13803_v12 = vld [vmem:[#allocation90_spill] sm:$0xff]  ;;  %v13804_v24 = vld [vmem:[#allocation91_spill] sm:$0xff] }
 0x2dd   :  { %v9953_v49 = vpop.eup %9952  ;;  %v1607_v36 = vadd.f32 1.0, %v9951_v43  ;;  %9972 = vrcp.f32 %v1605_v56  ;;  %v1282_v37 = vcombine.high %v1274_v50, %v1274_v50  ;;  %v1290_v20 = vrot.slane %v1274_v50, %v11612_v59  ;;  %7991 = vst.sshfl [vmem:[#allocation15] sm:$0x1 pattern:$0x73625140] %v1274_v50  ;;  %v13802_v56 = vld [vmem:[#allocation89_spill] sm:$0xff] }
 0x2de   :  { %v9955_v4 = vpop.eup %9954  ;;  %v1608_v58 = vadd.f32 1.0, %v9953_v49  ;;  %9974 = vrcp.f32 %v1606_v10  ;;  %v8010_v61 = vmul.f32 -1.442695, %v1641_v62  ;;  %v1283_v43 = vcombine.high %v1281_v47, %v1281_v47 }
 0x2df   :  { %v9957_v45 = vpop.eup %9956  ;;  %v1609_v54 = vadd.f32 1.0, %v9955_v4  ;;  %9976 = vrcp.f32 %v1607_v36  ;;  %8551 = vmatpush1.bf16.msra.mxu0 %v13801_v16  ;;  %8583 = vmatpush1.bf16.msra.mxu1 %v13802_v56  ;;  %v1297_v10 = vrot.slane %v1281_v47, %v11612_v59  ;;  %7993 = vst.sshfl [vmem:[#allocation15 + $0x20] sm:$0x1 pattern:$0x73625140] %v1281_v47  ;;  %v1304_v49 = vrot.slane %v1282_v37, %v11612_v59 }
 0x2e0   :  { %v9959_v29 = vpop.eup %9958  ;;  %9978 = vrcp.f32 %v1608_v58  ;;  %8553 = vmatprep.subr.bf16.mxu0 %v13803_v12  ;;  %8585 = vmatprep.subr.bf16.mxu1 %v13804_v24  ;;  %v1674_v4 = vadd.f32 1.0, %v9957_v45  ;;  %v1312_v50 = vcombine.high %v1290_v20, %v1290_v20  ;;  %7992 = vst.sshfl [vmem:[#allocation15 + $0x8] sm:$0x1 pattern:$0x73625140] %v1282_v37  ;;  %v1311_v58 = vrot.slane %v1283_v43, %v11612_v59  ;;  %v13805_v24 = vld [vmem:[#allocation92_spill] sm:$0xff] }
 0x2e1   :  { %v9961_v36 = vpop.eup %9960  ;;  %9980 = vrcp.f32 %v1609_v54  ;;  %v1675_v56 = vadd.f32 1.0, %v9959_v29  ;;  %v1313_v62 = vcombine.high %v1297_v10, %v1297_v10  ;;  %7994 = vst.sshfl [vmem:[#allocation15 + $0x28] sm:$0x1 pattern:$0x73625140] %v1283_v43  ;;  %v1314_v12 = vcombine.high %v1304_v49, %v1304_v49  ;;  %v13806_v54 = vld [vmem:[#allocation93_spill] sm:$0xff] }
 0x2e2   :  { %v9963_v16 = vpop.eup %9962  ;;  %9982 = vpow2.f32 %v8008_v30  ;;  %v1676_v47 = vadd.f32 1.0, %v9961_v36  ;;  %1326 = vst [vmem:[#allocation15 + $0x10] sm:$0x1] %v1312_v50  ;;  %v1315_v20 = vcombine.high %v1311_v58, %v1311_v58  ;;  %v13807_v30 = vld [vmem:[#allocation94_spill] sm:$0xff]  ;;  %v13808_v29 = vld [vmem:[#allocation95_spill] sm:$0xff]  ;;  %v1698_v36 = vrot.slane %v11828_v55, 2 }
 0x2e3   :  { %v9965_v0 = vpop.eup %9964  ;;  %9984 = vpow2.f32 %v8009_v6  ;;  %8555 = vmatpush1.bf16.msra.mxu0 %v13805_v24  ;;  %8587 = vmatpush1.bf16.msra.mxu1 %v13806_v54  ;;  %v1677_v37 = vadd.f32 1.0, %v9963_v16  ;;  %1330 = vst [vmem:[#allocation15 + $0x30] sm:$0x1] %v1313_v62  ;;  %1327 = vst [vmem:[#allocation15 + $0x18] sm:$0x1] %v1314_v12  ;;  %v1699_v16 = vrot.slane %v11830_v28, 2 }
 0x2e4   :  { %v11897_v45 = vpop.eup %9966  ;;  %9986 = vpow2.f32 %v8010_v61  ;;  %8557 = vmatprep.subr.bf16.mxu0 %v13807_v30  ;;  %8589 = vmatprep.subr.bf16.mxu1 %v13808_v29  ;;  %v1678_v6 = vadd.f32 1.0, %v9965_v0  ;;  %1331 = vst [vmem:[#allocation15 + $0x38] sm:$0x1] %v1315_v20  ;;  %v13809_v61 = vld [vmem:[#allocation96_spill] sm:$0xff]  ;;  %v13810_v50 = vld [vmem:[#allocation97_spill] sm:$0xff]  ;;  %v1700_v0 = vrot.slane %v11834_v32, 2 }
 0x2e5   :  { %v11901_v43 = vpop.eup %9968  ;;  %9988 = vrcp.f32 %v1674_v4  ;;  %v13811_v12 = vld [vmem:[#allocation98_spill] sm:$0xff]  ;;  %v1701_v62 = vrot.slane %v11836_v41, 2  ;;  %v1702_v20 = vrot.slane %v11832_v46, 2  ;;  %v1722_v54 = vrot.slane %v11828_v55, 3 }
 0x2e6   :  { %v11903_v10 = vpop.eup %9970  ;;  %9990 = vrcp.f32 %v1675_v56  ;;  %v13812_v56 = vld [vmem:[#allocation99_spill] sm:$0xff]  ;;  %v13816_v29 = vld [vmem:[#allocation26_spill] sm:$0xff]  ;;  %v1725_v55 = vrot.slane %v11836_v41, 3 }
 0x2e7   :  { %v11906_v49 = vpop.eup %9972  ;;  %9992 = vrcp.f32 %v1676_v47  ;;  %8559 = vmatpush1.bf16.msra.mxu0 %v13809_v61  ;;  %8591 = vmatpush1.bf16.msra.mxu1 %v13810_v50  ;;  %v13814_v61 = vld [vmem:[#allocation101_spill] sm:$0xff] }
 0x2e8   :  { %v11911_v58 = vpop.eup %9974  ;;  %9994 = vrcp.f32 %v1677_v37  ;;  %8561 = vmatprep.subr.bf16.mxu0 %v13811_v12  ;;  %8593 = vmatprep.subr.bf16.mxu1 %v13812_v56  ;;  %v13813_v37 = vld [vmem:[#allocation100_spill] sm:$0xff]  ;;  %v13815_v56 = vld [vmem:[#allocation25_spill] sm:$0xff]  ;;  %v8014_v41 = vmul.f32 -1.442695, %v1725_v55 }
 0x2e9   :  { %v11916_v4 = vpop.eup %9976  ;;  %9996 = vrcp.f32 %v1678_v6 }
 0x2ea   :  { %v11919_v47 = vpop.eup %9978  ;;  %9998 = vtanh.f32 %v1698_v36 }
 0x2eb   :  { %v11922_v50 = vpop.eup %9980  ;;  %10000 = vtanh.f32 %v1699_v16  ;;  %8563 = vmatpush1.bf16.msra.mxu0 %v13813_v37  ;;  %8595 = vmatpush1.bf16.msra.mxu1 %v13814_v61  ;;  %v1723_v16 = vrot.slane %v11830_v28, 3  ;;  %v1727_v28 = vrot.slane %v11838_v34, 3 }
 0x2ec   :  { %v9983_v12 = vpop.eup %9982  ;;  %10002 = vtanh.f32 %v1700_v0  ;;  %8597 = vmatprep.subr.bf16.mxu0 %v13815_v56  ;;  %8629 = vmatprep.subr.bf16.mxu1 %v13816_v29  ;;  %v1704_v0 = vrot.slane %v11840_v19, 2  ;;  %v1724_v56 = vrot.slane %v11834_v32, 3  ;;  %v1728_v32 = vrot.slane %v11840_v19, 3 }
 0x2ed   :  { %v9985_v6 = vpop.eup %9984  ;;  %v1679_v30 = vadd.f32 1.0, %v9983_v12  ;;  %10004 = vtanh.f32 %v1701_v62  ;;  %v1705_v12 = vrot.slane %v11844_v11, 2  ;;  %v8018_v11 = vmul.f32 -1.442695, %v1729_v3 }
 0x2ee   :  { %v9987_v24 = vpop.eup %9986  ;;  %v1680_v36 = vadd.f32 1.0, %v9985_v6  ;;  %10006 = vtanh.f32 %v1702_v20  ;;  %v1726_v6 = vrot.slane %v11832_v46, 3  ;;  %v8011_v20 = vmul.f32 -1.442695, %v1722_v54 }
 0x2ef   :  { %v9989_v37 = vpop.eup %9988  ;;  %v1681_v61 = vadd.f32 1.0, %v9987_v24  ;;  %10008 = vrcp.f32 %v1679_v30  ;;  %v8012_v24 = vmul.f32 -1.442695, %v1723_v16  ;;  %v8013_v48 = vmul.f32 -1.442695, %v1724_v56 }
 0x2f0   :  { %v9991_v29 = vpop.eup %9990  ;;  %10010 = vrcp.f32 %v1680_v36  ;;  %v1786_v46 = vmul.f32 %v9989_v37, %v11694_v60 }
 0x2f1   :  { %v9993_v62 = vpop.eup %9992  ;;  %10012 = vrcp.f32 %v1681_v61  ;;  %v8015_v61 = vmul.f32 -1.442695, %v1726_v6  ;;  %v1787_v34 = vmul.f32 %v9991_v29, %v11697_v8 }
 0x2f2   :  { %v9995_v14 = vpop.eup %9994  ;;  %10014 = vtanh.f32 %v1703_v42  ;;  %v8016_v42 = vmul.f32 -1.442695, %v1727_v28  ;;  %v1788_v56 = vmul.f32 %v9993_v62, %v11700_v33 }
 0x2f3   :  { %v9997_v30 = vpop.eup %9996  ;;  %10016 = vtanh.f32 %v1704_v0  ;;  %v8017_v0 = vmul.f32 -1.442695, %v1728_v32  ;;  %v1789_v6 = vmul.f32 %v9995_v14, %v11703_v25 }
 0x2f4   :  { %v9999_v36 = vpop.eup %9998  ;;  %10018 = vtanh.f32 %v1705_v12  ;;  %v1790_v8 = vmul.f32 %v9997_v30, %v11705_v38 }
 0x2f5   :  { %v10001_v7 = vpop.eup %10000  ;;  %10020 = vpow2.f32 %v8011_v20  ;;  %v1794_v19 = vmul.f32 %v9999_v36, %v11897_v45 }
 0x2f6   :  { %v10003_v54 = vpop.eup %10002  ;;  %10022 = vpow2.f32 %v8012_v24  ;;  %v1795_v55 = vmul.f32 %v10001_v7, %v11901_v43 }
 0x2f7   :  { %v10005_v16 = vpop.eup %10004  ;;  %10024 = vpow2.f32 %v8013_v48  ;;  %v1796_v37 = vmul.f32 %v10003_v54, %v11903_v10  ;;  %v11947_v29 = vadd.f32 %v1794_v19, %v1786_v46 }
 0x2f8   :  { %v10007_v12 = vpop.eup %10006  ;;  %10026 = vpow2.f32 %v8014_v41  ;;  %v1797_v45 = vmul.f32 %v10005_v16, %v11906_v49  ;;  %v11950_v33 = vadd.f32 %v1795_v55, %v1787_v34 }
 0x2f9   :  { %v10009_v60 = vpop.eup %10008  ;;  %10028 = vpow2.f32 %v8015_v61  ;;  %v1798_v7 = vmul.f32 %v10007_v12, %v11911_v58  ;;  %v11953_v3 = vadd.f32 %v1796_v37, %v1788_v56 }
 0x2fa   :  { %v10011_v48 = vpop.eup %10010  ;;  %10030 = vpow2.f32 %v8016_v42  ;;  %v11955_v14 = vadd.f32 %v1797_v45, %v1789_v6  ;;  %v1791_v36 = vmul.f32 %v10009_v60, %v11715_v23 }
 0x2fb   :  { %v10013_v62 = vpop.eup %10012  ;;  %10032 = vpow2.f32 %v8017_v0  ;;  %v11957_v38 = vadd.f32 %v1798_v7, %v1790_v8  ;;  %v1792_v46 = vmul.f32 %v10011_v48, %v11717_v15 }
 0x2fc   :  { %v10015_v25 = vpop.eup %10014  ;;  %10034 = vpow2.f32 %v8018_v11  ;;  %v1793_v16 = vmul.f32 %v10013_v62, %v11719_v5 }
 0x2fd   :  { %v10017_v43 = vpop.eup %10016  ;;  %10036 = vtanh.f32 %v11947_v29  ;;  %v1799_v34 = vmul.f32 %v10015_v25, %v11916_v4 }
 0x2fe   :  { %v10019_v10 = vpop.eup %10018  ;;  %10038 = vtanh.f32 %v11950_v33  ;;  %v1800_v56 = vmul.f32 %v10017_v43, %v11919_v47 }
 0x2ff   :  { %v10021_v49 = vpop.eup %10020  ;;  %10040 = vtanh.f32 %v11953_v3  ;;  %v1801_v23 = vmul.f32 %v10019_v10, %v11922_v50  ;;  %v11970_v55 = vadd.f32 %v1799_v34, %v1791_v36 }
 0x300   :  { %v10023_v20 = vpop.eup %10022  ;;  %v1762_v28 = vadd.f32 1.0, %v10021_v49  ;;  %10042 = vtanh.f32 %v11955_v14  ;;  %v11972_v60 = vadd.f32 %v1800_v56, %v1792_v46 }
 0x301   :  { %v10025_v58 = vpop.eup %10024  ;;  %v1763_v24 = vadd.f32 1.0, %v10023_v20  ;;  %10044 = vtanh.f32 %v11957_v38  ;;  %v11974_v5 = vadd.f32 %v1801_v23, %v1793_v16 }
 0x302   :  { %v10027_v30 = vpop.eup %10026  ;;  %v1764_v32 = vadd.f32 1.0, %v10025_v58  ;;  %10046 = vrcp.f32 %v1762_v28 }
 0x303   :  { %v10029_v41 = vpop.eup %10028  ;;  %v1765_v61 = vadd.f32 1.0, %v10027_v30  ;;  %10048 = vrcp.f32 %v1763_v24 }
 0x304   :  { %v10031_v54 = vpop.eup %10030  ;;  %v1766_v42 = vadd.f32 1.0, %v10029_v41  ;;  %10050 = vrcp.f32 %v1764_v32 }
 0x305   :  { %v10033_v0 = vpop.eup %10032  ;;  %v1767_v19 = vadd.f32 1.0, %v10031_v54  ;;  %10052 = vrcp.f32 %v1765_v61 }
 0x306   :  { %v10035_v12 = vpop.eup %10034  ;;  %v1768_v11 = vadd.f32 1.0, %v10033_v0  ;;  %10054 = vrcp.f32 %v1766_v42 }
 0x307   :  { %v10037_v15 = vpop.eup %10036  ;;  %v1769_v6 = vadd.f32 1.0, %v10035_v12  ;;  %10056 = vrcp.f32 %v1767_v19 }
 0x308   :  { %v10039_v4 = vpop.eup %10038  ;;  %10058 = vrcp.f32 %v1768_v11 }
 0x309   :  { %v10041_v37 = vpop.eup %10040  ;;  %10060 = vrcp.f32 %v1769_v6 }
 0x30a   :  { %v10043_v8 = vpop.eup %10042  ;;  %10062 = vtanh.f32 %v11970_v55 }
 0x30b   :  { %v10045_v47 = vpop.eup %10044  ;;  %10064 = vtanh.f32 %v11972_v60 }
 0x30c   :  { %v10047_v50 = vpop.eup %10046  ;;  %10066 = vtanh.f32 %v11974_v5 }
 0x30d   :  { %v10049_v48 = vpop.eup %10048  ;;  %v1818_v45 = vmul.f32 %v10047_v50, %v10037_v15  ;;  %v13820_v50 = vld [vmem:[#allocation30_spill] sm:$0xff] }
 0x30e   :  { %v10051_v62 = vpop.eup %10050  ;;  %v1819_v7 = vmul.f32 %v10049_v48, %v10039_v4  ;;  %v13821_v48 = vld [vmem:[#allocation31_spill] sm:$0xff] }
 0x30f   :  { %v10053_v25 = vpop.eup %10052  ;;  %v1820_v43 = vmul.f32 %v10051_v62, %v10041_v37  ;;  %v13817_v37 = vld [vmem:[#allocation27_spill] sm:$0xff]  ;;  %v13823_v62 = vld [vmem:[#allocation33_spill] sm:$0xff] }
 0x310   :  { %v10055_v10 = vpop.eup %10054  ;;  %v1821_v49 = vmul.f32 %v10053_v25, %v10043_v8  ;;  %v1976_v20 = vcombine.low %v1818_v45, %v1819_v7  ;;  %v13818_v8 = vld [vmem:[#allocation28_spill] sm:$0xff]  ;;  %v13824_v7 = vld [vmem:[#allocation34_spill] sm:$0xff]  ;;  %v13825_v25 = vld [vmem:[#allocation35_spill] sm:$0xff] }
 0x311   :  { %v10057_v28 = vpop.eup %10056  ;;  %v1822_v32 = vmul.f32 %v10055_v10, %v10045_v47  ;;  %v13819_v47 = vld [vmem:[#allocation29_spill] sm:$0xff]  ;;  %v13822_v45 = vld [vmem:[#allocation32_spill] sm:$0xff] }
 0x312   :  { %v10059_v58 = vpop.eup %10058  ;;  %v1977_v24 = vcombine.low %v1820_v43, %v1821_v49  ;;  %v1986_v41 = vrot.slane %v1976_v20, %v11612_v59  ;;  %v13826_v43 = vld [vmem:[#allocation36_spill] sm:$0xff]  ;;  %v13827_v10 = vld [vmem:[#allocation37_spill] sm:$0xff]  ;;  %v13828_v49 = vld [vmem:[#allocation38_spill] sm:$0xff] }
 0x313   :  { %v10061_v30 = vpop.eup %10060  ;;  %v13829_v20 = vld [vmem:[#allocation39_spill] sm:$0xff] }
 0x314   :  { %v10063_v36 = vpop.eup %10062  ;;  %v1993_v61 = vrot.slane %v1977_v24, %v11612_v59  ;;  %v13832_v24 = vld [vmem:[#allocation42_spill] sm:$0xff] }
 0x315   :  { %v10065_v46 = vpop.eup %10064  ;;  %v1823_v54 = vmul.f32 %v10063_v36, %v10057_v28  ;;  %v13830_v28 = vld [vmem:[#allocation40_spill] sm:$0xff]  ;;  %v13835_v36 = vld [vmem:[#allocation45_spill] sm:$0xff] }
 0x316   :  { %v10067_v42 = vpop.eup %10066  ;;  %v1824_v34 = vmul.f32 %v10065_v46, %v10059_v58  ;;  %v2008_v16 = vcombine.low %v1986_v41, %v1993_v61  ;;  %v13831_v58 = vld [vmem:[#allocation41_spill] sm:$0xff]  ;;  %v13836_v41 = vld [vmem:[#allocation46_spill] sm:$0xff]  ;;  %v13837_v61 = vld [vmem:[#allocation47_spill] sm:$0xff] }
 0x317   :  { %v1825_v0 = vmul.f32 %v10067_v42, %v10061_v30  ;;  %v1978_v19 = vcombine.low %v1822_v32, %v1823_v54  ;;  %v13833_v30 = vld [vmem:[#allocation43_spill] sm:$0xff]  ;;  %v13834_v32 = vld [vmem:[#allocation44_spill] sm:$0xff]  ;;  %v13839_v54 = vld [vmem:[#allocation49_spill] sm:$0xff] }
 0x318   :  { %v2016_v15 = vrot.slane %v2008_v16, %v11612_v59  ;;  %v13838_v46 = vld [vmem:[#allocation48_spill] sm:$0xff]  ;;  %v13840_v42 = vld [vmem:[#allocation50_spill] sm:$0xff] }
 0x319   :  { %v1979_v56 = vcombine.low %v1824_v34, %v1825_v0  ;;  %v2000_v12 = vrot.slane %v1978_v19, %v11612_v59  ;;  %v13841_v34 = vld [vmem:[#allocation51_spill] sm:$0xff]  ;;  %v13842_v16 = vld [vmem:[#allocation52_spill] sm:$0xff]  ;;  %v13843_v0 = vld [vmem:[#allocation53_spill] sm:$0xff] }
 0x31a   :  { %v13844_v19 = vld [vmem:[#allocation54_spill] sm:$0xff] }
 0x31b   :  { %v2007_v11 = vrot.slane %v1979_v56, %v11612_v59  ;;  %v13845_v56 = vld [vmem:[#allocation55_spill] sm:$0xff] }
 0x31d   :  { %v2009_v23 = vcombine.low %v2000_v12, %v2007_v11  ;;  %v13846_v12 = vld [vmem:[#allocation56_spill] sm:$0xff]  ;;  %v13847_v11 = vld [vmem:[#allocation57_spill] sm:$0xff] }
 0x31f   :  { %v2023_v6 = vrot.slane %v2009_v23, %v11612_v59  ;;  %v13848_v23 = vld [vmem:[#allocation58_spill] sm:$0xff] }
 0x321   :  { %v2024_v4 = vcombine.low %v2016_v15, %v2023_v6  ;;  %v13849_v15 = vld [vmem:[#allocation59_spill] sm:$0xff]  ;;  %v13850_v6 = vld [vmem:[#allocation60_spill] sm:$0xff] }
 0x323   :  { %2091 = vmatmul.mubr.f32.vlgmr.msra.gmra.mrb[6].mxu0 %v2024_v4  ;;  %2162 = vmatmul.mubr.f32.vlgmr.msra.gmra.mrb[6].mxu1 %v2024_v4 }
 0x324   :  { %8599 = vmatpush1.bf16.msra.mxu0 %v11319_v9  ;;  %8631 = vmatpush1.bf16.msra.mxu1 %v11322_v13 }
 0x325   :  { %8601 = vmatprep.subr.bf16.mxu0 %v11326_v17  ;;  %8633 = vmatprep.subr.bf16.mxu1 %v11328_v18 }
 0x326   :  { %2342 = vmatprep.mubr.f32.mxu0 %v13711_v21  ;;  %2413 = vmatprep.mubr.f32.mxu1 %v13711_v21 }
 0x328   :  { %8603 = vmatpush1.bf16.msra.mxu0 %v11331_v22  ;;  %8635 = vmatpush1.bf16.msra.mxu1 %v11335_v26 }
 0x329   :  { %8605 = vmatprep.subr.bf16.mxu0 %v11337_v27  ;;  %8637 = vmatprep.subr.bf16.mxu1 %v11339_v31 }
 0x32c   :  { %8607 = vmatpush1.bf16.msra.mxu0 %v11342_v35  ;;  %8639 = vmatpush1.bf16.msra.mxu1 %v11346_v39 }
 0x32d   :  { %8609 = vmatprep.subr.bf16.mxu0 %v11348_v40  ;;  %8641 = vmatprep.subr.bf16.mxu1 %v11351_v44 }
 0x330   :  { %8611 = vmatpush1.bf16.msra.mxu0 %v11354_v51  ;;  %8643 = vmatpush1.bf16.msra.mxu1 %v11358_v52 }
 0x331   :  { %8613 = vmatprep.subr.bf16.mxu0 %v11360_v53  ;;  %8645 = vmatprep.subr.bf16.mxu1 %v11363_v57 }
 0x334   :  { %8615 = vmatpush1.bf16.msra.mxu0 %v11366_v63  ;;  %8647 = vmatpush1.bf16.msra.mxu1 %v11370_v1 }
 0x335   :  { %8617 = vmatprep.subr.bf16.mxu0 %v11372_v2  ;;  %8649 = vmatprep.subr.bf16.mxu1 %v13817_v37 }
 0x338   :  { %8619 = vmatpush1.bf16.msra.mxu0 %v13818_v8  ;;  %8651 = vmatpush1.bf16.msra.mxu1 %v13819_v47 }
 0x339   :  { %8621 = vmatprep.subr.bf16.mxu0 %v13820_v50  ;;  %8653 = vmatprep.subr.bf16.mxu1 %v13821_v48 }
 0x33c   :  { %8623 = vmatpush1.bf16.msra.mxu0 %v13822_v45  ;;  %8655 = vmatpush1.bf16.msra.mxu1 %v13823_v62 }
 0x33d   :  { %8625 = vmatprep.subr.bf16.mxu0 %v13824_v7  ;;  %8657 = vmatprep.subr.bf16.mxu1 %v13825_v25 }
 0x340   :  { %8627 = vmatpush1.bf16.msra.mxu0 %v13826_v43  ;;  %8659 = vmatpush1.bf16.msra.mxu1 %v13827_v10 }
 0x341   :  { %8661 = vmatprep.subr.bf16.mxu0 %v13828_v49  ;;  %8693 = vmatprep.subr.bf16.mxu1 %v13829_v20 }
 0x343   :  { %2343 = vmatmul.mubr.f32.vlgmr.msra.gmra.mrb[8].mxu0 %v2024_v4  ;;  %2414 = vmatmul.mubr.f32.vlgmr.msra.gmra.mrb[8].mxu1 %v2024_v4  ;;  %v13851_v4 = vld [vmem:[#allocation61_spill] sm:$0xff] }
 0x344   :  { %8663 = vmatpush1.bf16.msra.mxu0 %v13830_v28  ;;  %8695 = vmatpush1.bf16.msra.mxu1 %v13831_v58 }
 0x345   :  { %8665 = vmatprep.subr.bf16.mxu0 %v13832_v24  ;;  %8697 = vmatprep.subr.bf16.mxu1 %v13833_v30  ;;  %v2267_v24 = vld [vmem:[#allocation4 + $0x42] ss:$8 sm:$0xf] }
 0x346   :  { %2820 = vmatprep.mubr.f32.mxu0 %v13711_v21  ;;  %2891 = vmatprep.mubr.f32.mxu1 %v13711_v21 }
 0x348   :  { %8667 = vmatpush1.bf16.msra.mxu0 %v13834_v32  ;;  %8699 = vmatpush1.bf16.msra.mxu1 %v13835_v36 }
 0x349   :  { %8669 = vmatprep.subr.bf16.mxu0 %v13836_v41  ;;  %8701 = vmatprep.subr.bf16.mxu1 %v13837_v61 }
 0x34c   :  { %8671 = vmatpush1.bf16.msra.mxu0 %v13838_v46  ;;  %8703 = vmatpush1.bf16.msra.mxu1 %v13839_v54  ;;  %v13863_v46 = vld [vmem:[#allocation103_spill] sm:$0xff] }
 0x34d   :  { %8673 = vmatprep.subr.bf16.mxu0 %v13840_v42  ;;  %8705 = vmatprep.subr.bf16.mxu1 %v13841_v34  ;;  %v13852_v34 = vld [vmem:[#allocation62_spill] sm:$0xff] }
 0x34e   :  { %v13862_v42 = vld [vmem:[#allocation102_spill] sm:$0xff] }
 0x350   :  { %8675 = vmatpush1.bf16.msra.mxu0 %v13842_v16  ;;  %8707 = vmatpush1.bf16.msra.mxu1 %v13843_v0  ;;  %v13853_v16 = vld [vmem:[#allocation63_spill] sm:$0xff]  ;;  %v13854_v0 = vld [vmem:[#allocation64_spill] sm:$0xff] }
 0x351   :  { %8677 = vmatprep.subr.bf16.mxu0 %v13844_v19  ;;  %8709 = vmatprep.subr.bf16.mxu1 %v13845_v56  ;;  %v13855_v19 = vld [vmem:[#allocation65_spill] sm:$0xff]  ;;  %v13856_v56 = vld [vmem:[#allocation66_spill] sm:$0xff] }
 0x354   :  { %8679 = vmatpush1.bf16.msra.mxu0 %v13846_v12  ;;  %8711 = vmatpush1.bf16.msra.mxu1 %v13847_v11  ;;  %v13857_v12 = vld [vmem:[#allocation67_spill] sm:$0xff]  ;;  %v13858_v11 = vld [vmem:[#allocation68_spill] sm:$0xff] }
 0x355   :  { %8681 = vmatprep.subr.bf16.mxu0 %v13848_v23  ;;  %8713 = vmatprep.subr.bf16.mxu1 %v13849_v15  ;;  %v13859_v23 = vld [vmem:[#allocation69_spill] sm:$0xff]  ;;  %v13860_v15 = vld [vmem:[#allocation70_spill] sm:$0xff] }
 0x358   :  { %8683 = vmatpush1.bf16.msra.mxu0 %v13850_v6  ;;  %8715 = vmatpush1.bf16.msra.mxu1 %v13851_v4  ;;  %v13861_v6 = vld [vmem:[#allocation71_spill] sm:$0xff] }
 0x359   :  { %8685 = vmatprep.subr.bf16.mxu0 %v13852_v34  ;;  %8717 = vmatprep.subr.bf16.mxu1 %v13853_v16 }
 0x35c   :  { %8687 = vmatpush1.bf16.msra.mxu0 %v13854_v0  ;;  %8719 = vmatpush1.bf16.msra.mxu1 %v13855_v19 }
 0x35d   :  { %8689 = vmatprep.subr.bf16.mxu0 %v13856_v56  ;;  %8721 = vmatprep.subr.bf16.mxu1 %v13857_v12  ;;  %v13864_v12 = vld [vmem:[#allocation104_spill] sm:$0xff] }
 0x360   :  { %8691 = vmatpush1.bf16.msra.mxu0 %v13858_v11  ;;  %8723 = vmatpush1.bf16.msra.mxu1 %v13859_v23  ;;  %v13865_v23 = vld [vmem:[#allocation105_spill] sm:$0xff] }
 0x361   :  { %8725 = vmatprep.subr.bf16.mxu0 %v13860_v15  ;;  %8757 = vmatprep.subr.bf16.mxu1 %v13861_v6 }
 0x3f6   :  { %v2092_v4 = vpop.f32.mrb[6].mxu0  ;;  %v2163_v34 = vpop.f32.mrb[6].mxu1 }
 0x3f7   :  { %v2168_v16 = vadd.f32 %v2092_v4, %v13862_v42  ;;  %v2094_v54 = vpop.f32.mrb[7].mxu0  ;;  %v2165_v0 = vpop.f32.mrb[7].mxu1  ;;  %v2170_v36 = vadd.f32 %v2163_v34, %v13865_v23 }
 0x3f8   :  { %v2169_v19 = vadd.f32 %v2094_v54, %v13863_v46  ;;  %v2171_v11 = vadd.f32 %v2165_v0, %v13864_v12  ;;  %v2265_v12 = vld [vmem:[#allocation4 + $0x22] ss:$8 sm:$0xf] }
 0x3f9   :  { %v8019_v61 = vmul.f32 -1.442695, %v2168_v16 }
 0x3fa   :  { %v8020_v56 = vmul.f32 -1.442695, %v2169_v19  ;;  %v8021_v41 = vmul.f32 -1.442695, %v2171_v11 }
 0x3fb   :  { %10068 = vpow2.f32 %v8019_v61 }
 0x3fc   :  { %10070 = vpow2.f32 %v8020_v56  ;;  %v13866_v56 = vld [vmem:[#allocation106_spill] sm:$0xff] }
 0x3fd   :  { %10072 = vpow2.f32 %v8021_v41 }
 0x3fe   :  { %10074 = vtanh.f32 %v2170_v36 }
 0x405   :  { %v10069_v15 = vpop.eup %10068 }
 0x406   :  { %v10071_v32 = vpop.eup %10070  ;;  %v2175_v6 = vadd.f32 1.0, %v10069_v15 }
 0x407   :  { %v2181_v30 = vadd.f32 1.0, %v10071_v32  ;;  %v10073_v4 = vpop.eup %10072 }
 0x408   :  { %10076 = vrcp.f32 %v2175_v6  ;;  %v10075_v42 = vpop.eup %10074  ;;  %v2188_v61 = vadd.f32 1.0, %v10073_v4 }
 0x409   :  { %10078 = vrcp.f32 %v2181_v30 }
 0x40a   :  { %10080 = vrcp.f32 %v2188_v61 }
 0x412   :  { %v10077_v54 = vpop.eup %10076 }
 0x413   :  { %v10079_v16 = vpop.eup %10078  ;;  %v2192_v19 = vmul.f32 %v10077_v54, %v10075_v42 }
 0x414   :  { %v2191_v46 = vmul.f32 %v10079_v16, %v13866_v56  ;;  %v2263_v56 = vld [vmem:[#allocation4 + $0x2] ss:$8 sm:$0xf] }
 0x416   :  { %v12058_v0 = vadd.f32 %v2192_v19, %v2191_v46  ;;  %v2344_v11 = vpop.f32.mrb[8].mxu0  ;;  %v2415_v34 = vpop.f32.mrb[8].mxu1 }
 0x417   :  { %v2346_v23 = vpop.f32.mrb[9].mxu0  ;;  %v2417_v15 = vpop.f32.mrb[9].mxu1 }
 0x418   :  { %13867 = vst [vmem:[#allocation106_spill] sm:$0xff] %v12058_v0  ;;  %v2424_v41 = vcombine.low %v2344_v11, %v2346_v23  ;;  %v2425_v36 = vcombine.high %v2344_v11, %v2346_v23  ;;  %v2426_v32 = vcombine.low %v2415_v34, %v2417_v15  ;;  %v2427_v6 = vcombine.high %v2415_v34, %v2417_v15  ;;  %v2271_v23 = vld [vmem:[#allocation4 + $0x82] ss:$8 sm:$0xf] }
 0x419   :  { %10082 = vtanh.f32 %v12058_v0  ;;  %v2275_v0 = vld [vmem:[#allocation4 + $0xc2] ss:$8 sm:$0xf] }
 0x41a   :  { %v2434_v30 = vrot.slane %v2424_v41, %v11612_v59  ;;  %v2441_v42 = vrot.slane %v2425_v36, %v11612_v59  ;;  %v2448_v4 = vrot.slane %v2426_v32, %v11612_v59  ;;  %v2455_v46 = vrot.slane %v2427_v6, %v11612_v59  ;;  %v2269_v36 = vld [vmem:[#allocation4 + $0x62] ss:$8 sm:$0xf] }
 0x41b   :  { %v2273_v32 = vld [vmem:[#allocation4 + $0xa2] ss:$8 sm:$0xf] }
 0x41c   :  { %v2456_v54 = vcombine.low %v2434_v30, %v2448_v4  ;;  %v2457_v16 = vcombine.high %v2434_v30, %v2448_v4  ;;  %v2458_v19 = vcombine.low %v2441_v42, %v2455_v46  ;;  %v2459_v61 = vcombine.high %v2441_v42, %v2455_v46  ;;  %v10081_v42 = vpop.eup %10080  ;;  %v2277_v46 = vld [vmem:[#allocation4 + $0xe2] ss:$8 sm:$0xf] }
 0x41e   :  { %v2466_v11 = vrot.slane %v2456_v54, %v11612_v59  ;;  %v2473_v34 = vrot.slane %v2458_v19, %v11612_v59  ;;  %v2480_v15 = vrot.slane %v2457_v16, %v11612_v59  ;;  %v2487_v41 = vrot.slane %v2459_v61, %v11612_v59 }
 0x420   :  { %v2488_v6 = vcombine.high %v2466_v11, %v2466_v11  ;;  %v2489_v58 = vcombine.high %v2473_v34, %v2473_v34  ;;  %v2490_v30 = vcombine.high %v2480_v15, %v2480_v15  ;;  %v2491_v4 = vcombine.high %v2487_v41, %v2487_v41 }
 0x421   :  { %v12069_v28 = vadd.f32 %v2466_v11, %v2263_v56  ;;  %v12071_v20 = vadd.f32 %v2480_v15, %v2265_v12  ;;  %v12073_v54 = vadd.f32 %v2473_v34, %v2271_v23  ;;  %v12079_v61 = vadd.f32 %v2487_v41, %v2273_v32  ;;  %v13868_v15 = vld [vmem:[#allocation72_spill] sm:$0xff]  ;;  %v13871_v32 = vld [vmem:[#allocation75_spill] sm:$0xff] }
 0x422   :  { %v12075_v19 = vadd.f32 %v2488_v6, %v2267_v24  ;;  %v12077_v16 = vadd.f32 %v2490_v30, %v2269_v36  ;;  %v12081_v10 = vadd.f32 %v2489_v58, %v2275_v0  ;;  %v12085_v7 = vadd.f32 %v2491_v4, %v2277_v46  ;;  %v13870_v36 = vld [vmem:[#allocation74_spill] sm:$0xff]  ;;  %v13872_v46 = vld [vmem:[#allocation76_spill] sm:$0xff] }
 0x423   :  { %v10083_v49 = vpop.eup %10082  ;;  %v8026_v43 = vmul.f32 -1.442695, %v12069_v28  ;;  %v8027_v25 = vmul.f32 -1.442695, %v12071_v20  ;;  %v8030_v24 = vmul.f32 -1.442695, %v12073_v54 }
 0x424   :  { %v8028_v12 = vmul.f32 -1.442695, %v12075_v19  ;;  %v8029_v56 = vmul.f32 -1.442695, %v12077_v16  ;;  %v12089_v23 = vmul.f32 %v10083_v49, %v10081_v42  ;;  %v2564_v11 = vrot.slane %v12069_v28, 1 }
 0x425   :  { %10084 = vpow2.f32 %v8026_v43  ;;  %v8031_v58 = vmul.f32 -1.442695, %v12079_v61  ;;  %v2565_v0 = vrot.slane %v12071_v20, 1  ;;  %v8032_v34 = vmul.f32 -1.442695, %v12081_v10  ;;  %v13869_v43 = vld [vmem:[#allocation73_spill] sm:$0xff] }
 0x426   :  { %10086 = vpow2.f32 %v8027_v25  ;;  %2821 = vmatmul.mubr.f32.vlgmr.msra.gmra.mrb[10].mxu0 %v12089_v23  ;;  %2892 = vmatmul.mubr.f32.vlgmr.msra.gmra.mrb[10].mxu1 %v12089_v23  ;;  %v2566_v49 = vrot.slane %v12075_v19, 1  ;;  %v8033_v25 = vmul.f32 -1.442695, %v12085_v7  ;;  %v2567_v41 = vrot.slane %v12077_v16, 1 }
 0x427   :  { %10088 = vpow2.f32 %v8028_v12  ;;  %8727 = vmatpush1.bf16.msra.mxu0 %v13868_v15  ;;  %8759 = vmatpush1.bf16.msra.mxu1 %v13869_v43  ;;  %v2568_v6 = vrot.slane %v12073_v54, 1  ;;  %v8034_v30 = vmul.f32 -1.442695, %v2564_v11  ;;  %v8035_v4 = vmul.f32 -1.442695, %v2565_v0  ;;  %v13873_v12 = vld [vmem:[#allocation77_spill] sm:$0xff] }
 0x428   :  { %10090 = vpow2.f32 %v8029_v56  ;;  %8729 = vmatprep.subr.bf16.mxu0 %v13870_v36  ;;  %8761 = vmatprep.subr.bf16.mxu1 %v13871_v32  ;;  %v8036_v42 = vmul.f32 -1.442695, %v2566_v49  ;;  %v8037_v56 = vmul.f32 -1.442695, %v2567_v41  ;;  %v13874_v36 = vld [vmem:[#allocation78_spill] sm:$0xff]  ;;  %v13876_v43 = vld [vmem:[#allocation80_spill] sm:$0xff] }
 0x429   :  { %10092 = vpow2.f32 %v8030_v24  ;;  %3020 = vmatprep.mubr.f32.mxu0 %v13711_v21  ;;  %3091 = vmatprep.mubr.f32.mxu1 %v13711_v21  ;;  %v13875_v24 = vld [vmem:[#allocation79_spill] sm:$0xff]  ;;  %v8038_v11 = vmul.f32 -1.442695, %v2568_v6  ;;  %v13878_v49 = vld [vmem:[#allocation82_spill] sm:$0xff]  ;;  %v2633_v48 = vrot.slane %v12079_v61, 2  ;;  %v2659_v8 = vrot.slane %v12085_v7, 3 }
 0x42a   :  { %10094 = vpow2.f32 %v8031_v58  ;;  %v13877_v58 = vld [vmem:[#allocation81_spill] sm:$0xff] }
 0x42b   :  { %10096 = vpow2.f32 %v8032_v34  ;;  %8731 = vmatpush1.bf16.msra.mxu0 %v13872_v46  ;;  %8763 = vmatpush1.bf16.msra.mxu1 %v13873_v12 }
 0x42c   :  { %10098 = vpow2.f32 %v8033_v25  ;;  %8733 = vmatprep.subr.bf16.mxu0 %v13874_v36  ;;  %8765 = vmatprep.subr.bf16.mxu1 %v13875_v24  ;;  %v13879_v25 = vld [vmem:[#allocation83_spill] sm:$0xff]  ;;  %v2569_v24 = vrot.slane %v12079_v61, 1 }
 0x42d   :  { %10100 = vpow2.f32 %v8034_v30 }
 0x42e   :  { %10102 = vpow2.f32 %v8035_v4  ;;  %v2570_v4 = vrot.slane %v12081_v10, 1 }
 0x42f   :  { %v10085_v32 = vpop.eup %10084  ;;  %10104 = vpow2.f32 %v8036_v42  ;;  %8735 = vmatpush1.bf16.msra.mxu0 %v13876_v43  ;;  %8767 = vmatpush1.bf16.msra.mxu1 %v13877_v58  ;;  %v13880_v58 = vld [vmem:[#allocation84_spill] sm:$0xff] }
 0x430   :  { %v10087_v0 = vpop.eup %10086  ;;  %v2532_v34 = vadd.f32 1.0, %v10085_v32  ;;  %10106 = vpow2.f32 %v8037_v56  ;;  %8737 = vmatprep.subr.bf16.mxu0 %v13878_v49  ;;  %8769 = vmatprep.subr.bf16.mxu1 %v13879_v25  ;;  %v13881_v32 = vld [vmem:[#allocation85_spill] sm:$0xff]  ;;  %v13882_v25 = vld [vmem:[#allocation86_spill] sm:$0xff] }
 0x431   :  { %v10089_v41 = vpop.eup %10088  ;;  %v2533_v36 = vadd.f32 1.0, %v10087_v0  ;;  %10108 = vpow2.f32 %v8038_v11  ;;  %v2571_v0 = vrot.slane %v12085_v7, 1  ;;  %v2197_v11 = vcombine.high %v12089_v23, %v12089_v23 }
 0x432   :  { %v10091_v6 = vpop.eup %10090  ;;  %v2534_v30 = vadd.f32 1.0, %v10089_v41  ;;  %10110 = vrcp.f32 %v2532_v34  ;;  %v13883_v34 = vld [vmem:[#allocation87_spill] sm:$0xff] }
 0x433   :  { %v10093_v42 = vpop.eup %10092  ;;  %v2535_v43 = vadd.f32 1.0, %v10091_v6  ;;  %10112 = vrcp.f32 %v2533_v36  ;;  %8739 = vmatpush1.bf16.msra.mxu0 %v13880_v58  ;;  %8771 = vmatpush1.bf16.msra.mxu1 %v13881_v32  ;;  %v8039_v36 = vmul.f32 -1.442695, %v2569_v24  ;;  %v2204_v6 = vrot.slane %v12089_v23, %v11612_v59 }
 0x434   :  { %v10095_v56 = vpop.eup %10094  ;;  %v2536_v49 = vadd.f32 1.0, %v10093_v42  ;;  %10114 = vrcp.f32 %v2534_v30  ;;  %8741 = vmatprep.subr.bf16.mxu0 %v13882_v25  ;;  %8773 = vmatprep.subr.bf16.mxu1 %v13883_v34  ;;  %v8040_v30 = vmul.f32 -1.442695, %v2570_v4  ;;  %v2211_v42 = vrot.slane %v2197_v11, %v11612_v59  ;;  %v13884_v34 = vld [vmem:[#allocation88_spill] sm:$0xff]  ;;  %v13886_v4 = vld [vmem:[#allocation90_spill] sm:$0xff]  ;;  %v13887_v11 = vld [vmem:[#allocation91_spill] sm:$0xff] }
 0x435   :  { %v10097_v41 = vpop.eup %10096  ;;  %v2537_v12 = vadd.f32 1.0, %v10095_v56  ;;  %10116 = vrcp.f32 %v2535_v43  ;;  %v2212_v62 = vcombine.high %v2204_v6, %v2204_v6  ;;  %v2220_v25 = vrot.slane %v2204_v6, %v11612_v59  ;;  %8022 = vst.sshfl [vmem:[#allocation15 + $0x1] sm:$0x1 pattern:$0x73625140] %v2204_v6  ;;  %v13885_v43 = vld [vmem:[#allocation89_spill] sm:$0xff] }
 0x436   :  { %v10099_v32 = vpop.eup %10098  ;;  %v2538_v58 = vadd.f32 1.0, %v10097_v41  ;;  %10118 = vrcp.f32 %v2536_v49  ;;  %v8041_v23 = vmul.f32 -1.442695, %v2571_v0  ;;  %v2213_v56 = vcombine.high %v2211_v42, %v2211_v42 }
 0x437   :  { %v10101_v46 = vpop.eup %10100  ;;  %v2539_v15 = vadd.f32 1.0, %v10099_v32  ;;  %10120 = vrcp.f32 %v2537_v12  ;;  %8743 = vmatpush1.bf16.msra.mxu0 %v13884_v34  ;;  %8775 = vmatpush1.bf16.msra.mxu1 %v13885_v43  ;;  %v2227_v49 = vrot.slane %v2211_v42, %v11612_v59  ;;  %8024 = vst.sshfl [vmem:[#allocation15 + $0x21] sm:$0x1 pattern:$0x73625140] %v2211_v42  ;;  %v2234_v41 = vrot.slane %v2212_v62, %v11612_v59 }
 0x438   :  { %v10103_v24 = vpop.eup %10102  ;;  %10122 = vrcp.f32 %v2538_v58  ;;  %8745 = vmatprep.subr.bf16.mxu0 %v13886_v4  ;;  %8777 = vmatprep.subr.bf16.mxu1 %v13887_v11  ;;  %v2604_v32 = vadd.f32 1.0, %v10101_v46  ;;  %v2242_v6 = vcombine.high %v2220_v25, %v2220_v25  ;;  %8023 = vst.sshfl [vmem:[#allocation15 + $0x9] sm:$0x1 pattern:$0x73625140] %v2212_v62  ;;  %v2241_v58 = vrot.slane %v2213_v56, %v11612_v59  ;;  %v13888_v11 = vld [vmem:[#allocation92_spill] sm:$0xff] }
 0x439   :  { %v10105_v12 = vpop.eup %10104  ;;  %10124 = vrcp.f32 %v2539_v15  ;;  %v2605_v43 = vadd.f32 1.0, %v10103_v24  ;;  %v2243_v0 = vcombine.high %v2227_v49, %v2227_v49  ;;  %8025 = vst.sshfl [vmem:[#allocation15 + $0x29] sm:$0x1 pattern:$0x73625140] %v2213_v56  ;;  %v2244_v4 = vcombine.high %v2234_v41, %v2234_v41  ;;  %v13889_v15 = vld [vmem:[#allocation93_spill] sm:$0xff] }
 0x43a   :  { %v10107_v34 = vpop.eup %10106  ;;  %10126 = vpow2.f32 %v8039_v36  ;;  %v2606_v42 = vadd.f32 1.0, %v10105_v12  ;;  %2256 = vst [vmem:[#allocation15 + $0x11] sm:$0x1] %v2242_v6  ;;  %v2245_v25 = vcombine.high %v2241_v58, %v2241_v58  ;;  %v13890_v36 = vld [vmem:[#allocation94_spill] sm:$0xff]  ;;  %v13891_v24 = vld [vmem:[#allocation95_spill] sm:$0xff]  ;;  %v2628_v12 = vrot.slane %v12069_v28, 2 }
 0x43b   :  { %v10109_v45 = vpop.eup %10108  ;;  %10128 = vpow2.f32 %v8040_v30  ;;  %8747 = vmatpush1.bf16.msra.mxu0 %v13888_v11  ;;  %8779 = vmatpush1.bf16.msra.mxu1 %v13889_v15  ;;  %v2607_v62 = vadd.f32 1.0, %v10107_v34  ;;  %2260 = vst [vmem:[#allocation15 + $0x31] sm:$0x1] %v2243_v0  ;;  %2257 = vst [vmem:[#allocation15 + $0x19] sm:$0x1] %v2244_v4  ;;  %v2629_v34 = vrot.slane %v12071_v20, 2 }
 0x43c   :  { %v12138_v46 = vpop.eup %10110  ;;  %10130 = vpow2.f32 %v8041_v23  ;;  %8749 = vmatprep.subr.bf16.mxu0 %v13890_v36  ;;  %8781 = vmatprep.subr.bf16.mxu1 %v13891_v24  ;;  %v2608_v30 = vadd.f32 1.0, %v10109_v45  ;;  %2261 = vst [vmem:[#allocation15 + $0x39] sm:$0x1] %v2245_v25  ;;  %v13892_v23 = vld [vmem:[#allocation96_spill] sm:$0xff]  ;;  %v13893_v6 = vld [vmem:[#allocation97_spill] sm:$0xff]  ;;  %v2630_v45 = vrot.slane %v12075_v19, 2 }
 0x43d   :  { %v12142_v56 = vpop.eup %10112  ;;  %10132 = vrcp.f32 %v2604_v32  ;;  %v13894_v4 = vld [vmem:[#allocation98_spill] sm:$0xff]  ;;  %v2631_v0 = vrot.slane %v12077_v16, 2  ;;  %v2632_v25 = vrot.slane %v12073_v54, 2  ;;  %v2652_v15 = vrot.slane %v12069_v28, 3 }
 0x43e   :  { %v12144_v49 = vpop.eup %10114  ;;  %10134 = vrcp.f32 %v2605_v43  ;;  %v13895_v43 = vld [vmem:[#allocation99_spill] sm:$0xff]  ;;  %v13899_v24 = vld [vmem:[#allocation26_spill] sm:$0xff]  ;;  %v2655_v28 = vrot.slane %v12077_v16, 3 }
 0x43f   :  { %v12147_v41 = vpop.eup %10116  ;;  %10136 = vrcp.f32 %v2606_v42  ;;  %8751 = vmatpush1.bf16.msra.mxu0 %v13892_v23  ;;  %8783 = vmatpush1.bf16.msra.mxu1 %v13893_v6  ;;  %v13897_v23 = vld [vmem:[#allocation101_spill] sm:$0xff] }
 0x440   :  { %v12152_v58 = vpop.eup %10118  ;;  %10138 = vrcp.f32 %v2607_v62  ;;  %8753 = vmatprep.subr.bf16.mxu0 %v13894_v4  ;;  %8785 = vmatprep.subr.bf16.mxu1 %v13895_v43  ;;  %v13896_v62 = vld [vmem:[#allocation100_spill] sm:$0xff]  ;;  %v13898_v43 = vld [vmem:[#allocation25_spill] sm:$0xff]  ;;  %v8045_v16 = vmul.f32 -1.442695, %v2655_v28 }
 0x441   :  { %v12157_v32 = vpop.eup %10120  ;;  %10140 = vrcp.f32 %v2608_v30 }
 0x442   :  { %v12160_v42 = vpop.eup %10122  ;;  %10142 = vtanh.f32 %v2628_v12 }
 0x443   :  { %v12163_v6 = vpop.eup %10124  ;;  %10144 = vtanh.f32 %v2629_v34  ;;  %8755 = vmatpush1.bf16.msra.mxu0 %v13896_v62  ;;  %8787 = vmatpush1.bf16.msra.mxu1 %v13897_v23  ;;  %v2653_v34 = vrot.slane %v12071_v20, 3  ;;  %v2657_v20 = vrot.slane %v12079_v61, 3 }
 0x444   :  { %v10127_v4 = vpop.eup %10126  ;;  %10146 = vtanh.f32 %v2630_v45  ;;  %8789 = vmatprep.subr.bf16.mxu0 %v13898_v43  ;;  %8821 = vmatprep.subr.bf16.mxu1 %v13899_v24  ;;  %v2634_v45 = vrot.slane %v12081_v10, 2  ;;  %v2654_v43 = vrot.slane %v12075_v19, 3  ;;  %v2658_v19 = vrot.slane %v12081_v10, 3 }
 0x445   :  { %v10129_v30 = vpop.eup %10128  ;;  %v2609_v36 = vadd.f32 1.0, %v10127_v4  ;;  %10148 = vtanh.f32 %v2631_v0  ;;  %v2635_v4 = vrot.slane %v12085_v7, 2  ;;  %v8049_v7 = vmul.f32 -1.442695, %v2659_v8 }
 0x446   :  { %v10131_v11 = vpop.eup %10130  ;;  %v2610_v12 = vadd.f32 1.0, %v10129_v30  ;;  %10150 = vtanh.f32 %v2632_v25  ;;  %v2656_v30 = vrot.slane %v12073_v54, 3  ;;  %v8042_v25 = vmul.f32 -1.442695, %v2652_v15 }
 0x447   :  { %v10133_v62 = vpop.eup %10132  ;;  %v2611_v23 = vadd.f32 1.0, %v10131_v11  ;;  %10152 = vrcp.f32 %v2609_v36  ;;  %v8043_v11 = vmul.f32 -1.442695, %v2653_v34  ;;  %v8044_v47 = vmul.f32 -1.442695, %v2654_v43 }
 0x448   :  { %v10135_v24 = vpop.eup %10134  ;;  %10154 = vrcp.f32 %v2610_v12  ;;  %v2716_v54 = vmul.f32 %v10133_v62, %v11947_v29 }
 0x449   :  { %v10137_v0 = vpop.eup %10136  ;;  %10156 = vrcp.f32 %v2611_v23  ;;  %v8046_v23 = vmul.f32 -1.442695, %v2656_v30  ;;  %v2717_v61 = vmul.f32 %v10135_v24, %v11950_v33 }
 0x44a   :  { %v10139_v50 = vpop.eup %10138  ;;  %10158 = vtanh.f32 %v2633_v48  ;;  %v8047_v48 = vmul.f32 -1.442695, %v2657_v20  ;;  %v2718_v43 = vmul.f32 %v10137_v0, %v11953_v3 }
 0x44b   :  { %v10141_v36 = vpop.eup %10140  ;;  %10160 = vtanh.f32 %v2634_v45  ;;  %v8048_v45 = vmul.f32 -1.442695, %v2658_v19  ;;  %v2719_v30 = vmul.f32 %v10139_v50, %v11955_v14 }
 0x44c   :  { %v10143_v12 = vpop.eup %10142  ;;  %10162 = vtanh.f32 %v2635_v4  ;;  %v2720_v33 = vmul.f32 %v10141_v36, %v11957_v38 }
 0x44d   :  { %v10145_v37 = vpop.eup %10144  ;;  %10164 = vpow2.f32 %v8042_v25  ;;  %v2724_v10 = vmul.f32 %v10143_v12, %v12138_v46 }
 0x44e   :  { %v10147_v15 = vpop.eup %10146  ;;  %10166 = vpow2.f32 %v8043_v11  ;;  %v2725_v28 = vmul.f32 %v10145_v37, %v12142_v56 }
 0x44f   :  { %v10149_v34 = vpop.eup %10148  ;;  %10168 = vpow2.f32 %v8044_v47  ;;  %v2726_v62 = vmul.f32 %v10147_v15, %v12144_v49  ;;  %v12188_v24 = vadd.f32 %v2724_v10, %v2716_v54 }
 0x450   :  { %v10151_v4 = vpop.eup %10150  ;;  %10170 = vpow2.f32 %v8045_v16  ;;  %v2727_v46 = vmul.f32 %v10149_v34, %v12147_v41  ;;  %v12191_v3 = vadd.f32 %v2725_v28, %v2717_v61 }
 0x451   :  { %v10153_v29 = vpop.eup %10152  ;;  %10172 = vpow2.f32 %v8046_v23  ;;  %v2728_v37 = vmul.f32 %v10151_v4, %v12152_v58  ;;  %v12194_v8 = vadd.f32 %v2726_v62, %v2718_v43 }
 0x452   :  { %v10155_v47 = vpop.eup %10154  ;;  %10174 = vpow2.f32 %v8047_v48  ;;  %v12196_v50 = vadd.f32 %v2727_v46, %v2719_v30  ;;  %v2721_v12 = vmul.f32 %v10153_v29, %v11970_v55 }
 0x453   :  { %v10157_v0 = vpop.eup %10156  ;;  %10176 = vpow2.f32 %v8048_v45  ;;  %v12198_v38 = vadd.f32 %v2728_v37, %v2720_v33  ;;  %v2722_v54 = vmul.f32 %v10155_v47, %v11972_v60 }
 0x454   :  { %v10159_v14 = vpop.eup %10158  ;;  %10178 = vpow2.f32 %v8049_v7  ;;  %v2723_v34 = vmul.f32 %v10157_v0, %v11974_v5 }
 0x455   :  { %v10161_v56 = vpop.eup %10160  ;;  %10180 = vtanh.f32 %v12188_v24  ;;  %v2729_v61 = vmul.f32 %v10159_v14, %v12157_v32 }
 0x456   :  { %v10163_v49 = vpop.eup %10162  ;;  %10182 = vtanh.f32 %v12191_v3  ;;  %v2730_v43 = vmul.f32 %v10161_v56, %v12160_v42 }
 0x457   :  { %v10165_v41 = vpop.eup %10164  ;;  %10184 = vtanh.f32 %v12194_v8  ;;  %v2731_v55 = vmul.f32 %v10163_v49, %v12163_v6  ;;  %v12211_v28 = vadd.f32 %v2729_v61, %v2721_v12 }
 0x458   :  { %v10167_v25 = vpop.eup %10166  ;;  %v2692_v20 = vadd.f32 1.0, %v10165_v41  ;;  %10186 = vtanh.f32 %v12196_v50  ;;  %v12213_v29 = vadd.f32 %v2730_v43, %v2722_v54 }
 0x459   :  { %v10169_v58 = vpop.eup %10168  ;;  %v2693_v11 = vadd.f32 1.0, %v10167_v25  ;;  %10188 = vtanh.f32 %v12198_v38  ;;  %v12215_v5 = vadd.f32 %v2731_v55, %v2723_v34 }
 0x45a   :  { %v10171_v36 = vpop.eup %10170  ;;  %v2694_v19 = vadd.f32 1.0, %v10169_v58  ;;  %10190 = vrcp.f32 %v2692_v20 }
 0x45b   :  { %v10173_v16 = vpop.eup %10172  ;;  %v2695_v23 = vadd.f32 1.0, %v10171_v36  ;;  %10192 = vrcp.f32 %v2693_v11 }
 0x45c   :  { %v10175_v15 = vpop.eup %10174  ;;  %v2696_v48 = vadd.f32 1.0, %v10173_v16  ;;  %10194 = vrcp.f32 %v2694_v19 }
 0x45d   :  { %v10177_v45 = vpop.eup %10176  ;;  %v2697_v10 = vadd.f32 1.0, %v10175_v15  ;;  %10196 = vrcp.f32 %v2695_v23 }
 0x45e   :  { %v10179_v4 = vpop.eup %10178  ;;  %v2698_v7 = vadd.f32 1.0, %v10177_v45  ;;  %10198 = vrcp.f32 %v2696_v48 }
 0x45f   :  { %v10181_v60 = vpop.eup %10180  ;;  %v2699_v30 = vadd.f32 1.0, %v10179_v4  ;;  %10200 = vrcp.f32 %v2697_v10 }
 0x460   :  { %v10183_v32 = vpop.eup %10182  ;;  %10202 = vrcp.f32 %v2698_v7 }
 0x461   :  { %v10185_v62 = vpop.eup %10184  ;;  %10204 = vrcp.f32 %v2699_v30 }
 0x462   :  { %v10187_v33 = vpop.eup %10186  ;;  %10206 = vtanh.f32 %v12211_v28 }
 0x463   :  { %v10189_v42 = vpop.eup %10188  ;;  %10208 = vtanh.f32 %v12213_v29 }
 0x464   :  { %v10191_v6 = vpop.eup %10190  ;;  %10210 = vtanh.f32 %v12215_v5 }
 0x465   :  { %v10193_v47 = vpop.eup %10192  ;;  %v2748_v46 = vmul.f32 %v10191_v6, %v10181_v60  ;;  %v13903_v6 = vld [vmem:[#allocation30_spill] sm:$0xff] }
 0x466   :  { %v10195_v0 = vpop.eup %10194  ;;  %v2749_v37 = vmul.f32 %v10193_v47, %v10183_v32  ;;  %v13904_v47 = vld [vmem:[#allocation31_spill] sm:$0xff] }
 0x467   :  { %v10197_v14 = vpop.eup %10196  ;;  %v2750_v56 = vmul.f32 %v10195_v0, %v10185_v62  ;;  %v13900_v62 = vld [vmem:[#allocation27_spill] sm:$0xff]  ;;  %v13906_v0 = vld [vmem:[#allocation33_spill] sm:$0xff] }
 0x468   :  { %v10199_v49 = vpop.eup %10198  ;;  %v2751_v41 = vmul.f32 %v10197_v14, %v10187_v33  ;;  %v2906_v25 = vcombine.low %v2748_v46, %v2749_v37  ;;  %v13901_v33 = vld [vmem:[#allocation28_spill] sm:$0xff]  ;;  %v13907_v37 = vld [vmem:[#allocation34_spill] sm:$0xff]  ;;  %v13908_v14 = vld [vmem:[#allocation35_spill] sm:$0xff] }
 0x469   :  { %v10201_v20 = vpop.eup %10200  ;;  %v2752_v19 = vmul.f32 %v10199_v49, %v10189_v42  ;;  %v13902_v42 = vld [vmem:[#allocation29_spill] sm:$0xff]  ;;  %v13905_v46 = vld [vmem:[#allocation32_spill] sm:$0xff] }
 0x46a   :  { %v10203_v58 = vpop.eup %10202  ;;  %v2907_v11 = vcombine.low %v2750_v56, %v2751_v41  ;;  %v2916_v16 = vrot.slane %v2906_v25, %v11612_v59  ;;  %v13909_v56 = vld [vmem:[#allocation36_spill] sm:$0xff]  ;;  %v13910_v49 = vld [vmem:[#allocation37_spill] sm:$0xff]  ;;  %v13911_v41 = vld [vmem:[#allocation38_spill] sm:$0xff] }
 0x46b   :  { %v10205_v36 = vpop.eup %10204  ;;  %v13912_v25 = vld [vmem:[#allocation39_spill] sm:$0xff] }
 0x46c   :  { %v10207_v12 = vpop.eup %10206  ;;  %v2923_v23 = vrot.slane %v2907_v11, %v11612_v59  ;;  %v13915_v11 = vld [vmem:[#allocation42_spill] sm:$0xff] }
 0x46d   :  { %v10209_v54 = vpop.eup %10208  ;;  %v2753_v15 = vmul.f32 %v10207_v12, %v10201_v20  ;;  %v13913_v20 = vld [vmem:[#allocation40_spill] sm:$0xff]  ;;  %v13918_v12 = vld [vmem:[#allocation45_spill] sm:$0xff] }
 0x46e   :  { %v10211_v48 = vpop.eup %10210  ;;  %v2754_v61 = vmul.f32 %v10209_v54, %v10203_v58  ;;  %v2938_v34 = vcombine.low %v2916_v16, %v2923_v23  ;;  %v13914_v58 = vld [vmem:[#allocation41_spill] sm:$0xff]  ;;  %v13919_v16 = vld [vmem:[#allocation46_spill] sm:$0xff]  ;;  %v13920_v23 = vld [vmem:[#allocation47_spill] sm:$0xff] }
 0x46f   :  { %v2755_v45 = vmul.f32 %v10211_v48, %v10205_v36  ;;  %v2908_v10 = vcombine.low %v2752_v19, %v2753_v15  ;;  %v13916_v36 = vld [vmem:[#allocation43_spill] sm:$0xff]  ;;  %v13917_v19 = vld [vmem:[#allocation44_spill] sm:$0xff]  ;;  %v13922_v15 = vld [vmem:[#allocation49_spill] sm:$0xff] }
 0x470   :  { %v2946_v60 = vrot.slane %v2938_v34, %v11612_v59  ;;  %v13921_v54 = vld [vmem:[#allocation48_spill] sm:$0xff]  ;;  %v13923_v48 = vld [vmem:[#allocation50_spill] sm:$0xff] }
 0x471   :  { %v2909_v43 = vcombine.low %v2754_v61, %v2755_v45  ;;  %v2930_v4 = vrot.slane %v2908_v10, %v11612_v59  ;;  %v13924_v61 = vld [vmem:[#allocation51_spill] sm:$0xff]  ;;  %v13925_v34 = vld [vmem:[#allocation52_spill] sm:$0xff]  ;;  %v13926_v45 = vld [vmem:[#allocation53_spill] sm:$0xff] }
 0x472   :  { %v13927_v10 = vld [vmem:[#allocation54_spill] sm:$0xff] }
 0x473   :  { %v2937_v7 = vrot.slane %v2909_v43, %v11612_v59  ;;  %v13928_v43 = vld [vmem:[#allocation55_spill] sm:$0xff] }
 0x475   :  { %v2939_v55 = vcombine.low %v2930_v4, %v2937_v7  ;;  %v13929_v4 = vld [vmem:[#allocation56_spill] sm:$0xff]  ;;  %v13930_v7 = vld [vmem:[#allocation57_spill] sm:$0xff] }
 0x477   :  { %v2953_v30 = vrot.slane %v2939_v55, %v11612_v59  ;;  %v13931_v55 = vld [vmem:[#allocation58_spill] sm:$0xff] }
 0x479   :  { %v2954_v32 = vcombine.low %v2946_v60, %v2953_v30  ;;  %v13932_v60 = vld [vmem:[#allocation59_spill] sm:$0xff]  ;;  %v13933_v30 = vld [vmem:[#allocation60_spill] sm:$0xff] }
 0x47b   :  { %3021 = vmatmul.mubr.f32.vlgmr.msra.gmra.mrb[10].mxu0 %v2954_v32  ;;  %3092 = vmatmul.mubr.f32.vlgmr.msra.gmra.mrb[10].mxu1 %v2954_v32 }
 0x47c   :  { %8791 = vmatpush1.bf16.msra.mxu0 %v11319_v9  ;;  %8823 = vmatpush1.bf16.msra.mxu1 %v11322_v13 }
 0x47d   :  { %8793 = vmatprep.subr.bf16.mxu0 %v11326_v17  ;;  %8825 = vmatprep.subr.bf16.mxu1 %v11328_v18 }
 0x47e   :  { %3272 = vmatprep.mubr.f32.mxu0 %v13711_v21  ;;  %3343 = vmatprep.mubr.f32.mxu1 %v13711_v21 }
 0x480   :  { %8795 = vmatpush1.bf16.msra.mxu0 %v11331_v22  ;;  %8827 = vmatpush1.bf16.msra.mxu1 %v11335_v26 }
 0x481   :  { %8797 = vmatprep.subr.bf16.mxu0 %v11337_v27  ;;  %8829 = vmatprep.subr.bf16.mxu1 %v11339_v31 }
 0x484   :  { %8799 = vmatpush1.bf16.msra.mxu0 %v11342_v35  ;;  %8831 = vmatpush1.bf16.msra.mxu1 %v11346_v39 }
 0x485   :  { %8801 = vmatprep.subr.bf16.mxu0 %v11348_v40  ;;  %8833 = vmatprep.subr.bf16.mxu1 %v11351_v44 }
 0x488   :  { %8803 = vmatpush1.bf16.msra.mxu0 %v11354_v51  ;;  %8835 = vmatpush1.bf16.msra.mxu1 %v11358_v52 }
 0x489   :  { %8805 = vmatprep.subr.bf16.mxu0 %v11360_v53  ;;  %8837 = vmatprep.subr.bf16.mxu1 %v11363_v57 }
 0x48c   :  { %8807 = vmatpush1.bf16.msra.mxu0 %v11366_v63  ;;  %8839 = vmatpush1.bf16.msra.mxu1 %v11370_v1 }
 0x48d   :  { %8809 = vmatprep.subr.bf16.mxu0 %v11372_v2  ;;  %8841 = vmatprep.subr.bf16.mxu1 %v13900_v62 }
 0x490   :  { %8811 = vmatpush1.bf16.msra.mxu0 %v13901_v33  ;;  %8843 = vmatpush1.bf16.msra.mxu1 %v13902_v42 }
 0x491   :  { %8813 = vmatprep.subr.bf16.mxu0 %v13903_v6  ;;  %8845 = vmatprep.subr.bf16.mxu1 %v13904_v47 }
 0x494   :  { %8815 = vmatpush1.bf16.msra.mxu0 %v13905_v46  ;;  %8847 = vmatpush1.bf16.msra.mxu1 %v13906_v0 }
 0x495   :  { %8817 = vmatprep.subr.bf16.mxu0 %v13907_v37  ;;  %8849 = vmatprep.subr.bf16.mxu1 %v13908_v14 }
 0x498   :  { %8819 = vmatpush1.bf16.msra.mxu0 %v13909_v56  ;;  %8851 = vmatpush1.bf16.msra.mxu1 %v13910_v49 }
 0x499   :  { %8853 = vmatprep.subr.bf16.mxu0 %v13911_v41  ;;  %8885 = vmatprep.subr.bf16.mxu1 %v13912_v25 }
 0x49b   :  { %3273 = vmatmul.mubr.f32.vlgmr.msra.gmra.mrb[12].mxu0 %v2954_v32  ;;  %3344 = vmatmul.mubr.f32.vlgmr.msra.gmra.mrb[12].mxu1 %v2954_v32  ;;  %v13934_v32 = vld [vmem:[#allocation61_spill] sm:$0xff] }
 0x49c   :  { %8855 = vmatpush1.bf16.msra.mxu0 %v13913_v20  ;;  %8887 = vmatpush1.bf16.msra.mxu1 %v13914_v58 }
 0x49d   :  { %8857 = vmatprep.subr.bf16.mxu0 %v13915_v11  ;;  %8889 = vmatprep.subr.bf16.mxu1 %v13916_v36  ;;  %v3197_v11 = vld [vmem:[#allocation4 + $0x43] ss:$8 sm:$0xf] }
 0x49e   :  { %3750 = vmatprep.mubr.f32.mxu0 %v13711_v21  ;;  %3821 = vmatprep.mubr.f32.mxu1 %v13711_v21 }
 0x4a0   :  { %8859 = vmatpush1.bf16.msra.mxu0 %v13917_v19  ;;  %8891 = vmatpush1.bf16.msra.mxu1 %v13918_v12 }
 0x4a1   :  { %8861 = vmatprep.subr.bf16.mxu0 %v13919_v16  ;;  %8893 = vmatprep.subr.bf16.mxu1 %v13920_v23 }
 0x4a4   :  { %8863 = vmatpush1.bf16.msra.mxu0 %v13921_v54  ;;  %8895 = vmatpush1.bf16.msra.mxu1 %v13922_v15  ;;  %v13946_v54 = vld [vmem:[#allocation103_spill] sm:$0xff] }
 0x4a5   :  { %8865 = vmatprep.subr.bf16.mxu0 %v13923_v48  ;;  %8897 = vmatprep.subr.bf16.mxu1 %v13924_v61  ;;  %v13935_v61 = vld [vmem:[#allocation62_spill] sm:$0xff] }
 0x4a6   :  { %v13945_v48 = vld [vmem:[#allocation102_spill] sm:$0xff] }
 0x4a8   :  { %8867 = vmatpush1.bf16.msra.mxu0 %v13925_v34  ;;  %8899 = vmatpush1.bf16.msra.mxu1 %v13926_v45  ;;  %v13936_v34 = vld [vmem:[#allocation63_spill] sm:$0xff]  ;;  %v13937_v45 = vld [vmem:[#allocation64_spill] sm:$0xff] }
 0x4a9   :  { %8869 = vmatprep.subr.bf16.mxu0 %v13927_v10  ;;  %8901 = vmatprep.subr.bf16.mxu1 %v13928_v43  ;;  %v13938_v10 = vld [vmem:[#allocation65_spill] sm:$0xff]  ;;  %v13939_v43 = vld [vmem:[#allocation66_spill] sm:$0xff] }
 0x4ac   :  { %8871 = vmatpush1.bf16.msra.mxu0 %v13929_v4  ;;  %8903 = vmatpush1.bf16.msra.mxu1 %v13930_v7  ;;  %v13940_v4 = vld [vmem:[#allocation67_spill] sm:$0xff]  ;;  %v13941_v7 = vld [vmem:[#allocation68_spill] sm:$0xff] }
 0x4ad   :  { %8873 = vmatprep.subr.bf16.mxu0 %v13931_v55  ;;  %8905 = vmatprep.subr.bf16.mxu1 %v13932_v60  ;;  %v13942_v55 = vld [vmem:[#allocation69_spill] sm:$0xff]  ;;  %v13943_v60 = vld [vmem:[#allocation70_spill] sm:$0xff] }
 0x4b0   :  { %8875 = vmatpush1.bf16.msra.mxu0 %v13933_v30  ;;  %8907 = vmatpush1.bf16.msra.mxu1 %v13934_v32  ;;  %v13944_v30 = vld [vmem:[#allocation71_spill] sm:$0xff] }
 0x4b1   :  { %8877 = vmatprep.subr.bf16.mxu0 %v13935_v61  ;;  %8909 = vmatprep.subr.bf16.mxu1 %v13936_v34 }
 0x4b4   :  { %8879 = vmatpush1.bf16.msra.mxu0 %v13937_v45  ;;  %8911 = vmatpush1.bf16.msra.mxu1 %v13938_v10 }
 0x4b5   :  { %8881 = vmatprep.subr.bf16.mxu0 %v13939_v43  ;;  %8913 = vmatprep.subr.bf16.mxu1 %v13940_v4  ;;  %v13947_v4 = vld [vmem:[#allocation104_spill] sm:$0xff] }
 0x4b8   :  { %8883 = vmatpush1.bf16.msra.mxu0 %v13941_v7  ;;  %8915 = vmatpush1.bf16.msra.mxu1 %v13942_v55  ;;  %v13948_v55 = vld [vmem:[#allocation105_spill] sm:$0xff] }
 0x4b9   :  { %8917 = vmatprep.subr.bf16.mxu0 %v13943_v60  ;;  %8949 = vmatprep.subr.bf16.mxu1 %v13944_v30 }
 0x54e   :  { %v3022_v32 = vpop.f32.mrb[10].mxu0  ;;  %v3093_v61 = vpop.f32.mrb[10].mxu1 }
 0x54f   :  { %v3098_v34 = vadd.f32 %v3022_v32, %v13945_v48  ;;  %v3024_v15 = vpop.f32.mrb[11].mxu0  ;;  %v3095_v45 = vpop.f32.mrb[11].mxu1  ;;  %v3100_v12 = vadd.f32 %v3093_v61, %v13948_v55 }
 0x550   :  { %v3099_v10 = vadd.f32 %v3024_v15, %v13946_v54  ;;  %v3101_v7 = vadd.f32 %v3095_v45, %v13947_v4  ;;  %v3195_v4 = vld [vmem:[#allocation4 + $0x23] ss:$8 sm:$0xf] }
 0x551   :  { %v8050_v23 = vmul.f32 -1.442695, %v3098_v34 }
 0x552   :  { %v8051_v43 = vmul.f32 -1.442695, %v3099_v10  ;;  %v8052_v16 = vmul.f32 -1.442695, %v3101_v7 }
 0x553   :  { %10212 = vpow2.f32 %v8050_v23 }
 0x554   :  { %10214 = vpow2.f32 %v8051_v43  ;;  %v13949_v43 = vld [vmem:[#allocation106_spill] sm:$0xff] }
 0x555   :  { %10216 = vpow2.f32 %v8052_v16 }
 0x556   :  { %10218 = vtanh.f32 %v3100_v12 }
 0x55d   :  { %v10213_v60 = vpop.eup %10212 }
 0x55e   :  { %v10215_v19 = vpop.eup %10214  ;;  %v3105_v30 = vadd.f32 1.0, %v10213_v60 }
 0x55f   :  { %v3111_v36 = vadd.f32 1.0, %v10215_v19  ;;  %v10217_v32 = vpop.eup %10216 }
 0x560   :  { %10220 = vrcp.f32 %v3105_v30  ;;  %v10219_v48 = vpop.eup %10218  ;;  %v3118_v23 = vadd.f32 1.0, %v10217_v32 }
 0x561   :  { %10222 = vrcp.f32 %v3111_v36 }
 0x562   :  { %10224 = vrcp.f32 %v3118_v23 }
 0x56a   :  { %v10221_v15 = vpop.eup %10220 }
 0x56b   :  { %v10223_v34 = vpop.eup %10222  ;;  %v3122_v10 = vmul.f32 %v10221_v15, %v10219_v48 }
 0x56c   :  { %v3121_v54 = vmul.f32 %v10223_v34, %v13949_v43  ;;  %v3193_v43 = vld [vmem:[#allocation4 + $0x3] ss:$8 sm:$0xf] }
 0x56e   :  { %v12299_v45 = vadd.f32 %v3122_v10, %v3121_v54  ;;  %v3274_v7 = vpop.f32.mrb[12].mxu0  ;;  %v3345_v61 = vpop.f32.mrb[12].mxu1 }
 0x56f   :  { %v3276_v55 = vpop.f32.mrb[13].mxu0  ;;  %v3347_v60 = vpop.f32.mrb[13].mxu1 }
 0x570   :  { %13950 = vst [vmem:[#allocation106_spill] sm:$0xff] %v12299_v45  ;;  %v3354_v16 = vcombine.low %v3274_v7, %v3276_v55  ;;  %v3355_v12 = vcombine.high %v3274_v7, %v3276_v55  ;;  %v3356_v19 = vcombine.low %v3345_v61, %v3347_v60  ;;  %v3357_v30 = vcombine.high %v3345_v61, %v3347_v60  ;;  %v3201_v55 = vld [vmem:[#allocation4 + $0x83] ss:$8 sm:$0xf] }
 0x571   :  { %10226 = vtanh.f32 %v12299_v45  ;;  %v3205_v45 = vld [vmem:[#allocation4 + $0xc3] ss:$8 sm:$0xf] }
 0x572   :  { %v3364_v36 = vrot.slane %v3354_v16, %v11612_v59  ;;  %v3371_v48 = vrot.slane %v3355_v12, %v11612_v59  ;;  %v3378_v32 = vrot.slane %v3356_v19, %v11612_v59  ;;  %v3385_v54 = vrot.slane %v3357_v30, %v11612_v59  ;;  %v3199_v12 = vld [vmem:[#allocation4 + $0x63] ss:$8 sm:$0xf] }
 0x573   :  { %v3203_v19 = vld [vmem:[#allocation4 + $0xa3] ss:$8 sm:$0xf] }
 0x574   :  { %v3386_v15 = vcombine.low %v3364_v36, %v3378_v32  ;;  %v3387_v34 = vcombine.high %v3364_v36, %v3378_v32  ;;  %v3388_v10 = vcombine.low %v3371_v48, %v3385_v54  ;;  %v3389_v23 = vcombine.high %v3371_v48, %v3385_v54  ;;  %v10225_v48 = vpop.eup %10224  ;;  %v3207_v54 = vld [vmem:[#allocation4 + $0xe3] ss:$8 sm:$0xf] }
 0x576   :  { %v3396_v7 = vrot.slane %v3386_v15, %v11612_v59  ;;  %v3403_v61 = vrot.slane %v3388_v10, %v11612_v59  ;;  %v3410_v60 = vrot.slane %v3387_v34, %v11612_v59  ;;  %v3417_v16 = vrot.slane %v3389_v23, %v11612_v59 }
 0x578   :  { %v3418_v30 = vcombine.high %v3396_v7, %v3396_v7  ;;  %v3419_v58 = vcombine.high %v3403_v61, %v3403_v61  ;;  %v3420_v36 = vcombine.high %v3410_v60, %v3410_v60  ;;  %v3421_v32 = vcombine.high %v3417_v16, %v3417_v16 }
 0x579   :  { %v12310_v20 = vadd.f32 %v3396_v7, %v3193_v43  ;;  %v12312_v25 = vadd.f32 %v3410_v60, %v3195_v4  ;;  %v12314_v15 = vadd.f32 %v3403_v61, %v3201_v55  ;;  %v12320_v23 = vadd.f32 %v3417_v16, %v3203_v19  ;;  %v13951_v60 = vld [vmem:[#allocation72_spill] sm:$0xff]  ;;  %v13954_v19 = vld [vmem:[#allocation75_spill] sm:$0xff] }
 0x57a   :  { %v12316_v10 = vadd.f32 %v3418_v30, %v3197_v11  ;;  %v12318_v34 = vadd.f32 %v3420_v36, %v3199_v12  ;;  %v12322_v49 = vadd.f32 %v3419_v58, %v3205_v45  ;;  %v12326_v37 = vadd.f32 %v3421_v32, %v3207_v54  ;;  %v13953_v12 = vld [vmem:[#allocation74_spill] sm:$0xff]  ;;  %v13955_v54 = vld [vmem:[#allocation76_spill] sm:$0xff] }
 0x57b   :  { %v10227_v41 = vpop.eup %10226  ;;  %v8057_v56 = vmul.f32 -1.442695, %v12310_v20  ;;  %v8058_v14 = vmul.f32 -1.442695, %v12312_v25  ;;  %v8061_v11 = vmul.f32 -1.442695, %v12314_v15 }
 0x57c   :  { %v8059_v4 = vmul.f32 -1.442695, %v12316_v10  ;;  %v8060_v43 = vmul.f32 -1.442695, %v12318_v34  ;;  %v12330_v55 = vmul.f32 %v10227_v41, %v10225_v48  ;;  %v3494_v7 = vrot.slane %v12310_v20, 1 }
 0x57d   :  { %10228 = vpow2.f32 %v8057_v56  ;;  %v8062_v58 = vmul.f32 -1.442695, %v12320_v23  ;;  %v3495_v45 = vrot.slane %v12312_v25, 1  ;;  %v8063_v61 = vmul.f32 -1.442695, %v12322_v49  ;;  %v13952_v56 = vld [vmem:[#allocation73_spill] sm:$0xff] }
 0x57e   :  { %10230 = vpow2.f32 %v8058_v14  ;;  %3751 = vmatmul.mubr.f32.vlgmr.msra.gmra.mrb[14].mxu0 %v12330_v55  ;;  %3822 = vmatmul.mubr.f32.vlgmr.msra.gmra.mrb[14].mxu1 %v12330_v55  ;;  %v3496_v41 = vrot.slane %v12316_v10, 1  ;;  %v8064_v14 = vmul.f32 -1.442695, %v12326_v37  ;;  %v3497_v16 = vrot.slane %v12318_v34, 1 }
 0x57f   :  { %10232 = vpow2.f32 %v8059_v4  ;;  %8919 = vmatpush1.bf16.msra.mxu0 %v13951_v60  ;;  %8951 = vmatpush1.bf16.msra.mxu1 %v13952_v56  ;;  %v3498_v30 = vrot.slane %v12314_v15, 1  ;;  %v8065_v36 = vmul.f32 -1.442695, %v3494_v7  ;;  %v8066_v32 = vmul.f32 -1.442695, %v3495_v45  ;;  %v13956_v4 = vld [vmem:[#allocation77_spill] sm:$0xff] }
 0x580   :  { %10234 = vpow2.f32 %v8060_v43  ;;  %8921 = vmatprep.subr.bf16.mxu0 %v13953_v12  ;;  %8953 = vmatprep.subr.bf16.mxu1 %v13954_v19  ;;  %v8067_v48 = vmul.f32 -1.442695, %v3496_v41  ;;  %v8068_v43 = vmul.f32 -1.442695, %v3497_v16  ;;  %v13957_v12 = vld [vmem:[#allocation78_spill] sm:$0xff]  ;;  %v13959_v56 = vld [vmem:[#allocation80_spill] sm:$0xff] }
 0x581   :  { %10236 = vpow2.f32 %v8061_v11  ;;  %3950 = vmatprep.mubr.f32.mxu0 %v13711_v21  ;;  %4021 = vmatprep.mubr.f32.mxu1 %v13711_v21  ;;  %v13958_v11 = vld [vmem:[#allocation79_spill] sm:$0xff]  ;;  %v8069_v7 = vmul.f32 -1.442695, %v3498_v30  ;;  %v13961_v41 = vld [vmem:[#allocation82_spill] sm:$0xff]  ;;  %v3563_v47 = vrot.slane %v12320_v23, 2  ;;  %v3589_v33 = vrot.slane %v12326_v37, 3 }
 0x582   :  { %10238 = vpow2.f32 %v8062_v58  ;;  %v13960_v58 = vld [vmem:[#allocation81_spill] sm:$0xff] }
 0x583   :  { %10240 = vpow2.f32 %v8063_v61  ;;  %8923 = vmatpush1.bf16.msra.mxu0 %v13955_v54  ;;  %8955 = vmatpush1.bf16.msra.mxu1 %v13956_v4 }
 0x584   :  { %10242 = vpow2.f32 %v8064_v14  ;;  %8925 = vmatprep.subr.bf16.mxu0 %v13957_v12  ;;  %8957 = vmatprep.subr.bf16.mxu1 %v13958_v11  ;;  %v13962_v14 = vld [vmem:[#allocation83_spill] sm:$0xff]  ;;  %v3499_v11 = vrot.slane %v12320_v23, 1 }
 0x585   :  { %10244 = vpow2.f32 %v8065_v36 }
 0x586   :  { %10246 = vpow2.f32 %v8066_v32  ;;  %v3500_v32 = vrot.slane %v12322_v49, 1 }
 0x587   :  { %v10229_v19 = vpop.eup %10228  ;;  %10248 = vpow2.f32 %v8067_v48  ;;  %8927 = vmatpush1.bf16.msra.mxu0 %v13959_v56  ;;  %8959 = vmatpush1.bf16.msra.mxu1 %v13960_v58  ;;  %v13963_v58 = vld [vmem:[#allocation84_spill] sm:$0xff] }
 0x588   :  { %v10231_v45 = vpop.eup %10230  ;;  %v3462_v61 = vadd.f32 1.0, %v10229_v19  ;;  %10250 = vpow2.f32 %v8068_v43  ;;  %8929 = vmatprep.subr.bf16.mxu0 %v13961_v41  ;;  %8961 = vmatprep.subr.bf16.mxu1 %v13962_v14  ;;  %v13964_v19 = vld [vmem:[#allocation85_spill] sm:$0xff]  ;;  %v13965_v14 = vld [vmem:[#allocation86_spill] sm:$0xff] }
 0x589   :  { %v10233_v16 = vpop.eup %10232  ;;  %v3463_v12 = vadd.f32 1.0, %v10231_v45  ;;  %10252 = vpow2.f32 %v8069_v7  ;;  %v3501_v45 = vrot.slane %v12326_v37, 1  ;;  %v3127_v7 = vcombine.high %v12330_v55, %v12330_v55 }
 0x58a   :  { %v10235_v30 = vpop.eup %10234  ;;  %v3464_v36 = vadd.f32 1.0, %v10233_v16  ;;  %10254 = vrcp.f32 %v3462_v61  ;;  %v13966_v61 = vld [vmem:[#allocation87_spill] sm:$0xff] }
 0x58b   :  { %v10237_v48 = vpop.eup %10236  ;;  %v3465_v56 = vadd.f32 1.0, %v10235_v30  ;;  %10256 = vrcp.f32 %v3463_v12  ;;  %8931 = vmatpush1.bf16.msra.mxu0 %v13963_v58  ;;  %8963 = vmatpush1.bf16.msra.mxu1 %v13964_v19  ;;  %v8070_v12 = vmul.f32 -1.442695, %v3499_v11  ;;  %v3134_v30 = vrot.slane %v12330_v55, %v11612_v59 }
 0x58c   :  { %v10239_v43 = vpop.eup %10238  ;;  %v3466_v41 = vadd.f32 1.0, %v10237_v48  ;;  %10258 = vrcp.f32 %v3464_v36  ;;  %8933 = vmatprep.subr.bf16.mxu0 %v13965_v14  ;;  %8965 = vmatprep.subr.bf16.mxu1 %v13966_v61  ;;  %v8071_v36 = vmul.f32 -1.442695, %v3500_v32  ;;  %v3141_v48 = vrot.slane %v3127_v7, %v11612_v59  ;;  %v13967_v61 = vld [vmem:[#allocation88_spill] sm:$0xff]  ;;  %v13969_v32 = vld [vmem:[#allocation90_spill] sm:$0xff]  ;;  %v13970_v7 = vld [vmem:[#allocation91_spill] sm:$0xff] }
 0x58d   :  { %v10241_v16 = vpop.eup %10240  ;;  %v3467_v4 = vadd.f32 1.0, %v10239_v43  ;;  %10260 = vrcp.f32 %v3465_v56  ;;  %v3142_v0 = vcombine.high %v3134_v30, %v3134_v30  ;;  %v3150_v14 = vrot.slane %v3134_v30, %v11612_v59  ;;  %8053 = vst.sshfl [vmem:[#allocation15 + $0x2] sm:$0x1 pattern:$0x73625140] %v3134_v30  ;;  %v13968_v56 = vld [vmem:[#allocation89_spill] sm:$0xff] }
 0x58e   :  { %v10243_v19 = vpop.eup %10242  ;;  %v3468_v58 = vadd.f32 1.0, %v10241_v16  ;;  %10262 = vrcp.f32 %v3466_v41  ;;  %v8072_v55 = vmul.f32 -1.442695, %v3501_v45  ;;  %v3143_v43 = vcombine.high %v3141_v48, %v3141_v48 }
 0x58f   :  { %v10245_v54 = vpop.eup %10244  ;;  %v3469_v60 = vadd.f32 1.0, %v10243_v19  ;;  %10264 = vrcp.f32 %v3467_v4  ;;  %8935 = vmatpush1.bf16.msra.mxu0 %v13967_v61  ;;  %8967 = vmatpush1.bf16.msra.mxu1 %v13968_v56  ;;  %v3157_v41 = vrot.slane %v3141_v48, %v11612_v59  ;;  %8055 = vst.sshfl [vmem:[#allocation15 + $0x22] sm:$0x1 pattern:$0x73625140] %v3141_v48  ;;  %v3164_v16 = vrot.slane %v3142_v0, %v11612_v59 }
 0x590   :  { %v10247_v11 = vpop.eup %10246  ;;  %10266 = vrcp.f32 %v3468_v58  ;;  %8937 = vmatprep.subr.bf16.mxu0 %v13969_v32  ;;  %8969 = vmatprep.subr.bf16.mxu1 %v13970_v7  ;;  %v3534_v19 = vadd.f32 1.0, %v10245_v54  ;;  %v3172_v30 = vcombine.high %v3150_v14, %v3150_v14  ;;  %8054 = vst.sshfl [vmem:[#allocation15 + $0xa] sm:$0x1 pattern:$0x73625140] %v3142_v0  ;;  %v3171_v58 = vrot.slane %v3143_v43, %v11612_v59  ;;  %v13971_v7 = vld [vmem:[#allocation92_spill] sm:$0xff] }
 0x591   :  { %v10249_v4 = vpop.eup %10248  ;;  %10268 = vrcp.f32 %v3469_v60  ;;  %v3535_v56 = vadd.f32 1.0, %v10247_v11  ;;  %v3173_v45 = vcombine.high %v3157_v41, %v3157_v41  ;;  %8056 = vst.sshfl [vmem:[#allocation15 + $0x2a] sm:$0x1 pattern:$0x73625140] %v3143_v43  ;;  %v3174_v32 = vcombine.high %v3164_v16, %v3164_v16  ;;  %v13972_v60 = vld [vmem:[#allocation93_spill] sm:$0xff] }
 0x592   :  { %v10251_v61 = vpop.eup %10250  ;;  %10270 = vpow2.f32 %v8070_v12  ;;  %v3536_v48 = vadd.f32 1.0, %v10249_v4  ;;  %3186 = vst [vmem:[#allocation15 + $0x12] sm:$0x1] %v3172_v30  ;;  %v3175_v14 = vcombine.high %v3171_v58, %v3171_v58  ;;  %v13973_v12 = vld [vmem:[#allocation94_spill] sm:$0xff]  ;;  %v13974_v11 = vld [vmem:[#allocation95_spill] sm:$0xff]  ;;  %v3558_v4 = vrot.slane %v12310_v20, 2 }
 0x593   :  { %v10253_v46 = vpop.eup %10252  ;;  %10272 = vpow2.f32 %v8071_v36  ;;  %8939 = vmatpush1.bf16.msra.mxu0 %v13971_v7  ;;  %8971 = vmatpush1.bf16.msra.mxu1 %v13972_v60  ;;  %v3537_v0 = vadd.f32 1.0, %v10251_v61  ;;  %3190 = vst [vmem:[#allocation15 + $0x32] sm:$0x1] %v3173_v45  ;;  %3187 = vst [vmem:[#allocation15 + $0x1a] sm:$0x1] %v3174_v32  ;;  %v3559_v61 = vrot.slane %v12312_v25, 2 }
 0x594   :  { %v12379_v54 = vpop.eup %10254  ;;  %10274 = vpow2.f32 %v8072_v55  ;;  %8941 = vmatprep.subr.bf16.mxu0 %v13973_v12  ;;  %8973 = vmatprep.subr.bf16.mxu1 %v13974_v11  ;;  %v3538_v36 = vadd.f32 1.0, %v10253_v46  ;;  %3191 = vst [vmem:[#allocation15 + $0x3a] sm:$0x1] %v3175_v14  ;;  %v13975_v55 = vld [vmem:[#allocation96_spill] sm:$0xff]  ;;  %v13976_v30 = vld [vmem:[#allocation97_spill] sm:$0xff]  ;;  %v3560_v46 = vrot.slane %v12316_v10, 2 }
 0x595   :  { %v12383_v43 = vpop.eup %10256  ;;  %10276 = vrcp.f32 %v3534_v19  ;;  %v13977_v32 = vld [vmem:[#allocation98_spill] sm:$0xff]  ;;  %v3561_v45 = vrot.slane %v12318_v34, 2  ;;  %v3562_v14 = vrot.slane %v12314_v15, 2  ;;  %v3582_v60 = vrot.slane %v12310_v20, 3 }
 0x596   :  { %v12385_v41 = vpop.eup %10258  ;;  %10278 = vrcp.f32 %v3535_v56  ;;  %v13978_v56 = vld [vmem:[#allocation99_spill] sm:$0xff]  ;;  %v13982_v11 = vld [vmem:[#allocation26_spill] sm:$0xff]  ;;  %v3585_v20 = vrot.slane %v12318_v34, 3 }
 0x597   :  { %v12388_v16 = vpop.eup %10260  ;;  %10280 = vrcp.f32 %v3536_v48  ;;  %8943 = vmatpush1.bf16.msra.mxu0 %v13975_v55  ;;  %8975 = vmatpush1.bf16.msra.mxu1 %v13976_v30  ;;  %v13980_v55 = vld [vmem:[#allocation101_spill] sm:$0xff] }
 0x598   :  { %v12393_v58 = vpop.eup %10262  ;;  %10282 = vrcp.f32 %v3537_v0  ;;  %8945 = vmatprep.subr.bf16.mxu0 %v13977_v32  ;;  %8977 = vmatprep.subr.bf16.mxu1 %v13978_v56  ;;  %v13979_v0 = vld [vmem:[#allocation100_spill] sm:$0xff]  ;;  %v13981_v56 = vld [vmem:[#allocation25_spill] sm:$0xff]  ;;  %v8076_v34 = vmul.f32 -1.442695, %v3585_v20 }
 0x599   :  { %v12398_v19 = vpop.eup %10264  ;;  %10284 = vrcp.f32 %v3538_v36 }
 0x59a   :  { %v12401_v48 = vpop.eup %10266  ;;  %10286 = vtanh.f32 %v3558_v4 }
 0x59b   :  { %v12404_v30 = vpop.eup %10268  ;;  %10288 = vtanh.f32 %v3559_v61  ;;  %8947 = vmatpush1.bf16.msra.mxu0 %v13979_v0  ;;  %8979 = vmatpush1.bf16.msra.mxu1 %v13980_v55  ;;  %v3583_v61 = vrot.slane %v12312_v25, 3  ;;  %v3587_v25 = vrot.slane %v12320_v23, 3 }
 0x59c   :  { %v10271_v32 = vpop.eup %10270  ;;  %10290 = vtanh.f32 %v3560_v46  ;;  %8981 = vmatprep.subr.bf16.mxu0 %v13981_v56  ;;  %9013 = vmatprep.subr.bf16.mxu1 %v13982_v11  ;;  %v3564_v46 = vrot.slane %v12322_v49, 2  ;;  %v3584_v56 = vrot.slane %v12316_v10, 3  ;;  %v3588_v10 = vrot.slane %v12322_v49, 3 }
 0x59d   :  { %v10273_v36 = vpop.eup %10272  ;;  %v3539_v12 = vadd.f32 1.0, %v10271_v32  ;;  %10292 = vtanh.f32 %v3561_v45  ;;  %v3565_v32 = vrot.slane %v12326_v37, 2  ;;  %v8080_v37 = vmul.f32 -1.442695, %v3589_v33 }
 0x59e   :  { %v10275_v7 = vpop.eup %10274  ;;  %v3540_v4 = vadd.f32 1.0, %v10273_v36  ;;  %10294 = vtanh.f32 %v3562_v14  ;;  %v3586_v36 = vrot.slane %v12314_v15, 3  ;;  %v8073_v14 = vmul.f32 -1.442695, %v3582_v60 }
 0x59f   :  { %v10277_v0 = vpop.eup %10276  ;;  %v3541_v55 = vadd.f32 1.0, %v10275_v7  ;;  %10296 = vrcp.f32 %v3539_v12  ;;  %v8074_v7 = vmul.f32 -1.442695, %v3583_v61  ;;  %v8075_v42 = vmul.f32 -1.442695, %v3584_v56 }
 0x5a0   :  { %v10279_v11 = vpop.eup %10278  ;;  %10298 = vrcp.f32 %v3540_v4  ;;  %v3646_v15 = vmul.f32 %v10277_v0, %v12188_v24 }
 0x5a1   :  { %v10281_v45 = vpop.eup %10280  ;;  %10300 = vrcp.f32 %v3541_v55  ;;  %v8077_v55 = vmul.f32 -1.442695, %v3586_v36  ;;  %v3647_v23 = vmul.f32 %v10279_v11, %v12191_v3 }
 0x5a2   :  { %v10283_v6 = vpop.eup %10282  ;;  %10302 = vtanh.f32 %v3563_v47  ;;  %v8078_v47 = vmul.f32 -1.442695, %v3587_v25  ;;  %v3648_v56 = vmul.f32 %v10281_v45, %v12194_v8 }
 0x5a3   :  { %v10285_v12 = vpop.eup %10284  ;;  %10304 = vtanh.f32 %v3564_v46  ;;  %v8079_v46 = vmul.f32 -1.442695, %v3588_v10  ;;  %v3649_v36 = vmul.f32 %v10283_v6, %v12196_v50 }
 0x5a4   :  { %v10287_v4 = vpop.eup %10286  ;;  %10306 = vtanh.f32 %v3565_v32  ;;  %v3650_v3 = vmul.f32 %v10285_v12, %v12198_v38 }
 0x5a5   :  { %v10289_v62 = vpop.eup %10288  ;;  %10308 = vpow2.f32 %v8073_v14  ;;  %v3654_v49 = vmul.f32 %v10287_v4, %v12379_v54 }
 0x5a6   :  { %v10291_v60 = vpop.eup %10290  ;;  %10310 = vpow2.f32 %v8074_v7  ;;  %v3655_v20 = vmul.f32 %v10289_v62, %v12383_v43 }
 0x5a7   :  { %v10293_v61 = vpop.eup %10292  ;;  %10312 = vpow2.f32 %v8075_v42  ;;  %v3656_v0 = vmul.f32 %v10291_v60, %v12385_v41  ;;  %v12429_v11 = vadd.f32 %v3654_v49, %v3646_v15 }
 0x5a8   :  { %v10295_v32 = vpop.eup %10294  ;;  %10314 = vpow2.f32 %v8076_v34  ;;  %v3657_v54 = vmul.f32 %v10293_v61, %v12388_v16  ;;  %v12432_v8 = vadd.f32 %v3655_v20, %v3647_v23 }
 0x5a9   :  { %v10297_v24 = vpop.eup %10296  ;;  %10316 = vpow2.f32 %v8077_v55  ;;  %v3658_v62 = vmul.f32 %v10295_v32, %v12393_v58  ;;  %v12435_v33 = vadd.f32 %v3656_v0, %v3648_v56 }
 0x5aa   :  { %v10299_v42 = vpop.eup %10298  ;;  %10318 = vpow2.f32 %v8078_v47  ;;  %v12437_v6 = vadd.f32 %v3657_v54, %v3649_v36  ;;  %v3651_v4 = vmul.f32 %v10297_v24, %v12211_v28 }
 0x5ab   :  { %v10301_v45 = vpop.eup %10300  ;;  %10320 = vpow2.f32 %v8079_v46  ;;  %v12439_v38 = vadd.f32 %v3658_v62, %v3650_v3  ;;  %v3652_v15 = vmul.f32 %v10299_v42, %v12213_v29 }
 0x5ac   :  { %v10303_v50 = vpop.eup %10302  ;;  %10322 = vpow2.f32 %v8080_v37  ;;  %v3653_v61 = vmul.f32 %v10301_v45, %v12215_v5 }
 0x5ad   :  { %v10305_v43 = vpop.eup %10304  ;;  %10324 = vtanh.f32 %v12429_v11  ;;  %v3659_v23 = vmul.f32 %v10303_v50, %v12398_v19 }
 0x5ae   :  { %v10307_v41 = vpop.eup %10306  ;;  %10326 = vtanh.f32 %v12432_v8  ;;  %v3660_v56 = vmul.f32 %v10305_v43, %v12401_v48 }
 0x5af   :  { %v10309_v16 = vpop.eup %10308  ;;  %10328 = vtanh.f32 %v12435_v33  ;;  %v3661_v28 = vmul.f32 %v10307_v41, %v12404_v30  ;;  %v12452_v20 = vadd.f32 %v3659_v23, %v3651_v4 }
 0x5b0   :  { %v10311_v14 = vpop.eup %10310  ;;  %v3622_v25 = vadd.f32 1.0, %v10309_v16  ;;  %10330 = vtanh.f32 %v12437_v6  ;;  %v12454_v24 = vadd.f32 %v3660_v56, %v3652_v15 }
 0x5b1   :  { %v10313_v58 = vpop.eup %10312  ;;  %v3623_v7 = vadd.f32 1.0, %v10311_v14  ;;  %10332 = vtanh.f32 %v12439_v38  ;;  %v12456_v5 = vadd.f32 %v3661_v28, %v3653_v61 }
 0x5b2   :  { %v10315_v12 = vpop.eup %10314  ;;  %v3624_v10 = vadd.f32 1.0, %v10313_v58  ;;  %10334 = vrcp.f32 %v3622_v25 }
 0x5b3   :  { %v10317_v34 = vpop.eup %10316  ;;  %v3625_v55 = vadd.f32 1.0, %v10315_v12  ;;  %10336 = vrcp.f32 %v3623_v7 }
 0x5b4   :  { %v10319_v60 = vpop.eup %10318  ;;  %v3626_v47 = vadd.f32 1.0, %v10317_v34  ;;  %10338 = vrcp.f32 %v3624_v10 }
 0x5b5   :  { %v10321_v46 = vpop.eup %10320  ;;  %v3627_v49 = vadd.f32 1.0, %v10319_v60  ;;  %10340 = vrcp.f32 %v3625_v55 }
 0x5b6   :  { %v10323_v32 = vpop.eup %10322  ;;  %v3628_v37 = vadd.f32 1.0, %v10321_v46  ;;  %10342 = vrcp.f32 %v3626_v47 }
 0x5b7   :  { %v10325_v29 = vpop.eup %10324  ;;  %v3629_v36 = vadd.f32 1.0, %v10323_v32  ;;  %10344 = vrcp.f32 %v3627_v49 }
 0x5b8   :  { %v10327_v19 = vpop.eup %10326  ;;  %10346 = vrcp.f32 %v3628_v37 }
 0x5b9   :  { %v10329_v0 = vpop.eup %10328  ;;  %10348 = vrcp.f32 %v3629_v36 }
 0x5ba   :  { %v10331_v3 = vpop.eup %10330  ;;  %10350 = vtanh.f32 %v12452_v20 }
 0x5bb   :  { %v10333_v48 = vpop.eup %10332  ;;  %10352 = vtanh.f32 %v12454_v24 }
 0x5bc   :  { %v10335_v30 = vpop.eup %10334  ;;  %10354 = vtanh.f32 %v12456_v5 }
 0x5bd   :  { %v10337_v42 = vpop.eup %10336  ;;  %v3678_v54 = vmul.f32 %v10335_v30, %v10325_v29  ;;  %v13986_v30 = vld [vmem:[#allocation30_spill] sm:$0xff] }
 0x5be   :  { %v10339_v45 = vpop.eup %10338  ;;  %v3679_v62 = vmul.f32 %v10337_v42, %v10327_v19  ;;  %v13987_v42 = vld [vmem:[#allocation31_spill] sm:$0xff] }
 0x5bf   :  { %v10341_v50 = vpop.eup %10340  ;;  %v3680_v43 = vmul.f32 %v10339_v45, %v10329_v0  ;;  %v13983_v0 = vld [vmem:[#allocation27_spill] sm:$0xff]  ;;  %v13989_v45 = vld [vmem:[#allocation33_spill] sm:$0xff] }
 0x5c0   :  { %v10343_v41 = vpop.eup %10342  ;;  %v3681_v16 = vmul.f32 %v10341_v50, %v10331_v3  ;;  %v3836_v14 = vcombine.low %v3678_v54, %v3679_v62  ;;  %v13984_v3 = vld [vmem:[#allocation28_spill] sm:$0xff]  ;;  %v13990_v62 = vld [vmem:[#allocation34_spill] sm:$0xff]  ;;  %v13991_v50 = vld [vmem:[#allocation35_spill] sm:$0xff] }
 0x5c1   :  { %v10345_v25 = vpop.eup %10344  ;;  %v3682_v10 = vmul.f32 %v10343_v41, %v10333_v48  ;;  %v13985_v48 = vld [vmem:[#allocation29_spill] sm:$0xff]  ;;  %v13988_v54 = vld [vmem:[#allocation32_spill] sm:$0xff] }
 0x5c2   :  { %v10347_v58 = vpop.eup %10346  ;;  %v3837_v7 = vcombine.low %v3680_v43, %v3681_v16  ;;  %v3846_v34 = vrot.slane %v3836_v14, %v11612_v59  ;;  %v13992_v43 = vld [vmem:[#allocation36_spill] sm:$0xff]  ;;  %v13993_v41 = vld [vmem:[#allocation37_spill] sm:$0xff]  ;;  %v13994_v16 = vld [vmem:[#allocation38_spill] sm:$0xff] }
 0x5c3   :  { %v10349_v12 = vpop.eup %10348  ;;  %v13995_v14 = vld [vmem:[#allocation39_spill] sm:$0xff] }
 0x5c4   :  { %v10351_v4 = vpop.eup %10350  ;;  %v3853_v55 = vrot.slane %v3837_v7, %v11612_v59  ;;  %v13998_v7 = vld [vmem:[#allocation42_spill] sm:$0xff] }
 0x5c5   :  { %v10353_v15 = vpop.eup %10352  ;;  %v3683_v60 = vmul.f32 %v10351_v4, %v10345_v25  ;;  %v13996_v25 = vld [vmem:[#allocation40_spill] sm:$0xff]  ;;  %v14001_v4 = vld [vmem:[#allocation45_spill] sm:$0xff] }
 0x5c6   :  { %v10355_v47 = vpop.eup %10354  ;;  %v3684_v23 = vmul.f32 %v10353_v15, %v10347_v58  ;;  %v3868_v61 = vcombine.low %v3846_v34, %v3853_v55  ;;  %v13997_v58 = vld [vmem:[#allocation41_spill] sm:$0xff]  ;;  %v14002_v34 = vld [vmem:[#allocation46_spill] sm:$0xff]  ;;  %v14003_v55 = vld [vmem:[#allocation47_spill] sm:$0xff] }
 0x5c7   :  { %v3685_v46 = vmul.f32 %v10355_v47, %v10349_v12  ;;  %v3838_v49 = vcombine.low %v3682_v10, %v3683_v60  ;;  %v13999_v12 = vld [vmem:[#allocation43_spill] sm:$0xff]  ;;  %v14000_v10 = vld [vmem:[#allocation44_spill] sm:$0xff]  ;;  %v14005_v60 = vld [vmem:[#allocation49_spill] sm:$0xff] }
 0x5c8   :  { %v3876_v29 = vrot.slane %v3868_v61, %v11612_v59  ;;  %v14004_v15 = vld [vmem:[#allocation48_spill] sm:$0xff]  ;;  %v14006_v47 = vld [vmem:[#allocation50_spill] sm:$0xff] }
 0x5c9   :  { %v3839_v56 = vcombine.low %v3684_v23, %v3685_v46  ;;  %v3860_v32 = vrot.slane %v3838_v49, %v11612_v59  ;;  %v14007_v23 = vld [vmem:[#allocation51_spill] sm:$0xff]  ;;  %v14008_v61 = vld [vmem:[#allocation52_spill] sm:$0xff]  ;;  %v14009_v46 = vld [vmem:[#allocation53_spill] sm:$0xff] }
 0x5ca   :  { %v14010_v49 = vld [vmem:[#allocation54_spill] sm:$0xff] }
 0x5cb   :  { %v3867_v37 = vrot.slane %v3839_v56, %v11612_v59  ;;  %v14011_v56 = vld [vmem:[#allocation55_spill] sm:$0xff] }
 0x5cd   :  { %v3869_v28 = vcombine.low %v3860_v32, %v3867_v37  ;;  %v14012_v32 = vld [vmem:[#allocation56_spill] sm:$0xff]  ;;  %v14013_v37 = vld [vmem:[#allocation57_spill] sm:$0xff] }
 0x5cf   :  { %v3883_v36 = vrot.slane %v3869_v28, %v11612_v59  ;;  %v14014_v28 = vld [vmem:[#allocation58_spill] sm:$0xff] }
 0x5d1   :  { %v3884_v19 = vcombine.low %v3876_v29, %v3883_v36  ;;  %v14015_v29 = vld [vmem:[#allocation59_spill] sm:$0xff]  ;;  %v14016_v36 = vld [vmem:[#allocation60_spill] sm:$0xff] }
 0x5d3   :  { %3951 = vmatmul.mubr.f32.vlgmr.msra.gmra.mrb[14].mxu0 %v3884_v19  ;;  %4022 = vmatmul.mubr.f32.vlgmr.msra.gmra.mrb[14].mxu1 %v3884_v19 }
 0x5d4   :  { %8983 = vmatpush1.bf16.msra.mxu0 %v11319_v9  ;;  %9015 = vmatpush1.bf16.msra.mxu1 %v11322_v13 }
 0x5d5   :  { %8985 = vmatprep.subr.bf16.mxu0 %v11326_v17  ;;  %9017 = vmatprep.subr.bf16.mxu1 %v11328_v18 }
 0x5d6   :  { %4202 = vmatprep.mubr.f32.mxu0 %v13711_v21  ;;  %4273 = vmatprep.mubr.f32.mxu1 %v13711_v21 }
 0x5d8   :  { %8987 = vmatpush1.bf16.msra.mxu0 %v11331_v22  ;;  %9019 = vmatpush1.bf16.msra.mxu1 %v11335_v26 }
 0x5d9   :  { %8989 = vmatprep.subr.bf16.mxu0 %v11337_v27  ;;  %9021 = vmatprep.subr.bf16.mxu1 %v11339_v31 }
 0x5dc   :  { %8991 = vmatpush1.bf16.msra.mxu0 %v11342_v35  ;;  %9023 = vmatpush1.bf16.msra.mxu1 %v11346_v39 }
 0x5dd   :  { %8993 = vmatprep.subr.bf16.mxu0 %v11348_v40  ;;  %9025 = vmatprep.subr.bf16.mxu1 %v11351_v44 }
 0x5e0   :  { %8995 = vmatpush1.bf16.msra.mxu0 %v11354_v51  ;;  %9027 = vmatpush1.bf16.msra.mxu1 %v11358_v52 }
 0x5e1   :  { %8997 = vmatprep.subr.bf16.mxu0 %v11360_v53  ;;  %9029 = vmatprep.subr.bf16.mxu1 %v11363_v57 }
 0x5e4   :  { %8999 = vmatpush1.bf16.msra.mxu0 %v11366_v63  ;;  %9031 = vmatpush1.bf16.msra.mxu1 %v11370_v1 }
 0x5e5   :  { %9001 = vmatprep.subr.bf16.mxu0 %v11372_v2  ;;  %9033 = vmatprep.subr.bf16.mxu1 %v13983_v0 }
 0x5e8   :  { %9003 = vmatpush1.bf16.msra.mxu0 %v13984_v3  ;;  %9035 = vmatpush1.bf16.msra.mxu1 %v13985_v48 }
 0x5e9   :  { %9005 = vmatprep.subr.bf16.mxu0 %v13986_v30  ;;  %9037 = vmatprep.subr.bf16.mxu1 %v13987_v42 }
 0x5ec   :  { %9007 = vmatpush1.bf16.msra.mxu0 %v13988_v54  ;;  %9039 = vmatpush1.bf16.msra.mxu1 %v13989_v45 }
 0x5ed   :  { %9009 = vmatprep.subr.bf16.mxu0 %v13990_v62  ;;  %9041 = vmatprep.subr.bf16.mxu1 %v13991_v50 }
 0x5f0   :  { %9011 = vmatpush1.bf16.msra.mxu0 %v13992_v43  ;;  %9043 = vmatpush1.bf16.msra.mxu1 %v13993_v41 }
 0x5f1   :  { %9045 = vmatprep.subr.bf16.mxu0 %v13994_v16  ;;  %9077 = vmatprep.subr.bf16.mxu1 %v13995_v14 }
 0x5f3   :  { %4203 = vmatmul.mubr.f32.vlgmr.msra.gmra.mrb[16].mxu0 %v3884_v19  ;;  %4274 = vmatmul.mubr.f32.vlgmr.msra.gmra.mrb[16].mxu1 %v3884_v19  ;;  %v14017_v19 = vld [vmem:[#allocation61_spill] sm:$0xff] }
 0x5f4   :  { %9047 = vmatpush1.bf16.msra.mxu0 %v13996_v25  ;;  %9079 = vmatpush1.bf16.msra.mxu1 %v13997_v58 }
 0x5f5   :  { %9049 = vmatprep.subr.bf16.mxu0 %v13998_v7  ;;  %9081 = vmatprep.subr.bf16.mxu1 %v13999_v12  ;;  %v4127_v7 = vld [vmem:[#allocation4 + $0x44] ss:$8 sm:$0xf] }
 0x5f6   :  { %4680 = vmatprep.mubr.f32.mxu0 %v13711_v21  ;;  %4751 = vmatprep.mubr.f32.mxu1 %v13711_v21 }
 0x5f8   :  { %9051 = vmatpush1.bf16.msra.mxu0 %v14000_v10  ;;  %9083 = vmatpush1.bf16.msra.mxu1 %v14001_v4 }
 0x5f9   :  { %9053 = vmatprep.subr.bf16.mxu0 %v14002_v34  ;;  %9085 = vmatprep.subr.bf16.mxu1 %v14003_v55 }
 0x5fc   :  { %9055 = vmatpush1.bf16.msra.mxu0 %v14004_v15  ;;  %9087 = vmatpush1.bf16.msra.mxu1 %v14005_v60  ;;  %v14029_v15 = vld [vmem:[#allocation103_spill] sm:$0xff] }
 0x5fd   :  { %9057 = vmatprep.subr.bf16.mxu0 %v14006_v47  ;;  %9089 = vmatprep.subr.bf16.mxu1 %v14007_v23  ;;  %v14018_v23 = vld [vmem:[#allocation62_spill] sm:$0xff] }
 0x5fe   :  { %v14028_v47 = vld [vmem:[#allocation102_spill] sm:$0xff] }
 0x600   :  { %9059 = vmatpush1.bf16.msra.mxu0 %v14008_v61  ;;  %9091 = vmatpush1.bf16.msra.mxu1 %v14009_v46  ;;  %v14019_v61 = vld [vmem:[#allocation63_spill] sm:$0xff]  ;;  %v14020_v46 = vld [vmem:[#allocation64_spill] sm:$0xff] }
 0x601   :  { %9061 = vmatprep.subr.bf16.mxu0 %v14010_v49  ;;  %9093 = vmatprep.subr.bf16.mxu1 %v14011_v56  ;;  %v14021_v49 = vld [vmem:[#allocation65_spill] sm:$0xff]  ;;  %v14022_v56 = vld [vmem:[#allocation66_spill] sm:$0xff] }
 0x604   :  { %9063 = vmatpush1.bf16.msra.mxu0 %v14012_v32  ;;  %9095 = vmatpush1.bf16.msra.mxu1 %v14013_v37  ;;  %v14023_v32 = vld [vmem:[#allocation67_spill] sm:$0xff]  ;;  %v14024_v37 = vld [vmem:[#allocation68_spill] sm:$0xff] }
 0x605   :  { %9065 = vmatprep.subr.bf16.mxu0 %v14014_v28  ;;  %9097 = vmatprep.subr.bf16.mxu1 %v14015_v29  ;;  %v14025_v28 = vld [vmem:[#allocation69_spill] sm:$0xff]  ;;  %v14026_v29 = vld [vmem:[#allocation70_spill] sm:$0xff] }
 0x608   :  { %9067 = vmatpush1.bf16.msra.mxu0 %v14016_v36  ;;  %9099 = vmatpush1.bf16.msra.mxu1 %v14017_v19  ;;  %v14027_v36 = vld [vmem:[#allocation71_spill] sm:$0xff] }
 0x609   :  { %9069 = vmatprep.subr.bf16.mxu0 %v14018_v23  ;;  %9101 = vmatprep.subr.bf16.mxu1 %v14019_v61 }
 0x60c   :  { %9071 = vmatpush1.bf16.msra.mxu0 %v14020_v46  ;;  %9103 = vmatpush1.bf16.msra.mxu1 %v14021_v49 }
 0x60d   :  { %9073 = vmatprep.subr.bf16.mxu0 %v14022_v56  ;;  %9105 = vmatprep.subr.bf16.mxu1 %v14023_v32  ;;  %v14030_v32 = vld [vmem:[#allocation104_spill] sm:$0xff] }
 0x610   :  { %9075 = vmatpush1.bf16.msra.mxu0 %v14024_v37  ;;  %9107 = vmatpush1.bf16.msra.mxu1 %v14025_v28  ;;  %v14031_v28 = vld [vmem:[#allocation105_spill] sm:$0xff] }
 0x611   :  { %9109 = vmatprep.subr.bf16.mxu0 %v14026_v29  ;;  %9141 = vmatprep.subr.bf16.mxu1 %v14027_v36 }
 0x6a6   :  { %v3952_v19 = vpop.f32.mrb[14].mxu0  ;;  %v4023_v23 = vpop.f32.mrb[14].mxu1 }
 0x6a7   :  { %v4028_v61 = vadd.f32 %v3952_v19, %v14028_v47  ;;  %v3954_v60 = vpop.f32.mrb[15].mxu0  ;;  %v4025_v46 = vpop.f32.mrb[15].mxu1  ;;  %v4030_v4 = vadd.f32 %v4023_v23, %v14031_v28 }
 0x6a8   :  { %v4029_v49 = vadd.f32 %v3954_v60, %v14029_v15  ;;  %v4031_v37 = vadd.f32 %v4025_v46, %v14030_v32  ;;  %v4125_v32 = vld [vmem:[#allocation4 + $0x24] ss:$8 sm:$0xf] }
 0x6a9   :  { %v8081_v55 = vmul.f32 -1.442695, %v4028_v61 }
 0x6aa   :  { %v8082_v56 = vmul.f32 -1.442695, %v4029_v49  ;;  %v8083_v34 = vmul.f32 -1.442695, %v4031_v37 }
 0x6ab   :  { %10356 = vpow2.f32 %v8081_v55 }
 0x6ac   :  { %10358 = vpow2.f32 %v8082_v56  ;;  %v14032_v56 = vld [vmem:[#allocation106_spill] sm:$0xff] }
 0x6ad   :  { %10360 = vpow2.f32 %v8083_v34 }
 0x6ae   :  { %10362 = vtanh.f32 %v4030_v4 }
 0x6b5   :  { %v10357_v29 = vpop.eup %10356 }
 0x6b6   :  { %v10359_v10 = vpop.eup %10358  ;;  %v4035_v36 = vadd.f32 1.0, %v10357_v29 }
 0x6b7   :  { %v4041_v12 = vadd.f32 1.0, %v10359_v10  ;;  %v10361_v19 = vpop.eup %10360 }
 0x6b8   :  { %10364 = vrcp.f32 %v4035_v36  ;;  %v10363_v47 = vpop.eup %10362  ;;  %v4048_v55 = vadd.f32 1.0, %v10361_v19 }
 0x6b9   :  { %10366 = vrcp.f32 %v4041_v12 }
 0x6ba   :  { %10368 = vrcp.f32 %v4048_v55 }
 0x6c2   :  { %v10365_v60 = vpop.eup %10364 }
 0x6c3   :  { %v10367_v61 = vpop.eup %10366  ;;  %v4052_v49 = vmul.f32 %v10365_v60, %v10363_v47 }
 0x6c4   :  { %v4051_v15 = vmul.f32 %v10367_v61, %v14032_v56  ;;  %v4123_v56 = vld [vmem:[#allocation4 + $0x4] ss:$8 sm:$0xf] }
 0x6c6   :  { %v12540_v46 = vadd.f32 %v4052_v49, %v4051_v15  ;;  %v4204_v37 = vpop.f32.mrb[16].mxu0  ;;  %v4275_v23 = vpop.f32.mrb[16].mxu1 }
 0x6c7   :  { %v4206_v28 = vpop.f32.mrb[17].mxu0  ;;  %v4277_v29 = vpop.f32.mrb[17].mxu1 }
 0x6c8   :  { %14033 = vst [vmem:[#allocation106_spill] sm:$0xff] %v12540_v46  ;;  %v4284_v34 = vcombine.low %v4204_v37, %v4206_v28  ;;  %v4285_v4 = vcombine.high %v4204_v37, %v4206_v28  ;;  %v4286_v10 = vcombine.low %v4275_v23, %v4277_v29  ;;  %v4287_v36 = vcombine.high %v4275_v23, %v4277_v29  ;;  %v4131_v28 = vld [vmem:[#allocation4 + $0x84] ss:$8 sm:$0xf] }
 0x6c9   :  { %10370 = vtanh.f32 %v12540_v46  ;;  %v4135_v46 = vld [vmem:[#allocation4 + $0xc4] ss:$8 sm:$0xf] }
 0x6ca   :  { %v4294_v12 = vrot.slane %v4284_v34, %v11612_v59  ;;  %v4301_v47 = vrot.slane %v4285_v4, %v11612_v59  ;;  %v4308_v19 = vrot.slane %v4286_v10, %v11612_v59  ;;  %v4315_v15 = vrot.slane %v4287_v36, %v11612_v59  ;;  %v4129_v4 = vld [vmem:[#allocation4 + $0x64] ss:$8 sm:$0xf] }
 0x6cb   :  { %v4133_v10 = vld [vmem:[#allocation4 + $0xa4] ss:$8 sm:$0xf] }
 0x6cc   :  { %v4316_v60 = vcombine.low %v4294_v12, %v4308_v19  ;;  %v4317_v61 = vcombine.high %v4294_v12, %v4308_v19  ;;  %v4318_v49 = vcombine.low %v4301_v47, %v4315_v15  ;;  %v4319_v55 = vcombine.high %v4301_v47, %v4315_v15  ;;  %v10369_v47 = vpop.eup %10368  ;;  %v4137_v15 = vld [vmem:[#allocation4 + $0xe4] ss:$8 sm:$0xf] }
 0x6ce   :  { %v4326_v37 = vrot.slane %v4316_v60, %v11612_v59  ;;  %v4333_v23 = vrot.slane %v4318_v49, %v11612_v59  ;;  %v4340_v29 = vrot.slane %v4317_v61, %v11612_v59  ;;  %v4347_v34 = vrot.slane %v4319_v55, %v11612_v59 }
 0x6d0   :  { %v4348_v36 = vcombine.high %v4326_v37, %v4326_v37  ;;  %v4349_v58 = vcombine.high %v4333_v23, %v4333_v23  ;;  %v4350_v12 = vcombine.high %v4340_v29, %v4340_v29  ;;  %v4351_v19 = vcombine.high %v4347_v34, %v4347_v34 }
 0x6d1   :  { %v12551_v25 = vadd.f32 %v4326_v37, %v4123_v56  ;;  %v12553_v14 = vadd.f32 %v4340_v29, %v4125_v32  ;;  %v12555_v60 = vadd.f32 %v4333_v23, %v4131_v28  ;;  %v12561_v55 = vadd.f32 %v4347_v34, %v4133_v10  ;;  %v14034_v29 = vld [vmem:[#allocation72_spill] sm:$0xff]  ;;  %v14037_v10 = vld [vmem:[#allocation75_spill] sm:$0xff] }
 0x6d2   :  { %v12557_v49 = vadd.f32 %v4348_v36, %v4127_v7  ;;  %v12559_v61 = vadd.f32 %v4350_v12, %v4129_v4  ;;  %v12563_v41 = vadd.f32 %v4349_v58, %v4135_v46  ;;  %v12567_v62 = vadd.f32 %v4351_v19, %v4137_v15  ;;  %v14036_v4 = vld [vmem:[#allocation74_spill] sm:$0xff]  ;;  %v14038_v15 = vld [vmem:[#allocation76_spill] sm:$0xff] }
 0x6d3   :  { %v10371_v16 = vpop.eup %10370  ;;  %v8088_v43 = vmul.f32 -1.442695, %v12551_v25  ;;  %v8089_v50 = vmul.f32 -1.442695, %v12553_v14  ;;  %v8092_v7 = vmul.f32 -1.442695, %v12555_v60 }
 0x6d4   :  { %v8090_v32 = vmul.f32 -1.442695, %v12557_v49  ;;  %v8091_v56 = vmul.f32 -1.442695, %v12559_v61  ;;  %v12571_v28 = vmul.f32 %v10371_v16, %v10369_v47  ;;  %v4424_v37 = vrot.slane %v12551_v25, 1 }
 0x6d5   :  { %10372 = vpow2.f32 %v8088_v43  ;;  %v8093_v58 = vmul.f32 -1.442695, %v12561_v55  ;;  %v4425_v46 = vrot.slane %v12553_v14, 1  ;;  %v8094_v23 = vmul.f32 -1.442695, %v12563_v41  ;;  %v14035_v43 = vld [vmem:[#allocation73_spill] sm:$0xff] }
 0x6d6   :  { %10374 = vpow2.f32 %v8089_v50  ;;  %4681 = vmatmul.mubr.f32.vlgmr.msra.gmra.mrb[18].mxu0 %v12571_v28  ;;  %4752 = vmatmul.mubr.f32.vlgmr.msra.gmra.mrb[18].mxu1 %v12571_v28  ;;  %v4426_v16 = vrot.slane %v12557_v49, 1  ;;  %v8095_v50 = vmul.f32 -1.442695, %v12567_v62  ;;  %v4427_v34 = vrot.slane %v12559_v61, 1 }
 0x6d7   :  { %10376 = vpow2.f32 %v8090_v32  ;;  %9111 = vmatpush1.bf16.msra.mxu0 %v14034_v29  ;;  %9143 = vmatpush1.bf16.msra.mxu1 %v14035_v43  ;;  %v4428_v36 = vrot.slane %v12555_v60, 1  ;;  %v8096_v12 = vmul.f32 -1.442695, %v4424_v37  ;;  %v8097_v19 = vmul.f32 -1.442695, %v4425_v46  ;;  %v14039_v32 = vld [vmem:[#allocation77_spill] sm:$0xff] }
 0x6d8   :  { %10378 = vpow2.f32 %v8091_v56  ;;  %9113 = vmatprep.subr.bf16.mxu0 %v14036_v4  ;;  %9145 = vmatprep.subr.bf16.mxu1 %v14037_v10  ;;  %v8098_v47 = vmul.f32 -1.442695, %v4426_v16  ;;  %v8099_v56 = vmul.f32 -1.442695, %v4427_v34  ;;  %v14040_v4 = vld [vmem:[#allocation78_spill] sm:$0xff]  ;;  %v14042_v43 = vld [vmem:[#allocation80_spill] sm:$0xff] }
 0x6d9   :  { %10380 = vpow2.f32 %v8092_v7  ;;  %4880 = vmatprep.mubr.f32.mxu0 %v13711_v21  ;;  %4951 = vmatprep.mubr.f32.mxu1 %v13711_v21  ;;  %v14041_v7 = vld [vmem:[#allocation79_spill] sm:$0xff]  ;;  %v8100_v37 = vmul.f32 -1.442695, %v4428_v36  ;;  %v14044_v16 = vld [vmem:[#allocation82_spill] sm:$0xff]  ;;  %v4493_v42 = vrot.slane %v12561_v55, 2  ;;  %v4519_v3 = vrot.slane %v12567_v62, 3 }
 0x6da   :  { %10382 = vpow2.f32 %v8093_v58  ;;  %v14043_v58 = vld [vmem:[#allocation81_spill] sm:$0xff] }
 0x6db   :  { %10384 = vpow2.f32 %v8094_v23  ;;  %9115 = vmatpush1.bf16.msra.mxu0 %v14038_v15  ;;  %9147 = vmatpush1.bf16.msra.mxu1 %v14039_v32 }
 0x6dc   :  { %10386 = vpow2.f32 %v8095_v50  ;;  %9117 = vmatprep.subr.bf16.mxu0 %v14040_v4  ;;  %9149 = vmatprep.subr.bf16.mxu1 %v14041_v7  ;;  %v14045_v50 = vld [vmem:[#allocation83_spill] sm:$0xff]  ;;  %v4429_v7 = vrot.slane %v12561_v55, 1 }
 0x6dd   :  { %10388 = vpow2.f32 %v8096_v12 }
 0x6de   :  { %10390 = vpow2.f32 %v8097_v19  ;;  %v4430_v19 = vrot.slane %v12563_v41, 1 }
 0x6df   :  { %v10373_v10 = vpop.eup %10372  ;;  %10392 = vpow2.f32 %v8098_v47  ;;  %9119 = vmatpush1.bf16.msra.mxu0 %v14042_v43  ;;  %9151 = vmatpush1.bf16.msra.mxu1 %v14043_v58  ;;  %v14046_v58 = vld [vmem:[#allocation84_spill] sm:$0xff] }
 0x6e0   :  { %v10375_v46 = vpop.eup %10374  ;;  %v4392_v23 = vadd.f32 1.0, %v10373_v10  ;;  %10394 = vpow2.f32 %v8099_v56  ;;  %9121 = vmatprep.subr.bf16.mxu0 %v14044_v16  ;;  %9153 = vmatprep.subr.bf16.mxu1 %v14045_v50  ;;  %v14047_v10 = vld [vmem:[#allocation85_spill] sm:$0xff]  ;;  %v14048_v50 = vld [vmem:[#allocation86_spill] sm:$0xff] }
 0x6e1   :  { %v10377_v34 = vpop.eup %10376  ;;  %v4393_v4 = vadd.f32 1.0, %v10375_v46  ;;  %10396 = vpow2.f32 %v8100_v37  ;;  %v4431_v46 = vrot.slane %v12567_v62, 1  ;;  %v4057_v37 = vcombine.high %v12571_v28, %v12571_v28 }
 0x6e2   :  { %v10379_v36 = vpop.eup %10378  ;;  %v4394_v12 = vadd.f32 1.0, %v10377_v34  ;;  %10398 = vrcp.f32 %v4392_v23  ;;  %v14049_v23 = vld [vmem:[#allocation87_spill] sm:$0xff] }
 0x6e3   :  { %v10381_v47 = vpop.eup %10380  ;;  %v4395_v43 = vadd.f32 1.0, %v10379_v36  ;;  %10400 = vrcp.f32 %v4393_v4  ;;  %9123 = vmatpush1.bf16.msra.mxu0 %v14046_v58  ;;  %9155 = vmatpush1.bf16.msra.mxu1 %v14047_v10  ;;  %v8101_v4 = vmul.f32 -1.442695, %v4429_v7  ;;  %v4064_v36 = vrot.slane %v12571_v28, %v11612_v59 }
 0x6e4   :  { %v10383_v56 = vpop.eup %10382  ;;  %v4396_v16 = vadd.f32 1.0, %v10381_v47  ;;  %10402 = vrcp.f32 %v4394_v12  ;;  %9125 = vmatprep.subr.bf16.mxu0 %v14048_v50  ;;  %9157 = vmatprep.subr.bf16.mxu1 %v14049_v23  ;;  %v8102_v12 = vmul.f32 -1.442695, %v4430_v19  ;;  %v4071_v47 = vrot.slane %v4057_v37, %v11612_v59  ;;  %v14050_v23 = vld [vmem:[#allocation88_spill] sm:$0xff]  ;;  %v14052_v19 = vld [vmem:[#allocation90_spill] sm:$0xff]  ;;  %v14053_v37 = vld [vmem:[#allocation91_spill] sm:$0xff] }
 0x6e5   :  { %v10385_v34 = vpop.eup %10384  ;;  %v4397_v32 = vadd.f32 1.0, %v10383_v56  ;;  %10404 = vrcp.f32 %v4395_v43  ;;  %v4072_v45 = vcombine.high %v4064_v36, %v4064_v36  ;;  %v4080_v50 = vrot.slane %v4064_v36, %v11612_v59  ;;  %8084 = vst.sshfl [vmem:[#allocation15 + $0x3] sm:$0x1 pattern:$0x73625140] %v4064_v36  ;;  %v14051_v43 = vld [vmem:[#allocation89_spill] sm:$0xff] }
 0x6e6   :  { %v10387_v10 = vpop.eup %10386  ;;  %v4398_v58 = vadd.f32 1.0, %v10385_v34  ;;  %10406 = vrcp.f32 %v4396_v16  ;;  %v8103_v28 = vmul.f32 -1.442695, %v4431_v46  ;;  %v4073_v56 = vcombine.high %v4071_v47, %v4071_v47 }
 0x6e7   :  { %v10389_v15 = vpop.eup %10388  ;;  %v4399_v29 = vadd.f32 1.0, %v10387_v10  ;;  %10408 = vrcp.f32 %v4397_v32  ;;  %9127 = vmatpush1.bf16.msra.mxu0 %v14050_v23  ;;  %9159 = vmatpush1.bf16.msra.mxu1 %v14051_v43  ;;  %v4087_v16 = vrot.slane %v4071_v47, %v11612_v59  ;;  %8086 = vst.sshfl [vmem:[#allocation15 + $0x23] sm:$0x1 pattern:$0x73625140] %v4071_v47  ;;  %v4094_v34 = vrot.slane %v4072_v45, %v11612_v59 }
 0x6e8   :  { %v10391_v7 = vpop.eup %10390  ;;  %10410 = vrcp.f32 %v4398_v58  ;;  %9129 = vmatprep.subr.bf16.mxu0 %v14052_v19  ;;  %9161 = vmatprep.subr.bf16.mxu1 %v14053_v37  ;;  %v4464_v10 = vadd.f32 1.0, %v10389_v15  ;;  %v4102_v36 = vcombine.high %v4080_v50, %v4080_v50  ;;  %8085 = vst.sshfl [vmem:[#allocation15 + $0xb] sm:$0x1 pattern:$0x73625140] %v4072_v45  ;;  %v4101_v58 = vrot.slane %v4073_v56, %v11612_v59  ;;  %v14054_v37 = vld [vmem:[#allocation92_spill] sm:$0xff] }
 0x6e9   :  { %v10393_v32 = vpop.eup %10392  ;;  %10412 = vrcp.f32 %v4399_v29  ;;  %v4465_v43 = vadd.f32 1.0, %v10391_v7  ;;  %v4103_v46 = vcombine.high %v4087_v16, %v4087_v16  ;;  %8087 = vst.sshfl [vmem:[#allocation15 + $0x2b] sm:$0x1 pattern:$0x73625140] %v4073_v56  ;;  %v4104_v19 = vcombine.high %v4094_v34, %v4094_v34  ;;  %v14055_v29 = vld [vmem:[#allocation93_spill] sm:$0xff] }
 0x6ea   :  { %v10395_v23 = vpop.eup %10394  ;;  %10414 = vpow2.f32 %v8101_v4  ;;  %v4466_v47 = vadd.f32 1.0, %v10393_v32  ;;  %4116 = vst [vmem:[#allocation15 + $0x13] sm:$0x1] %v4102_v36  ;;  %v4105_v50 = vcombine.high %v4101_v58, %v4101_v58  ;;  %v14056_v4 = vld [vmem:[#allocation94_spill] sm:$0xff]  ;;  %v14057_v7 = vld [vmem:[#allocation95_spill] sm:$0xff]  ;;  %v4488_v32 = vrot.slane %v12551_v25, 2 }
 0x6eb   :  { %v10397_v54 = vpop.eup %10396  ;;  %10416 = vpow2.f32 %v8102_v12  ;;  %9131 = vmatpush1.bf16.msra.mxu0 %v14054_v37  ;;  %9163 = vmatpush1.bf16.msra.mxu1 %v14055_v29  ;;  %v4467_v45 = vadd.f32 1.0, %v10395_v23  ;;  %4120 = vst [vmem:[#allocation15 + $0x33] sm:$0x1] %v4103_v46  ;;  %4117 = vst [vmem:[#allocation15 + $0x1b] sm:$0x1] %v4104_v19  ;;  %v4489_v23 = vrot.slane %v12553_v14, 2 }
 0x6ec   :  { %v12620_v15 = vpop.eup %10398  ;;  %10418 = vpow2.f32 %v8103_v28  ;;  %9133 = vmatprep.subr.bf16.mxu0 %v14056_v4  ;;  %9165 = vmatprep.subr.bf16.mxu1 %v14057_v7  ;;  %v4468_v12 = vadd.f32 1.0, %v10397_v54  ;;  %4121 = vst [vmem:[#allocation15 + $0x3b] sm:$0x1] %v4105_v50  ;;  %v14058_v28 = vld [vmem:[#allocation96_spill] sm:$0xff]  ;;  %v14059_v36 = vld [vmem:[#allocation97_spill] sm:$0xff]  ;;  %v4490_v54 = vrot.slane %v12557_v49, 2 }
 0x6ed   :  { %v12624_v56 = vpop.eup %10400  ;;  %10420 = vrcp.f32 %v4464_v10  ;;  %v14060_v19 = vld [vmem:[#allocation98_spill] sm:$0xff]  ;;  %v4491_v46 = vrot.slane %v12559_v61, 2  ;;  %v4492_v50 = vrot.slane %v12555_v60, 2  ;;  %v4512_v29 = vrot.slane %v12551_v25, 3 }
 0x6ee   :  { %v12626_v16 = vpop.eup %10402  ;;  %10422 = vrcp.f32 %v4465_v43  ;;  %v14061_v43 = vld [vmem:[#allocation99_spill] sm:$0xff]  ;;  %v14065_v7 = vld [vmem:[#allocation26_spill] sm:$0xff]  ;;  %v4515_v25 = vrot.slane %v12559_v61, 3 }
 0x6ef   :  { %v12629_v34 = vpop.eup %10404  ;;  %10424 = vrcp.f32 %v4466_v47  ;;  %9135 = vmatpush1.bf16.msra.mxu0 %v14058_v28  ;;  %9167 = vmatpush1.bf16.msra.mxu1 %v14059_v36  ;;  %v14063_v28 = vld [vmem:[#allocation101_spill] sm:$0xff] }
 0x6f0   :  { %v12634_v58 = vpop.eup %10406  ;;  %10426 = vrcp.f32 %v4467_v45  ;;  %9137 = vmatprep.subr.bf16.mxu0 %v14060_v19  ;;  %9169 = vmatprep.subr.bf16.mxu1 %v14061_v43  ;;  %v14062_v45 = vld [vmem:[#allocation100_spill] sm:$0xff]  ;;  %v14064_v43 = vld [vmem:[#allocation25_spill] sm:$0xff]  ;;  %v8107_v61 = vmul.f32 -1.442695, %v4515_v25 }
 0x6f1   :  { %v12639_v10 = vpop.eup %10408  ;;  %10428 = vrcp.f32 %v4468_v12 }
 0x6f2   :  { %v12642_v47 = vpop.eup %10410  ;;  %10430 = vtanh.f32 %v4488_v32 }
 0x6f3   :  { %v12645_v36 = vpop.eup %10412  ;;  %10432 = vtanh.f32 %v4489_v23  ;;  %9139 = vmatpush1.bf16.msra.mxu0 %v14062_v45  ;;  %9171 = vmatpush1.bf16.msra.mxu1 %v14063_v28  ;;  %v4513_v23 = vrot.slane %v12553_v14, 3  ;;  %v4517_v14 = vrot.slane %v12561_v55, 3 }
 0x6f4   :  { %v10415_v19 = vpop.eup %10414  ;;  %10434 = vtanh.f32 %v4490_v54  ;;  %9173 = vmatprep.subr.bf16.mxu0 %v14064_v43  ;;  %9205 = vmatprep.subr.bf16.mxu1 %v14065_v7  ;;  %v4494_v54 = vrot.slane %v12563_v41, 2  ;;  %v4514_v43 = vrot.slane %v12557_v49, 3  ;;  %v4518_v49 = vrot.slane %v12563_v41, 3 }
 0x6f5   :  { %v10417_v12 = vpop.eup %10416  ;;  %v4469_v4 = vadd.f32 1.0, %v10415_v19  ;;  %10436 = vtanh.f32 %v4491_v46  ;;  %v4495_v19 = vrot.slane %v12567_v62, 2  ;;  %v8111_v62 = vmul.f32 -1.442695, %v4519_v3 }
 0x6f6   :  { %v10419_v37 = vpop.eup %10418  ;;  %v4470_v32 = vadd.f32 1.0, %v10417_v12  ;;  %10438 = vtanh.f32 %v4492_v50  ;;  %v4516_v12 = vrot.slane %v12555_v60, 3  ;;  %v8104_v50 = vmul.f32 -1.442695, %v4512_v29 }
 0x6f7   :  { %v10421_v45 = vpop.eup %10420  ;;  %v4471_v28 = vadd.f32 1.0, %v10419_v37  ;;  %10440 = vrcp.f32 %v4469_v4  ;;  %v8105_v37 = vmul.f32 -1.442695, %v4513_v23  ;;  %v8106_v48 = vmul.f32 -1.442695, %v4514_v43 }
 0x6f8   :  { %v10423_v7 = vpop.eup %10422  ;;  %10442 = vrcp.f32 %v4470_v32  ;;  %v4576_v60 = vmul.f32 %v10421_v45, %v12429_v11 }
 0x6f9   :  { %v10425_v46 = vpop.eup %10424  ;;  %10444 = vrcp.f32 %v4471_v28  ;;  %v8108_v28 = vmul.f32 -1.442695, %v4516_v12  ;;  %v4577_v55 = vmul.f32 %v10423_v7, %v12432_v8 }
 0x6fa   :  { %v10427_v30 = vpop.eup %10426  ;;  %10446 = vtanh.f32 %v4493_v42  ;;  %v8109_v42 = vmul.f32 -1.442695, %v4517_v14  ;;  %v4578_v43 = vmul.f32 %v10425_v46, %v12435_v33 }
 0x6fb   :  { %v10429_v4 = vpop.eup %10428  ;;  %10448 = vtanh.f32 %v4494_v54  ;;  %v8110_v54 = vmul.f32 -1.442695, %v4518_v49  ;;  %v4579_v12 = vmul.f32 %v10427_v30, %v12437_v6 }
 0x6fc   :  { %v10431_v32 = vpop.eup %10430  ;;  %10450 = vtanh.f32 %v4495_v19  ;;  %v4580_v8 = vmul.f32 %v10429_v4, %v12439_v38 }
 0x6fd   :  { %v10433_v0 = vpop.eup %10432  ;;  %10452 = vpow2.f32 %v8104_v50  ;;  %v4584_v41 = vmul.f32 %v10431_v32, %v12620_v15 }
 0x6fe   :  { %v10435_v29 = vpop.eup %10434  ;;  %10454 = vpow2.f32 %v8105_v37  ;;  %v4585_v25 = vmul.f32 %v10433_v0, %v12624_v56 }
 0x6ff   :  { %v10437_v23 = vpop.eup %10436  ;;  %10456 = vpow2.f32 %v8106_v48  ;;  %v4586_v45 = vmul.f32 %v10435_v29, %v12626_v16  ;;  %v12670_v7 = vadd.f32 %v4584_v41, %v4576_v60 }
 0x700   :  { %v10439_v19 = vpop.eup %10438  ;;  %10458 = vpow2.f32 %v8107_v61  ;;  %v4587_v15 = vmul.f32 %v10437_v23, %v12629_v34  ;;  %v12673_v33 = vadd.f32 %v4585_v25, %v4577_v55 }
 0x701   :  { %v10441_v11 = vpop.eup %10440  ;;  %10460 = vpow2.f32 %v8108_v28  ;;  %v4588_v0 = vmul.f32 %v10439_v19, %v12634_v58  ;;  %v12676_v3 = vadd.f32 %v4586_v45, %v4578_v43 }
 0x702   :  { %v10443_v48 = vpop.eup %10442  ;;  %10462 = vpow2.f32 %v8109_v42  ;;  %v12678_v30 = vadd.f32 %v4587_v15, %v4579_v12  ;;  %v4581_v32 = vmul.f32 %v10441_v11, %v12452_v20 }
 0x703   :  { %v10445_v46 = vpop.eup %10444  ;;  %10464 = vpow2.f32 %v8110_v54  ;;  %v12680_v38 = vadd.f32 %v4588_v0, %v4580_v8  ;;  %v4582_v60 = vmul.f32 %v10443_v48, %v12454_v24 }
 0x704   :  { %v10447_v6 = vpop.eup %10446  ;;  %10466 = vpow2.f32 %v8111_v62  ;;  %v4583_v23 = vmul.f32 %v10445_v46, %v12456_v5 }
 0x705   :  { %v10449_v56 = vpop.eup %10448  ;;  %10468 = vtanh.f32 %v12670_v7  ;;  %v4589_v55 = vmul.f32 %v10447_v6, %v12639_v10 }
 0x706   :  { %v10451_v16 = vpop.eup %10450  ;;  %10470 = vtanh.f32 %v12673_v33  ;;  %v4590_v43 = vmul.f32 %v10449_v56, %v12642_v47 }
 0x707   :  { %v10453_v34 = vpop.eup %10452  ;;  %10472 = vtanh.f32 %v12676_v3  ;;  %v4591_v20 = vmul.f32 %v10451_v16, %v12645_v36  ;;  %v12693_v25 = vadd.f32 %v4589_v55, %v4581_v32 }
 0x708   :  { %v10455_v50 = vpop.eup %10454  ;;  %v4552_v14 = vadd.f32 1.0, %v10453_v34  ;;  %10474 = vtanh.f32 %v12678_v30  ;;  %v12695_v11 = vadd.f32 %v4590_v43, %v4582_v60 }
 0x709   :  { %v10457_v58 = vpop.eup %10456  ;;  %v4553_v37 = vadd.f32 1.0, %v10455_v50  ;;  %10476 = vtanh.f32 %v12680_v38  ;;  %v12697_v5 = vadd.f32 %v4591_v20, %v4583_v23 }
 0x70a   :  { %v10459_v4 = vpop.eup %10458  ;;  %v4554_v49 = vadd.f32 1.0, %v10457_v58  ;;  %10478 = vrcp.f32 %v4552_v14 }
 0x70b   :  { %v10461_v61 = vpop.eup %10460  ;;  %v4555_v28 = vadd.f32 1.0, %v10459_v4  ;;  %10480 = vrcp.f32 %v4553_v37 }
 0x70c   :  { %v10463_v29 = vpop.eup %10462  ;;  %v4556_v42 = vadd.f32 1.0, %v10461_v61  ;;  %10482 = vrcp.f32 %v4554_v49 }
 0x70d   :  { %v10465_v54 = vpop.eup %10464  ;;  %v4557_v41 = vadd.f32 1.0, %v10463_v29  ;;  %10484 = vrcp.f32 %v4555_v28 }
 0x70e   :  { %v10467_v19 = vpop.eup %10466  ;;  %v4558_v62 = vadd.f32 1.0, %v10465_v54  ;;  %10486 = vrcp.f32 %v4556_v42 }
 0x70f   :  { %v10469_v24 = vpop.eup %10468  ;;  %v4559_v12 = vadd.f32 1.0, %v10467_v19  ;;  %10488 = vrcp.f32 %v4557_v41 }
 0x710   :  { %v10471_v10 = vpop.eup %10470  ;;  %10490 = vrcp.f32 %v4558_v62 }
 0x711   :  { %v10473_v45 = vpop.eup %10472  ;;  %10492 = vrcp.f32 %v4559_v12 }
 0x712   :  { %v10475_v8 = vpop.eup %10474  ;;  %10494 = vtanh.f32 %v12693_v25 }
 0x713   :  { %v10477_v47 = vpop.eup %10476  ;;  %10496 = vtanh.f32 %v12695_v11 }
 0x714   :  { %v10479_v36 = vpop.eup %10478  ;;  %10498 = vtanh.f32 %v12697_v5 }
 0x715   :  { %v10481_v48 = vpop.eup %10480  ;;  %v4608_v15 = vmul.f32 %v10479_v36, %v10469_v24  ;;  %v14069_v36 = vld [vmem:[#allocation30_spill] sm:$0xff] }
 0x716   :  { %v10483_v46 = vpop.eup %10482  ;;  %v4609_v0 = vmul.f32 %v10481_v48, %v10471_v10  ;;  %v14070_v48 = vld [vmem:[#allocation31_spill] sm:$0xff] }
 0x717   :  { %v10485_v6 = vpop.eup %10484  ;;  %v4610_v56 = vmul.f32 %v10483_v46, %v10473_v45  ;;  %v14066_v45 = vld [vmem:[#allocation27_spill] sm:$0xff]  ;;  %v14072_v46 = vld [vmem:[#allocation33_spill] sm:$0xff] }
 0x718   :  { %v10487_v16 = vpop.eup %10486  ;;  %v4611_v34 = vmul.f32 %v10485_v6, %v10475_v8  ;;  %v4766_v50 = vcombine.low %v4608_v15, %v4609_v0  ;;  %v14067_v8 = vld [vmem:[#allocation28_spill] sm:$0xff]  ;;  %v14073_v0 = vld [vmem:[#allocation34_spill] sm:$0xff]  ;;  %v14074_v6 = vld [vmem:[#allocation35_spill] sm:$0xff] }
 0x719   :  { %v10489_v14 = vpop.eup %10488  ;;  %v4612_v49 = vmul.f32 %v10487_v16, %v10477_v47  ;;  %v14068_v47 = vld [vmem:[#allocation29_spill] sm:$0xff]  ;;  %v14071_v15 = vld [vmem:[#allocation32_spill] sm:$0xff] }
 0x71a   :  { %v10491_v58 = vpop.eup %10490  ;;  %v4767_v37 = vcombine.low %v4610_v56, %v4611_v34  ;;  %v4776_v61 = vrot.slane %v4766_v50, %v11612_v59  ;;  %v14075_v56 = vld [vmem:[#allocation36_spill] sm:$0xff]  ;;  %v14076_v16 = vld [vmem:[#allocation37_spill] sm:$0xff]  ;;  %v14077_v34 = vld [vmem:[#allocation38_spill] sm:$0xff] }
 0x71b   :  { %v10493_v4 = vpop.eup %10492  ;;  %v14078_v50 = vld [vmem:[#allocation39_spill] sm:$0xff] }
 0x71c   :  { %v10495_v32 = vpop.eup %10494  ;;  %v4783_v28 = vrot.slane %v4767_v37, %v11612_v59  ;;  %v14081_v37 = vld [vmem:[#allocation42_spill] sm:$0xff] }
 0x71d   :  { %v10497_v60 = vpop.eup %10496  ;;  %v4613_v29 = vmul.f32 %v10495_v32, %v10489_v14  ;;  %v14079_v14 = vld [vmem:[#allocation40_spill] sm:$0xff]  ;;  %v14084_v32 = vld [vmem:[#allocation45_spill] sm:$0xff] }
 0x71e   :  { %v10499_v42 = vpop.eup %10498  ;;  %v4614_v55 = vmul.f32 %v10497_v60, %v10491_v58  ;;  %v4798_v23 = vcombine.low %v4776_v61, %v4783_v28  ;;  %v14080_v58 = vld [vmem:[#allocation41_spill] sm:$0xff]  ;;  %v14085_v61 = vld [vmem:[#allocation46_spill] sm:$0xff]  ;;  %v14086_v28 = vld [vmem:[#allocation47_spill] sm:$0xff] }
 0x71f   :  { %v4615_v54 = vmul.f32 %v10499_v42, %v10493_v4  ;;  %v4768_v41 = vcombine.low %v4612_v49, %v4613_v29  ;;  %v14082_v4 = vld [vmem:[#allocation43_spill] sm:$0xff]  ;;  %v14083_v49 = vld [vmem:[#allocation44_spill] sm:$0xff]  ;;  %v14088_v29 = vld [vmem:[#allocation49_spill] sm:$0xff] }
 0x720   :  { %v4806_v24 = vrot.slane %v4798_v23, %v11612_v59  ;;  %v14087_v60 = vld [vmem:[#allocation48_spill] sm:$0xff]  ;;  %v14089_v42 = vld [vmem:[#allocation50_spill] sm:$0xff] }
 0x721   :  { %v4769_v43 = vcombine.low %v4614_v55, %v4615_v54  ;;  %v4790_v19 = vrot.slane %v4768_v41, %v11612_v59  ;;  %v14090_v55 = vld [vmem:[#allocation51_spill] sm:$0xff]  ;;  %v14091_v23 = vld [vmem:[#allocation52_spill] sm:$0xff]  ;;  %v14092_v54 = vld [vmem:[#allocation53_spill] sm:$0xff] }
 0x722   :  { %v14093_v41 = vld [vmem:[#allocation54_spill] sm:$0xff] }
 0x723   :  { %v4797_v62 = vrot.slane %v4769_v43, %v11612_v59  ;;  %v14094_v43 = vld [vmem:[#allocation55_spill] sm:$0xff] }
 0x725   :  { %v4799_v20 = vcombine.low %v4790_v19, %v4797_v62  ;;  %v14095_v19 = vld [vmem:[#allocation56_spill] sm:$0xff]  ;;  %v14096_v62 = vld [vmem:[#allocation57_spill] sm:$0xff] }
 0x727   :  { %v4813_v12 = vrot.slane %v4799_v20, %v11612_v59  ;;  %v14097_v20 = vld [vmem:[#allocation58_spill] sm:$0xff] }
 0x729   :  { %v4814_v10 = vcombine.low %v4806_v24, %v4813_v12  ;;  %v14098_v24 = vld [vmem:[#allocation59_spill] sm:$0xff]  ;;  %v14099_v12 = vld [vmem:[#allocation60_spill] sm:$0xff] }
 0x72b   :  { %4881 = vmatmul.mubr.f32.vlgmr.msra.gmra.mrb[18].mxu0 %v4814_v10  ;;  %4952 = vmatmul.mubr.f32.vlgmr.msra.gmra.mrb[18].mxu1 %v4814_v10 }
 0x72c   :  { %9175 = vmatpush1.bf16.msra.mxu0 %v11319_v9  ;;  %9207 = vmatpush1.bf16.msra.mxu1 %v11322_v13 }
 0x72d   :  { %9177 = vmatprep.subr.bf16.mxu0 %v11326_v17  ;;  %9209 = vmatprep.subr.bf16.mxu1 %v11328_v18 }
 0x72e   :  { %5132 = vmatprep.mubr.f32.mxu0 %v13711_v21  ;;  %5203 = vmatprep.mubr.f32.mxu1 %v13711_v21 }
 0x730   :  { %9179 = vmatpush1.bf16.msra.mxu0 %v11331_v22  ;;  %9211 = vmatpush1.bf16.msra.mxu1 %v11335_v26 }
 0x731   :  { %9181 = vmatprep.subr.bf16.mxu0 %v11337_v27  ;;  %9213 = vmatprep.subr.bf16.mxu1 %v11339_v31 }
 0x734   :  { %9183 = vmatpush1.bf16.msra.mxu0 %v11342_v35  ;;  %9215 = vmatpush1.bf16.msra.mxu1 %v11346_v39 }
 0x735   :  { %9185 = vmatprep.subr.bf16.mxu0 %v11348_v40  ;;  %9217 = vmatprep.subr.bf16.mxu1 %v11351_v44 }
 0x738   :  { %9187 = vmatpush1.bf16.msra.mxu0 %v11354_v51  ;;  %9219 = vmatpush1.bf16.msra.mxu1 %v11358_v52 }
 0x739   :  { %9189 = vmatprep.subr.bf16.mxu0 %v11360_v53  ;;  %9221 = vmatprep.subr.bf16.mxu1 %v11363_v57 }
 0x73c   :  { %9191 = vmatpush1.bf16.msra.mxu0 %v11366_v63  ;;  %9223 = vmatpush1.bf16.msra.mxu1 %v11370_v1 }
 0x73d   :  { %9193 = vmatprep.subr.bf16.mxu0 %v11372_v2  ;;  %9225 = vmatprep.subr.bf16.mxu1 %v14066_v45 }
 0x740   :  { %9195 = vmatpush1.bf16.msra.mxu0 %v14067_v8  ;;  %9227 = vmatpush1.bf16.msra.mxu1 %v14068_v47 }
 0x741   :  { %9197 = vmatprep.subr.bf16.mxu0 %v14069_v36  ;;  %9229 = vmatprep.subr.bf16.mxu1 %v14070_v48 }
 0x744   :  { %9199 = vmatpush1.bf16.msra.mxu0 %v14071_v15  ;;  %9231 = vmatpush1.bf16.msra.mxu1 %v14072_v46 }
 0x745   :  { %9201 = vmatprep.subr.bf16.mxu0 %v14073_v0  ;;  %9233 = vmatprep.subr.bf16.mxu1 %v14074_v6 }
 0x748   :  { %9203 = vmatpush1.bf16.msra.mxu0 %v14075_v56  ;;  %9235 = vmatpush1.bf16.msra.mxu1 %v14076_v16 }
 0x749   :  { %9237 = vmatprep.subr.bf16.mxu0 %v14077_v34  ;;  %9269 = vmatprep.subr.bf16.mxu1 %v14078_v50 }
 0x74b   :  { %5133 = vmatmul.mubr.f32.vlgmr.msra.gmra.mrb[20].mxu0 %v4814_v10  ;;  %5204 = vmatmul.mubr.f32.vlgmr.msra.gmra.mrb[20].mxu1 %v4814_v10  ;;  %v14100_v10 = vld [vmem:[#allocation61_spill] sm:$0xff] }
 0x74c   :  { %9239 = vmatpush1.bf16.msra.mxu0 %v14079_v14  ;;  %9271 = vmatpush1.bf16.msra.mxu1 %v14080_v58 }
 0x74d   :  { %9241 = vmatprep.subr.bf16.mxu0 %v14081_v37  ;;  %9273 = vmatprep.subr.bf16.mxu1 %v14082_v4  ;;  %v5057_v37 = vld [vmem:[#allocation4 + $0x45] ss:$8 sm:$0xf] }
 0x74e   :  { %5610 = vmatprep.mubr.f32.mxu0 %v13711_v21  ;;  %5681 = vmatprep.mubr.f32.mxu1 %v13711_v21 }
 0x750   :  { %9243 = vmatpush1.bf16.msra.mxu0 %v14083_v49  ;;  %9275 = vmatpush1.bf16.msra.mxu1 %v14084_v32 }
 0x751   :  { %9245 = vmatprep.subr.bf16.mxu0 %v14085_v61  ;;  %9277 = vmatprep.subr.bf16.mxu1 %v14086_v28 }
 0x754   :  { %9247 = vmatpush1.bf16.msra.mxu0 %v14087_v60  ;;  %9279 = vmatpush1.bf16.msra.mxu1 %v14088_v29  ;;  %v14112_v60 = vld [vmem:[#allocation103_spill] sm:$0xff] }
 0x755   :  { %9249 = vmatprep.subr.bf16.mxu0 %v14089_v42  ;;  %9281 = vmatprep.subr.bf16.mxu1 %v14090_v55  ;;  %v14101_v55 = vld [vmem:[#allocation62_spill] sm:$0xff] }
 0x756   :  { %v14111_v42 = vld [vmem:[#allocation102_spill] sm:$0xff] }
 0x758   :  { %9251 = vmatpush1.bf16.msra.mxu0 %v14091_v23  ;;  %9283 = vmatpush1.bf16.msra.mxu1 %v14092_v54  ;;  %v14102_v23 = vld [vmem:[#allocation63_spill] sm:$0xff]  ;;  %v14103_v54 = vld [vmem:[#allocation64_spill] sm:$0xff] }
 0x759   :  { %9253 = vmatprep.subr.bf16.mxu0 %v14093_v41  ;;  %9285 = vmatprep.subr.bf16.mxu1 %v14094_v43  ;;  %v14104_v41 = vld [vmem:[#allocation65_spill] sm:$0xff]  ;;  %v14105_v43 = vld [vmem:[#allocation66_spill] sm:$0xff] }
 0x75c   :  { %9255 = vmatpush1.bf16.msra.mxu0 %v14095_v19  ;;  %9287 = vmatpush1.bf16.msra.mxu1 %v14096_v62  ;;  %v14106_v19 = vld [vmem:[#allocation67_spill] sm:$0xff]  ;;  %v14107_v62 = vld [vmem:[#allocation68_spill] sm:$0xff] }
 0x75d   :  { %9257 = vmatprep.subr.bf16.mxu0 %v14097_v20  ;;  %9289 = vmatprep.subr.bf16.mxu1 %v14098_v24  ;;  %v14108_v20 = vld [vmem:[#allocation69_spill] sm:$0xff]  ;;  %v14109_v24 = vld [vmem:[#allocation70_spill] sm:$0xff] }
 0x760   :  { %9259 = vmatpush1.bf16.msra.mxu0 %v14099_v12  ;;  %9291 = vmatpush1.bf16.msra.mxu1 %v14100_v10  ;;  %v14110_v12 = vld [vmem:[#allocation71_spill] sm:$0xff] }
 0x761   :  { %9261 = vmatprep.subr.bf16.mxu0 %v14101_v55  ;;  %9293 = vmatprep.subr.bf16.mxu1 %v14102_v23 }
 0x764   :  { %9263 = vmatpush1.bf16.msra.mxu0 %v14103_v54  ;;  %9295 = vmatpush1.bf16.msra.mxu1 %v14104_v41 }
 0x765   :  { %9265 = vmatprep.subr.bf16.mxu0 %v14105_v43  ;;  %9297 = vmatprep.subr.bf16.mxu1 %v14106_v19  ;;  %v14113_v19 = vld [vmem:[#allocation104_spill] sm:$0xff] }
 0x768   :  { %9267 = vmatpush1.bf16.msra.mxu0 %v14107_v62  ;;  %9299 = vmatpush1.bf16.msra.mxu1 %v14108_v20  ;;  %v14114_v20 = vld [vmem:[#allocation105_spill] sm:$0xff] }
 0x769   :  { %9301 = vmatprep.subr.bf16.mxu0 %v14109_v24  ;;  %9333 = vmatprep.subr.bf16.mxu1 %v14110_v12 }
 0x7fe   :  { %v4882_v10 = vpop.f32.mrb[18].mxu0  ;;  %v4953_v55 = vpop.f32.mrb[18].mxu1 }
 0x7ff   :  { %v4958_v23 = vadd.f32 %v4882_v10, %v14111_v42  ;;  %v4884_v29 = vpop.f32.mrb[19].mxu0  ;;  %v4955_v54 = vpop.f32.mrb[19].mxu1  ;;  %v4960_v32 = vadd.f32 %v4953_v55, %v14114_v20 }
 0x800   :  { %v4959_v41 = vadd.f32 %v4884_v29, %v14112_v60  ;;  %v4961_v62 = vadd.f32 %v4955_v54, %v14113_v19  ;;  %v5055_v19 = vld [vmem:[#allocation4 + $0x25] ss:$8 sm:$0xf] }
 0x801   :  { %v8112_v28 = vmul.f32 -1.442695, %v4958_v23 }
 0x802   :  { %v8113_v43 = vmul.f32 -1.442695, %v4959_v41  ;;  %v8114_v61 = vmul.f32 -1.442695, %v4961_v62 }
 0x803   :  { %10500 = vpow2.f32 %v8112_v28 }
 0x804   :  { %10502 = vpow2.f32 %v8113_v43  ;;  %v14115_v43 = vld [vmem:[#allocation106_spill] sm:$0xff] }
 0x805   :  { %10504 = vpow2.f32 %v8114_v61 }
 0x806   :  { %10506 = vtanh.f32 %v4960_v32 }
 0x80d   :  { %v10501_v24 = vpop.eup %10500 }
 0x80e   :  { %v10503_v49 = vpop.eup %10502  ;;  %v4965_v12 = vadd.f32 1.0, %v10501_v24 }
 0x80f   :  { %v4971_v4 = vadd.f32 1.0, %v10503_v49  ;;  %v10505_v10 = vpop.eup %10504 }
 0x810   :  { %10508 = vrcp.f32 %v4965_v12  ;;  %v10507_v42 = vpop.eup %10506  ;;  %v4978_v28 = vadd.f32 1.0, %v10505_v10 }
 0x811   :  { %10510 = vrcp.f32 %v4971_v4 }
 0x812   :  { %10512 = vrcp.f32 %v4978_v28 }
 0x81a   :  { %v10509_v29 = vpop.eup %10508 }
 0x81b   :  { %v10511_v23 = vpop.eup %10510  ;;  %v4982_v41 = vmul.f32 %v10509_v29, %v10507_v42 }
 0x81c   :  { %v4981_v60 = vmul.f32 %v10511_v23, %v14115_v43  ;;  %v5053_v43 = vld [vmem:[#allocation4 + $0x5] ss:$8 sm:$0xf] }
 0x81e   :  { %v12781_v54 = vadd.f32 %v4982_v41, %v4981_v60  ;;  %v5134_v62 = vpop.f32.mrb[20].mxu0  ;;  %v5205_v55 = vpop.f32.mrb[20].mxu1 }
 0x81f   :  { %v5136_v20 = vpop.f32.mrb[21].mxu0  ;;  %v5207_v24 = vpop.f32.mrb[21].mxu1 }
 0x820   :  { %14116 = vst [vmem:[#allocation106_spill] sm:$0xff] %v12781_v54  ;;  %v5214_v61 = vcombine.low %v5134_v62, %v5136_v20  ;;  %v5215_v32 = vcombine.high %v5134_v62, %v5136_v20  ;;  %v5216_v49 = vcombine.low %v5205_v55, %v5207_v24  ;;  %v5217_v12 = vcombine.high %v5205_v55, %v5207_v24  ;;  %v5061_v20 = vld [vmem:[#allocation4 + $0x85] ss:$8 sm:$0xf] }
 0x821   :  { %10514 = vtanh.f32 %v12781_v54  ;;  %v5065_v54 = vld [vmem:[#allocation4 + $0xc5] ss:$8 sm:$0xf] }
 0x822   :  { %v5224_v4 = vrot.slane %v5214_v61, %v11612_v59  ;;  %v5231_v42 = vrot.slane %v5215_v32, %v11612_v59  ;;  %v5238_v10 = vrot.slane %v5216_v49, %v11612_v59  ;;  %v5245_v60 = vrot.slane %v5217_v12, %v11612_v59  ;;  %v5059_v32 = vld [vmem:[#allocation4 + $0x65] ss:$8 sm:$0xf] }
 0x823   :  { %v5063_v49 = vld [vmem:[#allocation4 + $0xa5] ss:$8 sm:$0xf] }
 0x824   :  { %v5246_v29 = vcombine.low %v5224_v4, %v5238_v10  ;;  %v5247_v23 = vcombine.high %v5224_v4, %v5238_v10  ;;  %v5248_v41 = vcombine.low %v5231_v42, %v5245_v60  ;;  %v5249_v28 = vcombine.high %v5231_v42, %v5245_v60  ;;  %v10513_v42 = vpop.eup %10512  ;;  %v5067_v60 = vld [vmem:[#allocation4 + $0xe5] ss:$8 sm:$0xf] }
 0x826   :  { %v5256_v62 = vrot.slane %v5246_v29, %v11612_v59  ;;  %v5263_v55 = vrot.slane %v5248_v41, %v11612_v59  ;;  %v5270_v24 = vrot.slane %v5247_v23, %v11612_v59  ;;  %v5277_v61 = vrot.slane %v5249_v28, %v11612_v59 }
 0x828   :  { %v5278_v12 = vcombine.high %v5256_v62, %v5256_v62  ;;  %v5279_v58 = vcombine.high %v5263_v55, %v5263_v55  ;;  %v5280_v4 = vcombine.high %v5270_v24, %v5270_v24  ;;  %v5281_v10 = vcombine.high %v5277_v61, %v5277_v61 }
 0x829   :  { %v12792_v14 = vadd.f32 %v5256_v62, %v5053_v43  ;;  %v12794_v50 = vadd.f32 %v5270_v24, %v5055_v19  ;;  %v12796_v29 = vadd.f32 %v5263_v55, %v5061_v20  ;;  %v12802_v28 = vadd.f32 %v5277_v61, %v5063_v49  ;;  %v14117_v24 = vld [vmem:[#allocation72_spill] sm:$0xff]  ;;  %v14120_v49 = vld [vmem:[#allocation75_spill] sm:$0xff] }
 0x82a   :  { %v12798_v41 = vadd.f32 %v5278_v12, %v5057_v37  ;;  %v12800_v23 = vadd.f32 %v5280_v4, %v5059_v32  ;;  %v12804_v16 = vadd.f32 %v5279_v58, %v5065_v54  ;;  %v12808_v0 = vadd.f32 %v5281_v10, %v5067_v60  ;;  %v14119_v32 = vld [vmem:[#allocation74_spill] sm:$0xff]  ;;  %v14121_v60 = vld [vmem:[#allocation76_spill] sm:$0xff] }
 0x82b   :  { %v10515_v34 = vpop.eup %10514  ;;  %v8119_v56 = vmul.f32 -1.442695, %v12792_v14  ;;  %v8120_v6 = vmul.f32 -1.442695, %v12794_v50  ;;  %v8123_v37 = vmul.f32 -1.442695, %v12796_v29 }
 0x82c   :  { %v8121_v19 = vmul.f32 -1.442695, %v12798_v41  ;;  %v8122_v43 = vmul.f32 -1.442695, %v12800_v23  ;;  %v12812_v20 = vmul.f32 %v10515_v34, %v10513_v42  ;;  %v5354_v62 = vrot.slane %v12792_v14, 1 }
 0x82d   :  { %10516 = vpow2.f32 %v8119_v56  ;;  %v8124_v58 = vmul.f32 -1.442695, %v12802_v28  ;;  %v5355_v54 = vrot.slane %v12794_v50, 1  ;;  %v8125_v55 = vmul.f32 -1.442695, %v12804_v16  ;;  %v14118_v56 = vld [vmem:[#allocation73_spill] sm:$0xff] }
 0x82e   :  { %10518 = vpow2.f32 %v8120_v6  ;;  %5611 = vmatmul.mubr.f32.vlgmr.msra.gmra.mrb[22].mxu0 %v12812_v20  ;;  %5682 = vmatmul.mubr.f32.vlgmr.msra.gmra.mrb[22].mxu1 %v12812_v20  ;;  %v5356_v34 = vrot.slane %v12798_v41, 1  ;;  %v8126_v6 = vmul.f32 -1.442695, %v12808_v0  ;;  %v5357_v61 = vrot.slane %v12800_v23, 1 }
 0x82f   :  { %10520 = vpow2.f32 %v8121_v19  ;;  %9303 = vmatpush1.bf16.msra.mxu0 %v14117_v24  ;;  %9335 = vmatpush1.bf16.msra.mxu1 %v14118_v56  ;;  %v5358_v12 = vrot.slane %v12796_v29, 1  ;;  %v8127_v4 = vmul.f32 -1.442695, %v5354_v62  ;;  %v8128_v10 = vmul.f32 -1.442695, %v5355_v54  ;;  %v14122_v19 = vld [vmem:[#allocation77_spill] sm:$0xff] }
 0x830   :  { %10522 = vpow2.f32 %v8122_v43  ;;  %9305 = vmatprep.subr.bf16.mxu0 %v14119_v32  ;;  %9337 = vmatprep.subr.bf16.mxu1 %v14120_v49  ;;  %v8129_v42 = vmul.f32 -1.442695, %v5356_v34  ;;  %v8130_v43 = vmul.f32 -1.442695, %v5357_v61  ;;  %v14123_v32 = vld [vmem:[#allocation78_spill] sm:$0xff]  ;;  %v14125_v56 = vld [vmem:[#allocation80_spill] sm:$0xff] }
 0x831   :  { %10524 = vpow2.f32 %v8123_v37  ;;  %5810 = vmatprep.mubr.f32.mxu0 %v13711_v21  ;;  %5881 = vmatprep.mubr.f32.mxu1 %v13711_v21  ;;  %v14124_v37 = vld [vmem:[#allocation79_spill] sm:$0xff]  ;;  %v8131_v62 = vmul.f32 -1.442695, %v5358_v12  ;;  %v14127_v34 = vld [vmem:[#allocation82_spill] sm:$0xff]  ;;  %v5423_v48 = vrot.slane %v12802_v28, 2  ;;  %v5449_v8 = vrot.slane %v12808_v0, 3 }
 0x832   :  { %10526 = vpow2.f32 %v8124_v58  ;;  %v14126_v58 = vld [vmem:[#allocation81_spill] sm:$0xff] }
 0x833   :  { %10528 = vpow2.f32 %v8125_v55  ;;  %9307 = vmatpush1.bf16.msra.mxu0 %v14121_v60  ;;  %9339 = vmatpush1.bf16.msra.mxu1 %v14122_v19 }
 0x834   :  { %10530 = vpow2.f32 %v8126_v6  ;;  %9309 = vmatprep.subr.bf16.mxu0 %v14123_v32  ;;  %9341 = vmatprep.subr.bf16.mxu1 %v14124_v37  ;;  %v14128_v6 = vld [vmem:[#allocation83_spill] sm:$0xff]  ;;  %v5359_v37 = vrot.slane %v12802_v28, 1 }
 0x835   :  { %10532 = vpow2.f32 %v8127_v4 }
 0x836   :  { %10534 = vpow2.f32 %v8128_v10  ;;  %v5360_v10 = vrot.slane %v12804_v16, 1 }
 0x837   :  { %v10517_v49 = vpop.eup %10516  ;;  %10536 = vpow2.f32 %v8129_v42  ;;  %9311 = vmatpush1.bf16.msra.mxu0 %v14125_v56  ;;  %9343 = vmatpush1.bf16.msra.mxu1 %v14126_v58  ;;  %v14129_v58 = vld [vmem:[#allocation84_spill] sm:$0xff] }
 0x838   :  { %v10519_v54 = vpop.eup %10518  ;;  %v5322_v55 = vadd.f32 1.0, %v10517_v49  ;;  %10538 = vpow2.f32 %v8130_v43  ;;  %9313 = vmatprep.subr.bf16.mxu0 %v14127_v34  ;;  %9345 = vmatprep.subr.bf16.mxu1 %v14128_v6  ;;  %v14130_v49 = vld [vmem:[#allocation85_spill] sm:$0xff]  ;;  %v14131_v6 = vld [vmem:[#allocation86_spill] sm:$0xff] }
 0x839   :  { %v10521_v61 = vpop.eup %10520  ;;  %v5323_v32 = vadd.f32 1.0, %v10519_v54  ;;  %10540 = vpow2.f32 %v8131_v62  ;;  %v5361_v54 = vrot.slane %v12808_v0, 1  ;;  %v4987_v62 = vcombine.high %v12812_v20, %v12812_v20 }
 0x83a   :  { %v10523_v12 = vpop.eup %10522  ;;  %v5324_v4 = vadd.f32 1.0, %v10521_v61  ;;  %10542 = vrcp.f32 %v5322_v55  ;;  %v14132_v55 = vld [vmem:[#allocation87_spill] sm:$0xff] }
 0x83b   :  { %v10525_v42 = vpop.eup %10524  ;;  %v5325_v56 = vadd.f32 1.0, %v10523_v12  ;;  %10544 = vrcp.f32 %v5323_v32  ;;  %9315 = vmatpush1.bf16.msra.mxu0 %v14129_v58  ;;  %9347 = vmatpush1.bf16.msra.mxu1 %v14130_v49  ;;  %v8132_v32 = vmul.f32 -1.442695, %v5359_v37  ;;  %v4994_v12 = vrot.slane %v12812_v20, %v11612_v59 }
 0x83c   :  { %v10527_v43 = vpop.eup %10526  ;;  %v5326_v34 = vadd.f32 1.0, %v10525_v42  ;;  %10546 = vrcp.f32 %v5324_v4  ;;  %9317 = vmatprep.subr.bf16.mxu0 %v14131_v6  ;;  %9349 = vmatprep.subr.bf16.mxu1 %v14132_v55  ;;  %v8133_v4 = vmul.f32 -1.442695, %v5360_v10  ;;  %v5001_v42 = vrot.slane %v4987_v62, %v11612_v59  ;;  %v14133_v55 = vld [vmem:[#allocation88_spill] sm:$0xff]  ;;  %v14135_v10 = vld [vmem:[#allocation90_spill] sm:$0xff]  ;;  %v14136_v62 = vld [vmem:[#allocation91_spill] sm:$0xff] }
 0x83d   :  { %v10529_v61 = vpop.eup %10528  ;;  %v5327_v19 = vadd.f32 1.0, %v10527_v43  ;;  %10548 = vrcp.f32 %v5325_v56  ;;  %v5002_v46 = vcombine.high %v4994_v12, %v4994_v12  ;;  %v5010_v6 = vrot.slane %v4994_v12, %v11612_v59  ;;  %8115 = vst.sshfl [vmem:[#allocation15 + $0x4] sm:$0x1 pattern:$0x73625140] %v4994_v12  ;;  %v14134_v56 = vld [vmem:[#allocation89_spill] sm:$0xff] }
 0x83e   :  { %v10531_v49 = vpop.eup %10530  ;;  %v5328_v58 = vadd.f32 1.0, %v10529_v61  ;;  %10550 = vrcp.f32 %v5326_v34  ;;  %v8134_v20 = vmul.f32 -1.442695, %v5361_v54  ;;  %v5003_v43 = vcombine.high %v5001_v42, %v5001_v42 }
 0x83f   :  { %v10533_v60 = vpop.eup %10532  ;;  %v5329_v24 = vadd.f32 1.0, %v10531_v49  ;;  %10552 = vrcp.f32 %v5327_v19  ;;  %9319 = vmatpush1.bf16.msra.mxu0 %v14133_v55  ;;  %9351 = vmatpush1.bf16.msra.mxu1 %v14134_v56  ;;  %v5017_v34 = vrot.slane %v5001_v42, %v11612_v59  ;;  %8117 = vst.sshfl [vmem:[#allocation15 + $0x24] sm:$0x1 pattern:$0x73625140] %v5001_v42  ;;  %v5024_v61 = vrot.slane %v5002_v46, %v11612_v59 }
 0x840   :  { %v10535_v37 = vpop.eup %10534  ;;  %10554 = vrcp.f32 %v5328_v58  ;;  %9321 = vmatprep.subr.bf16.mxu0 %v14135_v10  ;;  %9353 = vmatprep.subr.bf16.mxu1 %v14136_v62  ;;  %v5394_v49 = vadd.f32 1.0, %v10533_v60  ;;  %v5032_v12 = vcombine.high %v5010_v6, %v5010_v6  ;;  %8116 = vst.sshfl [vmem:[#allocation15 + $0xc] sm:$0x1 pattern:$0x73625140] %v5002_v46  ;;  %v5031_v58 = vrot.slane %v5003_v43, %v11612_v59  ;;  %v14137_v62 = vld [vmem:[#allocation92_spill] sm:$0xff] }
 0x841   :  { %v10537_v19 = vpop.eup %10536  ;;  %10556 = vrcp.f32 %v5329_v24  ;;  %v5395_v56 = vadd.f32 1.0, %v10535_v37  ;;  %v5033_v54 = vcombine.high %v5017_v34, %v5017_v34  ;;  %8118 = vst.sshfl [vmem:[#allocation15 + $0x2c] sm:$0x1 pattern:$0x73625140] %v5003_v43  ;;  %v5034_v10 = vcombine.high %v5024_v61, %v5024_v61  ;;  %v14138_v24 = vld [vmem:[#allocation93_spill] sm:$0xff] }
 0x842   :  { %v10539_v55 = vpop.eup %10538  ;;  %10558 = vpow2.f32 %v8132_v32  ;;  %v5396_v42 = vadd.f32 1.0, %v10537_v19  ;;  %5046 = vst [vmem:[#allocation15 + $0x14] sm:$0x1] %v5032_v12  ;;  %v5035_v6 = vcombine.high %v5031_v58, %v5031_v58  ;;  %v14139_v32 = vld [vmem:[#allocation94_spill] sm:$0xff]  ;;  %v14140_v37 = vld [vmem:[#allocation95_spill] sm:$0xff]  ;;  %v5418_v19 = vrot.slane %v12792_v14, 2 }
 0x843   :  { %v10541_v15 = vpop.eup %10540  ;;  %10560 = vpow2.f32 %v8133_v4  ;;  %9323 = vmatpush1.bf16.msra.mxu0 %v14137_v62  ;;  %9355 = vmatpush1.bf16.msra.mxu1 %v14138_v24  ;;  %v5397_v46 = vadd.f32 1.0, %v10539_v55  ;;  %5050 = vst [vmem:[#allocation15 + $0x34] sm:$0x1] %v5033_v54  ;;  %5047 = vst [vmem:[#allocation15 + $0x1c] sm:$0x1] %v5034_v10  ;;  %v5419_v55 = vrot.slane %v12794_v50, 2 }
 0x844   :  { %v12861_v60 = vpop.eup %10542  ;;  %10562 = vpow2.f32 %v8134_v20  ;;  %9325 = vmatprep.subr.bf16.mxu0 %v14139_v32  ;;  %9357 = vmatprep.subr.bf16.mxu1 %v14140_v37  ;;  %v5398_v4 = vadd.f32 1.0, %v10541_v15  ;;  %5051 = vst [vmem:[#allocation15 + $0x3c] sm:$0x1] %v5035_v6  ;;  %v14141_v20 = vld [vmem:[#allocation96_spill] sm:$0xff]  ;;  %v14142_v12 = vld [vmem:[#allocation97_spill] sm:$0xff]  ;;  %v5420_v15 = vrot.slane %v12798_v41, 2 }
 0x845   :  { %v12865_v43 = vpop.eup %10544  ;;  %10564 = vrcp.f32 %v5394_v49  ;;  %v14143_v10 = vld [vmem:[#allocation98_spill] sm:$0xff]  ;;  %v5421_v54 = vrot.slane %v12800_v23, 2  ;;  %v5422_v6 = vrot.slane %v12796_v29, 2  ;;  %v5442_v24 = vrot.slane %v12792_v14, 3 }
 0x846   :  { %v12867_v34 = vpop.eup %10546  ;;  %10566 = vrcp.f32 %v5395_v56  ;;  %v14144_v56 = vld [vmem:[#allocation99_spill] sm:$0xff]  ;;  %v14148_v37 = vld [vmem:[#allocation26_spill] sm:$0xff]  ;;  %v5445_v14 = vrot.slane %v12800_v23, 3 }
 0x847   :  { %v12870_v61 = vpop.eup %10548  ;;  %10568 = vrcp.f32 %v5396_v42  ;;  %9327 = vmatpush1.bf16.msra.mxu0 %v14141_v20  ;;  %9359 = vmatpush1.bf16.msra.mxu1 %v14142_v12  ;;  %v14146_v20 = vld [vmem:[#allocation101_spill] sm:$0xff] }
 0x848   :  { %v12875_v58 = vpop.eup %10550  ;;  %10570 = vrcp.f32 %v5397_v46  ;;  %9329 = vmatprep.subr.bf16.mxu0 %v14143_v10  ;;  %9361 = vmatprep.subr.bf16.mxu1 %v14144_v56  ;;  %v14145_v46 = vld [vmem:[#allocation100_spill] sm:$0xff]  ;;  %v14147_v56 = vld [vmem:[#allocation25_spill] sm:$0xff]  ;;  %v8138_v23 = vmul.f32 -1.442695, %v5445_v14 }
 0x849   :  { %v12880_v49 = vpop.eup %10552  ;;  %10572 = vrcp.f32 %v5398_v4 }
 0x84a   :  { %v12883_v42 = vpop.eup %10554  ;;  %10574 = vtanh.f32 %v5418_v19 }
 0x84b   :  { %v12886_v12 = vpop.eup %10556  ;;  %10576 = vtanh.f32 %v5419_v55  ;;  %9331 = vmatpush1.bf16.msra.mxu0 %v14145_v46  ;;  %9363 = vmatpush1.bf16.msra.mxu1 %v14146_v20  ;;  %v5443_v55 = vrot.slane %v12794_v50, 3  ;;  %v5447_v50 = vrot.slane %v12802_v28, 3 }
 0x84c   :  { %v10559_v10 = vpop.eup %10558  ;;  %10578 = vtanh.f32 %v5420_v15  ;;  %9365 = vmatprep.subr.bf16.mxu0 %v14147_v56  ;;  %9397 = vmatprep.subr.bf16.mxu1 %v14148_v37  ;;  %v5424_v15 = vrot.slane %v12804_v16, 2  ;;  %v5444_v56 = vrot.slane %v12798_v41, 3  ;;  %v5448_v41 = vrot.slane %v12804_v16, 3 }
 0x84d   :  { %v10561_v4 = vpop.eup %10560  ;;  %v5399_v32 = vadd.f32 1.0, %v10559_v10  ;;  %10580 = vtanh.f32 %v5421_v54  ;;  %v5425_v10 = vrot.slane %v12808_v0, 2  ;;  %v8142_v0 = vmul.f32 -1.442695, %v5449_v8 }
 0x84e   :  { %v10563_v62 = vpop.eup %10562  ;;  %v5400_v19 = vadd.f32 1.0, %v10561_v4  ;;  %10582 = vtanh.f32 %v5422_v6  ;;  %v5446_v4 = vrot.slane %v12796_v29, 3  ;;  %v8135_v6 = vmul.f32 -1.442695, %v5442_v24 }
 0x84f   :  { %v10565_v46 = vpop.eup %10564  ;;  %v5401_v20 = vadd.f32 1.0, %v10563_v62  ;;  %10584 = vrcp.f32 %v5399_v32  ;;  %v8136_v62 = vmul.f32 -1.442695, %v5443_v55  ;;  %v8137_v47 = vmul.f32 -1.442695, %v5444_v56 }
 0x850   :  { %v10567_v37 = vpop.eup %10566  ;;  %10586 = vrcp.f32 %v5400_v19  ;;  %v5506_v29 = vmul.f32 %v10565_v46, %v12670_v7 }
 0x851   :  { %v10569_v54 = vpop.eup %10568  ;;  %10588 = vrcp.f32 %v5401_v20  ;;  %v8139_v20 = vmul.f32 -1.442695, %v5446_v4  ;;  %v5507_v28 = vmul.f32 %v10567_v37, %v12673_v33 }
 0x852   :  { %v10571_v36 = vpop.eup %10570  ;;  %10590 = vtanh.f32 %v5423_v48  ;;  %v8140_v48 = vmul.f32 -1.442695, %v5447_v50  ;;  %v5508_v56 = vmul.f32 %v10569_v54, %v12676_v3 }
 0x853   :  { %v10573_v32 = vpop.eup %10572  ;;  %10592 = vtanh.f32 %v5424_v15  ;;  %v8141_v15 = vmul.f32 -1.442695, %v5448_v41  ;;  %v5509_v4 = vmul.f32 %v10571_v36, %v12678_v30 }
 0x854   :  { %v10575_v19 = vpop.eup %10574  ;;  %10594 = vtanh.f32 %v5425_v10  ;;  %v5510_v33 = vmul.f32 %v10573_v32, %v12680_v38 }
 0x855   :  { %v10577_v45 = vpop.eup %10576  ;;  %10596 = vpow2.f32 %v8135_v6  ;;  %v5514_v16 = vmul.f32 %v10575_v19, %v12861_v60 }
 0x856   :  { %v10579_v24 = vpop.eup %10578  ;;  %10598 = vpow2.f32 %v8136_v62  ;;  %v5515_v14 = vmul.f32 %v10577_v45, %v12865_v43 }
 0x857   :  { %v10581_v55 = vpop.eup %10580  ;;  %10600 = vpow2.f32 %v8137_v47  ;;  %v5516_v46 = vmul.f32 %v10579_v24, %v12867_v34  ;;  %v12911_v37 = vadd.f32 %v5514_v16, %v5506_v29 }
 0x858   :  { %v10583_v10 = vpop.eup %10582  ;;  %10602 = vpow2.f32 %v8138_v23  ;;  %v5517_v60 = vmul.f32 %v10581_v55, %v12870_v61  ;;  %v12914_v3 = vadd.f32 %v5515_v14, %v5507_v28 }
 0x859   :  { %v10585_v7 = vpop.eup %10584  ;;  %10604 = vpow2.f32 %v8139_v20  ;;  %v5518_v45 = vmul.f32 %v10583_v10, %v12875_v58  ;;  %v12917_v8 = vadd.f32 %v5516_v46, %v5508_v56 }
 0x85a   :  { %v10587_v47 = vpop.eup %10586  ;;  %10606 = vpow2.f32 %v8140_v48  ;;  %v12919_v36 = vadd.f32 %v5517_v60, %v5509_v4  ;;  %v5511_v19 = vmul.f32 %v10585_v7, %v12693_v25 }
 0x85b   :  { %v10589_v54 = vpop.eup %10588  ;;  %10608 = vpow2.f32 %v8141_v15  ;;  %v12921_v38 = vadd.f32 %v5518_v45, %v5510_v33  ;;  %v5512_v29 = vmul.f32 %v10587_v47, %v12695_v11 }
 0x85c   :  { %v10591_v30 = vpop.eup %10590  ;;  %10610 = vpow2.f32 %v8142_v0  ;;  %v5513_v55 = vmul.f32 %v10589_v54, %v12697_v5 }
 0x85d   :  { %v10593_v43 = vpop.eup %10592  ;;  %10612 = vtanh.f32 %v12911_v37  ;;  %v5519_v28 = vmul.f32 %v10591_v30, %v12880_v49 }
 0x85e   :  { %v10595_v34 = vpop.eup %10594  ;;  %10614 = vtanh.f32 %v12914_v3  ;;  %v5520_v56 = vmul.f32 %v10593_v43, %v12883_v42 }
 0x85f   :  { %v10597_v61 = vpop.eup %10596  ;;  %10616 = vtanh.f32 %v12917_v8  ;;  %v5521_v25 = vmul.f32 %v10595_v34, %v12886_v12  ;;  %v12934_v14 = vadd.f32 %v5519_v28, %v5511_v19 }
 0x860   :  { %v10599_v6 = vpop.eup %10598  ;;  %v5482_v50 = vadd.f32 1.0, %v10597_v61  ;;  %10618 = vtanh.f32 %v12919_v36  ;;  %v12936_v7 = vadd.f32 %v5520_v56, %v5512_v29 }
 0x861   :  { %v10601_v58 = vpop.eup %10600  ;;  %v5483_v62 = vadd.f32 1.0, %v10599_v6  ;;  %10620 = vtanh.f32 %v12921_v38  ;;  %v12938_v5 = vadd.f32 %v5521_v25, %v5513_v55 }
 0x862   :  { %v10603_v32 = vpop.eup %10602  ;;  %v5484_v41 = vadd.f32 1.0, %v10601_v58  ;;  %10622 = vrcp.f32 %v5482_v50 }
 0x863   :  { %v10605_v23 = vpop.eup %10604  ;;  %v5485_v20 = vadd.f32 1.0, %v10603_v32  ;;  %10624 = vrcp.f32 %v5483_v62 }
 0x864   :  { %v10607_v24 = vpop.eup %10606  ;;  %v5486_v48 = vadd.f32 1.0, %v10605_v23  ;;  %10626 = vrcp.f32 %v5484_v41 }
 0x865   :  { %v10609_v15 = vpop.eup %10608  ;;  %v5487_v16 = vadd.f32 1.0, %v10607_v24  ;;  %10628 = vrcp.f32 %v5485_v20 }
 0x866   :  { %v10611_v10 = vpop.eup %10610  ;;  %v5488_v0 = vadd.f32 1.0, %v10609_v15  ;;  %10630 = vrcp.f32 %v5486_v48 }
 0x867   :  { %v10613_v11 = vpop.eup %10612  ;;  %v5489_v4 = vadd.f32 1.0, %v10611_v10  ;;  %10632 = vrcp.f32 %v5487_v16 }
 0x868   :  { %v10615_v49 = vpop.eup %10614  ;;  %10634 = vrcp.f32 %v5488_v0 }
 0x869   :  { %v10617_v46 = vpop.eup %10616  ;;  %10636 = vrcp.f32 %v5489_v4 }
 0x86a   :  { %v10619_v33 = vpop.eup %10618  ;;  %10638 = vtanh.f32 %v12934_v14 }
 0x86b   :  { %v10621_v42 = vpop.eup %10620  ;;  %10640 = vtanh.f32 %v12936_v7 }
 0x86c   :  { %v10623_v12 = vpop.eup %10622  ;;  %10642 = vtanh.f32 %v12938_v5 }
 0x86d   :  { %v10625_v47 = vpop.eup %10624  ;;  %v5538_v60 = vmul.f32 %v10623_v12, %v10613_v11  ;;  %v14152_v12 = vld [vmem:[#allocation30_spill] sm:$0xff] }
 0x86e   :  { %v10627_v54 = vpop.eup %10626  ;;  %v5539_v45 = vmul.f32 %v10625_v47, %v10615_v49  ;;  %v14153_v47 = vld [vmem:[#allocation31_spill] sm:$0xff] }
 0x86f   :  { %v10629_v30 = vpop.eup %10628  ;;  %v5540_v43 = vmul.f32 %v10627_v54, %v10617_v46  ;;  %v14149_v46 = vld [vmem:[#allocation27_spill] sm:$0xff]  ;;  %v14155_v54 = vld [vmem:[#allocation33_spill] sm:$0xff] }
 0x870   :  { %v10631_v34 = vpop.eup %10630  ;;  %v5541_v61 = vmul.f32 %v10629_v30, %v10619_v33  ;;  %v5696_v6 = vcombine.low %v5538_v60, %v5539_v45  ;;  %v14150_v33 = vld [vmem:[#allocation28_spill] sm:$0xff]  ;;  %v14156_v45 = vld [vmem:[#allocation34_spill] sm:$0xff]  ;;  %v14157_v30 = vld [vmem:[#allocation35_spill] sm:$0xff] }
 0x871   :  { %v10633_v50 = vpop.eup %10632  ;;  %v5542_v41 = vmul.f32 %v10631_v34, %v10621_v42  ;;  %v14151_v42 = vld [vmem:[#allocation29_spill] sm:$0xff]  ;;  %v14154_v60 = vld [vmem:[#allocation32_spill] sm:$0xff] }
 0x872   :  { %v10635_v58 = vpop.eup %10634  ;;  %v5697_v62 = vcombine.low %v5540_v43, %v5541_v61  ;;  %v5706_v23 = vrot.slane %v5696_v6, %v11612_v59  ;;  %v14158_v43 = vld [vmem:[#allocation36_spill] sm:$0xff]  ;;  %v14159_v34 = vld [vmem:[#allocation37_spill] sm:$0xff]  ;;  %v14160_v61 = vld [vmem:[#allocation38_spill] sm:$0xff] }
 0x873   :  { %v10637_v32 = vpop.eup %10636  ;;  %v14161_v6 = vld [vmem:[#allocation39_spill] sm:$0xff] }
 0x874   :  { %v10639_v19 = vpop.eup %10638  ;;  %v5713_v20 = vrot.slane %v5697_v62, %v11612_v59  ;;  %v14164_v62 = vld [vmem:[#allocation42_spill] sm:$0xff] }
 0x875   :  { %v10641_v29 = vpop.eup %10640  ;;  %v5543_v24 = vmul.f32 %v10639_v19, %v10633_v50  ;;  %v14162_v50 = vld [vmem:[#allocation40_spill] sm:$0xff]  ;;  %v14167_v19 = vld [vmem:[#allocation45_spill] sm:$0xff] }
 0x876   :  { %v10643_v48 = vpop.eup %10642  ;;  %v5544_v28 = vmul.f32 %v10641_v29, %v10635_v58  ;;  %v5728_v55 = vcombine.low %v5706_v23, %v5713_v20  ;;  %v14163_v58 = vld [vmem:[#allocation41_spill] sm:$0xff]  ;;  %v14168_v23 = vld [vmem:[#allocation46_spill] sm:$0xff]  ;;  %v14169_v20 = vld [vmem:[#allocation47_spill] sm:$0xff] }
 0x877   :  { %v5545_v15 = vmul.f32 %v10643_v48, %v10637_v32  ;;  %v5698_v16 = vcombine.low %v5542_v41, %v5543_v24  ;;  %v14165_v32 = vld [vmem:[#allocation43_spill] sm:$0xff]  ;;  %v14166_v41 = vld [vmem:[#allocation44_spill] sm:$0xff]  ;;  %v14171_v24 = vld [vmem:[#allocation49_spill] sm:$0xff] }
 0x878   :  { %v5736_v11 = vrot.slane %v5728_v55, %v11612_v59  ;;  %v14170_v29 = vld [vmem:[#allocation48_spill] sm:$0xff]  ;;  %v14172_v48 = vld [vmem:[#allocation50_spill] sm:$0xff] }
 0x879   :  { %v5699_v56 = vcombine.low %v5544_v28, %v5545_v15  ;;  %v5720_v10 = vrot.slane %v5698_v16, %v11612_v59  ;;  %v14173_v28 = vld [vmem:[#allocation51_spill] sm:$0xff]  ;;  %v14174_v55 = vld [vmem:[#allocation52_spill] sm:$0xff]  ;;  %v14175_v15 = vld [vmem:[#allocation53_spill] sm:$0xff] }
 0x87a   :  { %v14176_v16 = vld [vmem:[#allocation54_spill] sm:$0xff] }
 0x87b   :  { %v5727_v0 = vrot.slane %v5699_v56, %v11612_v59  ;;  %v14177_v56 = vld [vmem:[#allocation55_spill] sm:$0xff] }
 0x87d   :  { %v5729_v25 = vcombine.low %v5720_v10, %v5727_v0  ;;  %v14178_v10 = vld [vmem:[#allocation56_spill] sm:$0xff]  ;;  %v14179_v0 = vld [vmem:[#allocation57_spill] sm:$0xff] }
 0x87f   :  { %v5743_v4 = vrot.slane %v5729_v25, %v11612_v59  ;;  %v14180_v25 = vld [vmem:[#allocation58_spill] sm:$0xff] }
 0x881   :  { %v5744_v49 = vcombine.low %v5736_v11, %v5743_v4  ;;  %v14181_v11 = vld [vmem:[#allocation59_spill] sm:$0xff]  ;;  %v14182_v4 = vld [vmem:[#allocation60_spill] sm:$0xff] }
 0x883   :  { %5811 = vmatmul.mubr.f32.vlgmr.msra.gmra.mrb[22].mxu0 %v5744_v49  ;;  %5882 = vmatmul.mubr.f32.vlgmr.msra.gmra.mrb[22].mxu1 %v5744_v49 }
 0x884   :  { %9367 = vmatpush1.bf16.msra.mxu0 %v11319_v9  ;;  %9399 = vmatpush1.bf16.msra.mxu1 %v11322_v13 }
 0x885   :  { %9369 = vmatprep.subr.bf16.mxu0 %v11326_v17  ;;  %9401 = vmatprep.subr.bf16.mxu1 %v11328_v18 }
 0x886   :  { %6062 = vmatprep.mubr.f32.mxu0 %v13711_v21  ;;  %6133 = vmatprep.mubr.f32.mxu1 %v13711_v21 }
 0x888   :  { %9371 = vmatpush1.bf16.msra.mxu0 %v11331_v22  ;;  %9403 = vmatpush1.bf16.msra.mxu1 %v11335_v26 }
 0x889   :  { %9373 = vmatprep.subr.bf16.mxu0 %v11337_v27  ;;  %9405 = vmatprep.subr.bf16.mxu1 %v11339_v31 }
 0x88c   :  { %9375 = vmatpush1.bf16.msra.mxu0 %v11342_v35  ;;  %9407 = vmatpush1.bf16.msra.mxu1 %v11346_v39 }
 0x88d   :  { %9377 = vmatprep.subr.bf16.mxu0 %v11348_v40  ;;  %9409 = vmatprep.subr.bf16.mxu1 %v11351_v44 }
 0x890   :  { %9379 = vmatpush1.bf16.msra.mxu0 %v11354_v51  ;;  %9411 = vmatpush1.bf16.msra.mxu1 %v11358_v52 }
 0x891   :  { %9381 = vmatprep.subr.bf16.mxu0 %v11360_v53  ;;  %9413 = vmatprep.subr.bf16.mxu1 %v11363_v57 }
 0x894   :  { %9383 = vmatpush1.bf16.msra.mxu0 %v11366_v63  ;;  %9415 = vmatpush1.bf16.msra.mxu1 %v11370_v1 }
 0x895   :  { %9385 = vmatprep.subr.bf16.mxu0 %v11372_v2  ;;  %9417 = vmatprep.subr.bf16.mxu1 %v14149_v46 }
 0x898   :  { %9387 = vmatpush1.bf16.msra.mxu0 %v14150_v33  ;;  %9419 = vmatpush1.bf16.msra.mxu1 %v14151_v42 }
 0x899   :  { %9389 = vmatprep.subr.bf16.mxu0 %v14152_v12  ;;  %9421 = vmatprep.subr.bf16.mxu1 %v14153_v47 }
 0x89c   :  { %9391 = vmatpush1.bf16.msra.mxu0 %v14154_v60  ;;  %9423 = vmatpush1.bf16.msra.mxu1 %v14155_v54 }
 0x89d   :  { %9393 = vmatprep.subr.bf16.mxu0 %v14156_v45  ;;  %9425 = vmatprep.subr.bf16.mxu1 %v14157_v30 }
 0x8a0   :  { %9395 = vmatpush1.bf16.msra.mxu0 %v14158_v43  ;;  %9427 = vmatpush1.bf16.msra.mxu1 %v14159_v34 }
 0x8a1   :  { %9429 = vmatprep.subr.bf16.mxu0 %v14160_v61  ;;  %9461 = vmatprep.subr.bf16.mxu1 %v14161_v6 }
 0x8a3   :  { %6063 = vmatmul.mubr.f32.vlgmr.msra.gmra.mrb[24].mxu0 %v5744_v49  ;;  %6134 = vmatmul.mubr.f32.vlgmr.msra.gmra.mrb[24].mxu1 %v5744_v49  ;;  %v14183_v49 = vld [vmem:[#allocation61_spill] sm:$0xff] }
 0x8a4   :  { %9431 = vmatpush1.bf16.msra.mxu0 %v14162_v50  ;;  %9463 = vmatpush1.bf16.msra.mxu1 %v14163_v58 }
 0x8a5   :  { %9433 = vmatprep.subr.bf16.mxu0 %v14164_v62  ;;  %9465 = vmatprep.subr.bf16.mxu1 %v14165_v32  ;;  %v5987_v62 = vld [vmem:[#allocation4 + $0x46] ss:$8 sm:$0xf] }
 0x8a6   :  { %6540 = vmatprep.mubr.f32.mxu0 %v13711_v21  ;;  %6611 = vmatprep.mubr.f32.mxu1 %v13711_v21 }
 0x8a8   :  { %9435 = vmatpush1.bf16.msra.mxu0 %v14166_v41  ;;  %9467 = vmatpush1.bf16.msra.mxu1 %v14167_v19 }
 0x8a9   :  { %9437 = vmatprep.subr.bf16.mxu0 %v14168_v23  ;;  %9469 = vmatprep.subr.bf16.mxu1 %v14169_v20 }
 0x8ac   :  { %9439 = vmatpush1.bf16.msra.mxu0 %v14170_v29  ;;  %9471 = vmatpush1.bf16.msra.mxu1 %v14171_v24  ;;  %v14195_v29 = vld [vmem:[#allocation103_spill] sm:$0xff] }
 0x8ad   :  { %9441 = vmatprep.subr.bf16.mxu0 %v14172_v48  ;;  %9473 = vmatprep.subr.bf16.mxu1 %v14173_v28  ;;  %v14184_v28 = vld [vmem:[#allocation62_spill] sm:$0xff] }
 0x8ae   :  { %v14194_v48 = vld [vmem:[#allocation102_spill] sm:$0xff] }
 0x8b0   :  { %9443 = vmatpush1.bf16.msra.mxu0 %v14174_v55  ;;  %9475 = vmatpush1.bf16.msra.mxu1 %v14175_v15  ;;  %v14185_v55 = vld [vmem:[#allocation63_spill] sm:$0xff]  ;;  %v14186_v15 = vld [vmem:[#allocation64_spill] sm:$0xff] }
 0x8b1   :  { %9445 = vmatprep.subr.bf16.mxu0 %v14176_v16  ;;  %9477 = vmatprep.subr.bf16.mxu1 %v14177_v56  ;;  %v14187_v16 = vld [vmem:[#allocation65_spill] sm:$0xff]  ;;  %v14188_v56 = vld [vmem:[#allocation66_spill] sm:$0xff] }
 0x8b4   :  { %9447 = vmatpush1.bf16.msra.mxu0 %v14178_v10  ;;  %9479 = vmatpush1.bf16.msra.mxu1 %v14179_v0  ;;  %v14189_v10 = vld [vmem:[#allocation67_spill] sm:$0xff]  ;;  %v14190_v0 = vld [vmem:[#allocation68_spill] sm:$0xff] }
 0x8b5   :  { %9449 = vmatprep.subr.bf16.mxu0 %v14180_v25  ;;  %9481 = vmatprep.subr.bf16.mxu1 %v14181_v11  ;;  %v14191_v25 = vld [vmem:[#allocation69_spill] sm:$0xff]  ;;  %v14192_v11 = vld [vmem:[#allocation70_spill] sm:$0xff] }
 0x8b8   :  { %9451 = vmatpush1.bf16.msra.mxu0 %v14182_v4  ;;  %9483 = vmatpush1.bf16.msra.mxu1 %v14183_v49  ;;  %v14193_v4 = vld [vmem:[#allocation71_spill] sm:$0xff] }
 0x8b9   :  { %9453 = vmatprep.subr.bf16.mxu0 %v14184_v28  ;;  %9485 = vmatprep.subr.bf16.mxu1 %v14185_v55 }
 0x8bc   :  { %9455 = vmatpush1.bf16.msra.mxu0 %v14186_v15  ;;  %9487 = vmatpush1.bf16.msra.mxu1 %v14187_v16 }
 0x8bd   :  { %9457 = vmatprep.subr.bf16.mxu0 %v14188_v56  ;;  %9489 = vmatprep.subr.bf16.mxu1 %v14189_v10  ;;  %v14196_v10 = vld [vmem:[#allocation104_spill] sm:$0xff] }
 0x8c0   :  { %9459 = vmatpush1.bf16.msra.mxu0 %v14190_v0  ;;  %9491 = vmatpush1.bf16.msra.mxu1 %v14191_v25  ;;  %v14197_v25 = vld [vmem:[#allocation105_spill] sm:$0xff] }
 0x8c1   :  { %9493 = vmatprep.subr.bf16.mxu0 %v14192_v11  ;;  %9525 = vmatprep.subr.bf16.mxu1 %v14193_v4 }
 0x956   :  { %v5812_v49 = vpop.f32.mrb[22].mxu0  ;;  %v5883_v28 = vpop.f32.mrb[22].mxu1 }
 0x957   :  { %v5888_v55 = vadd.f32 %v5812_v49, %v14194_v48  ;;  %v5814_v24 = vpop.f32.mrb[23].mxu0  ;;  %v5885_v15 = vpop.f32.mrb[23].mxu1  ;;  %v5890_v19 = vadd.f32 %v5883_v28, %v14197_v25 }
 0x958   :  { %v5889_v16 = vadd.f32 %v5814_v24, %v14195_v29  ;;  %v5891_v0 = vadd.f32 %v5885_v15, %v14196_v10  ;;  %v5985_v10 = vld [vmem:[#allocation4 + $0x26] ss:$8 sm:$0xf] }
 0x959   :  { %v8143_v20 = vmul.f32 -1.442695, %v5888_v55 }
 0x95a   :  { %v8144_v56 = vmul.f32 -1.442695, %v5889_v16  ;;  %v8145_v23 = vmul.f32 -1.442695, %v5891_v0 }
 0x95b   :  { %10644 = vpow2.f32 %v8143_v20 }
 0x95c   :  { %10646 = vpow2.f32 %v8144_v56  ;;  %v14198_v56 = vld [vmem:[#allocation106_spill] sm:$0xff] }
 0x95d   :  { %10648 = vpow2.f32 %v8145_v23 }
 0x95e   :  { %10650 = vtanh.f32 %v5890_v19 }
 0x965   :  { %v10645_v11 = vpop.eup %10644 }
 0x966   :  { %v10647_v41 = vpop.eup %10646  ;;  %v5895_v4 = vadd.f32 1.0, %v10645_v11 }
 0x967   :  { %v5901_v32 = vadd.f32 1.0, %v10647_v41  ;;  %v10649_v49 = vpop.eup %10648 }
 0x968   :  { %10652 = vrcp.f32 %v5895_v4  ;;  %v10651_v48 = vpop.eup %10650  ;;  %v5908_v20 = vadd.f32 1.0, %v10649_v49 }
 0x969   :  { %10654 = vrcp.f32 %v5901_v32 }
 0x96a   :  { %10656 = vrcp.f32 %v5908_v20 }
 0x972   :  { %v10653_v24 = vpop.eup %10652 }
 0x973   :  { %v10655_v55 = vpop.eup %10654  ;;  %v5912_v16 = vmul.f32 %v10653_v24, %v10651_v48 }
 0x974   :  { %v5911_v29 = vmul.f32 %v10655_v55, %v14198_v56  ;;  %v5983_v56 = vld [vmem:[#allocation4 + $0x6] ss:$8 sm:$0xf] }
 0x976   :  { %v13022_v15 = vadd.f32 %v5912_v16, %v5911_v29  ;;  %v6064_v0 = vpop.f32.mrb[24].mxu0  ;;  %v6135_v28 = vpop.f32.mrb[24].mxu1 }
 0x977   :  { %v6066_v25 = vpop.f32.mrb[25].mxu0  ;;  %v6137_v11 = vpop.f32.mrb[25].mxu1 }
 0x978   :  { %14199 = vst [vmem:[#allocation106_spill] sm:$0xff] %v13022_v15  ;;  %v6144_v23 = vcombine.low %v6064_v0, %v6066_v25  ;;  %v6145_v19 = vcombine.high %v6064_v0, %v6066_v25  ;;  %v6146_v41 = vcombine.low %v6135_v28, %v6137_v11  ;;  %v6147_v4 = vcombine.high %v6135_v28, %v6137_v11  ;;  %v5991_v25 = vld [vmem:[#allocation4 + $0x86] ss:$8 sm:$0xf] }
 0x979   :  { %10658 = vtanh.f32 %v13022_v15  ;;  %v5995_v15 = vld [vmem:[#allocation4 + $0xc6] ss:$8 sm:$0xf] }
 0x97a   :  { %v6154_v32 = vrot.slane %v6144_v23, %v11612_v59  ;;  %v6161_v48 = vrot.slane %v6145_v19, %v11612_v59  ;;  %v6168_v49 = vrot.slane %v6146_v41, %v11612_v59  ;;  %v6175_v29 = vrot.slane %v6147_v4, %v11612_v59  ;;  %v5989_v19 = vld [vmem:[#allocation4 + $0x66] ss:$8 sm:$0xf] }
 0x97b   :  { %v5993_v41 = vld [vmem:[#allocation4 + $0xa6] ss:$8 sm:$0xf] }
 0x97c   :  { %v6176_v24 = vcombine.low %v6154_v32, %v6168_v49  ;;  %v6177_v55 = vcombine.high %v6154_v32, %v6168_v49  ;;  %v6178_v16 = vcombine.low %v6161_v48, %v6175_v29  ;;  %v6179_v20 = vcombine.high %v6161_v48, %v6175_v29  ;;  %v10657_v48 = vpop.eup %10656  ;;  %v5997_v29 = vld [vmem:[#allocation4 + $0xe6] ss:$8 sm:$0xf] }
 0x97e   :  { %v6186_v0 = vrot.slane %v6176_v24, %v11612_v59  ;;  %v6193_v28 = vrot.slane %v6178_v16, %v11612_v59  ;;  %v6200_v11 = vrot.slane %v6177_v55, %v11612_v59  ;;  %v6207_v23 = vrot.slane %v6179_v20, %v11612_v59 }
 0x980   :  { %v6208_v4 = vcombine.high %v6186_v0, %v6186_v0  ;;  %v6209_v58 = vcombine.high %v6193_v28, %v6193_v28  ;;  %v6210_v32 = vcombine.high %v6200_v11, %v6200_v11  ;;  %v6211_v49 = vcombine.high %v6207_v23, %v6207_v23 }
 0x981   :  { %v13033_v50 = vadd.f32 %v6186_v0, %v5983_v56  ;;  %v13035_v6 = vadd.f32 %v6200_v11, %v5985_v10  ;;  %v13037_v24 = vadd.f32 %v6193_v28, %v5991_v25  ;;  %v13043_v20 = vadd.f32 %v6207_v23, %v5993_v41  ;;  %v14200_v11 = vld [vmem:[#allocation72_spill] sm:$0xff]  ;;  %v14203_v41 = vld [vmem:[#allocation75_spill] sm:$0xff] }
 0x982   :  { %v13039_v16 = vadd.f32 %v6208_v4, %v5987_v62  ;;  %v13041_v55 = vadd.f32 %v6210_v32, %v5989_v19  ;;  %v13045_v34 = vadd.f32 %v6209_v58, %v5995_v15  ;;  %v13049_v45 = vadd.f32 %v6211_v49, %v5997_v29  ;;  %v14202_v19 = vld [vmem:[#allocation74_spill] sm:$0xff]  ;;  %v14204_v29 = vld [vmem:[#allocation76_spill] sm:$0xff] }
 0x983   :  { %v10659_v61 = vpop.eup %10658  ;;  %v8150_v43 = vmul.f32 -1.442695, %v13033_v50  ;;  %v8151_v30 = vmul.f32 -1.442695, %v13035_v6  ;;  %v8154_v62 = vmul.f32 -1.442695, %v13037_v24 }
 0x984   :  { %v8152_v10 = vmul.f32 -1.442695, %v13039_v16  ;;  %v8153_v56 = vmul.f32 -1.442695, %v13041_v55  ;;  %v13053_v25 = vmul.f32 %v10659_v61, %v10657_v48  ;;  %v6284_v0 = vrot.slane %v13033_v50, 1 }
 0x985   :  { %10660 = vpow2.f32 %v8150_v43  ;;  %v8155_v58 = vmul.f32 -1.442695, %v13043_v20  ;;  %v6285_v15 = vrot.slane %v13035_v6, 1  ;;  %v8156_v28 = vmul.f32 -1.442695, %v13045_v34  ;;  %v14201_v43 = vld [vmem:[#allocation73_spill] sm:$0xff] }
 0x986   :  { %10662 = vpow2.f32 %v8151_v30  ;;  %6541 = vmatmul.mubr.f32.vlgmr.msra.gmra.mrb[26].mxu0 %v13053_v25  ;;  %6612 = vmatmul.mubr.f32.vlgmr.msra.gmra.mrb[26].mxu1 %v13053_v25  ;;  %v6286_v61 = vrot.slane %v13039_v16, 1  ;;  %v8157_v30 = vmul.f32 -1.442695, %v13049_v45  ;;  %v6287_v23 = vrot.slane %v13041_v55, 1 }
 0x987   :  { %10664 = vpow2.f32 %v8152_v10  ;;  %9495 = vmatpush1.bf16.msra.mxu0 %v14200_v11  ;;  %9527 = vmatpush1.bf16.msra.mxu1 %v14201_v43  ;;  %v6288_v4 = vrot.slane %v13037_v24, 1  ;;  %v8158_v32 = vmul.f32 -1.442695, %v6284_v0  ;;  %v8159_v49 = vmul.f32 -1.442695, %v6285_v15  ;;  %v14205_v10 = vld [vmem:[#allocation77_spill] sm:$0xff] }
 0x988   :  { %10666 = vpow2.f32 %v8153_v56  ;;  %9497 = vmatprep.subr.bf16.mxu0 %v14202_v19  ;;  %9529 = vmatprep.subr.bf16.mxu1 %v14203_v41  ;;  %v8160_v48 = vmul.f32 -1.442695, %v6286_v61  ;;  %v8161_v56 = vmul.f32 -1.442695, %v6287_v23  ;;  %v14206_v19 = vld [vmem:[#allocation78_spill] sm:$0xff]  ;;  %v14208_v43 = vld [vmem:[#allocation80_spill] sm:$0xff] }
 0x989   :  { %10668 = vpow2.f32 %v8154_v62  ;;  %6740 = vmatprep.mubr.f32.mxu0 %v13711_v21  ;;  %6811 = vmatprep.mubr.f32.mxu1 %v13711_v21  ;;  %v14207_v62 = vld [vmem:[#allocation79_spill] sm:$0xff]  ;;  %v8162_v0 = vmul.f32 -1.442695, %v6288_v4  ;;  %v14210_v61 = vld [vmem:[#allocation82_spill] sm:$0xff]  ;;  %v6353_v47 = vrot.slane %v13043_v20, 2  ;;  %v6379_v33 = vrot.slane %v13049_v45, 3 }
 0x98a   :  { %10670 = vpow2.f32 %v8155_v58  ;;  %v14209_v58 = vld [vmem:[#allocation81_spill] sm:$0xff] }
 0x98b   :  { %10672 = vpow2.f32 %v8156_v28  ;;  %9499 = vmatpush1.bf16.msra.mxu0 %v14204_v29  ;;  %9531 = vmatpush1.bf16.msra.mxu1 %v14205_v10 }
 0x98c   :  { %10674 = vpow2.f32 %v8157_v30  ;;  %9501 = vmatprep.subr.bf16.mxu0 %v14206_v19  ;;  %9533 = vmatprep.subr.bf16.mxu1 %v14207_v62  ;;  %v14211_v30 = vld [vmem:[#allocation83_spill] sm:$0xff]  ;;  %v6289_v62 = vrot.slane %v13043_v20, 1 }
 0x98d   :  { %10676 = vpow2.f32 %v8158_v32 }
 0x98e   :  { %10678 = vpow2.f32 %v8159_v49  ;;  %v6290_v49 = vrot.slane %v13045_v34, 1 }
 0x98f   :  { %v10661_v41 = vpop.eup %10660  ;;  %10680 = vpow2.f32 %v8160_v48  ;;  %9503 = vmatpush1.bf16.msra.mxu0 %v14208_v43  ;;  %9535 = vmatpush1.bf16.msra.mxu1 %v14209_v58  ;;  %v14212_v58 = vld [vmem:[#allocation84_spill] sm:$0xff] }
 0x990   :  { %v10663_v15 = vpop.eup %10662  ;;  %v6252_v28 = vadd.f32 1.0, %v10661_v41  ;;  %10682 = vpow2.f32 %v8161_v56  ;;  %9505 = vmatprep.subr.bf16.mxu0 %v14210_v61  ;;  %9537 = vmatprep.subr.bf16.mxu1 %v14211_v30  ;;  %v14213_v41 = vld [vmem:[#allocation85_spill] sm:$0xff]  ;;  %v14214_v30 = vld [vmem:[#allocation86_spill] sm:$0xff] }
 0x991   :  { %v10665_v23 = vpop.eup %10664  ;;  %v6253_v19 = vadd.f32 1.0, %v10663_v15  ;;  %10684 = vpow2.f32 %v8162_v0  ;;  %v6291_v15 = vrot.slane %v13049_v45, 1  ;;  %v5917_v0 = vcombine.high %v13053_v25, %v13053_v25 }
 0x992   :  { %v10667_v4 = vpop.eup %10666  ;;  %v6254_v32 = vadd.f32 1.0, %v10665_v23  ;;  %10686 = vrcp.f32 %v6252_v28  ;;  %v14215_v28 = vld [vmem:[#allocation87_spill] sm:$0xff] }
 0x993   :  { %v10669_v48 = vpop.eup %10668  ;;  %v6255_v43 = vadd.f32 1.0, %v10667_v4  ;;  %10688 = vrcp.f32 %v6253_v19  ;;  %9507 = vmatpush1.bf16.msra.mxu0 %v14212_v58  ;;  %9539 = vmatpush1.bf16.msra.mxu1 %v14213_v41  ;;  %v8163_v19 = vmul.f32 -1.442695, %v6289_v62  ;;  %v5924_v4 = vrot.slane %v13053_v25, %v11612_v59 }
 0x994   :  { %v10671_v56 = vpop.eup %10670  ;;  %v6256_v61 = vadd.f32 1.0, %v10669_v48  ;;  %10690 = vrcp.f32 %v6254_v32  ;;  %9509 = vmatprep.subr.bf16.mxu0 %v14214_v30  ;;  %9541 = vmatprep.subr.bf16.mxu1 %v14215_v28  ;;  %v8164_v32 = vmul.f32 -1.442695, %v6290_v49  ;;  %v5931_v48 = vrot.slane %v5917_v0, %v11612_v59  ;;  %v14216_v28 = vld [vmem:[#allocation88_spill] sm:$0xff]  ;;  %v14218_v49 = vld [vmem:[#allocation90_spill] sm:$0xff]  ;;  %v14219_v0 = vld [vmem:[#allocation91_spill] sm:$0xff] }
 0x995   :  { %v10673_v23 = vpop.eup %10672  ;;  %v6257_v10 = vadd.f32 1.0, %v10671_v56  ;;  %10692 = vrcp.f32 %v6255_v43  ;;  %v5932_v54 = vcombine.high %v5924_v4, %v5924_v4  ;;  %v5940_v30 = vrot.slane %v5924_v4, %v11612_v59  ;;  %8146 = vst.sshfl [vmem:[#allocation15 + $0x5] sm:$0x1 pattern:$0x73625140] %v5924_v4  ;;  %v14217_v43 = vld [vmem:[#allocation89_spill] sm:$0xff] }
 0x996   :  { %v10675_v41 = vpop.eup %10674  ;;  %v6258_v58 = vadd.f32 1.0, %v10673_v23  ;;  %10694 = vrcp.f32 %v6256_v61  ;;  %v8165_v25 = vmul.f32 -1.442695, %v6291_v15  ;;  %v5933_v56 = vcombine.high %v5931_v48, %v5931_v48 }
 0x997   :  { %v10677_v29 = vpop.eup %10676  ;;  %v6259_v11 = vadd.f32 1.0, %v10675_v41  ;;  %10696 = vrcp.f32 %v6257_v10  ;;  %9511 = vmatpush1.bf16.msra.mxu0 %v14216_v28  ;;  %9543 = vmatpush1.bf16.msra.mxu1 %v14217_v43  ;;  %v5947_v61 = vrot.slane %v5931_v48, %v11612_v59  ;;  %8148 = vst.sshfl [vmem:[#allocation15 + $0x25] sm:$0x1 pattern:$0x73625140] %v5931_v48  ;;  %v5954_v23 = vrot.slane %v5932_v54, %v11612_v59 }
 0x998   :  { %v10679_v62 = vpop.eup %10678  ;;  %10698 = vrcp.f32 %v6258_v58  ;;  %9513 = vmatprep.subr.bf16.mxu0 %v14218_v49  ;;  %9545 = vmatprep.subr.bf16.mxu1 %v14219_v0  ;;  %v6324_v41 = vadd.f32 1.0, %v10677_v29  ;;  %v5962_v4 = vcombine.high %v5940_v30, %v5940_v30  ;;  %8147 = vst.sshfl [vmem:[#allocation15 + $0xd] sm:$0x1 pattern:$0x73625140] %v5932_v54  ;;  %v5961_v58 = vrot.slane %v5933_v56, %v11612_v59  ;;  %v14220_v0 = vld [vmem:[#allocation92_spill] sm:$0xff] }
 0x999   :  { %v10681_v10 = vpop.eup %10680  ;;  %10700 = vrcp.f32 %v6259_v11  ;;  %v6325_v43 = vadd.f32 1.0, %v10679_v62  ;;  %v5963_v15 = vcombine.high %v5947_v61, %v5947_v61  ;;  %8149 = vst.sshfl [vmem:[#allocation15 + $0x2d] sm:$0x1 pattern:$0x73625140] %v5933_v56  ;;  %v5964_v49 = vcombine.high %v5954_v23, %v5954_v23  ;;  %v14221_v11 = vld [vmem:[#allocation93_spill] sm:$0xff] }
 0x99a   :  { %v10683_v28 = vpop.eup %10682  ;;  %10702 = vpow2.f32 %v8163_v19  ;;  %v6326_v48 = vadd.f32 1.0, %v10681_v10  ;;  %5976 = vst [vmem:[#allocation15 + $0x15] sm:$0x1] %v5962_v4  ;;  %v5965_v30 = vcombine.high %v5961_v58, %v5961_v58  ;;  %v14222_v19 = vld [vmem:[#allocation94_spill] sm:$0xff]  ;;  %v14223_v62 = vld [vmem:[#allocation95_spill] sm:$0xff]  ;;  %v6348_v10 = vrot.slane %v13033_v50, 2 }
 0x99b   :  { %v10685_v60 = vpop.eup %10684  ;;  %10704 = vpow2.f32 %v8164_v32  ;;  %9515 = vmatpush1.bf16.msra.mxu0 %v14220_v0  ;;  %9547 = vmatpush1.bf16.msra.mxu1 %v14221_v11  ;;  %v6327_v54 = vadd.f32 1.0, %v10683_v28  ;;  %5980 = vst [vmem:[#allocation15 + $0x35] sm:$0x1] %v5963_v15  ;;  %5977 = vst [vmem:[#allocation15 + $0x1d] sm:$0x1] %v5964_v49  ;;  %v6349_v28 = vrot.slane %v13035_v6, 2 }
 0x99c   :  { %v13102_v29 = vpop.eup %10686  ;;  %10706 = vpow2.f32 %v8165_v25  ;;  %9517 = vmatprep.subr.bf16.mxu0 %v14222_v19  ;;  %9549 = vmatprep.subr.bf16.mxu1 %v14223_v62  ;;  %v6328_v32 = vadd.f32 1.0, %v10685_v60  ;;  %5981 = vst [vmem:[#allocation15 + $0x3d] sm:$0x1] %v5965_v30  ;;  %v14224_v25 = vld [vmem:[#allocation96_spill] sm:$0xff]  ;;  %v14225_v4 = vld [vmem:[#allocation97_spill] sm:$0xff]  ;;  %v6350_v60 = vrot.slane %v13039_v16, 2 }
 0x99d   :  { %v13106_v56 = vpop.eup %10688  ;;  %10708 = vrcp.f32 %v6324_v41  ;;  %v14226_v49 = vld [vmem:[#allocation98_spill] sm:$0xff]  ;;  %v6351_v15 = vrot.slane %v13041_v55, 2  ;;  %v6352_v30 = vrot.slane %v13037_v24, 2  ;;  %v6372_v11 = vrot.slane %v13033_v50, 3 }
 0x99e   :  { %v13108_v61 = vpop.eup %10690  ;;  %10710 = vrcp.f32 %v6325_v43  ;;  %v14227_v43 = vld [vmem:[#allocation99_spill] sm:$0xff]  ;;  %v14231_v62 = vld [vmem:[#allocation26_spill] sm:$0xff]  ;;  %v6375_v50 = vrot.slane %v13041_v55, 3 }
 0x99f   :  { %v13111_v23 = vpop.eup %10692  ;;  %10712 = vrcp.f32 %v6326_v48  ;;  %9519 = vmatpush1.bf16.msra.mxu0 %v14224_v25  ;;  %9551 = vmatpush1.bf16.msra.mxu1 %v14225_v4  ;;  %v14229_v25 = vld [vmem:[#allocation101_spill] sm:$0xff] }
 0x9a0   :  { %v13116_v58 = vpop.eup %10694  ;;  %10714 = vrcp.f32 %v6327_v54  ;;  %9521 = vmatprep.subr.bf16.mxu0 %v14226_v49  ;;  %9553 = vmatprep.subr.bf16.mxu1 %v14227_v43  ;;  %v14228_v54 = vld [vmem:[#allocation100_spill] sm:$0xff]  ;;  %v14230_v43 = vld [vmem:[#allocation25_spill] sm:$0xff]  ;;  %v8169_v55 = vmul.f32 -1.442695, %v6375_v50 }
 0x9a1   :  { %v13121_v41 = vpop.eup %10696  ;;  %10716 = vrcp.f32 %v6328_v32 }
 0x9a2   :  { %v13124_v48 = vpop.eup %10698  ;;  %10718 = vtanh.f32 %v6348_v10 }
 0x9a3   :  { %v13127_v4 = vpop.eup %10700  ;;  %10720 = vtanh.f32 %v6349_v28  ;;  %9523 = vmatpush1.bf16.msra.mxu0 %v14228_v54  ;;  %9555 = vmatpush1.bf16.msra.mxu1 %v14229_v25  ;;  %v6373_v28 = vrot.slane %v13035_v6, 3  ;;  %v6377_v6 = vrot.slane %v13043_v20, 3 }
 0x9a4   :  { %v10703_v49 = vpop.eup %10702  ;;  %10722 = vtanh.f32 %v6350_v60  ;;  %9557 = vmatprep.subr.bf16.mxu0 %v14230_v43  ;;  %9589 = vmatprep.subr.bf16.mxu1 %v14231_v62  ;;  %v6354_v60 = vrot.slane %v13045_v34, 2  ;;  %v6374_v43 = vrot.slane %v13039_v16, 3  ;;  %v6378_v16 = vrot.slane %v13045_v34, 3 }
 0x9a5   :  { %v10705_v32 = vpop.eup %10704  ;;  %v6329_v19 = vadd.f32 1.0, %v10703_v49  ;;  %10724 = vtanh.f32 %v6351_v15  ;;  %v6355_v49 = vrot.slane %v13049_v45, 2  ;;  %v8173_v45 = vmul.f32 -1.442695, %v6379_v33 }
 0x9a6   :  { %v10707_v0 = vpop.eup %10706  ;;  %v6330_v10 = vadd.f32 1.0, %v10705_v32  ;;  %10726 = vtanh.f32 %v6352_v30  ;;  %v6376_v32 = vrot.slane %v13037_v24, 3  ;;  %v8166_v30 = vmul.f32 -1.442695, %v6372_v11 }
 0x9a7   :  { %v10709_v54 = vpop.eup %10708  ;;  %v6331_v25 = vadd.f32 1.0, %v10707_v0  ;;  %10728 = vrcp.f32 %v6329_v19  ;;  %v8167_v0 = vmul.f32 -1.442695, %v6373_v28  ;;  %v8168_v42 = vmul.f32 -1.442695, %v6374_v43 }
 0x9a8   :  { %v10711_v62 = vpop.eup %10710  ;;  %10730 = vrcp.f32 %v6330_v10  ;;  %v6436_v24 = vmul.f32 %v10709_v54, %v12911_v37 }
 0x9a9   :  { %v10713_v15 = vpop.eup %10712  ;;  %10732 = vrcp.f32 %v6331_v25  ;;  %v8170_v25 = vmul.f32 -1.442695, %v6376_v32  ;;  %v6437_v20 = vmul.f32 %v10711_v62, %v12914_v3 }
 0x9aa   :  { %v10715_v12 = vpop.eup %10714  ;;  %10734 = vtanh.f32 %v6353_v47  ;;  %v8171_v47 = vmul.f32 -1.442695, %v6377_v6  ;;  %v6438_v43 = vmul.f32 %v10713_v15, %v12917_v8 }
 0x9ab   :  { %v10717_v19 = vpop.eup %10716  ;;  %10736 = vtanh.f32 %v6354_v60  ;;  %v8172_v60 = vmul.f32 -1.442695, %v6378_v16  ;;  %v6439_v32 = vmul.f32 %v10715_v12, %v12919_v36 }
 0x9ac   :  { %v10719_v10 = vpop.eup %10718  ;;  %10738 = vtanh.f32 %v6355_v49  ;;  %v6440_v3 = vmul.f32 %v10717_v19, %v12921_v38 }
 0x9ad   :  { %v10721_v46 = vpop.eup %10720  ;;  %10740 = vpow2.f32 %v8166_v30  ;;  %v6444_v34 = vmul.f32 %v10719_v10, %v13102_v29 }
 0x9ae   :  { %v10723_v11 = vpop.eup %10722  ;;  %10742 = vpow2.f32 %v8167_v0  ;;  %v6445_v50 = vmul.f32 %v10721_v46, %v13106_v56 }
 0x9af   :  { %v10725_v28 = vpop.eup %10724  ;;  %10744 = vpow2.f32 %v8168_v42  ;;  %v6446_v54 = vmul.f32 %v10723_v11, %v13108_v61  ;;  %v13152_v62 = vadd.f32 %v6444_v34, %v6436_v24 }
 0x9b0   :  { %v10727_v49 = vpop.eup %10726  ;;  %10746 = vpow2.f32 %v8169_v55  ;;  %v6447_v29 = vmul.f32 %v10725_v28, %v13111_v23  ;;  %v13155_v8 = vadd.f32 %v6445_v50, %v6437_v20 }
 0x9b1   :  { %v10729_v37 = vpop.eup %10728  ;;  %10748 = vpow2.f32 %v8170_v25  ;;  %v6448_v46 = vmul.f32 %v10727_v49, %v13116_v58  ;;  %v13158_v33 = vadd.f32 %v6446_v54, %v6438_v43 }
 0x9b2   :  { %v10731_v42 = vpop.eup %10730  ;;  %10750 = vpow2.f32 %v8171_v47  ;;  %v13160_v12 = vadd.f32 %v6447_v29, %v6439_v32  ;;  %v6441_v10 = vmul.f32 %v10729_v37, %v12934_v14 }
 0x9b3   :  { %v10733_v15 = vpop.eup %10732  ;;  %10752 = vpow2.f32 %v8172_v60  ;;  %v13162_v38 = vadd.f32 %v6448_v46, %v6440_v3  ;;  %v6442_v24 = vmul.f32 %v10731_v42, %v12936_v7 }
 0x9b4   :  { %v10735_v36 = vpop.eup %10734  ;;  %10754 = vpow2.f32 %v8173_v45  ;;  %v6443_v28 = vmul.f32 %v10733_v15, %v12938_v5 }
 0x9b5   :  { %v10737_v56 = vpop.eup %10736  ;;  %10756 = vtanh.f32 %v13152_v62  ;;  %v6449_v20 = vmul.f32 %v10735_v36, %v13121_v41 }
 0x9b6   :  { %v10739_v61 = vpop.eup %10738  ;;  %10758 = vtanh.f32 %v13155_v8  ;;  %v6450_v43 = vmul.f32 %v10737_v56, %v13124_v48 }
 0x9b7   :  { %v10741_v23 = vpop.eup %10740  ;;  %10760 = vtanh.f32 %v13158_v33  ;;  %v6451_v14 = vmul.f32 %v10739_v61, %v13127_v4  ;;  %v13175_v50 = vadd.f32 %v6449_v20, %v6441_v10 }
 0x9b8   :  { %v10743_v30 = vpop.eup %10742  ;;  %v6412_v6 = vadd.f32 1.0, %v10741_v23  ;;  %10762 = vtanh.f32 %v13160_v12  ;;  %v13177_v37 = vadd.f32 %v6450_v43, %v6442_v24 }
 0x9b9   :  { %v10745_v58 = vpop.eup %10744  ;;  %v6413_v0 = vadd.f32 1.0, %v10743_v30  ;;  %10764 = vtanh.f32 %v13162_v38  ;;  %v13179_v5 = vadd.f32 %v6451_v14, %v6443_v28 }
 0x9ba   :  { %v10747_v19 = vpop.eup %10746  ;;  %v6414_v16 = vadd.f32 1.0, %v10745_v58  ;;  %10766 = vrcp.f32 %v6412_v6 }
 0x9bb   :  { %v10749_v55 = vpop.eup %10748  ;;  %v6415_v25 = vadd.f32 1.0, %v10747_v19  ;;  %10768 = vrcp.f32 %v6413_v0 }
 0x9bc   :  { %v10751_v11 = vpop.eup %10750  ;;  %v6416_v47 = vadd.f32 1.0, %v10749_v55  ;;  %10770 = vrcp.f32 %v6414_v16 }
 0x9bd   :  { %v10753_v60 = vpop.eup %10752  ;;  %v6417_v34 = vadd.f32 1.0, %v10751_v11  ;;  %10772 = vrcp.f32 %v6415_v25 }
 0x9be   :  { %v10755_v49 = vpop.eup %10754  ;;  %v6418_v45 = vadd.f32 1.0, %v10753_v60  ;;  %10774 = vrcp.f32 %v6416_v47 }
 0x9bf   :  { %v10757_v7 = vpop.eup %10756  ;;  %v6419_v32 = vadd.f32 1.0, %v10755_v49  ;;  %10776 = vrcp.f32 %v6417_v34 }
 0x9c0   :  { %v10759_v41 = vpop.eup %10758  ;;  %10778 = vrcp.f32 %v6418_v45 }
 0x9c1   :  { %v10761_v54 = vpop.eup %10760  ;;  %10780 = vrcp.f32 %v6419_v32 }
 0x9c2   :  { %v10763_v3 = vpop.eup %10762  ;;  %10782 = vtanh.f32 %v13175_v50 }
 0x9c3   :  { %v10765_v48 = vpop.eup %10764  ;;  %10784 = vtanh.f32 %v13177_v37 }
 0x9c4   :  { %v10767_v4 = vpop.eup %10766  ;;  %10786 = vtanh.f32 %v13179_v5 }
 0x9c5   :  { %v10769_v42 = vpop.eup %10768  ;;  %v6468_v29 = vmul.f32 %v10767_v4, %v10757_v7  ;;  %v14254_v4 = vld [vmem:[#allocation49_spill] sm:$0xff] }
 0x9c6   :  { %v10771_v15 = vpop.eup %10770  ;;  %v6469_v46 = vmul.f32 %v10769_v42, %v10759_v41  ;;  %v14255_v42 = vld [vmem:[#allocation50_spill] sm:$0xff] }
 0x9c7   :  { %v10773_v36 = vpop.eup %10772  ;;  %v6470_v56 = vmul.f32 %v10771_v15, %v10761_v54  ;;  %v14251_v54 = vld [vmem:[#allocation46_spill] sm:$0xff]  ;;  %v14257_v15 = vld [vmem:[#allocation52_spill] sm:$0xff] }
 0x9c8   :  { %v10775_v61 = vpop.eup %10774  ;;  %v6471_v23 = vmul.f32 %v10773_v36, %v10763_v3  ;;  %v6626_v30 = vcombine.low %v6468_v29, %v6469_v46  ;;  %v14252_v3 = vld [vmem:[#allocation47_spill] sm:$0xff]  ;;  %v14258_v46 = vld [vmem:[#allocation53_spill] sm:$0xff]  ;;  %v14259_v36 = vld [vmem:[#allocation54_spill] sm:$0xff] }
 0x9c9   :  { %v10777_v6 = vpop.eup %10776  ;;  %v6472_v16 = vmul.f32 %v10775_v61, %v10765_v48  ;;  %v14253_v48 = vld [vmem:[#allocation48_spill] sm:$0xff]  ;;  %v14256_v29 = vld [vmem:[#allocation51_spill] sm:$0xff] }
 0x9ca   :  { %v10779_v58 = vpop.eup %10778  ;;  %v6627_v0 = vcombine.low %v6470_v56, %v6471_v23  ;;  %v6636_v55 = vrot.slane %v6626_v30, %v11612_v59  ;;  %v14260_v56 = vld [vmem:[#allocation55_spill] sm:$0xff]  ;;  %v14261_v61 = vld [vmem:[#allocation56_spill] sm:$0xff]  ;;  %v14262_v23 = vld [vmem:[#allocation57_spill] sm:$0xff] }
 0x9cb   :  { %v10781_v19 = vpop.eup %10780  ;;  %v14263_v30 = vld [vmem:[#allocation58_spill] sm:$0xff] }
 0x9cc   :  { %v10783_v10 = vpop.eup %10782  ;;  %v6643_v25 = vrot.slane %v6627_v0, %v11612_v59  ;;  %v14266_v0 = vld [vmem:[#allocation61_spill] sm:$0xff] }
 0x9cd   :  { %v10785_v24 = vpop.eup %10784  ;;  %v6473_v11 = vmul.f32 %v10783_v10, %v10777_v6  ;;  %v14264_v6 = vld [vmem:[#allocation59_spill] sm:$0xff]  ;;  %v14269_v10 = vld [vmem:[#allocation64_spill] sm:$0xff] }
 0x9ce   :  { %v10787_v47 = vpop.eup %10786  ;;  %v6474_v20 = vmul.f32 %v10785_v24, %v10779_v58  ;;  %v6658_v28 = vcombine.low %v6636_v55, %v6643_v25  ;;  %v14265_v58 = vld [vmem:[#allocation60_spill] sm:$0xff]  ;;  %v14270_v55 = vld [vmem:[#allocation65_spill] sm:$0xff]  ;;  %v14271_v25 = vld [vmem:[#allocation66_spill] sm:$0xff] }
 0x9cf   :  { %v6475_v60 = vmul.f32 %v10787_v47, %v10781_v19  ;;  %v6628_v34 = vcombine.low %v6472_v16, %v6473_v11  ;;  %v14267_v19 = vld [vmem:[#allocation62_spill] sm:$0xff]  ;;  %v14268_v16 = vld [vmem:[#allocation63_spill] sm:$0xff]  ;;  %v14273_v11 = vld [vmem:[#allocation68_spill] sm:$0xff] }
 0x9d0   :  { %v6666_v7 = vrot.slane %v6658_v28, %v11612_v59  ;;  %v14272_v24 = vld [vmem:[#allocation67_spill] sm:$0xff]  ;;  %v14274_v47 = vld [vmem:[#allocation69_spill] sm:$0xff] }
 0x9d1   :  { %v6629_v43 = vcombine.low %v6474_v20, %v6475_v60  ;;  %v6650_v49 = vrot.slane %v6628_v34, %v11612_v59  ;;  %v14275_v20 = vld [vmem:[#allocation70_spill] sm:$0xff]  ;;  %v14276_v28 = vld [vmem:[#allocation71_spill] sm:$0xff] }
 0x9d3   :  { %v6657_v45 = vrot.slane %v6629_v43, %v11612_v59  ;;  %v14277_v43 = vld [vmem:[#allocation102_spill] sm:$0xff] }
 0x9d5   :  { %v6659_v14 = vcombine.low %v6650_v49, %v6657_v45 }
 0x9d7   :  { %v6673_v32 = vrot.slane %v6659_v14, %v11612_v59 }
 0x9d9   :  { %v6674_v41 = vcombine.low %v6666_v7, %v6673_v32  ;;  %v14278_v7 = vld [vmem:[#allocation103_spill] sm:$0xff] }
 0x9db   :  { %6741 = vmatmul.mubr.f32.vlgmr.msra.gmra.mrb[26].mxu0 %v6674_v41  ;;  %6812 = vmatmul.mubr.f32.vlgmr.msra.gmra.mrb[26].mxu1 %v6674_v41 }
 0x9dc   :  { %9559 = vmatpush1.bf16.msra.mxu0 %v11319_v9  ;;  %9591 = vmatpush1.bf16.msra.mxu1 %v11322_v13  ;;  %v14232_v9 = vld [vmem:[#allocation27_spill] sm:$0xff]  ;;  %v14233_v13 = vld [vmem:[#allocation28_spill] sm:$0xff] }
 0x9dd   :  { %9561 = vmatprep.subr.bf16.mxu0 %v11326_v17  ;;  %9593 = vmatprep.subr.bf16.mxu1 %v11328_v18  ;;  %v14234_v17 = vld [vmem:[#allocation29_spill] sm:$0xff]  ;;  %v14235_v18 = vld [vmem:[#allocation30_spill] sm:$0xff] }
 0x9de   :  { %6992 = vmatprep.mubr.f32.mxu0 %v13711_v21  ;;  %7063 = vmatprep.mubr.f32.mxu1 %v13711_v21 }
 0x9e0   :  { %9563 = vmatpush1.bf16.msra.mxu0 %v11331_v22  ;;  %9595 = vmatpush1.bf16.msra.mxu1 %v11335_v26  ;;  %v14236_v22 = vld [vmem:[#allocation31_spill] sm:$0xff]  ;;  %v14237_v26 = vld [vmem:[#allocation32_spill] sm:$0xff] }
 0x9e1   :  { %9565 = vmatprep.subr.bf16.mxu0 %v11337_v27  ;;  %9597 = vmatprep.subr.bf16.mxu1 %v11339_v31  ;;  %v14238_v27 = vld [vmem:[#allocation33_spill] sm:$0xff]  ;;  %v14239_v31 = vld [vmem:[#allocation34_spill] sm:$0xff] }
 0x9e4   :  { %9567 = vmatpush1.bf16.msra.mxu0 %v11342_v35  ;;  %9599 = vmatpush1.bf16.msra.mxu1 %v11346_v39  ;;  %v14240_v35 = vld [vmem:[#allocation35_spill] sm:$0xff]  ;;  %v14241_v39 = vld [vmem:[#allocation36_spill] sm:$0xff] }
 0x9e5   :  { %9569 = vmatprep.subr.bf16.mxu0 %v11348_v40  ;;  %9601 = vmatprep.subr.bf16.mxu1 %v11351_v44  ;;  %v14242_v40 = vld [vmem:[#allocation37_spill] sm:$0xff]  ;;  %v14243_v44 = vld [vmem:[#allocation38_spill] sm:$0xff] }
 0x9e8   :  { %9571 = vmatpush1.bf16.msra.mxu0 %v11354_v51  ;;  %9603 = vmatpush1.bf16.msra.mxu1 %v11358_v52  ;;  %v14244_v51 = vld [vmem:[#allocation39_spill] sm:$0xff]  ;;  %v14245_v52 = vld [vmem:[#allocation40_spill] sm:$0xff] }
 0x9e9   :  { %9573 = vmatprep.subr.bf16.mxu0 %v11360_v53  ;;  %9605 = vmatprep.subr.bf16.mxu1 %v11363_v57  ;;  %v14246_v53 = vld [vmem:[#allocation41_spill] sm:$0xff]  ;;  %v14247_v57 = vld [vmem:[#allocation42_spill] sm:$0xff] }
 0x9ec   :  { %9575 = vmatpush1.bf16.msra.mxu0 %v11366_v63  ;;  %9607 = vmatpush1.bf16.msra.mxu1 %v11370_v1  ;;  %v14248_v63 = vld [vmem:[#allocation43_spill] sm:$0xff]  ;;  %v14249_v1 = vld [vmem:[#allocation44_spill] sm:$0xff] }
 0x9ed   :  { %9577 = vmatprep.subr.bf16.mxu0 %v11372_v2  ;;  %9609 = vmatprep.subr.bf16.mxu1 %v14232_v9  ;;  %v14250_v2 = vld [vmem:[#allocation45_spill] sm:$0xff] }
 0x9f0   :  { %9579 = vmatpush1.bf16.msra.mxu0 %v14233_v13  ;;  %9611 = vmatpush1.bf16.msra.mxu1 %v14234_v17  ;;  %v14279_v13 = vld [vmem:[#allocation104_spill] sm:$0xff] }
 0x9f1   :  { %9581 = vmatprep.subr.bf16.mxu0 %v14235_v18  ;;  %9613 = vmatprep.subr.bf16.mxu1 %v14236_v22  ;;  %v14280_v22 = vld [vmem:[#allocation105_spill] sm:$0xff] }
 0x9f4   :  { %9583 = vmatpush1.bf16.msra.mxu0 %v14237_v26  ;;  %9615 = vmatpush1.bf16.msra.mxu1 %v14238_v27 }
 0x9f5   :  { %9585 = vmatprep.subr.bf16.mxu0 %v14239_v31  ;;  %9617 = vmatprep.subr.bf16.mxu1 %v14240_v35 }
 0x9f8   :  { %9587 = vmatpush1.bf16.msra.mxu0 %v14241_v39  ;;  %9619 = vmatpush1.bf16.msra.mxu1 %v14242_v40 }
 0x9f9   :  { %9621 = vmatprep.subr.bf16.mxu0 %v14243_v44  ;;  %9653 = vmatprep.subr.bf16.mxu1 %v14244_v51 }
 0x9fb   :  { %6993 = vmatmul.mubr.f32.vlgmr.msra.gmra.mrb[28].mxu0 %v6674_v41  ;;  %7064 = vmatmul.mubr.f32.vlgmr.msra.gmra.mrb[28].mxu1 %v6674_v41 }
 0x9fc   :  { %9623 = vmatpush1.bf16.msra.mxu0 %v14245_v52  ;;  %9655 = vmatpush1.bf16.msra.mxu1 %v14246_v53 }
 0x9fd   :  { %9625 = vmatprep.subr.bf16.mxu0 %v14247_v57  ;;  %9657 = vmatprep.subr.bf16.mxu1 %v14248_v63  ;;  %v14281_v63 = vld [vmem:[#allocation106_spill] sm:$0xff] }
 0x9fe   :  { %7470 = vmatprep.mubr.f32.mxu0 %v13711_v21  ;;  %7541 = vmatprep.mubr.f32.mxu1 %v13711_v21 }
 0xa00   :  { %9627 = vmatpush1.bf16.msra.mxu0 %v14249_v1  ;;  %9659 = vmatpush1.bf16.msra.mxu1 %v14250_v2 }
 0xa01   :  { %9629 = vmatprep.subr.bf16.mxu0 %v14251_v54  ;;  %9661 = vmatprep.subr.bf16.mxu1 %v14252_v3 }
 0xa04   :  { %9631 = vmatpush1.bf16.msra.mxu0 %v14253_v48  ;;  %9663 = vmatpush1.bf16.msra.mxu1 %v14254_v4 }
 0xa05   :  { %9633 = vmatprep.subr.bf16.mxu0 %v14255_v42  ;;  %9665 = vmatprep.subr.bf16.mxu1 %v14256_v29 }
 0xa08   :  { %9635 = vmatpush1.bf16.msra.mxu0 %v14257_v15  ;;  %9667 = vmatpush1.bf16.msra.mxu1 %v14258_v46 }
 0xa09   :  { %9637 = vmatprep.subr.bf16.mxu0 %v14259_v36  ;;  %9669 = vmatprep.subr.bf16.mxu1 %v14260_v56 }
 0xa0c   :  { %9639 = vmatpush1.bf16.msra.mxu0 %v14261_v61  ;;  %9671 = vmatpush1.bf16.msra.mxu1 %v14262_v23 }
 0xa0d   :  { %9641 = vmatprep.subr.bf16.mxu0 %v14263_v30  ;;  %9673 = vmatprep.subr.bf16.mxu1 %v14264_v6 }
 0xa10   :  { %9643 = vmatpush1.bf16.msra.mxu0 %v14265_v58  ;;  %9675 = vmatpush1.bf16.msra.mxu1 %v14266_v0 }
 0xa11   :  { %9645 = vmatprep.subr.bf16.mxu0 %v14267_v19  ;;  %9677 = vmatprep.subr.bf16.mxu1 %v14268_v16  ;;  %v6913_v19 = vld [vmem:[#allocation4 + $0x7] ss:$8 sm:$0xf] }
 0xa12   :  { %v6915_v16 = vld [vmem:[#allocation4 + $0x27] ss:$8 sm:$0xf] }
 0xa14   :  { %9647 = vmatpush1.bf16.msra.mxu0 %v14269_v10  ;;  %9679 = vmatpush1.bf16.msra.mxu1 %v14270_v55  ;;  %v6917_v10 = vld [vmem:[#allocation4 + $0x47] ss:$8 sm:$0xf] }
 0xa15   :  { %9649 = vmatprep.subr.bf16.mxu0 %v14271_v25  ;;  %9681 = vmatprep.subr.bf16.mxu1 %v14272_v24  ;;  %v6921_v55 = vld [vmem:[#allocation4 + $0x87] ss:$8 sm:$0xf] }
 0xa18   :  { %9651 = vmatpush1.bf16.msra.mxu0 %v14273_v11  ;;  %9683 = vmatpush1.bf16.msra.mxu1 %v14274_v47 }
 0xa19   :  { %9685 = vmatprep.subr.bf16.mxu0 %v14275_v20  ;;  %9717 = vmatprep.subr.bf16.mxu1 %v14276_v28  ;;  %v6919_v20 = vld [vmem:[#allocation4 + $0x67] ss:$8 sm:$0xf] }
 0xa1a   :  { %v6923_v28 = vld [vmem:[#allocation4 + $0xa7] ss:$8 sm:$0xf] }
 0xaae   :  { %v6742_v60 = vpop.f32.mrb[26].mxu0  ;;  %v6813_v34 = vpop.f32.mrb[26].mxu1 }
 0xaaf   :  { %v6818_v49 = vadd.f32 %v6742_v60, %v14277_v43  ;;  %v6744_v45 = vpop.f32.mrb[27].mxu0  ;;  %v6815_v14 = vpop.f32.mrb[27].mxu1  ;;  %v6820_v26 = vadd.f32 %v6813_v34, %v14280_v22  ;;  %v6925_v60 = vld [vmem:[#allocation4 + $0xc7] ss:$8 sm:$0xf] }
 0xab0   :  { %v6819_v32 = vadd.f32 %v6744_v45, %v14278_v7  ;;  %v6821_v17 = vadd.f32 %v6815_v14, %v14279_v13 }
 0xab1   :  { %v8174_v41 = vmul.f32 -1.442695, %v6818_v49 }
 0xab2   :  { %v8175_v9 = vmul.f32 -1.442695, %v6819_v32  ;;  %v8176_v18 = vmul.f32 -1.442695, %v6821_v17 }
 0xab3   :  { %10788 = vpow2.f32 %v8174_v41  ;;  %v6927_v41 = vld [vmem:[#allocation4 + $0xe7] ss:$8 sm:$0xf] }
 0xab4   :  { %10790 = vpow2.f32 %v8175_v9 }
 0xab5   :  { %10792 = vpow2.f32 %v8176_v18 }
 0xab6   :  { %10794 = vtanh.f32 %v6820_v26 }
 0xabd   :  { %v10789_v27 = vpop.eup %10788 }
 0xabe   :  { %v10791_v31 = vpop.eup %10790  ;;  %v6825_v35 = vadd.f32 1.0, %v10789_v27 }
 0xabf   :  { %v6831_v39 = vadd.f32 1.0, %v10791_v31  ;;  %v10793_v40 = vpop.eup %10792 }
 0xac0   :  { %10796 = vrcp.f32 %v6825_v35  ;;  %v10795_v44 = vpop.eup %10794  ;;  %v6838_v57 = vadd.f32 1.0, %v10793_v40 }
 0xac1   :  { %10798 = vrcp.f32 %v6831_v39 }
 0xac2   :  { %10800 = vrcp.f32 %v6838_v57 }
 0xaca   :  { %v10797_v51 = vpop.eup %10796 }
 0xacb   :  { %v10799_v52 = vpop.eup %10798  ;;  %v6842_v53 = vmul.f32 %v10797_v51, %v10795_v44 }
 0xacc   :  { %v6841_v1 = vmul.f32 %v10799_v52, %v14281_v63  ;;  %v10801_v32 = vpop.eup %10800 }
 0xace   :  { %v13263_v2 = vadd.f32 %v6842_v53, %v6841_v1  ;;  %v6994_v54 = vpop.f32.mrb[28].mxu0  ;;  %v7065_v3 = vpop.f32.mrb[28].mxu1 }
 0xacf   :  { %v6996_v48 = vpop.f32.mrb[29].mxu0  ;;  %v7067_v4 = vpop.f32.mrb[29].mxu1 }
 0xad0   :  { %v7074_v42 = vcombine.low %v6994_v54, %v6996_v48  ;;  %v7075_v29 = vcombine.high %v6994_v54, %v6996_v48  ;;  %v7076_v15 = vcombine.low %v7065_v3, %v7067_v4  ;;  %v7077_v46 = vcombine.high %v7065_v3, %v7067_v4 }
 0xad1   :  { %10802 = vtanh.f32 %v13263_v2 }
 0xad2   :  { %v7084_v36 = vrot.slane %v7074_v42, %v11612_v59  ;;  %v7091_v56 = vrot.slane %v7075_v29, %v11612_v59  ;;  %v7098_v61 = vrot.slane %v7076_v15, %v11612_v59  ;;  %v7105_v23 = vrot.slane %v7077_v46, %v11612_v59  ;;  %v14282_v42 = vld [vmem:[#allocation72_spill] sm:$0xff]  ;;  %v14283_v29 = vld [vmem:[#allocation73_spill] sm:$0xff] }
 0xad4   :  { %v7106_v30 = vcombine.low %v7084_v36, %v7098_v61  ;;  %v7107_v6 = vcombine.high %v7084_v36, %v7098_v61  ;;  %v7108_v58 = vcombine.low %v7091_v56, %v7105_v23  ;;  %v7109_v0 = vcombine.high %v7091_v56, %v7105_v23  ;;  %v14284_v36 = vld [vmem:[#allocation74_spill] sm:$0xff]  ;;  %v14285_v56 = vld [vmem:[#allocation75_spill] sm:$0xff] }
 0xad6   :  { %v7116_v25 = vrot.slane %v7106_v30, %v11612_v59  ;;  %v7123_v24 = vrot.slane %v7108_v58, %v11612_v59  ;;  %v7130_v11 = vrot.slane %v7107_v6, %v11612_v59  ;;  %v7137_v47 = vrot.slane %v7109_v0, %v11612_v59  ;;  %v14286_v58 = vld [vmem:[#allocation76_spill] sm:$0xff]  ;;  %v14287_v0 = vld [vmem:[#allocation77_spill] sm:$0xff] }
 0xad8   :  { %v7138_v34 = vcombine.high %v7116_v25, %v7116_v25  ;;  %v7139_v49 = vcombine.high %v7123_v24, %v7123_v24  ;;  %v7140_v45 = vcombine.high %v7130_v11, %v7130_v11  ;;  %v7141_v14 = vcombine.high %v7137_v47, %v7137_v47 }
 0xad9   :  { %v13274_v9 = vadd.f32 %v7116_v25, %v6913_v19  ;;  %v13276_v17 = vadd.f32 %v7130_v11, %v6915_v16  ;;  %v13278_v18 = vadd.f32 %v7123_v24, %v6921_v55  ;;  %v13284_v31 = vadd.f32 %v7137_v47, %v6923_v28  ;;  %v14288_v16 = vld [vmem:[#allocation78_spill] sm:$0xff]  ;;  %v14291_v24 = vld [vmem:[#allocation81_spill] sm:$0xff]  ;;  %v14293_v28 = vld [vmem:[#allocation83_spill] sm:$0xff] }
 0xada   :  { %v13280_v26 = vadd.f32 %v7138_v34, %v6917_v10  ;;  %v13282_v27 = vadd.f32 %v7140_v45, %v6919_v20  ;;  %v13286_v39 = vadd.f32 %v7139_v49, %v6925_v60  ;;  %v13290_v51 = vadd.f32 %v7141_v14, %v6927_v41  ;;  %v14289_v10 = vld [vmem:[#allocation79_spill] sm:$0xff]  ;;  %v14292_v20 = vld [vmem:[#allocation82_spill] sm:$0xff] }
 0xadb   :  { %v10803_v35 = vpop.eup %10802  ;;  %v8181_v40 = vmul.f32 -1.442695, %v13274_v9  ;;  %v8182_v44 = vmul.f32 -1.442695, %v13276_v17  ;;  %v8185_v63 = vmul.f32 -1.442695, %v13278_v18 }
 0xadc   :  { %v8183_v52 = vmul.f32 -1.442695, %v13280_v26  ;;  %v8184_v53 = vmul.f32 -1.442695, %v13282_v27  ;;  %v13294_v57 = vmul.f32 %v10803_v35, %v10801_v32  ;;  %v7214_v1 = vrot.slane %v13274_v9, 1 }
 0xadd   :  { %10804 = vpow2.f32 %v8181_v40  ;;  %v8186_v54 = vmul.f32 -1.442695, %v13284_v31  ;;  %v7215_v3 = vrot.slane %v13276_v17, 1  ;;  %v8187_v48 = vmul.f32 -1.442695, %v13286_v39  ;;  %v14294_v40 = vld [vmem:[#allocation84_spill] sm:$0xff] }
 0xade   :  { %10806 = vpow2.f32 %v8182_v44  ;;  %7471 = vmatmul.mubr.f32.vlgmr.msra.gmra.mrb[30].mxu0 %v13294_v57  ;;  %7542 = vmatmul.mubr.f32.vlgmr.msra.gmra.mrb[30].mxu1 %v13294_v57  ;;  %v7216_v4 = vrot.slane %v13280_v26, 1  ;;  %v8188_v15 = vmul.f32 -1.442695, %v13290_v51  ;;  %v7217_v46 = vrot.slane %v13282_v27, 1  ;;  %v14295_v44 = vld [vmem:[#allocation85_spill] sm:$0xff] }
 0xadf   :  { %10808 = vpow2.f32 %v8183_v52  ;;  %9687 = vmatpush1.bf16.msra.mxu0 %v14282_v42  ;;  %9719 = vmatpush1.bf16.msra.mxu1 %v14283_v29  ;;  %v7218_v61 = vrot.slane %v13278_v18, 1  ;;  %v8189_v23 = vmul.f32 -1.442695, %v7214_v1  ;;  %v8190_v30 = vmul.f32 -1.442695, %v7215_v3  ;;  %v14297_v3 = vld [vmem:[#allocation87_spill] sm:$0xff] }
 0xae0   :  { %10810 = vpow2.f32 %v8184_v53  ;;  %9689 = vmatprep.subr.bf16.mxu0 %v14284_v36  ;;  %9721 = vmatprep.subr.bf16.mxu1 %v14285_v56  ;;  %v8191_v6 = vmul.f32 -1.442695, %v7216_v4  ;;  %v8192_v19 = vmul.f32 -1.442695, %v7217_v46  ;;  %v7219_v49 = vrot.slane %v13284_v31, 1 }
 0xae1   :  { %10812 = vpow2.f32 %v8185_v63  ;;  %7670 = vmatprep.mubr.f32.mxu0 %v13711_v21  ;;  %7741 = vmatprep.mubr.f32.mxu1 %v13711_v21  ;;  %v8193_v55 = vmul.f32 -1.442695, %v7218_v61  ;;  %v14290_v21 = vld [vmem:[#allocation80_spill] sm:$0xff]  ;;  %v7220_v32 = vrot.slane %v13286_v39, 1  ;;  %v7221_v63 = vrot.slane %v13290_v51, 1 }
 0xae2   :  { %10814 = vpow2.f32 %v8186_v54  ;;  %v6847_v1 = vcombine.high %v13294_v57, %v13294_v57  ;;  %v14296_v54 = vld [vmem:[#allocation86_spill] sm:$0xff]  ;;  %v8194_v42 = vmul.f32 -1.442695, %v7219_v49  ;;  %v6854_v29 = vrot.slane %v13294_v57, %v11612_v59 }
 0xae3   :  { %10816 = vpow2.f32 %v8187_v48  ;;  %9691 = vmatpush1.bf16.msra.mxu0 %v14286_v58  ;;  %9723 = vmatpush1.bf16.msra.mxu1 %v14287_v0  ;;  %v8195_v36 = vmul.f32 -1.442695, %v7220_v32  ;;  %v14298_v58 = vld [vmem:[#allocation88_spill] sm:$0xff]  ;;  %v14299_v0 = vld [vmem:[#allocation89_spill] sm:$0xff]  ;;  %v8196_v57 = vmul.f32 -1.442695, %v7221_v63 }
 0xae4   :  { %10818 = vpow2.f32 %v8188_v15  ;;  %9693 = vmatprep.subr.bf16.mxu0 %v14288_v16  ;;  %9725 = vmatprep.subr.bf16.mxu1 %v14289_v10  ;;  %v6861_v56 = vrot.slane %v6847_v1, %v11612_v59  ;;  %8177 = vst.sshfl [vmem:[#allocation15 + $0x6] sm:$0x1 pattern:$0x73625140] %v6854_v29  ;;  %v14302_v32 = vld [vmem:[#allocation92_spill] sm:$0xff] }
 0xae5   :  { %10820 = vpow2.f32 %v8189_v23 }
 0xae6   :  { %10822 = vpow2.f32 %v8190_v30  ;;  %v6862_v30 = vcombine.high %v6854_v29, %v6854_v29  ;;  %v6863_v16 = vcombine.high %v6861_v56, %v6861_v56  ;;  %v6877_v10 = vrot.slane %v6861_v56, %v11612_v59  ;;  %8179 = vst.sshfl [vmem:[#allocation15 + $0x26] sm:$0x1 pattern:$0x73625140] %v6861_v56  ;;  %v14309_v56 = vld [vmem:[#allocation99_spill] sm:$0xff] }
 0xae7   :  { %v10805_v25 = vpop.eup %10804  ;;  %10824 = vpow2.f32 %v8191_v6  ;;  %9695 = vmatpush1.bf16.msra.mxu0 %v14290_v21  ;;  %9727 = vmatpush1.bf16.msra.mxu1 %v14291_v24  ;;  %v6870_v6 = vrot.slane %v6854_v29, %v11612_v59  ;;  %v14307_v29 = vld [vmem:[#allocation97_spill] sm:$0xff] }
 0xae8   :  { %v10807_v11 = vpop.eup %10806  ;;  %v7182_v47 = vadd.f32 1.0, %v10805_v25  ;;  %10826 = vpow2.f32 %v8192_v19  ;;  %9697 = vmatprep.subr.bf16.mxu0 %v14292_v20  ;;  %9729 = vmatprep.subr.bf16.mxu1 %v14293_v28  ;;  %v14301_v25 = vld [vmem:[#allocation91_spill] sm:$0xff]  ;;  %8178 = vst.sshfl [vmem:[#allocation15 + $0xe] sm:$0x1 pattern:$0x73625140] %v6862_v30 }
 0xae9   :  { %v10809_v60 = vpop.eup %10808  ;;  %v7183_v34 = vadd.f32 1.0, %v10807_v11  ;;  %10828 = vpow2.f32 %v8193_v55  ;;  %v14300_v55 = vld [vmem:[#allocation90_spill] sm:$0xff]  ;;  %v6884_v11 = vrot.slane %v6862_v30, %v11612_v59  ;;  %8180 = vst.sshfl [vmem:[#allocation15 + $0x2e] sm:$0x1 pattern:$0x73625140] %v6863_v16 }
 0xaea   :  { %v10811_v45 = vpop.eup %10810  ;;  %v7184_v14 = vadd.f32 1.0, %v10809_v60  ;;  %10830 = vrcp.f32 %v7182_v47  ;;  %v6892_v47 = vcombine.high %v6870_v6, %v6870_v6  ;;  %v6891_v60 = vrot.slane %v6863_v16, %v11612_v59 }
 0xaeb   :  { %v10813_v41 = vpop.eup %10812  ;;  %v7185_v35 = vadd.f32 1.0, %v10811_v45  ;;  %10832 = vrcp.f32 %v7183_v34  ;;  %9699 = vmatpush1.bf16.msra.mxu0 %v14294_v40  ;;  %9731 = vmatpush1.bf16.msra.mxu1 %v14295_v44  ;;  %v6893_v34 = vcombine.high %v6877_v10, %v6877_v10  ;;  %v7282_v6 = vrot.slane %v13278_v18, 2 }
 0xaec   :  { %v10815_v52 = vpop.eup %10814  ;;  %v7186_v53 = vadd.f32 1.0, %v10813_v41  ;;  %10834 = vrcp.f32 %v7184_v14  ;;  %9701 = vmatprep.subr.bf16.mxu0 %v14296_v54  ;;  %9733 = vmatprep.subr.bf16.mxu1 %v14297_v3  ;;  %v6894_v14 = vcombine.high %v6884_v11, %v6884_v11  ;;  %6906 = vst [vmem:[#allocation15 + $0x16] sm:$0x1] %v6892_v47  ;;  %v14303_v41 = vld [vmem:[#allocation93_spill] sm:$0xff]  ;;  %v6895_v44 = vcombine.high %v6891_v60, %v6891_v60 }
 0xaed   :  { %v10817_v48 = vpop.eup %10816  ;;  %v7187_v4 = vadd.f32 1.0, %v10815_v52  ;;  %10836 = vrcp.f32 %v7185_v35  ;;  %6910 = vst [vmem:[#allocation15 + $0x36] sm:$0x1] %v6893_v34  ;;  %v14304_v52 = vld [vmem:[#allocation94_spill] sm:$0xff]  ;;  %v7278_v3 = vrot.slane %v13274_v9, 2  ;;  %v7303_v11 = vrot.slane %v13276_v17, 3 }
 0xaee   :  { %v10819_v15 = vpop.eup %10818  ;;  %v7188_v46 = vadd.f32 1.0, %v10817_v48  ;;  %10838 = vrcp.f32 %v7186_v53  ;;  %v14305_v53 = vld [vmem:[#allocation95_spill] sm:$0xff]  ;;  %6907 = vst [vmem:[#allocation15 + $0x1e] sm:$0x1] %v6894_v14  ;;  %6911 = vst [vmem:[#allocation15 + $0x3e] sm:$0x1] %v6895_v44 }
 0xaef   :  { %v10821_v61 = vpop.eup %10820  ;;  %v7189_v23 = vadd.f32 1.0, %v10819_v15  ;;  %10840 = vrcp.f32 %v7187_v4  ;;  %9703 = vmatpush1.bf16.msra.mxu0 %v14298_v58  ;;  %9735 = vmatpush1.bf16.msra.mxu1 %v14299_v0  ;;  %v7279_v4 = vrot.slane %v13276_v17, 2  ;;  %v14310_v0 = vld [vmem:[#allocation100_spill] sm:$0xff]  ;;  %v7304_v60 = vrot.slane %v13280_v26, 3 }
 0xaf0   :  { %v10823_v19 = vpop.eup %10822  ;;  %10842 = vrcp.f32 %v7188_v46  ;;  %9705 = vmatprep.subr.bf16.mxu0 %v14300_v55  ;;  %9737 = vmatprep.subr.bf16.mxu1 %v14301_v25  ;;  %v7254_v24 = vadd.f32 1.0, %v10821_v61  ;;  %v7280_v46 = vrot.slane %v13280_v26, 2  ;;  %v7302_v55 = vrot.slane %v13274_v9, 3 }
 0xaf1   :  { %v10825_v21 = vpop.eup %10824  ;;  %10844 = vrcp.f32 %v7189_v23  ;;  %v7255_v28 = vadd.f32 1.0, %v10823_v19  ;;  %v7281_v23 = vrot.slane %v13282_v27, 2  ;;  %v14311_v19 = vld [vmem:[#allocation101_spill] sm:$0xff]  ;;  %v7305_v9 = vrot.slane %v13282_v27, 3 }
 0xaf2   :  { %v10827_v20 = vpop.eup %10826  ;;  %10846 = vpow2.f32 %v8194_v42  ;;  %v7256_v45 = vadd.f32 1.0, %v10825_v21  ;;  %v14306_v42 = vld [vmem:[#allocation96_spill] sm:$0xff]  ;;  %v7306_v14 = vrot.slane %v13278_v18, 3  ;;  %v7307_v17 = vrot.slane %v13284_v31, 3 }
 0xaf3   :  { %v10829_v49 = vpop.eup %10828  ;;  %10848 = vpow2.f32 %v8195_v36  ;;  %9707 = vmatpush1.bf16.msra.mxu0 %v14302_v32  ;;  %9739 = vmatpush1.bf16.msra.mxu1 %v14303_v41  ;;  %v7257_v40 = vadd.f32 1.0, %v10827_v20  ;;  %v14308_v36 = vld [vmem:[#allocation98_spill] sm:$0xff]  ;;  %v8197_v32 = vmul.f32 -1.442695, %v7302_v55  ;;  %v7308_v26 = vrot.slane %v13286_v39, 3 }
 0xaf4   :  { %v13343_v35 = vpop.eup %10830  ;;  %10850 = vpow2.f32 %v8196_v57  ;;  %9709 = vmatprep.subr.bf16.mxu0 %v14304_v52  ;;  %9741 = vmatprep.subr.bf16.mxu1 %v14305_v53  ;;  %v7258_v1 = vadd.f32 1.0, %v10829_v49  ;;  %v7285_v49 = vrot.slane %v13290_v51, 2  ;;  %v8199_v52 = vmul.f32 -1.442695, %v7304_v60 }
 0xaf5   :  { %v13347_v63 = vpop.eup %10832  ;;  %10852 = vrcp.f32 %v7254_v24  ;;  %v7283_v24 = vrot.slane %v13284_v31, 2  ;;  %v7309_v27 = vrot.slane %v13290_v51, 3  ;;  %v8203_v51 = vmul.f32 -1.442695, %v7308_v26 }
 0xaf6   :  { %v13349_v54 = vpop.eup %10834  ;;  %10854 = vrcp.f32 %v7255_v28  ;;  %v7284_v28 = vrot.slane %v13286_v39, 2  ;;  %v8202_v39 = vmul.f32 -1.442695, %v7307_v17 }
 0xaf7   :  { %v13352_v48 = vpop.eup %10836  ;;  %10856 = vrcp.f32 %v7256_v45  ;;  %9711 = vmatpush1.bf16.msra.mxu0 %v14306_v42  ;;  %9743 = vmatpush1.bf16.msra.mxu1 %v14307_v29  ;;  %v8201_v42 = vmul.f32 -1.442695, %v7306_v14 }
 0xaf8   :  { %v13357_v15 = vpop.eup %10838  ;;  %10858 = vrcp.f32 %v7257_v40  ;;  %9713 = vmatprep.subr.bf16.mxu0 %v14308_v36  ;;  %9745 = vmatprep.subr.bf16.mxu1 %v14309_v56  ;;  %v8198_v40 = vmul.f32 -1.442695, %v7303_v11 }
 0xaf9   :  { %v13362_v61 = vpop.eup %10840  ;;  %10860 = vrcp.f32 %v7258_v1 }
 0xafa   :  { %v13365_v30 = vpop.eup %10842  ;;  %10862 = vtanh.f32 %v7278_v3  ;;  %v8200_v3 = vmul.f32 -1.442695, %v7305_v9 }
 0xafb   :  { %v13368_v58 = vpop.eup %10844  ;;  %10864 = vtanh.f32 %v7279_v4  ;;  %9715 = vmatpush1.bf16.msra.mxu0 %v14310_v0  ;;  %9747 = vmatpush1.bf16.msra.mxu1 %v14311_v19  ;;  %v8204_v0 = vmul.f32 -1.442695, %v7309_v27 }
 0xafc   :  { %v10847_v57 = vpop.eup %10846  ;;  %10866 = vtanh.f32 %v7280_v46 }
 0xafd   :  { %v10849_v16 = vpop.eup %10848  ;;  %v7259_v10 = vadd.f32 1.0, %v10847_v57  ;;  %10868 = vtanh.f32 %v7281_v23 }
 0xafe   :  { %v10851_v25 = vpop.eup %10850  ;;  %v7260_v21 = vadd.f32 1.0, %v10849_v16  ;;  %10870 = vtanh.f32 %v7282_v6 }
 0xaff   :  { %v10853_v47 = vpop.eup %10852  ;;  %v7261_v20 = vadd.f32 1.0, %v10851_v25  ;;  %10872 = vrcp.f32 %v7259_v10 }
 0xb00   :  { %v10855_v34 = vpop.eup %10854  ;;  %10874 = vrcp.f32 %v7260_v21  ;;  %v7366_v53 = vmul.f32 %v10853_v47, %v13152_v62 }
 0xb01   :  { %v10857_v45 = vpop.eup %10856  ;;  %10876 = vrcp.f32 %v7261_v20  ;;  %v7367_v18 = vmul.f32 %v10855_v34, %v13155_v8 }
 0xb02   :  { %v10859_v41 = vpop.eup %10858  ;;  %10878 = vtanh.f32 %v7283_v24  ;;  %v7368_v29 = vmul.f32 %v10857_v45, %v13158_v33 }
 0xb03   :  { %v10861_v44 = vpop.eup %10860  ;;  %10880 = vtanh.f32 %v7284_v28  ;;  %v7369_v62 = vmul.f32 %v10859_v41, %v13160_v12 }
 0xb04   :  { %v10863_v1 = vpop.eup %10862  ;;  %10882 = vtanh.f32 %v7285_v49  ;;  %v7370_v57 = vmul.f32 %v10861_v44, %v13162_v38 }
 0xb05   :  { %v10865_v4 = vpop.eup %10864  ;;  %10884 = vpow2.f32 %v8197_v32  ;;  %v7374_v31 = vmul.f32 %v10863_v1, %v13343_v35 }
 0xb06   :  { %v10867_v46 = vpop.eup %10866  ;;  %10886 = vpow2.f32 %v8198_v40  ;;  %v7375_v36 = vmul.f32 %v10865_v4, %v13347_v63 }
 0xb07   :  { %v10869_v56 = vpop.eup %10868  ;;  %10888 = vpow2.f32 %v8199_v52  ;;  %v7376_v23 = vmul.f32 %v10867_v46, %v13349_v54  ;;  %v7382_v8 = vadd.f32 %v7374_v31, %v7366_v53 }
 0xb08   :  { %v10871_v6 = vpop.eup %10870  ;;  %10890 = vpow2.f32 %v8200_v3  ;;  %v7377_v35 = vmul.f32 %v10869_v56, %v13352_v48  ;;  %v7383_v19 = vadd.f32 %v7375_v36, %v7367_v18 }
 0xb09   :  { %v10873_v33 = vpop.eup %10872  ;;  %10892 = vpow2.f32 %v8201_v42  ;;  %v7384_v16 = vadd.f32 %v7376_v23, %v7368_v29  ;;  %v7378_v54 = vmul.f32 %v10871_v6, %v13357_v15 }
 0xb0a   :  { %v10875_v63 = vpop.eup %10874  ;;  %10894 = vpow2.f32 %v8202_v39  ;;  %v7385_v12 = vadd.f32 %v7377_v35, %v7369_v62  ;;  %v7851_v10 = vcombine.low %v7382_v8, %v7383_v19  ;;  %v7371_v25 = vmul.f32 %v10873_v33, %v13175_v50 }
 0xb0b   :  { %v10877_v55 = vpop.eup %10876  ;;  %10896 = vpow2.f32 %v8203_v51  ;;  %v7372_v48 = vmul.f32 %v10875_v63, %v13177_v37  ;;  %v7386_v20 = vadd.f32 %v7378_v54, %v7370_v57 }
 0xb0c   :  { %v10879_v21 = vpop.eup %10878  ;;  %10898 = vpow2.f32 %v8204_v0  ;;  %v7852_v24 = vcombine.low %v7384_v16, %v7385_v12  ;;  %v7373_v38 = vmul.f32 %v10877_v55, %v13179_v5  ;;  %v7861_v15 = vrot.slane %v7851_v10, %v11612_v59 }
 0xb0d   :  { %v10881_v11 = vpop.eup %10880  ;;  %v7379_v47 = vmul.f32 %v10879_v21, %v13362_v61  ;;  %10900 = vtanh.f32 %v7382_v8 }
 0xb0e   :  { %v10883_v28 = vpop.eup %10882  ;;  %v7380_v60 = vmul.f32 %v10881_v11, %v13365_v30  ;;  %10902 = vtanh.f32 %v7383_v19  ;;  %v7868_v50 = vrot.slane %v7852_v24, %v11612_v59 }
 0xb0f   :  { %v10885_v34 = vpop.eup %10884  ;;  %v7381_v49 = vmul.f32 %v10883_v28, %v13368_v58  ;;  %v7387_v37 = vadd.f32 %v7379_v47, %v7371_v25  ;;  %10904 = vtanh.f32 %v7384_v16 }
 0xb10   :  { %v10887_v9 = vpop.eup %10886  ;;  %v7342_v45 = vadd.f32 1.0, %v10885_v34  ;;  %v7388_v61 = vadd.f32 %v7380_v60, %v7372_v48  ;;  %10906 = vtanh.f32 %v7385_v12  ;;  %v7883_v5 = vcombine.low %v7861_v15, %v7868_v50 }
 0xb11   :  { %v10889_v14 = vpop.eup %10888  ;;  %v7343_v32 = vadd.f32 1.0, %v10887_v9  ;;  %v7389_v41 = vadd.f32 %v7381_v49, %v7373_v38  ;;  %10908 = vtanh.f32 %v7386_v20  ;;  %v7853_v30 = vcombine.low %v7386_v20, %v7387_v37 }
 0xb12   :  { %v10891_v17 = vpop.eup %10890  ;;  %v7344_v40 = vadd.f32 1.0, %v10889_v14  ;;  %10910 = vrcp.f32 %v7342_v45  ;;  %v7891_v39 = vrot.slane %v7883_v5, %v11612_v59 }
 0xb13   :  { %v10893_v44 = vpop.eup %10892  ;;  %v7345_v26 = vadd.f32 1.0, %v10891_v17  ;;  %10912 = vrcp.f32 %v7343_v32  ;;  %v7854_v52 = vcombine.low %v7388_v61, %v7389_v41  ;;  %v7875_v3 = vrot.slane %v7853_v30, %v11612_v59 }
 0xb14   :  { %v10895_v58 = vpop.eup %10894  ;;  %v7346_v53 = vadd.f32 1.0, %v10893_v44  ;;  %10914 = vrcp.f32 %v7344_v40 }
 0xb15   :  { %v10897_v1 = vpop.eup %10896  ;;  %v7347_v27 = vadd.f32 1.0, %v10895_v58  ;;  %10916 = vrcp.f32 %v7345_v26  ;;  %v7882_v18 = vrot.slane %v7854_v52, %v11612_v59 }
 0xb16   :  { %v10899_v4 = vpop.eup %10898  ;;  %v7348_v42 = vadd.f32 1.0, %v10897_v1  ;;  %10918 = vrcp.f32 %v7346_v53 }
 0xb17   :  { %v10901_v31 = vpop.eup %10900  ;;  %v7349_v29 = vadd.f32 1.0, %v10899_v4  ;;  %10920 = vrcp.f32 %v7347_v27  ;;  %v7884_v46 = vcombine.low %v7875_v3, %v7882_v18 }
 0xb18   :  { %v10903_v36 = vpop.eup %10902  ;;  %10922 = vrcp.f32 %v7348_v42 }
 0xb19   :  { %v10905_v62 = vpop.eup %10904  ;;  %10924 = vrcp.f32 %v7349_v29  ;;  %v7898_v56 = vrot.slane %v7884_v46, %v11612_v59 }
 0xb1a   :  { %v10907_v51 = vpop.eup %10906  ;;  %10926 = vtanh.f32 %v7387_v37 }
 0xb1b   :  { %v10909_v23 = vpop.eup %10908  ;;  %10928 = vtanh.f32 %v7388_v61  ;;  %v7899_v8 = vcombine.low %v7891_v39, %v7898_v56 }
 0xb1c   :  { %v10911_v6 = vpop.eup %10910  ;;  %10930 = vtanh.f32 %v7389_v41 }
 0xb1d   :  { %v10913_v0 = vpop.eup %10912  ;;  %v7398_v35 = vmul.f32 %v10911_v6, %v10901_v31  ;;  %7910 = vst [vmem:[#allocation18] sm:$0xff] %v7899_v8 }
 0xb1e   :  { %v10915_v19 = vpop.eup %10914  ;;  %v7399_v33 = vmul.f32 %v10913_v0, %v10903_v36 }
 0xb1f   :  { %v10917_v57 = vpop.eup %10916  ;;  %v7400_v16 = vmul.f32 %v10915_v19, %v10905_v62 }
 0xb20   :  { %v10919_v63 = vpop.eup %10918  ;;  %v7401_v12 = vmul.f32 %v10917_v57, %v10907_v51  ;;  %v7556_v10 = vcombine.low %v7398_v35, %v7399_v33 }
 0xb21   :  { %v10921_v55 = vpop.eup %10920  ;;  %v7402_v48 = vmul.f32 %v10919_v63, %v10909_v23 }
 0xb22   :  { %v10923_v54 = vpop.eup %10922  ;;  %v7557_v25 = vcombine.low %v7400_v16, %v7401_v12  ;;  %v7566_v11 = vrot.slane %v7556_v10, %v11612_v59 }
 0xb23   :  { %v10925_v21 = vpop.eup %10924 }
 0xb24   :  { %v10927_v24 = vpop.eup %10926  ;;  %v7573_v47 = vrot.slane %v7557_v25, %v11612_v59 }
 0xb25   :  { %v10929_v38 = vpop.eup %10928  ;;  %v7403_v20 = vmul.f32 %v10927_v24, %v10921_v55 }
 0xb26   :  { %v10931_v28 = vpop.eup %10930  ;;  %v7404_v60 = vmul.f32 %v10929_v38, %v10923_v54  ;;  %v7588_v15 = vcombine.low %v7566_v11, %v7573_v47 }
 0xb27   :  { %v7405_v50 = vmul.f32 %v10931_v28, %v10925_v21  ;;  %v7558_v34 = vcombine.low %v7402_v48, %v7403_v20 }
 0xb28   :  { %v7596_v61 = vrot.slane %v7588_v15, %v11612_v59 }
 0xb29   :  { %v7559_v49 = vcombine.low %v7404_v60, %v7405_v50  ;;  %v7580_v37 = vrot.slane %v7558_v34, %v11612_v59 }
 0xb2b   :  { %v7587_v9 = vrot.slane %v7559_v49, %v11612_v59 }
 0xb2d   :  { %v7589_v45 = vcombine.low %v7580_v37, %v7587_v9 }
 0xb2f   :  { %v7603_v5 = vrot.slane %v7589_v45, %v11612_v59 }
 0xb31   :  { %v7604_v14 = vcombine.low %v7596_v61, %v7603_v5 }
 0xb33   :  { %7671 = vmatmul.mubr.f32.vlgmr.msra.gmra.mrb[30].mxu0 %v7604_v14  ;;  %7907 = vst [vmem:[#allocation16] sm:$0xff] %v7604_v14  ;;  %7742 = vmatmul.mubr.f32.vlgmr.msra.gmra.mrb[30].mxu1 %v7604_v14 }
 0xc06   :  { %v7672_v32 = vpop.f32.mrb[30].mxu0  ;;  %v7743_v41 = vpop.f32.mrb[30].mxu1 }
 0xc07   :  { %v7748_v30 = vadd.f32 %v7672_v32, %v14277_v43  ;;  %v7674_v17 = vpop.f32.mrb[31].mxu0  ;;  %v7745_v40 = vpop.f32.mrb[31].mxu1  ;;  %v7750_v1 = vadd.f32 %v7743_v41, %v14280_v22 }
 0xc08   :  { %v7749_v44 = vadd.f32 %v7674_v17, %v14278_v7  ;;  %v7751_v58 = vadd.f32 %v7745_v40, %v14279_v13 }
 0xc09   :  { %v8205_v26 = vmul.f32 -1.442695, %v7748_v30 }
 0xc0a   :  { %v8206_v52 = vmul.f32 -1.442695, %v7749_v44  ;;  %v8207_v53 = vmul.f32 -1.442695, %v7751_v58 }
 0xc0b   :  { %10932 = vpow2.f32 %v8205_v26 }
 0xc0c   :  { %10934 = vpow2.f32 %v8206_v52 }
 0xc0d   :  { %10936 = vpow2.f32 %v8207_v53 }
 0xc0e   :  { %10938 = vtanh.f32 %v7750_v1 }
 0xc15   :  { %v10933_v27 = vpop.eup %10932 }
 0xc16   :  { %v10935_v3 = vpop.eup %10934  ;;  %v7755_v18 = vadd.f32 1.0, %v10933_v27 }
 0xc17   :  { %v7761_v4 = vadd.f32 1.0, %v10935_v3  ;;  %v10937_v43 = vpop.eup %10936 }
 0xc18   :  { %10940 = vrcp.f32 %v7755_v18  ;;  %v10939_v42 = vpop.eup %10938  ;;  %v7768_v46 = vadd.f32 1.0, %v10937_v43 }
 0xc19   :  { %10942 = vrcp.f32 %v7761_v4 }
 0xc1a   :  { %10944 = vrcp.f32 %v7768_v46 }
 0xc22   :  { %v10941_v7 = vpop.eup %10940 }
 0xc23   :  { %v10943_v31 = vpop.eup %10942  ;;  %v7772_v29 = vmul.f32 %v10941_v7, %v10939_v42 }
 0xc24   :  { %v7771_v39 = vmul.f32 %v10943_v31, %v13263_v2  ;;  %v10945_v22 = vpop.eup %10944 }
 0xc26   :  { %v7773_v13 = vadd.f32 %v7772_v29, %v7771_v39 }
 0xc28   :  { %7912 = vst [vmem:[#allocation18 + $0x8] sm:$0xff] %v7773_v13  ;;  %10946 = vtanh.f32 %v7773_v13 }
 0xc32   :  { %v10947_v36 = vpop.eup %10946 }
 0xc33   :  { %v7775_v62 = vmul.f32 %v10947_v36, %v10945_v22 }
 0xc35   :  { %v7777_v56 = vcombine.high %v7775_v62, %v7775_v62  ;;  %v7784_v51 = vrot.slane %v7775_v62, %v11612_v59  ;;  %7909 = vst [vmem:[#allocation16 + $0x8] sm:$0xff] %v7775_v62 }
 0xc36   :  { %11091 = shalt.err (!%p11088_p10)
}
 0xc37   :  { %s11092_s24 = scalar_lea.hbm %s13482_s8, 256 }
 0xc38   :  { %p11093_p11 = scmp.ne.s32.totalorder %s13482_s8, %s11092_s24  ;;  %p11096_p12 = scmp.lt.u32.totalorder %s11092_s24, %s13482_s8 }
 0xc3a   :  { %p11098_p13 = pnand %p11096_p12, %p11093_p11 }
 0xc3c   :  { %11101 = shalt.err (!%p11098_p13)
}
 0xc3d   :  { %7936 = dma.vmem_to_hbm [thread:$0]  %s7931_s14, 256, %s13482_s8, [#allocation17], %s11159_s19, %s11159_s19, %s11160_s20   ;;  %v7791_v2 = vrot.slane %v7777_v56, %v11612_v59  ;;  %v7792_v23 = vcombine.high %v7784_v51, %v7784_v51  ;;  %v7800_v8 = vrot.slane %v7784_v51, %v11612_v59  ;;  %8208 = vst.sshfl [vmem:[#allocation15 + $0x7] sm:$0x1 pattern:$0x73625140] %v7784_v51 }
 0xc3e   :  { %s11102_s15 = scalar_lea.vmem %s13416_s25, 256  ;;  %p11107_p1 = scmp.lt.s32.totalorder %s13416_s25, %s13416_s25 }
 0xc3f   :  { %p11103_p0 = scmp.ne.s32.totalorder %s13416_s25, %s11102_s15  ;;  %p11108_p2 = scmp.lt.s32.totalorder %s11102_s15, %s11102_s15 }
 0xc41   :  { %p11109_p3 = por %p11108_p2, %p11107_p1 }
 0xc43   :  { %p11110_p4 = pnand %p11109_p3, %p11103_p0 }
 0xc45   :  { %11113 = shalt.err (!%p11110_p4)
}
 0xc46   :  { %s11114_s18 = scalar_lea.hbm %s13483_s9, 256 }
 0xc47   :  { %p11115_p5 = scmp.ne.s32.totalorder %s13483_s9, %s11114_s18  ;;  %p11118_p6 = scmp.lt.u32.totalorder %s11114_s18, %s13483_s9 }
 0xc49   :  { %p11120_p7 = pnand %p11118_p6, %p11115_p5 }
 0xc4b   :  { %11123 = shalt.err (!%p11120_p7)
}
 0xc4c   :  { %7948 = dma.vmem_to_hbm [thread:$0]  %s13416_s25, 256, %s13483_s9, [#allocation17], %s11159_s19, %s11159_s19, %s11160_s20   ;;  %v7793_v6 = vcombine.high %v7791_v2, %v7791_v2  ;;  %v7807_v0 = vrot.slane %v7791_v2, %v11612_v59  ;;  %v7814_v35 = vrot.slane %v7792_v23, %v11612_v59  ;;  %v7822_v19 = vcombine.high %v7800_v8, %v7800_v8  ;;  %8209 = vst.sshfl [vmem:[#allocation15 + $0xf] sm:$0x1 pattern:$0x73625140] %v7792_v23 }
 0xc4d   :  { %8210 = vst.sshfl [vmem:[#allocation15 + $0x27] sm:$0x1 pattern:$0x73625140] %v7791_v2  ;;  %s11172_s12 = smov [#allocation15]  }
 0xc4e   :  { %s7918_s5 = sshll.u32 %s11172_s12, 4  ;;  %v7821_v33 = vrot.slane %v7793_v6, %v11612_v59  ;;  %v7823_v57 = vcombine.high %v7807_v0, %v7807_v0  ;;  %v7824_v16 = vcombine.high %v7814_v35, %v7814_v35  ;;  %7836 = vst [vmem:[#allocation15 + $0x17] sm:$0x1] %v7822_v19  ;;  %s7919_s5 = int_to_ptr.vmem [resolvable:$true] %s7918_s5 }
 0xc4f   :  { %8211 = vst.sshfl [vmem:[#allocation15 + $0x2f] sm:$0x1 pattern:$0x73625140] %v7793_v6  ;;  %s11124_s9 = scalar_lea.vmem %s7919_s5, 1024  ;;  %p11129_p9 = scmp.lt.s32.totalorder %s7919_s5, %s7919_s5 }
 0xc50   :  { %v7825_v63 = vcombine.high %v7821_v33, %v7821_v33  ;;  %7837 = vst [vmem:[#allocation15 + $0x1f] sm:$0x1] %v7824_v16  ;;  %7840 = vst [vmem:[#allocation15 + $0x37] sm:$0x1] %v7823_v57  ;;  %p11125_p8 = scmp.ne.s32.totalorder %s7919_s5, %s11124_s9  ;;  %p11130_p10 = scmp.lt.s32.totalorder %s11124_s9, %s11124_s9 }
 0xc52   :  { %7841 = vst [vmem:[#allocation15 + $0x3f] sm:$0x1] %v7825_v63  ;;  %p11131_p11 = por %p11130_p10, %p11129_p9 }
 0xc54   :  { %p11132_p12 = pnand %p11131_p11, %p11125_p8 }
 0xc56   :  { %11135 = shalt.err (!%p11132_p12)
}
 0xc57   :  { %s11136_s14 = scalar_lea.hbm %s13481_s7, 1024 }
 0xc58   :  { %p11137_p13 = scmp.ne.s32.totalorder %s13481_s7, %s11136_s14  ;;  %p11140_p0 = scmp.lt.u32.totalorder %s11136_s14, %s13481_s7 }
 0xc5a   :  { %p11142_p1 = pnand %p11140_p0, %p11137_p13 }
 0xc5c   :  { %11145 = shalt.err (!%p11142_p1)
}
 0xc5d   :  { %7924 = dma.vmem_to_hbm [thread:$0]  %s7919_s5, 1024, %s13481_s7, [#allocation6], %s11159_s19, %s11159_s19, %s11160_s20  }
 0xc5e   :  { %11154 = dma.done.wait [#allocation6], 1024  }
 0xc5f   :  { %11155 = vsyncadd [#allocation6], 4294966272 }
 0xc60   :  { %11156 = dma.done.wait [#allocation17], 512  }
 0xc61   :  { %11157 = vsyncadd [#allocation17], 4294966784 }
 0xc62   :  { %7958 = vsyncpa [#allocation5], 1 }
 0xc63   :  { %7959 = vsyncpa [#allocation8], 1 }
 0xc64   :  { %7960 = vsyncpa [#allocation11], 1 }
 0xc65   :  { %7961 = vsyncpa [#allocation14], 1 }
 0xc66   :  { %7962 = vsyncpa [#allocation6], 1 }
 0xc67   :  { %7963 = vsyncpa [#allocation17], 1 }

</bundles_post_ra>
